<compile_context>
chip_gen: v5e
topology: v5e:2x2
jax: 0.10.0
libtpu: 0.0.40
codegen_flags: <defaults>
</compile_context>

<pallas_src>
import functools

import jax
import jax.numpy as jnp
from jax.experimental import pallas as pl
from jax.experimental.pallas import tpu as pltpu

EPS = 1e-5


# ----------------------------------------------------------------------------
# Fused kernel: one grid step == `BT` batch images, channels-first (C, BT*H*W)
# ----------------------------------------------------------------------------
def cbam_kernel(x_ref,
                dw1_w_ref, dw1_sb_ref, dw2_w_ref, dw2_sb_ref,
                w1_ref, sb1_ref, w2_ref, sb2_ref,
                wse1_ref, wse2_ref,
                w3a_ref, sb3a_ref, w3b_ref, b3b_ref,
                wsa_ref,
                coef_ref,
                out_ref,
                *, C, H, W, BT):
    f32 = jnp.float32
    HW = H * W
    N = BT * HW                                   # lanes per grid step

    x_cf = x_ref[0]                               # (C, N) channels-first view
    coefs = coef_ref[...]                         # (1, 8)
    alpha, beta, gamma = coefs[:, 0:1], coefs[:, 1:2], coefs[:, 2:3]
    inv_temp, sa_bias = coefs[:, 3:4], coefs[:, 4:5]

    # ---- image-local pixel / column indices (masks handle zero padding and
    #      keep folded images from bleeding into each other under roll) ------
    n_i = jax.lax.broadcasted_iota(jnp.int32, (1, N), 1)
    if HW & (HW - 1) == 0:                        # power-of-two image size
        p_i = jnp.bitwise_and(n_i, HW - 1)
    else:
        nf = n_i.astype(f32)
        p_i = (nf - HW * jnp.floor(nf / HW)).astype(jnp.int32)
    if W & (W - 1) == 0:
        w_i = jnp.bitwise_and(p_i, W - 1)
    else:
        pf = p_i.astype(f32)
        w_i = (pf - W * jnp.floor(pf / W)).astype(jnp.int32)

    def hvalid(d):                                # bool (1,N): 0 <= h+d < H
        return (p_i >= (-d) * W) & (p_i < (H - d) * W)

    def wvalid(d):                                # bool (1,N): 0 <= w+d < W
        return (w_i >= -d) & (w_i < W - d)

    def lane_roll(v, s):
        """v[:, i] <- v[:, (i+s) mod N]; circular, pair with a validity mask."""
        if s % N == 0:
            return v
        return pltpu.roll(v, shift=(-s) % N, axis=1)

    # fused per-tap masks for every 3x3 conv (row t = (dy+1)*3 + (dx+1))
    m3 = jnp.concatenate(
        [(hvalid(t // 3 - 1) & wvalid(t % 3 - 1)).astype(f32) for t in range(9)],
        axis=0)                                                       # (9, N)

    def tap3(v, t):
        dy, dx = t // 3 - 1, t % 3 - 1
        if dy == 0 and dx == 0:
            return v
        return lane_roll(v, dy * W + dx) * m3[t:t + 1, :]

    # ---- color_enhance: 2 x (depthwise 3x3 conv + folded BN + ReLU) --------
    def depthwise3x3(v, w_ref_, sb_ref_):
        w = w_ref_[...]                            # (C, 9)
        sb = sb_ref_[...]                          # (C, 2): [scale | shift]
        acc = v * w[:, 4:5]                        # center tap: no roll/mask
        for t in range(9):
            if t == 4:
                continue
            acc = acc + tap3(v, t) * w[:, t:t + 1]
        return jnp.maximum(acc * sb[:, 0:1] + sb[:, 1:2], 0.0)

    ce = depthwise3x3(x_cf, dw1_w_ref, dw1_sb_ref)
    ce = depthwise3x3(ce, dw2_w_ref, dw2_sb_ref)                      # (C, N)

    # ---- fused 1x1 trunk on ce: [color_conv1 | hsv1 | color_transform1] ----
    sb1 = sb1_ref[...]
    h1 = jnp.dot(w1_ref[...], ce, preferred_element_type=f32)         # (28, N)
    h1 = jnp.maximum(h1 * sb1[:, 0:1] + sb1[:, 1:2], 0.0)
    sb2 = sb2_ref[...]
    h2 = jnp.dot(w2_ref[...], h1, preferred_element_type=f32)         # (2C+3, N)
    h2 = h2 * sb2[:, 0:1] + sb2[:, 1:2]
    color_feat = h2[0:C, :]                        # BN'd, no ReLU
    hsv_feat = h2[C:2 * C, :]                      # bias only
    cmap3 = h2[2 * C:2 * C + 3, :]                 # (3, N) ColorAttention map

    # ---- ChannelAttention: per-image global pools -> shared SE -> sigmoid --
    wse1 = wse1_ref[...]
    wse2 = wse2_ref[...]

    def se_att(pooled):                            # pooled: (C, 4)
        se_h = jnp.maximum(jnp.dot(wse1, pooled, preferred_element_type=f32), 0.0)
        se_o = jnp.dot(wse2, se_h, preferred_element_type=f32)        # (C, 4)
        return jax.nn.sigmoid(jnp.sum(se_o, axis=1, keepdims=True)) * inv_temp

    if BT == 1:
        pooled = jnp.concatenate(
            [jnp.max(ce, axis=1, keepdims=True),
             jnp.mean(ce, axis=1, keepdims=True),
             jnp.max(color_feat, axis=1, keepdims=True),
             jnp.max(hsv_feat, axis=1, keepdims=True)], axis=1)       # (C, 4)
        ca_out = x_cf * se_att(pooled)                                # (C, N)
    else:
        ca_map = jnp.zeros((C, N), f32)
        for b in range(BT):                        # per-image pooling via masks
            imgb = (n_i >= b * HW) & (n_i < (b + 1) * HW)             # (1, N)
            imgf = imgb.astype(f32)
            mmax = lambda v: jnp.max(jnp.where(imgb, v, -jnp.inf),
                                     axis=1, keepdims=True)
            mavg = lambda v: jnp.sum(v * imgf, axis=1, keepdims=True) * (1.0 / HW)
            pooled = jnp.concatenate(
                [mmax(ce), mavg(ce), mmax(color_feat), mmax(hsv_feat)], axis=1)
            ca_map = ca_map + se_att(pooled) * imgf
        ca_out = x_cf * ca_map                                        # (C, N)

    # ---- fused 3x3 branches: SpatialAttention.color_spatial on ca_out[:3]
    #      and ColorAttention.color_feature on cmap3 -> one im2col + one dot -
    src6 = jnp.concatenate([ca_out[0:3, :], cmap3], axis=0)           # (6, N)
    col54 = jnp.concatenate([tap3(src6, t) for t in range(9)], axis=0)  # (54, N)
    sb3a = sb3a_ref[...]
    y3 = jnp.dot(w3a_ref[...], col54, preferred_element_type=f32)     # (32, N)
    y3 = jnp.maximum(y3 * sb3a[:, 0:1] + sb3a[:, 1:2], 0.0)
    y2 = jnp.dot(w3b_ref[...], y3, preferred_element_type=f32) + b3b_ref[...]
    cs = y2[0:1, :]                                # color_spatial output (no act.)
    color_map = jax.nn.sigmoid(y2[1:2, :])         # ColorAttention output (1, N)

    # ---- SpatialAttention: 9x9 conv over [max_c, mean_c, mean_c, cs] -------
    mean_c = jnp.mean(ca_out, axis=0, keepdims=True)
    sacat = jnp.concatenate(
        [jnp.max(ca_out, axis=0, keepdims=True), mean_c, mean_c, cs], axis=0)  # (4,N)

    hm9 = jnp.concatenate([hvalid(d - 4).astype(f32) for d in range(9)], axis=0)
    wm9 = jnp.concatenate([wvalid(d - 4).astype(f32) for d in range(9)], axis=0)
    wsa = wsa_ref[...]                                                # (9, 36)
    sa_logit = jnp.zeros((1, N), f32)
    for dyi in range(9):                           # per-kernel-row MXU im2col
        dy = dyi - 4
        hrow = lane_roll(sacat, dy * W)
        if dy != 0:
            hrow = hrow * hm9[dyi:dyi + 1, :]
        cols = []
        for dxi in range(9):
            dx = dxi - 4
            tap = lane_roll(hrow, dx)
            if dx != 0:
                tap = tap * wm9[dxi:dxi + 1, :]
            cols.append(tap)
        mat = jnp.concatenate(cols, axis=0)                           # (36, N)
        sa_logit = sa_logit + jnp.dot(wsa[dyi:dyi + 1, :], mat,
                                      preferred_element_type=f32)
    sa_map = jax.nn.sigmoid(sa_logit + sa_bias) * inv_temp            # (1, N)
    sa_out = ca_out * sa_map                                          # (C, N)

    # ---- final fusion --------------------------------------------------------
    out = alpha * sa_out + beta * ce + gamma * (sa_out * color_map) + x_cf
    out_ref[...] = out.reshape(1, C, N).astype(out_ref.dtype)


# ----------------------------------------------------------------------------
# Wrapper
# ----------------------------------------------------------------------------
def cbam_forward(x_nchw, kp, *, batch_tile=None):
    B, C, H, W = x_nchw.shape
    assert C > 3 and C % 4 == 0, "CBAMBlock needs C > 3 and C % 4 == 0"
    # note: keep C a multiple of 8 so the h2 row slices stay sublane-aligned.
    HW = H * W

    if batch_tile is None:
        batch_tile = 1
        for bt in (8, 4, 2):                       # fold images into the lane axis
            if B % bt == 0 and bt * HW <= 4096:
                batch_tile = bt
                break
    bt = batch_tile
    assert B % bt == 0
    G = B // bt
    Nl = bt * HW

    if bt == 1:
        x_in = x_nchw.reshape(B, C, HW)
    else:  # interleave bt images into the lane axis: lane = b_local*HW + pixel
        x_in = (x_nchw.reshape(G, bt, C, HW)
                .transpose(0, 2, 1, 3)
                .reshape(G, C, Nl))

    arrays = [
        x_in,
        kp["dw1_w"], kp["dw1_sb"], kp["dw2_w"], kp["dw2_sb"],
        kp["w1"], kp["sb1"], kp["w2"], kp["sb2"],
        kp["wse1"], kp["wse2"],
        kp["w3a"], kp["sb3a"], kp["w3b"], kp["b3b"],
        kp["wsa"],
        kp["coefs"],
    ]

    def _wspec(shape):                             # full-array, constant block index
        nd = len(shape)
        return pl.BlockSpec(shape, lambda g, _nd=nd: (0,) * _nd)

    in_specs = [pl.BlockSpec((1, C, Nl), lambda g: (g, 0, 0))]
    in_specs += [_wspec(a.shape) for a in arrays[1:]]

    out = pl.pallas_call(
        functools.partial(cbam_kernel, C=C, H=H, W=W, BT=bt),
        grid=(G,),
        in_specs=in_specs,
        out_specs=pl.BlockSpec((1, C, Nl), lambda g: (g, 0, 0)),
        out_shape=jax.ShapeDtypeStruct((G, C, Nl), jnp.float32),
        compiler_params=pltpu.CompilerParams(
            dimension_semantics=("parallel",)),
    )(*arrays)

    if bt == 1:
        return out.reshape(B, C, H, W)
    return (out.reshape(G, C, bt, HW)
            .transpose(0, 2, 1, 3)
            .reshape(B, C, H, W))


# ----------------------------------------------------------------------------
# Parameters (deterministic, synthetic, PyTorch layouts) + packing
# ----------------------------------------------------------------------------
def fold_bn(bias, gamma, beta, mean, var):
    scale = gamma / jnp.sqrt(var + EPS)
    shift = (bias - mean) * scale + beta
    return scale.astype(jnp.float32), shift.astype(jnp.float32)


def make_params(key, C, r):
    ks = iter(jax.random.split(key, 64))

    def nrm(shape, s=0.15):
        return (s * jax.random.normal(next(ks), shape)).astype(jnp.float32)

    def bn(c):
        gamma = (1.0 + 0.1 * jax.random.normal(next(ks), (c,))).astype(jnp.float32)
        beta = (0.05 * jax.random.normal(next(ks), (c,))).astype(jnp.float32)
        mean = (0.05 * jax.random.normal(next(ks), (c,))).astype(jnp.float32)
        var = (0.5 + 0.2 * jnp.abs(jax.random.normal(next(ks), (c,)))).astype(jnp.float32)
        return gamma, beta, mean, var

    p = {}
    # color_enhance: 2x depthwise 3x3 + BN + ReLU
    p["ce1_w"], p["ce1_b"], p["ce1_bn"] = nrm((C, 1, 3, 3)), nrm((C,), 0.05), bn(C)
    p["ce2_w"], p["ce2_b"], p["ce2_bn"] = nrm((C, 1, 3, 3)), nrm((C,), 0.05), bn(C)
    # ChannelAttention.color_conv (no bias) / hsv_branch / se
    p["cc1_w"], p["cc1_bn"] = nrm((C, C)), bn(C)
    p["cc2_w"], p["cc2_bn"] = nrm((C, C)), bn(C)
    p["hs1_w"], p["hs1_b"], p["hs1_bn"] = nrm((C // 4, C)), nrm((C // 4,), 0.05), bn(C // 4)
    p["hs2_w"], p["hs2_b"] = nrm((C, C // 4)), nrm((C,), 0.05)
    p["se1_w"], p["se2_w"] = nrm((C // r, C)), nrm((C, C // r))
    # ColorAttention
    p["ct1_w"], p["ct1_b"], p["ct1_bn"] = nrm((C // 2, C)), nrm((C // 2,), 0.05), bn(C // 2)
    p["ct2_w"], p["ct2_b"] = nrm((3, C // 2)), nrm((3,), 0.05)
    p["cf1_w"], p["cf1_b"], p["cf1_bn"] = nrm((16, 3, 3, 3)), nrm((16,), 0.05), bn(16)
    p["cf2_w"], p["cf2_b"] = nrm((1, 16)), nrm((1,), 0.05)
    # SpatialAttention
    p["cs1_w"], p["cs1_b"], p["cs1_bn"] = nrm((16, 3, 3, 3)), nrm((16,), 0.05), bn(16)
    p["cs2_w"], p["cs2_b"] = nrm((1, 16)), nrm((1,), 0.05)
    p["sa_w"], p["sa_b"] = nrm((1, 4, 9, 9)), nrm((1,), 0.05)
    # scalars (PyTorch defaults)
    p["alpha"] = jnp.float32(1.0)
    p["beta"] = jnp.float32(1.0)
    p["gamma"] = jnp.float32(1.0)
    p["temperature"] = jnp.float32(0.5)
    return p


def pack_params(p, C):
    """Fold BN (inference mode), fuse parallel branches, pack per-channel
    scale/shift as (Cout, 2), and pre-fold 1/temperature into the coefs."""
    C4, C2 = C // 4, C // 2
    one = lambda c: jnp.ones((c,), jnp.float32)
    zero = lambda c: jnp.zeros((c,), jnp.float32)

    def sb(scale, shift):
        return jnp.stack([scale, shift], axis=1).astype(jnp.float32)

    k = {}
    # depthwise convs
    s, t = fold_bn(p["ce1_b"], *p["ce1_bn"])
    k["dw1_w"], k["dw1_sb"] = p["ce1_w"].reshape(C, 9), sb(s, t)
    s, t = fold_bn(p["ce2_b"], *p["ce2_bn"])
    k["dw2_w"], k["dw2_sb"] = p["ce2_w"].reshape(C, 9), sb(s, t)
    # fused trunk stage 1: [color_conv1 | hsv1 | color_transform1] (all ReLU'd)
    s_cc1, t_cc1 = fold_bn(zero(C), *p["cc1_bn"])
    s_hs1, t_hs1 = fold_bn(p["hs1_b"], *p["hs1_bn"])
    s_ct1, t_ct1 = fold_bn(p["ct1_b"], *p["ct1_bn"])
    k["w1"] = jnp.concatenate([p["cc1_w"], p["hs1_w"], p["ct1_w"]], axis=0)   # (28, C)
    k["sb1"] = sb(jnp.concatenate([s_cc1, s_hs1, s_ct1]),
                  jnp.concatenate([t_cc1, t_hs1, t_ct1]))
    # fused block-diagonal stage 2: [color_conv2 | hsv2 | color_transform2]
    w2 = jnp.zeros((2 * C + 3, C + C4 + C2), jnp.float32)
    w2 = w2.at[0:C, 0:C].set(p["cc2_w"])
    w2 = w2.at[C:2 * C, C:C + C4].set(p["hs2_w"])
    w2 = w2.at[2 * C:2 * C + 3, C + C4:C + C4 + C2].set(p["ct2_w"])
    k["w2"] = w2
    s_cc2, t_cc2 = fold_bn(zero(C), *p["cc2_bn"])
    k["sb2"] = sb(jnp.concatenate([s_cc2, one(C), one(3)]),
                  jnp.concatenate([t_cc2, p["hs2_b"], p["ct2_b"]]))
    # shared SE (no bias)
    k["wse1"], k["wse2"] = p["se1_w"], p["se2_w"]
    # fused 3x3 stage: rows 0-15 = color_spatial(3->16), rows 16-31 = color_feature(3->16)
    # im2col column layout: 6*tap + ch, ch 0..2 = ca_out[:3], ch 3..5 = cmap3
    a3 = p["cs1_w"].transpose(0, 2, 3, 1).reshape(16, 9, 3)   # [o, tap, cin]
    b3 = p["cf1_w"].transpose(0, 2, 3, 1).reshape(16, 9, 3)
    z3 = jnp.zeros((16, 9, 3), jnp.float32)
    k["w3a"] = jnp.concatenate(
        [jnp.concatenate([a3, z3], axis=2).reshape(16, 54),
         jnp.concatenate([z3, b3], axis=2).reshape(16, 54)], axis=0)          # (32, 54)
    s_cs, t_cs = fold_bn(p["cs1_b"], *p["cs1_bn"])
    s_cf, t_cf = fold_bn(p["cf1_b"], *p["cf1_bn"])
    k["sb3a"] = sb(jnp.concatenate([s_cs, s_cf]), jnp.concatenate([t_cs, t_cf]))
    w3b = jnp.zeros((2, 32), jnp.float32)
    w3b = w3b.at[0, 0:16].set(p["cs2_w"][0])
    w3b = w3b.at[1, 16:32].set(p["cf2_w"][0])
    k["w3b"] = w3b
    k["b3b"] = jnp.stack([p["cs2_b"][0], p["cf2_b"][0]]).reshape(2, 1)
    # 9x9 spatial-attention weights: row ky, column 4*kx + c
    k["wsa"] = p["sa_w"][0].transpose(1, 2, 0).reshape(9, 36)
    # scalars: [alpha, beta, gamma, 1/temperature, sa_bias, 0, 0, 0]
    k["coefs"] = jnp.stack(
        [p["alpha"], p["beta"], p["gamma"], 1.0 / p["temperature"], p["sa_b"][0],
         jnp.float32(0.0), jnp.float32(0.0), jnp.float32(0.0)]).reshape(1, 8)
    return k


# ----------------------------------------------------------------------------
if __name__ == "__main__":
    # channel=16, reduction=8, kernel_size=9 (small shapes; module default C=512)
    B, C, H, W = 2, 16, 16, 16
    key = jax.random.PRNGKey(0)
    kx, kw = jax.random.split(key)
    x = jax.random.normal(kx, (B, C, H, W), jnp.float32)     # NCHW, like PyTorch

    raw_params = make_params(kw, C, r=8)
    packed = pack_params(raw_params, C)

    out = jax.jit(cbam_forward)(x, packed)
    out = jax.block_until_ready(out)
    assert out.shape == (B, C, H, W)
    assert bool(jnp.all(jnp.isfinite(out)))
    print("KERNEL_OK")
</pallas_src>

<mosaic_0001>
module attributes {stable_mosaic.version = 11 : i64} {
  func.func @cbam_kernel(%arg0: i32, %arg1: memref<1x16x512xf32, #tpu.memory_space<vmem>>, %arg2: memref<16x9xf32, #tpu.memory_space<vmem>>, %arg3: memref<16x2xf32, #tpu.memory_space<vmem>>, %arg4: memref<16x9xf32, #tpu.memory_space<vmem>>, %arg5: memref<16x2xf32, #tpu.memory_space<vmem>>, %arg6: memref<28x16xf32, #tpu.memory_space<vmem>>, %arg7: memref<28x2xf32, #tpu.memory_space<vmem>>, %arg8: memref<35x28xf32, #tpu.memory_space<vmem>>, %arg9: memref<35x2xf32, #tpu.memory_space<vmem>>, %arg10: memref<2x16xf32, #tpu.memory_space<vmem>>, %arg11: memref<16x2xf32, #tpu.memory_space<vmem>>, %arg12: memref<32x54xf32, #tpu.memory_space<vmem>>, %arg13: memref<32x2xf32, #tpu.memory_space<vmem>>, %arg14: memref<2x32xf32, #tpu.memory_space<vmem>>, %arg15: memref<2x1xf32, #tpu.memory_space<vmem>>, %arg16: memref<9x36xf32, #tpu.memory_space<vmem>>, %arg17: memref<1x8xf32, #tpu.memory_space<vmem>>, %arg18: memref<1x16x512xf32, #tpu.memory_space<vmem>>) attributes {dimension_semantics = [#tpu.dimension_semantics<parallel>], iteration_bounds = array<i64: 1>, scalar_prefetch = 0 : i64, scratch_operands = 0 : i64, tpu.core_type = #tpu.core_type<tc>, window_params = [{transform_indices = @transform_0, window_bounds = array<i64: 1, 16, 512>}, {pipeline_mode = #tpu.pipeline_mode<synchronous>, transform_indices = @transform_1, window_bounds = array<i64: 16, 9>}, {pipeline_mode = #tpu.pipeline_mode<synchronous>, transform_indices = @transform_2, window_bounds = array<i64: 16, 2>}, {pipeline_mode = #tpu.pipeline_mode<synchronous>, transform_indices = @transform_3, window_bounds = array<i64: 16, 9>}, {pipeline_mode = #tpu.pipeline_mode<synchronous>, transform_indices = @transform_4, window_bounds = array<i64: 16, 2>}, {pipeline_mode = #tpu.pipeline_mode<synchronous>, transform_indices = @transform_5, window_bounds = array<i64: 28, 16>}, {pipeline_mode = #tpu.pipeline_mode<synchronous>, transform_indices = @transform_6, window_bounds = array<i64: 28, 2>}, {pipeline_mode = #tpu.pipeline_mode<synchronous>, transform_indices = @transform_7, window_bounds = array<i64: 35, 28>}, {pipeline_mode = #tpu.pipeline_mode<synchronous>, transform_indices = @transform_8, window_bounds = array<i64: 35, 2>}, {pipeline_mode = #tpu.pipeline_mode<synchronous>, transform_indices = @transform_9, window_bounds = array<i64: 2, 16>}, {pipeline_mode = #tpu.pipeline_mode<synchronous>, transform_indices = @transform_10, window_bounds = array<i64: 16, 2>}, {pipeline_mode = #tpu.pipeline_mode<synchronous>, transform_indices = @transform_11, window_bounds = array<i64: 32, 54>}, {pipeline_mode = #tpu.pipeline_mode<synchronous>, transform_indices = @transform_12, window_bounds = array<i64: 32, 2>}, {pipeline_mode = #tpu.pipeline_mode<synchronous>, transform_indices = @transform_13, window_bounds = array<i64: 2, 32>}, {pipeline_mode = #tpu.pipeline_mode<synchronous>, transform_indices = @transform_14, window_bounds = array<i64: 2, 1>}, {pipeline_mode = #tpu.pipeline_mode<synchronous>, transform_indices = @transform_15, window_bounds = array<i64: 9, 36>}, {pipeline_mode = #tpu.pipeline_mode<synchronous>, transform_indices = @transform_16, window_bounds = array<i64: 1, 8>}, {transform_indices = @transform_17, window_bounds = array<i64: 1, 16, 512>}]} {
    %c0 = arith.constant 0 : index
    %c0_0 = arith.constant 0 : index
    %c0_1 = arith.constant 0 : index
    %0 = vector.load %arg1[%c0, %c0_0, %c0_1] : memref<1x16x512xf32, #tpu.memory_space<vmem>>, vector<1x16x512xf32>
    %1 = vector.shape_cast %0 : vector<1x16x512xf32> to vector<16x512xf32>
    %c0_2 = arith.constant 0 : index
    %c0_3 = arith.constant 0 : index
    %2 = vector.load %arg17[%c0_2, %c0_3] : memref<1x8xf32, #tpu.memory_space<vmem>>, vector<1x8xf32>
    %3 = vector.extract_strided_slice %2 {offsets = [0, 0], sizes = [1, 1], strides = [1, 1]} : vector<1x8xf32> to vector<1x1xf32>
    %4 = vector.extract_strided_slice %2 {offsets = [0, 1], sizes = [1, 1], strides = [1, 1]} : vector<1x8xf32> to vector<1x1xf32>
    %5 = vector.extract_strided_slice %2 {offsets = [0, 2], sizes = [1, 1], strides = [1, 1]} : vector<1x8xf32> to vector<1x1xf32>
    %6 = vector.extract_strided_slice %2 {offsets = [0, 3], sizes = [1, 1], strides = [1, 1]} : vector<1x8xf32> to vector<1x1xf32>
    %7 = vector.extract_strided_slice %2 {offsets = [0, 4], sizes = [1, 1], strides = [1, 1]} : vector<1x8xf32> to vector<1x1xf32>
    %8 = tpu.iota {dimensions = array<i32: 1>} : vector<1x512xi32>
    %c255_i32 = arith.constant 255 : i32
    %9 = vector.broadcast %c255_i32 : i32 to vector<1x512xi32>
    %10 = arith.andi %8, %9 : vector<1x512xi32>
    %c15_i32 = arith.constant 15 : i32
    %11 = vector.broadcast %c15_i32 : i32 to vector<1x512xi32>
    %12 = arith.andi %10, %11 : vector<1x512xi32>
    %c16_i32 = arith.constant 16 : i32
    %13 = vector.broadcast %c16_i32 : i32 to vector<1x512xi32>
    %14 = arith.cmpi sge, %10, %13 : vector<1x512xi32>
    %c272_i32 = arith.constant 272 : i32
    %15 = vector.broadcast %c272_i32 : i32 to vector<1x512xi32>
    %16 = arith.cmpi slt, %10, %15 : vector<1x512xi32>
    %17 = arith.andi %14, %16 : vector<1x512xi1>
    %c1_i32 = arith.constant 1 : i32
    %18 = vector.broadcast %c1_i32 : i32 to vector<1x512xi32>
    %19 = arith.cmpi sge, %12, %18 : vector<1x512xi32>
    %c17_i32 = arith.constant 17 : i32
    %20 = vector.broadcast %c17_i32 : i32 to vector<1x512xi32>
    %21 = arith.cmpi slt, %12, %20 : vector<1x512xi32>
    %22 = arith.andi %19, %21 : vector<1x512xi1>
    %23 = arith.andi %17, %22 : vector<1x512xi1>
    %24 = arith.extui %23 : vector<1x512xi1> to vector<1x512xi32>
    %25 = arith.sitofp %24 : vector<1x512xi32> to vector<1x512xf32>
    %c16_i32_4 = arith.constant 16 : i32
    %26 = vector.broadcast %c16_i32_4 : i32 to vector<1x512xi32>
    %27 = arith.cmpi sge, %10, %26 : vector<1x512xi32>
    %c272_i32_5 = arith.constant 272 : i32
    %28 = vector.broadcast %c272_i32_5 : i32 to vector<1x512xi32>
    %29 = arith.cmpi slt, %10, %28 : vector<1x512xi32>
    %30 = arith.andi %27, %29 : vector<1x512xi1>
    %c0_i32 = arith.constant 0 : i32
    %31 = vector.broadcast %c0_i32 : i32 to vector<1x512xi32>
    %32 = arith.cmpi sge, %12, %31 : vector<1x512xi32>
    %c16_i32_6 = arith.constant 16 : i32
    %33 = vector.broadcast %c16_i32_6 : i32 to vector<1x512xi32>
    %34 = arith.cmpi slt, %12, %33 : vector<1x512xi32>
    %35 = arith.andi %32, %34 : vector<1x512xi1>
    %36 = arith.andi %30, %35 : vector<1x512xi1>
    %37 = arith.extui %36 : vector<1x512xi1> to vector<1x512xi32>
    %38 = arith.sitofp %37 : vector<1x512xi32> to vector<1x512xf32>
    %c16_i32_7 = arith.constant 16 : i32
    %39 = vector.broadcast %c16_i32_7 : i32 to vector<1x512xi32>
    %40 = arith.cmpi sge, %10, %39 : vector<1x512xi32>
    %c272_i32_8 = arith.constant 272 : i32
    %41 = vector.broadcast %c272_i32_8 : i32 to vector<1x512xi32>
    %42 = arith.cmpi slt, %10, %41 : vector<1x512xi32>
    %43 = arith.andi %40, %42 : vector<1x512xi1>
    %c-1_i32 = arith.constant -1 : i32
    %44 = vector.broadcast %c-1_i32 : i32 to vector<1x512xi32>
    %45 = arith.cmpi sge, %12, %44 : vector<1x512xi32>
    %c15_i32_9 = arith.constant 15 : i32
    %46 = vector.broadcast %c15_i32_9 : i32 to vector<1x512xi32>
    %47 = arith.cmpi slt, %12, %46 : vector<1x512xi32>
    %48 = arith.andi %45, %47 : vector<1x512xi1>
    %49 = arith.andi %43, %48 : vector<1x512xi1>
    %50 = arith.extui %49 : vector<1x512xi1> to vector<1x512xi32>
    %51 = arith.sitofp %50 : vector<1x512xi32> to vector<1x512xf32>
    %c0_i32_10 = arith.constant 0 : i32
    %52 = vector.broadcast %c0_i32_10 : i32 to vector<1x512xi32>
    %53 = arith.cmpi sge, %10, %52 : vector<1x512xi32>
    %c256_i32 = arith.constant 256 : i32
    %54 = vector.broadcast %c256_i32 : i32 to vector<1x512xi32>
    %55 = arith.cmpi slt, %10, %54 : vector<1x512xi32>
    %56 = arith.andi %53, %55 : vector<1x512xi1>
    %c1_i32_11 = arith.constant 1 : i32
    %57 = vector.broadcast %c1_i32_11 : i32 to vector<1x512xi32>
    %58 = arith.cmpi sge, %12, %57 : vector<1x512xi32>
    %c17_i32_12 = arith.constant 17 : i32
    %59 = vector.broadcast %c17_i32_12 : i32 to vector<1x512xi32>
    %60 = arith.cmpi slt, %12, %59 : vector<1x512xi32>
    %61 = arith.andi %58, %60 : vector<1x512xi1>
    %62 = arith.andi %56, %61 : vector<1x512xi1>
    %63 = arith.extui %62 : vector<1x512xi1> to vector<1x512xi32>
    %64 = arith.sitofp %63 : vector<1x512xi32> to vector<1x512xf32>
    %c0_i32_13 = arith.constant 0 : i32
    %65 = vector.broadcast %c0_i32_13 : i32 to vector<1x512xi32>
    %66 = arith.cmpi sge, %10, %65 : vector<1x512xi32>
    %c256_i32_14 = arith.constant 256 : i32
    %67 = vector.broadcast %c256_i32_14 : i32 to vector<1x512xi32>
    %68 = arith.cmpi slt, %10, %67 : vector<1x512xi32>
    %69 = arith.andi %66, %68 : vector<1x512xi1>
    %c0_i32_15 = arith.constant 0 : i32
    %70 = vector.broadcast %c0_i32_15 : i32 to vector<1x512xi32>
    %71 = arith.cmpi sge, %12, %70 : vector<1x512xi32>
    %c16_i32_16 = arith.constant 16 : i32
    %72 = vector.broadcast %c16_i32_16 : i32 to vector<1x512xi32>
    %73 = arith.cmpi slt, %12, %72 : vector<1x512xi32>
    %74 = arith.andi %71, %73 : vector<1x512xi1>
    %75 = arith.andi %69, %74 : vector<1x512xi1>
    %76 = arith.extui %75 : vector<1x512xi1> to vector<1x512xi32>
    %77 = arith.sitofp %76 : vector<1x512xi32> to vector<1x512xf32>
    %c0_i32_17 = arith.constant 0 : i32
    %78 = vector.broadcast %c0_i32_17 : i32 to vector<1x512xi32>
    %79 = arith.cmpi sge, %10, %78 : vector<1x512xi32>
    %c256_i32_18 = arith.constant 256 : i32
    %80 = vector.broadcast %c256_i32_18 : i32 to vector<1x512xi32>
    %81 = arith.cmpi slt, %10, %80 : vector<1x512xi32>
    %82 = arith.andi %79, %81 : vector<1x512xi1>
    %c-1_i32_19 = arith.constant -1 : i32
    %83 = vector.broadcast %c-1_i32_19 : i32 to vector<1x512xi32>
    %84 = arith.cmpi sge, %12, %83 : vector<1x512xi32>
    %c15_i32_20 = arith.constant 15 : i32
    %85 = vector.broadcast %c15_i32_20 : i32 to vector<1x512xi32>
    %86 = arith.cmpi slt, %12, %85 : vector<1x512xi32>
    %87 = arith.andi %84, %86 : vector<1x512xi1>
    %88 = arith.andi %82, %87 : vector<1x512xi1>
    %89 = arith.extui %88 : vector<1x512xi1> to vector<1x512xi32>
    %90 = arith.sitofp %89 : vector<1x512xi32> to vector<1x512xf32>
    %c-16_i32 = arith.constant -16 : i32
    %91 = vector.broadcast %c-16_i32 : i32 to vector<1x512xi32>
    %92 = arith.cmpi sge, %10, %91 : vector<1x512xi32>
    %c240_i32 = arith.constant 240 : i32
    %93 = vector.broadcast %c240_i32 : i32 to vector<1x512xi32>
    %94 = arith.cmpi slt, %10, %93 : vector<1x512xi32>
    %95 = arith.andi %92, %94 : vector<1x512xi1>
    %c1_i32_21 = arith.constant 1 : i32
    %96 = vector.broadcast %c1_i32_21 : i32 to vector<1x512xi32>
    %97 = arith.cmpi sge, %12, %96 : vector<1x512xi32>
    %c17_i32_22 = arith.constant 17 : i32
    %98 = vector.broadcast %c17_i32_22 : i32 to vector<1x512xi32>
    %99 = arith.cmpi slt, %12, %98 : vector<1x512xi32>
    %100 = arith.andi %97, %99 : vector<1x512xi1>
    %101 = arith.andi %95, %100 : vector<1x512xi1>
    %102 = arith.extui %101 : vector<1x512xi1> to vector<1x512xi32>
    %103 = arith.sitofp %102 : vector<1x512xi32> to vector<1x512xf32>
    %c-16_i32_23 = arith.constant -16 : i32
    %104 = vector.broadcast %c-16_i32_23 : i32 to vector<1x512xi32>
    %105 = arith.cmpi sge, %10, %104 : vector<1x512xi32>
    %c240_i32_24 = arith.constant 240 : i32
    %106 = vector.broadcast %c240_i32_24 : i32 to vector<1x512xi32>
    %107 = arith.cmpi slt, %10, %106 : vector<1x512xi32>
    %108 = arith.andi %105, %107 : vector<1x512xi1>
    %c0_i32_25 = arith.constant 0 : i32
    %109 = vector.broadcast %c0_i32_25 : i32 to vector<1x512xi32>
    %110 = arith.cmpi sge, %12, %109 : vector<1x512xi32>
    %c16_i32_26 = arith.constant 16 : i32
    %111 = vector.broadcast %c16_i32_26 : i32 to vector<1x512xi32>
    %112 = arith.cmpi slt, %12, %111 : vector<1x512xi32>
    %113 = arith.andi %110, %112 : vector<1x512xi1>
    %114 = arith.andi %108, %113 : vector<1x512xi1>
    %115 = arith.extui %114 : vector<1x512xi1> to vector<1x512xi32>
    %116 = arith.sitofp %115 : vector<1x512xi32> to vector<1x512xf32>
    %c-16_i32_27 = arith.constant -16 : i32
    %117 = vector.broadcast %c-16_i32_27 : i32 to vector<1x512xi32>
    %118 = arith.cmpi sge, %10, %117 : vector<1x512xi32>
    %c240_i32_28 = arith.constant 240 : i32
    %119 = vector.broadcast %c240_i32_28 : i32 to vector<1x512xi32>
    %120 = arith.cmpi slt, %10, %119 : vector<1x512xi32>
    %121 = arith.andi %118, %120 : vector<1x512xi1>
    %c-1_i32_29 = arith.constant -1 : i32
    %122 = vector.broadcast %c-1_i32_29 : i32 to vector<1x512xi32>
    %123 = arith.cmpi sge, %12, %122 : vector<1x512xi32>
    %c15_i32_30 = arith.constant 15 : i32
    %124 = vector.broadcast %c15_i32_30 : i32 to vector<1x512xi32>
    %125 = arith.cmpi slt, %12, %124 : vector<1x512xi32>
    %126 = arith.andi %123, %125 : vector<1x512xi1>
    %127 = arith.andi %121, %126 : vector<1x512xi1>
    %128 = arith.extui %127 : vector<1x512xi1> to vector<1x512xi32>
    %129 = arith.sitofp %128 : vector<1x512xi32> to vector<1x512xf32>
    %130 = tpu.concatenate %25, %38, %51, %64, %77, %90, %103, %116, %129 in 0 : vector<1x512xf32>, vector<1x512xf32>, vector<1x512xf32>, vector<1x512xf32>, vector<1x512xf32>, vector<1x512xf32>, vector<1x512xf32>, vector<1x512xf32>, vector<1x512xf32> -> vector<9x512xf32>
    %c0_31 = arith.constant 0 : index
    %c0_32 = arith.constant 0 : index
    %131 = vector.load %arg2[%c0_31, %c0_32] : memref<16x9xf32, #tpu.memory_space<vmem>>, vector<16x9xf32>
    %c0_33 = arith.constant 0 : index
    %c0_34 = arith.constant 0 : index
    %132 = vector.load %arg3[%c0_33, %c0_34] : memref<16x2xf32, #tpu.memory_space<vmem>>, vector<16x2xf32>
    %133 = vector.extract_strided_slice %131 {offsets = [0, 4], sizes = [16, 1], strides = [1, 1]} : vector<16x9xf32> to vector<16x1xf32>
    %134 = vector.broadcast %133 : vector<16x1xf32> to vector<16x512xf32>
    %135 = arith.mulf %1, %134 : vector<16x512xf32>
    %c17_i32_35 = arith.constant 17 : i32
    %136 = tpu.dynamic_rotate %1 by %c17_i32_35 dim 1 : vector<16x512xf32>, i32 -> vector<16x512xf32>
    %137 = vector.extract_strided_slice %130 {offsets = [0, 0], sizes = [1, 512], strides = [1, 1]} : vector<9x512xf32> to vector<1x512xf32>
    %138 = vector.broadcast %137 : vector<1x512xf32> to vector<16x512xf32>
    %139 = arith.mulf %136, %138 : vector<16x512xf32>
    %140 = vector.extract_strided_slice %131 {offsets = [0, 0], sizes = [16, 1], strides = [1, 1]} : vector<16x9xf32> to vector<16x1xf32>
    %141 = vector.broadcast %140 : vector<16x1xf32> to vector<16x512xf32>
    %142 = arith.mulf %139, %141 : vector<16x512xf32>
    %143 = arith.addf %135, %142 : vector<16x512xf32>
    %c16_i32_36 = arith.constant 16 : i32
    %144 = tpu.dynamic_rotate %1 by %c16_i32_36 dim 1 : vector<16x512xf32>, i32 -> vector<16x512xf32>
    %145 = vector.extract_strided_slice %130 {offsets = [1, 0], sizes = [1, 512], strides = [1, 1]} : vector<9x512xf32> to vector<1x512xf32>
    %146 = vector.broadcast %145 : vector<1x512xf32> to vector<16x512xf32>
    %147 = arith.mulf %144, %146 : vector<16x512xf32>
    %148 = vector.extract_strided_slice %131 {offsets = [0, 1], sizes = [16, 1], strides = [1, 1]} : vector<16x9xf32> to vector<16x1xf32>
    %149 = vector.broadcast %148 : vector<16x1xf32> to vector<16x512xf32>
    %150 = arith.mulf %147, %149 : vector<16x512xf32>
    %151 = arith.addf %143, %150 : vector<16x512xf32>
    %c15_i32_37 = arith.constant 15 : i32
    %152 = tpu.dynamic_rotate %1 by %c15_i32_37 dim 1 : vector<16x512xf32>, i32 -> vector<16x512xf32>
    %153 = vector.extract_strided_slice %130 {offsets = [2, 0], sizes = [1, 512], strides = [1, 1]} : vector<9x512xf32> to vector<1x512xf32>
    %154 = vector.broadcast %153 : vector<1x512xf32> to vector<16x512xf32>
    %155 = arith.mulf %152, %154 : vector<16x512xf32>
    %156 = vector.extract_strided_slice %131 {offsets = [0, 2], sizes = [16, 1], strides = [1, 1]} : vector<16x9xf32> to vector<16x1xf32>
    %157 = vector.broadcast %156 : vector<16x1xf32> to vector<16x512xf32>
    %158 = arith.mulf %155, %157 : vector<16x512xf32>
    %159 = arith.addf %151, %158 : vector<16x512xf32>
    %c1_i32_38 = arith.constant 1 : i32
    %160 = tpu.dynamic_rotate %1 by %c1_i32_38 dim 1 : vector<16x512xf32>, i32 -> vector<16x512xf32>
    %161 = vector.extract_strided_slice %130 {offsets = [3, 0], sizes = [1, 512], strides = [1, 1]} : vector<9x512xf32> to vector<1x512xf32>
    %162 = vector.broadcast %161 : vector<1x512xf32> to vector<16x512xf32>
    %163 = arith.mulf %160, %162 : vector<16x512xf32>
    %164 = vector.extract_strided_slice %131 {offsets = [0, 3], sizes = [16, 1], strides = [1, 1]} : vector<16x9xf32> to vector<16x1xf32>
    %165 = vector.broadcast %164 : vector<16x1xf32> to vector<16x512xf32>
    %166 = arith.mulf %163, %165 : vector<16x512xf32>
    %167 = arith.addf %159, %166 : vector<16x512xf32>
    %c511_i32 = arith.constant 511 : i32
    %168 = tpu.dynamic_rotate %1 by %c511_i32 dim 1 : vector<16x512xf32>, i32 -> vector<16x512xf32>
    %169 = vector.extract_strided_slice %130 {offsets = [5, 0], sizes = [1, 512], strides = [1, 1]} : vector<9x512xf32> to vector<1x512xf32>
    %170 = vector.broadcast %169 : vector<1x512xf32> to vector<16x512xf32>
    %171 = arith.mulf %168, %170 : vector<16x512xf32>
    %172 = vector.extract_strided_slice %131 {offsets = [0, 5], sizes = [16, 1], strides = [1, 1]} : vector<16x9xf32> to vector<16x1xf32>
    %173 = vector.broadcast %172 : vector<16x1xf32> to vector<16x512xf32>
    %174 = arith.mulf %171, %173 : vector<16x512xf32>
    %175 = arith.addf %167, %174 : vector<16x512xf32>
    %c497_i32 = arith.constant 497 : i32
    %176 = tpu.dynamic_rotate %1 by %c497_i32 dim 1 : vector<16x512xf32>, i32 -> vector<16x512xf32>
    %177 = vector.extract_strided_slice %130 {offsets = [6, 0], sizes = [1, 512], strides = [1, 1]} : vector<9x512xf32> to vector<1x512xf32>
    %178 = vector.broadcast %177 : vector<1x512xf32> to vector<16x512xf32>
    %179 = arith.mulf %176, %178 : vector<16x512xf32>
    %180 = vector.extract_strided_slice %131 {offsets = [0, 6], sizes = [16, 1], strides = [1, 1]} : vector<16x9xf32> to vector<16x1xf32>
    %181 = vector.broadcast %180 : vector<16x1xf32> to vector<16x512xf32>
    %182 = arith.mulf %179, %181 : vector<16x512xf32>
    %183 = arith.addf %175, %182 : vector<16x512xf32>
    %c496_i32 = arith.constant 496 : i32
    %184 = tpu.dynamic_rotate %1 by %c496_i32 dim 1 : vector<16x512xf32>, i32 -> vector<16x512xf32>
    %185 = vector.extract_strided_slice %130 {offsets = [7, 0], sizes = [1, 512], strides = [1, 1]} : vector<9x512xf32> to vector<1x512xf32>
    %186 = vector.broadcast %185 : vector<1x512xf32> to vector<16x512xf32>
    %187 = arith.mulf %184, %186 : vector<16x512xf32>
    %188 = vector.extract_strided_slice %131 {offsets = [0, 7], sizes = [16, 1], strides = [1, 1]} : vector<16x9xf32> to vector<16x1xf32>
    %189 = vector.broadcast %188 : vector<16x1xf32> to vector<16x512xf32>
    %190 = arith.mulf %187, %189 : vector<16x512xf32>
    %191 = arith.addf %183, %190 : vector<16x512xf32>
    %c495_i32 = arith.constant 495 : i32
    %192 = tpu.dynamic_rotate %1 by %c495_i32 dim 1 : vector<16x512xf32>, i32 -> vector<16x512xf32>
    %193 = vector.extract_strided_slice %130 {offsets = [8, 0], sizes = [1, 512], strides = [1, 1]} : vector<9x512xf32> to vector<1x512xf32>
    %194 = vector.broadcast %193 : vector<1x512xf32> to vector<16x512xf32>
    %195 = arith.mulf %192, %194 : vector<16x512xf32>
    %196 = vector.extract_strided_slice %131 {offsets = [0, 8], sizes = [16, 1], strides = [1, 1]} : vector<16x9xf32> to vector<16x1xf32>
    %197 = vector.broadcast %196 : vector<16x1xf32> to vector<16x512xf32>
    %198 = arith.mulf %195, %197 : vector<16x512xf32>
    %199 = arith.addf %191, %198 : vector<16x512xf32>
    %200 = vector.extract_strided_slice %132 {offsets = [0, 0], sizes = [16, 1], strides = [1, 1]} : vector<16x2xf32> to vector<16x1xf32>
    %201 = vector.broadcast %200 : vector<16x1xf32> to vector<16x512xf32>
    %202 = arith.mulf %199, %201 : vector<16x512xf32>
    %203 = vector.extract_strided_slice %132 {offsets = [0, 1], sizes = [16, 1], strides = [1, 1]} : vector<16x2xf32> to vector<16x1xf32>
    %204 = vector.broadcast %203 : vector<16x1xf32> to vector<16x512xf32>
    %205 = arith.addf %202, %204 : vector<16x512xf32>
    %cst = arith.constant 0.000000e+00 : f32
    %206 = vector.broadcast %cst : f32 to vector<16x512xf32>
    %207 = arith.maximumf %205, %206 : vector<16x512xf32>
    %c0_39 = arith.constant 0 : index
    %c0_40 = arith.constant 0 : index
    %208 = vector.load %arg4[%c0_39, %c0_40] : memref<16x9xf32, #tpu.memory_space<vmem>>, vector<16x9xf32>
    %c0_41 = arith.constant 0 : index
    %c0_42 = arith.constant 0 : index
    %209 = vector.load %arg5[%c0_41, %c0_42] : memref<16x2xf32, #tpu.memory_space<vmem>>, vector<16x2xf32>
    %210 = vector.extract_strided_slice %208 {offsets = [0, 4], sizes = [16, 1], strides = [1, 1]} : vector<16x9xf32> to vector<16x1xf32>
    %211 = vector.broadcast %210 : vector<16x1xf32> to vector<16x512xf32>
    %212 = arith.mulf %207, %211 : vector<16x512xf32>
    %c17_i32_43 = arith.constant 17 : i32
    %213 = tpu.dynamic_rotate %207 by %c17_i32_43 dim 1 : vector<16x512xf32>, i32 -> vector<16x512xf32>
    %214 = vector.extract_strided_slice %130 {offsets = [0, 0], sizes = [1, 512], strides = [1, 1]} : vector<9x512xf32> to vector<1x512xf32>
    %215 = vector.broadcast %214 : vector<1x512xf32> to vector<16x512xf32>
    %216 = arith.mulf %213, %215 : vector<16x512xf32>
    %217 = vector.extract_strided_slice %208 {offsets = [0, 0], sizes = [16, 1], strides = [1, 1]} : vector<16x9xf32> to vector<16x1xf32>
    %218 = vector.broadcast %217 : vector<16x1xf32> to vector<16x512xf32>
    %219 = arith.mulf %216, %218 : vector<16x512xf32>
    %220 = arith.addf %212, %219 : vector<16x512xf32>
    %c16_i32_44 = arith.constant 16 : i32
    %221 = tpu.dynamic_rotate %207 by %c16_i32_44 dim 1 : vector<16x512xf32>, i32 -> vector<16x512xf32>
    %222 = vector.extract_strided_slice %130 {offsets = [1, 0], sizes = [1, 512], strides = [1, 1]} : vector<9x512xf32> to vector<1x512xf32>
    %223 = vector.broadcast %222 : vector<1x512xf32> to vector<16x512xf32>
    %224 = arith.mulf %221, %223 : vector<16x512xf32>
    %225 = vector.extract_strided_slice %208 {offsets = [0, 1], sizes = [16, 1], strides = [1, 1]} : vector<16x9xf32> to vector<16x1xf32>
    %226 = vector.broadcast %225 : vector<16x1xf32> to vector<16x512xf32>
    %227 = arith.mulf %224, %226 : vector<16x512xf32>
    %228 = arith.addf %220, %227 : vector<16x512xf32>
    %c15_i32_45 = arith.constant 15 : i32
    %229 = tpu.dynamic_rotate %207 by %c15_i32_45 dim 1 : vector<16x512xf32>, i32 -> vector<16x512xf32>
    %230 = vector.extract_strided_slice %130 {offsets = [2, 0], sizes = [1, 512], strides = [1, 1]} : vector<9x512xf32> to vector<1x512xf32>
    %231 = vector.broadcast %230 : vector<1x512xf32> to vector<16x512xf32>
    %232 = arith.mulf %229, %231 : vector<16x512xf32>
    %233 = vector.extract_strided_slice %208 {offsets = [0, 2], sizes = [16, 1], strides = [1, 1]} : vector<16x9xf32> to vector<16x1xf32>
    %234 = vector.broadcast %233 : vector<16x1xf32> to vector<16x512xf32>
    %235 = arith.mulf %232, %234 : vector<16x512xf32>
    %236 = arith.addf %228, %235 : vector<16x512xf32>
    %c1_i32_46 = arith.constant 1 : i32
    %237 = tpu.dynamic_rotate %207 by %c1_i32_46 dim 1 : vector<16x512xf32>, i32 -> vector<16x512xf32>
    %238 = vector.extract_strided_slice %130 {offsets = [3, 0], sizes = [1, 512], strides = [1, 1]} : vector<9x512xf32> to vector<1x512xf32>
    %239 = vector.broadcast %238 : vector<1x512xf32> to vector<16x512xf32>
    %240 = arith.mulf %237, %239 : vector<16x512xf32>
    %241 = vector.extract_strided_slice %208 {offsets = [0, 3], sizes = [16, 1], strides = [1, 1]} : vector<16x9xf32> to vector<16x1xf32>
    %242 = vector.broadcast %241 : vector<16x1xf32> to vector<16x512xf32>
    %243 = arith.mulf %240, %242 : vector<16x512xf32>
    %244 = arith.addf %236, %243 : vector<16x512xf32>
    %c511_i32_47 = arith.constant 511 : i32
    %245 = tpu.dynamic_rotate %207 by %c511_i32_47 dim 1 : vector<16x512xf32>, i32 -> vector<16x512xf32>
    %246 = vector.extract_strided_slice %130 {offsets = [5, 0], sizes = [1, 512], strides = [1, 1]} : vector<9x512xf32> to vector<1x512xf32>
    %247 = vector.broadcast %246 : vector<1x512xf32> to vector<16x512xf32>
    %248 = arith.mulf %245, %247 : vector<16x512xf32>
    %249 = vector.extract_strided_slice %208 {offsets = [0, 5], sizes = [16, 1], strides = [1, 1]} : vector<16x9xf32> to vector<16x1xf32>
    %250 = vector.broadcast %249 : vector<16x1xf32> to vector<16x512xf32>
    %251 = arith.mulf %248, %250 : vector<16x512xf32>
    %252 = arith.addf %244, %251 : vector<16x512xf32>
    %c497_i32_48 = arith.constant 497 : i32
    %253 = tpu.dynamic_rotate %207 by %c497_i32_48 dim 1 : vector<16x512xf32>, i32 -> vector<16x512xf32>
    %254 = vector.extract_strided_slice %130 {offsets = [6, 0], sizes = [1, 512], strides = [1, 1]} : vector<9x512xf32> to vector<1x512xf32>
    %255 = vector.broadcast %254 : vector<1x512xf32> to vector<16x512xf32>
    %256 = arith.mulf %253, %255 : vector<16x512xf32>
    %257 = vector.extract_strided_slice %208 {offsets = [0, 6], sizes = [16, 1], strides = [1, 1]} : vector<16x9xf32> to vector<16x1xf32>
    %258 = vector.broadcast %257 : vector<16x1xf32> to vector<16x512xf32>
    %259 = arith.mulf %256, %258 : vector<16x512xf32>
    %260 = arith.addf %252, %259 : vector<16x512xf32>
    %c496_i32_49 = arith.constant 496 : i32
    %261 = tpu.dynamic_rotate %207 by %c496_i32_49 dim 1 : vector<16x512xf32>, i32 -> vector<16x512xf32>
    %262 = vector.extract_strided_slice %130 {offsets = [7, 0], sizes = [1, 512], strides = [1, 1]} : vector<9x512xf32> to vector<1x512xf32>
    %263 = vector.broadcast %262 : vector<1x512xf32> to vector<16x512xf32>
    %264 = arith.mulf %261, %263 : vector<16x512xf32>
    %265 = vector.extract_strided_slice %208 {offsets = [0, 7], sizes = [16, 1], strides = [1, 1]} : vector<16x9xf32> to vector<16x1xf32>
    %266 = vector.broadcast %265 : vector<16x1xf32> to vector<16x512xf32>
    %267 = arith.mulf %264, %266 : vector<16x512xf32>
    %268 = arith.addf %260, %267 : vector<16x512xf32>
    %c495_i32_50 = arith.constant 495 : i32
    %269 = tpu.dynamic_rotate %207 by %c495_i32_50 dim 1 : vector<16x512xf32>, i32 -> vector<16x512xf32>
    %270 = vector.extract_strided_slice %130 {offsets = [8, 0], sizes = [1, 512], strides = [1, 1]} : vector<9x512xf32> to vector<1x512xf32>
    %271 = vector.broadcast %270 : vector<1x512xf32> to vector<16x512xf32>
    %272 = arith.mulf %269, %271 : vector<16x512xf32>
    %273 = vector.extract_strided_slice %208 {offsets = [0, 8], sizes = [16, 1], strides = [1, 1]} : vector<16x9xf32> to vector<16x1xf32>
    %274 = vector.broadcast %273 : vector<16x1xf32> to vector<16x512xf32>
    %275 = arith.mulf %272, %274 : vector<16x512xf32>
    %276 = arith.addf %268, %275 : vector<16x512xf32>
    %277 = vector.extract_strided_slice %209 {offsets = [0, 0], sizes = [16, 1], strides = [1, 1]} : vector<16x2xf32> to vector<16x1xf32>
    %278 = vector.broadcast %277 : vector<16x1xf32> to vector<16x512xf32>
    %279 = arith.mulf %276, %278 : vector<16x512xf32>
    %280 = vector.extract_strided_slice %209 {offsets = [0, 1], sizes = [16, 1], strides = [1, 1]} : vector<16x2xf32> to vector<16x1xf32>
    %281 = vector.broadcast %280 : vector<16x1xf32> to vector<16x512xf32>
    %282 = arith.addf %279, %281 : vector<16x512xf32>
    %cst_51 = arith.constant 0.000000e+00 : f32
    %283 = vector.broadcast %cst_51 : f32 to vector<16x512xf32>
    %284 = arith.maximumf %282, %283 : vector<16x512xf32>
    %c0_52 = arith.constant 0 : index
    %c0_53 = arith.constant 0 : index
    %285 = vector.load %arg7[%c0_52, %c0_53] : memref<28x2xf32, #tpu.memory_space<vmem>>, vector<28x2xf32>
    %c0_54 = arith.constant 0 : index
    %c0_55 = arith.constant 0 : index
    %286 = vector.load %arg6[%c0_54, %c0_55] : memref<28x16xf32, #tpu.memory_space<vmem>>, vector<28x16xf32>
    %cst_56 = arith.constant dense<0.000000e+00> : vector<28x512xf32>
    %287 = tpu.matmul %286, %284, %cst_56 {dimension_numbers = #tpu.dot_dimension_numbers<[1], [0], [0], [1], [0, 0, 1, 1], [], []>} : vector<28x16xf32>, vector<16x512xf32>, vector<28x512xf32> -> vector<28x512xf32>
    %288 = vector.extract_strided_slice %285 {offsets = [0, 0], sizes = [28, 1], strides = [1, 1]} : vector<28x2xf32> to vector<28x1xf32>
    %289 = vector.broadcast %288 : vector<28x1xf32> to vector<28x512xf32>
    %290 = arith.mulf %287, %289 : vector<28x512xf32>
    %291 = vector.extract_strided_slice %285 {offsets = [0, 1], sizes = [28, 1], strides = [1, 1]} : vector<28x2xf32> to vector<28x1xf32>
    %292 = vector.broadcast %291 : vector<28x1xf32> to vector<28x512xf32>
    %293 = arith.addf %290, %292 : vector<28x512xf32>
    %cst_57 = arith.constant 0.000000e+00 : f32
    %294 = vector.broadcast %cst_57 : f32 to vector<28x512xf32>
    %295 = arith.maximumf %293, %294 : vector<28x512xf32>
    %c0_58 = arith.constant 0 : index
    %c0_59 = arith.constant 0 : index
    %296 = vector.load %arg9[%c0_58, %c0_59] : memref<35x2xf32, #tpu.memory_space<vmem>>, vector<35x2xf32>
    %c0_60 = arith.constant 0 : index
    %c0_61 = arith.constant 0 : index
    %297 = vector.load %arg8[%c0_60, %c0_61] : memref<35x28xf32, #tpu.memory_space<vmem>>, vector<35x28xf32>
    %cst_62 = arith.constant dense<0.000000e+00> : vector<35x512xf32>
    %298 = tpu.matmul %297, %295, %cst_62 {dimension_numbers = #tpu.dot_dimension_numbers<[1], [0], [0], [1], [0, 0, 1, 1], [], []>} : vector<35x28xf32>, vector<28x512xf32>, vector<35x512xf32> -> vector<35x512xf32>
    %299 = vector.extract_strided_slice %296 {offsets = [0, 0], sizes = [35, 1], strides = [1, 1]} : vector<35x2xf32> to vector<35x1xf32>
    %300 = vector.broadcast %299 : vector<35x1xf32> to vector<35x512xf32>
    %301 = arith.mulf %298, %300 : vector<35x512xf32>
    %302 = vector.extract_strided_slice %296 {offsets = [0, 1], sizes = [35, 1], strides = [1, 1]} : vector<35x2xf32> to vector<35x1xf32>
    %303 = vector.broadcast %302 : vector<35x1xf32> to vector<35x512xf32>
    %304 = arith.addf %301, %303 : vector<35x512xf32>
    %305 = vector.extract_strided_slice %304 {offsets = [0, 0], sizes = [16, 512], strides = [1, 1]} : vector<35x512xf32> to vector<16x512xf32>
    %306 = vector.extract_strided_slice %304 {offsets = [16, 0], sizes = [16, 512], strides = [1, 1]} : vector<35x512xf32> to vector<16x512xf32>
    %307 = vector.extract_strided_slice %304 {offsets = [32, 0], sizes = [3, 512], strides = [1, 1]} : vector<35x512xf32> to vector<3x512xf32>
    %c0_63 = arith.constant 0 : index
    %c0_64 = arith.constant 0 : index
    %308 = vector.load %arg10[%c0_63, %c0_64] : memref<2x16xf32, #tpu.memory_space<vmem>>, vector<2x16xf32>
    %c0_65 = arith.constant 0 : index
    %c0_66 = arith.constant 0 : index
    %309 = vector.load %arg11[%c0_65, %c0_66] : memref<16x2xf32, #tpu.memory_space<vmem>>, vector<16x2xf32>
    %cst_67 = arith.constant 0.000000e+00 : f32
    %310 = vector.broadcast %cst_67 : f32 to vector<16x512xf32>
    %c0_i32_68 = arith.constant 0 : i32
    %311 = vector.broadcast %c0_i32_68 : i32 to vector<1x512xi32>
    %312 = arith.cmpi sge, %8, %311 : vector<1x512xi32>
    %c256_i32_69 = arith.constant 256 : i32
    %313 = vector.broadcast %c256_i32_69 : i32 to vector<1x512xi32>
    %314 = arith.cmpi slt, %8, %313 : vector<1x512xi32>
    %315 = arith.andi %312, %314 : vector<1x512xi1>
    %316 = arith.extui %315 : vector<1x512xi1> to vector<1x512xi32>
    %317 = arith.sitofp %316 : vector<1x512xi32> to vector<1x512xf32>
    %cst_70 = arith.constant 0xFF800000 : f32
    %318 = vector.shape_cast %315 : vector<1x512xi1> to vector<1x512xi1>
    %319 = vector.broadcast %318 : vector<1x512xi1> to vector<16x512xi1>
    %320 = vector.broadcast %cst_70 : f32 to vector<16x512xf32>
    %321 = arith.select %319, %284, %320 : vector<16x512xi1>, vector<16x512xf32>
    %cst_71 = arith.constant dense<0xFF800000> : vector<16xf32>
    %322 = vector.multi_reduction <maximumf>, %321, %cst_71 [1] : vector<16x512xf32> to vector<16xf32>
    %323 = vector.shape_cast %322 : vector<16xf32> to vector<16x1xf32>
    %324 = vector.broadcast %317 : vector<1x512xf32> to vector<16x512xf32>
    %325 = arith.mulf %284, %324 : vector<16x512xf32>
    %cst_72 = arith.constant dense<0.000000e+00> : vector<16xf32>
    %326 = vector.multi_reduction <add>, %325, %cst_72 [1] : vector<16x512xf32> to vector<16xf32>
    %327 = vector.shape_cast %326 : vector<16xf32> to vector<16x1xf32>
    %cst_73 = arith.constant 3.906250e-03 : f32
    %328 = vector.broadcast %cst_73 : f32 to vector<16x1xf32>
    %329 = arith.mulf %327, %328 : vector<16x1xf32>
    %cst_74 = arith.constant 0xFF800000 : f32
    %330 = vector.shape_cast %315 : vector<1x512xi1> to vector<1x512xi1>
    %331 = vector.broadcast %330 : vector<1x512xi1> to vector<16x512xi1>
    %332 = vector.broadcast %cst_74 : f32 to vector<16x512xf32>
    %333 = arith.select %331, %305, %332 : vector<16x512xi1>, vector<16x512xf32>
    %cst_75 = arith.constant dense<0xFF800000> : vector<16xf32>
    %334 = vector.multi_reduction <maximumf>, %333, %cst_75 [1] : vector<16x512xf32> to vector<16xf32>
    %335 = vector.shape_cast %334 : vector<16xf32> to vector<16x1xf32>
    %cst_76 = arith.constant 0xFF800000 : f32
    %336 = vector.shape_cast %315 : vector<1x512xi1> to vector<1x512xi1>
    %337 = vector.broadcast %336 : vector<1x512xi1> to vector<16x512xi1>
    %338 = vector.broadcast %cst_76 : f32 to vector<16x512xf32>
    %339 = arith.select %337, %306, %338 : vector<16x512xi1>, vector<16x512xf32>
    %cst_77 = arith.constant dense<0xFF800000> : vector<16xf32>
    %340 = vector.multi_reduction <maximumf>, %339, %cst_77 [1] : vector<16x512xf32> to vector<16xf32>
    %341 = vector.shape_cast %340 : vector<16xf32> to vector<16x1xf32>
    %342 = tpu.concatenate %323, %329, %335, %341 in 1 : vector<16x1xf32>, vector<16x1xf32>, vector<16x1xf32>, vector<16x1xf32> -> vector<16x4xf32>
    %cst_78 = arith.constant dense<0.000000e+00> : vector<2x4xf32>
    %343 = tpu.matmul %308, %342, %cst_78 {dimension_numbers = #tpu.dot_dimension_numbers<[1], [0], [0], [1], [0, 0, 1, 1], [], []>} : vector<2x16xf32>, vector<16x4xf32>, vector<2x4xf32> -> vector<2x4xf32>
    %cst_79 = arith.constant 0.000000e+00 : f32
    %344 = vector.broadcast %cst_79 : f32 to vector<2x4xf32>
    %345 = arith.maximumf %343, %344 : vector<2x4xf32>
    %cst_80 = arith.constant dense<0.000000e+00> : vector<16x4xf32>
    %346 = tpu.matmul %309, %345, %cst_80 {dimension_numbers = #tpu.dot_dimension_numbers<[1], [0], [0], [1], [0, 0, 1, 1], [], []>} : vector<16x2xf32>, vector<2x4xf32>, vector<16x4xf32> -> vector<16x4xf32>
    %cst_81 = arith.constant dense<0.000000e+00> : vector<16xf32>
    %347 = vector.multi_reduction <add>, %346, %cst_81 [1] : vector<16x4xf32> to vector<16xf32>
    %348 = vector.shape_cast %347 : vector<16xf32> to vector<16x1xf32>
    %349 = arith.negf %348 : vector<16x1xf32>
    %350 = math.exp %349 : vector<16x1xf32>
    %cst_82 = arith.constant 1.000000e+00 : f32
    %351 = vector.broadcast %cst_82 : f32 to vector<16x1xf32>
    %352 = arith.addf %351, %350 : vector<16x1xf32>
    %353 = arith.divf %351, %352 : vector<16x1xf32>
    %354 = vector.broadcast %6 : vector<1x1xf32> to vector<16x1xf32>
    %355 = arith.mulf %353, %354 : vector<16x1xf32>
    %356 = vector.broadcast %355 : vector<16x1xf32> to vector<16x512xf32>
    %357 = vector.broadcast %317 : vector<1x512xf32> to vector<16x512xf32>
    %358 = arith.mulf %356, %357 : vector<16x512xf32>
    %359 = arith.addf %310, %358 : vector<16x512xf32>
    %c256_i32_83 = arith.constant 256 : i32
    %360 = vector.broadcast %c256_i32_83 : i32 to vector<1x512xi32>
    %361 = arith.cmpi sge, %8, %360 : vector<1x512xi32>
    %c512_i32 = arith.constant 512 : i32
    %362 = vector.broadcast %c512_i32 : i32 to vector<1x512xi32>
    %363 = arith.cmpi slt, %8, %362 : vector<1x512xi32>
    %364 = arith.andi %361, %363 : vector<1x512xi1>
    %365 = arith.extui %364 : vector<1x512xi1> to vector<1x512xi32>
    %366 = arith.sitofp %365 : vector<1x512xi32> to vector<1x512xf32>
    %cst_84 = arith.constant 0xFF800000 : f32
    %367 = vector.shape_cast %364 : vector<1x512xi1> to vector<1x512xi1>
    %368 = vector.broadcast %367 : vector<1x512xi1> to vector<16x512xi1>
    %369 = vector.broadcast %cst_84 : f32 to vector<16x512xf32>
    %370 = arith.select %368, %284, %369 : vector<16x512xi1>, vector<16x512xf32>
    %cst_85 = arith.constant dense<0xFF800000> : vector<16xf32>
    %371 = vector.multi_reduction <maximumf>, %370, %cst_85 [1] : vector<16x512xf32> to vector<16xf32>
    %372 = vector.shape_cast %371 : vector<16xf32> to vector<16x1xf32>
    %373 = vector.broadcast %366 : vector<1x512xf32> to vector<16x512xf32>
    %374 = arith.mulf %284, %373 : vector<16x512xf32>
    %cst_86 = arith.constant dense<0.000000e+00> : vector<16xf32>
    %375 = vector.multi_reduction <add>, %374, %cst_86 [1] : vector<16x512xf32> to vector<16xf32>
    %376 = vector.shape_cast %375 : vector<16xf32> to vector<16x1xf32>
    %cst_87 = arith.constant 3.906250e-03 : f32
    %377 = vector.broadcast %cst_87 : f32 to vector<16x1xf32>
    %378 = arith.mulf %376, %377 : vector<16x1xf32>
    %cst_88 = arith.constant 0xFF800000 : f32
    %379 = vector.shape_cast %364 : vector<1x512xi1> to vector<1x512xi1>
    %380 = vector.broadcast %379 : vector<1x512xi1> to vector<16x512xi1>
    %381 = vector.broadcast %cst_88 : f32 to vector<16x512xf32>
    %382 = arith.select %380, %305, %381 : vector<16x512xi1>, vector<16x512xf32>
    %cst_89 = arith.constant dense<0xFF800000> : vector<16xf32>
    %383 = vector.multi_reduction <maximumf>, %382, %cst_89 [1] : vector<16x512xf32> to vector<16xf32>
    %384 = vector.shape_cast %383 : vector<16xf32> to vector<16x1xf32>
    %cst_90 = arith.constant 0xFF800000 : f32
    %385 = vector.shape_cast %364 : vector<1x512xi1> to vector<1x512xi1>
    %386 = vector.broadcast %385 : vector<1x512xi1> to vector<16x512xi1>
    %387 = vector.broadcast %cst_90 : f32 to vector<16x512xf32>
    %388 = arith.select %386, %306, %387 : vector<16x512xi1>, vector<16x512xf32>
    %cst_91 = arith.constant dense<0xFF800000> : vector<16xf32>
    %389 = vector.multi_reduction <maximumf>, %388, %cst_91 [1] : vector<16x512xf32> to vector<16xf32>
    %390 = vector.shape_cast %389 : vector<16xf32> to vector<16x1xf32>
    %391 = tpu.concatenate %372, %378, %384, %390 in 1 : vector<16x1xf32>, vector<16x1xf32>, vector<16x1xf32>, vector<16x1xf32> -> vector<16x4xf32>
    %cst_92 = arith.constant dense<0.000000e+00> : vector<2x4xf32>
    %392 = tpu.matmul %308, %391, %cst_92 {dimension_numbers = #tpu.dot_dimension_numbers<[1], [0], [0], [1], [0, 0, 1, 1], [], []>} : vector<2x16xf32>, vector<16x4xf32>, vector<2x4xf32> -> vector<2x4xf32>
    %cst_93 = arith.constant 0.000000e+00 : f32
    %393 = vector.broadcast %cst_93 : f32 to vector<2x4xf32>
    %394 = arith.maximumf %392, %393 : vector<2x4xf32>
    %cst_94 = arith.constant dense<0.000000e+00> : vector<16x4xf32>
    %395 = tpu.matmul %309, %394, %cst_94 {dimension_numbers = #tpu.dot_dimension_numbers<[1], [0], [0], [1], [0, 0, 1, 1], [], []>} : vector<16x2xf32>, vector<2x4xf32>, vector<16x4xf32> -> vector<16x4xf32>
    %cst_95 = arith.constant dense<0.000000e+00> : vector<16xf32>
    %396 = vector.multi_reduction <add>, %395, %cst_95 [1] : vector<16x4xf32> to vector<16xf32>
    %397 = vector.shape_cast %396 : vector<16xf32> to vector<16x1xf32>
    %398 = arith.negf %397 : vector<16x1xf32>
    %399 = math.exp %398 : vector<16x1xf32>
    %cst_96 = arith.constant 1.000000e+00 : f32
    %400 = vector.broadcast %cst_96 : f32 to vector<16x1xf32>
    %401 = arith.addf %400, %399 : vector<16x1xf32>
    %402 = arith.divf %400, %401 : vector<16x1xf32>
    %403 = vector.broadcast %6 : vector<1x1xf32> to vector<16x1xf32>
    %404 = arith.mulf %402, %403 : vector<16x1xf32>
    %405 = vector.broadcast %404 : vector<16x1xf32> to vector<16x512xf32>
    %406 = vector.broadcast %366 : vector<1x512xf32> to vector<16x512xf32>
    %407 = arith.mulf %405, %406 : vector<16x512xf32>
    %408 = arith.addf %359, %407 : vector<16x512xf32>
    %409 = arith.mulf %1, %408 : vector<16x512xf32>
    %410 = vector.extract_strided_slice %409 {offsets = [0, 0], sizes = [3, 512], strides = [1, 1]} : vector<16x512xf32> to vector<3x512xf32>
    %411 = tpu.concatenate %410, %307 in 0 : vector<3x512xf32>, vector<3x512xf32> -> vector<6x512xf32>
    %c17_i32_97 = arith.constant 17 : i32
    %412 = tpu.dynamic_rotate %411 by %c17_i32_97 dim 1 : vector<6x512xf32>, i32 -> vector<6x512xf32>
    %413 = vector.extract_strided_slice %130 {offsets = [0, 0], sizes = [1, 512], strides = [1, 1]} : vector<9x512xf32> to vector<1x512xf32>
    %414 = vector.broadcast %413 : vector<1x512xf32> to vector<6x512xf32>
    %415 = arith.mulf %412, %414 : vector<6x512xf32>
    %c16_i32_98 = arith.constant 16 : i32
    %416 = tpu.dynamic_rotate %411 by %c16_i32_98 dim 1 : vector<6x512xf32>, i32 -> vector<6x512xf32>
    %417 = vector.extract_strided_slice %130 {offsets = [1, 0], sizes = [1, 512], strides = [1, 1]} : vector<9x512xf32> to vector<1x512xf32>
    %418 = vector.broadcast %417 : vector<1x512xf32> to vector<6x512xf32>
    %419 = arith.mulf %416, %418 : vector<6x512xf32>
    %c15_i32_99 = arith.constant 15 : i32
    %420 = tpu.dynamic_rotate %411 by %c15_i32_99 dim 1 : vector<6x512xf32>, i32 -> vector<6x512xf32>
    %421 = vector.extract_strided_slice %130 {offsets = [2, 0], sizes = [1, 512], strides = [1, 1]} : vector<9x512xf32> to vector<1x512xf32>
    %422 = vector.broadcast %421 : vector<1x512xf32> to vector<6x512xf32>
    %423 = arith.mulf %420, %422 : vector<6x512xf32>
    %c1_i32_100 = arith.constant 1 : i32
    %424 = tpu.dynamic_rotate %411 by %c1_i32_100 dim 1 : vector<6x512xf32>, i32 -> vector<6x512xf32>
    %425 = vector.extract_strided_slice %130 {offsets = [3, 0], sizes = [1, 512], strides = [1, 1]} : vector<9x512xf32> to vector<1x512xf32>
    %426 = vector.broadcast %425 : vector<1x512xf32> to vector<6x512xf32>
    %427 = arith.mulf %424, %426 : vector<6x512xf32>
    %c511_i32_101 = arith.constant 511 : i32
    %428 = tpu.dynamic_rotate %411 by %c511_i32_101 dim 1 : vector<6x512xf32>, i32 -> vector<6x512xf32>
    %429 = vector.extract_strided_slice %130 {offsets = [5, 0], sizes = [1, 512], strides = [1, 1]} : vector<9x512xf32> to vector<1x512xf32>
    %430 = vector.broadcast %429 : vector<1x512xf32> to vector<6x512xf32>
    %431 = arith.mulf %428, %430 : vector<6x512xf32>
    %c497_i32_102 = arith.constant 497 : i32
    %432 = tpu.dynamic_rotate %411 by %c497_i32_102 dim 1 : vector<6x512xf32>, i32 -> vector<6x512xf32>
    %433 = vector.extract_strided_slice %130 {offsets = [6, 0], sizes = [1, 512], strides = [1, 1]} : vector<9x512xf32> to vector<1x512xf32>
    %434 = vector.broadcast %433 : vector<1x512xf32> to vector<6x512xf32>
    %435 = arith.mulf %432, %434 : vector<6x512xf32>
    %c496_i32_103 = arith.constant 496 : i32
    %436 = tpu.dynamic_rotate %411 by %c496_i32_103 dim 1 : vector<6x512xf32>, i32 -> vector<6x512xf32>
    %437 = vector.extract_strided_slice %130 {offsets = [7, 0], sizes = [1, 512], strides = [1, 1]} : vector<9x512xf32> to vector<1x512xf32>
    %438 = vector.broadcast %437 : vector<1x512xf32> to vector<6x512xf32>
    %439 = arith.mulf %436, %438 : vector<6x512xf32>
    %c495_i32_104 = arith.constant 495 : i32
    %440 = tpu.dynamic_rotate %411 by %c495_i32_104 dim 1 : vector<6x512xf32>, i32 -> vector<6x512xf32>
    %441 = vector.extract_strided_slice %130 {offsets = [8, 0], sizes = [1, 512], strides = [1, 1]} : vector<9x512xf32> to vector<1x512xf32>
    %442 = vector.broadcast %441 : vector<1x512xf32> to vector<6x512xf32>
    %443 = arith.mulf %440, %442 : vector<6x512xf32>
    %444 = tpu.concatenate %415, %419, %423, %427, %411, %431, %435, %439, %443 in 0 : vector<6x512xf32>, vector<6x512xf32>, vector<6x512xf32>, vector<6x512xf32>, vector<6x512xf32>, vector<6x512xf32>, vector<6x512xf32>, vector<6x512xf32>, vector<6x512xf32> -> vector<54x512xf32>
    %c0_105 = arith.constant 0 : index
    %c0_106 = arith.constant 0 : index
    %445 = vector.load %arg13[%c0_105, %c0_106] : memref<32x2xf32, #tpu.memory_space<vmem>>, vector<32x2xf32>
    %c0_107 = arith.constant 0 : index
    %c0_108 = arith.constant 0 : index
    %446 = vector.load %arg12[%c0_107, %c0_108] : memref<32x54xf32, #tpu.memory_space<vmem>>, vector<32x54xf32>
    %cst_109 = arith.constant dense<0.000000e+00> : vector<32x512xf32>
    %447 = tpu.matmul %446, %444, %cst_109 {dimension_numbers = #tpu.dot_dimension_numbers<[1], [0], [0], [1], [0, 0, 1, 1], [], []>} : vector<32x54xf32>, vector<54x512xf32>, vector<32x512xf32> -> vector<32x512xf32>
    %448 = vector.extract_strided_slice %445 {offsets = [0, 0], sizes = [32, 1], strides = [1, 1]} : vector<32x2xf32> to vector<32x1xf32>
    %449 = vector.broadcast %448 : vector<32x1xf32> to vector<32x512xf32>
    %450 = arith.mulf %447, %449 : vector<32x512xf32>
    %451 = vector.extract_strided_slice %445 {offsets = [0, 1], sizes = [32, 1], strides = [1, 1]} : vector<32x2xf32> to vector<32x1xf32>
    %452 = vector.broadcast %451 : vector<32x1xf32> to vector<32x512xf32>
    %453 = arith.addf %450, %452 : vector<32x512xf32>
    %cst_110 = arith.constant 0.000000e+00 : f32
    %454 = vector.broadcast %cst_110 : f32 to vector<32x512xf32>
    %455 = arith.maximumf %453, %454 : vector<32x512xf32>
    %c0_111 = arith.constant 0 : index
    %c0_112 = arith.constant 0 : index
    %456 = vector.load %arg14[%c0_111, %c0_112] : memref<2x32xf32, #tpu.memory_space<vmem>>, vector<2x32xf32>
    %cst_113 = arith.constant dense<0.000000e+00> : vector<2x512xf32>
    %457 = tpu.matmul %456, %455, %cst_113 {dimension_numbers = #tpu.dot_dimension_numbers<[1], [0], [0], [1], [0, 0, 1, 1], [], []>} : vector<2x32xf32>, vector<32x512xf32>, vector<2x512xf32> -> vector<2x512xf32>
    %c0_114 = arith.constant 0 : index
    %c0_115 = arith.constant 0 : index
    %458 = vector.load %arg15[%c0_114, %c0_115] : memref<2x1xf32, #tpu.memory_space<vmem>>, vector<2x1xf32>
    %459 = vector.broadcast %458 : vector<2x1xf32> to vector<2x512xf32>
    %460 = arith.addf %457, %459 : vector<2x512xf32>
    %461 = vector.extract_strided_slice %460 {offsets = [0, 0], sizes = [1, 512], strides = [1, 1]} : vector<2x512xf32> to vector<1x512xf32>
    %462 = vector.extract_strided_slice %460 {offsets = [1, 0], sizes = [1, 512], strides = [1, 1]} : vector<2x512xf32> to vector<1x512xf32>
    %463 = arith.negf %462 : vector<1x512xf32>
    %464 = math.exp %463 : vector<1x512xf32>
    %cst_116 = arith.constant 1.000000e+00 : f32
    %465 = vector.broadcast %cst_116 : f32 to vector<1x512xf32>
    %466 = arith.addf %465, %464 : vector<1x512xf32>
    %467 = arith.divf %465, %466 : vector<1x512xf32>
    %cst_117 = arith.constant dense<0.000000e+00> : vector<512xf32>
    %468 = vector.multi_reduction <add>, %409, %cst_117 [0] : vector<16x512xf32> to vector<512xf32>
    %469 = vector.shape_cast %468 : vector<512xf32> to vector<1x512xf32>
    %cst_118 = arith.constant 1.600000e+01 : f32
    %470 = vector.broadcast %cst_118 : f32 to vector<1x512xf32>
    %471 = arith.divf %469, %470 : vector<1x512xf32>
    %cst_119 = arith.constant dense<0xFF800000> : vector<512xf32>
    %472 = vector.multi_reduction <maximumf>, %409, %cst_119 [0] : vector<16x512xf32> to vector<512xf32>
    %473 = vector.shape_cast %472 : vector<512xf32> to vector<1x512xf32>
    %474 = tpu.concatenate %473, %471, %471, %461 in 0 : vector<1x512xf32>, vector<1x512xf32>, vector<1x512xf32>, vector<1x512xf32> -> vector<4x512xf32>
    %c64_i32 = arith.constant 64 : i32
    %475 = vector.broadcast %c64_i32 : i32 to vector<1x512xi32>
    %476 = arith.cmpi sge, %10, %475 : vector<1x512xi32>
    %c320_i32 = arith.constant 320 : i32
    %477 = vector.broadcast %c320_i32 : i32 to vector<1x512xi32>
    %478 = arith.cmpi slt, %10, %477 : vector<1x512xi32>
    %479 = arith.andi %476, %478 : vector<1x512xi1>
    %480 = arith.extui %479 : vector<1x512xi1> to vector<1x512xi32>
    %481 = arith.sitofp %480 : vector<1x512xi32> to vector<1x512xf32>
    %c48_i32 = arith.constant 48 : i32
    %482 = vector.broadcast %c48_i32 : i32 to vector<1x512xi32>
    %483 = arith.cmpi sge, %10, %482 : vector<1x512xi32>
    %c304_i32 = arith.constant 304 : i32
    %484 = vector.broadcast %c304_i32 : i32 to vector<1x512xi32>
    %485 = arith.cmpi slt, %10, %484 : vector<1x512xi32>
    %486 = arith.andi %483, %485 : vector<1x512xi1>
    %487 = arith.extui %486 : vector<1x512xi1> to vector<1x512xi32>
    %488 = arith.sitofp %487 : vector<1x512xi32> to vector<1x512xf32>
    %c32_i32 = arith.constant 32 : i32
    %489 = vector.broadcast %c32_i32 : i32 to vector<1x512xi32>
    %490 = arith.cmpi sge, %10, %489 : vector<1x512xi32>
    %c288_i32 = arith.constant 288 : i32
    %491 = vector.broadcast %c288_i32 : i32 to vector<1x512xi32>
    %492 = arith.cmpi slt, %10, %491 : vector<1x512xi32>
    %493 = arith.andi %490, %492 : vector<1x512xi1>
    %494 = arith.extui %493 : vector<1x512xi1> to vector<1x512xi32>
    %495 = arith.sitofp %494 : vector<1x512xi32> to vector<1x512xf32>
    %c16_i32_120 = arith.constant 16 : i32
    %496 = vector.broadcast %c16_i32_120 : i32 to vector<1x512xi32>
    %497 = arith.cmpi sge, %10, %496 : vector<1x512xi32>
    %c272_i32_121 = arith.constant 272 : i32
    %498 = vector.broadcast %c272_i32_121 : i32 to vector<1x512xi32>
    %499 = arith.cmpi slt, %10, %498 : vector<1x512xi32>
    %500 = arith.andi %497, %499 : vector<1x512xi1>
    %501 = arith.extui %500 : vector<1x512xi1> to vector<1x512xi32>
    %502 = arith.sitofp %501 : vector<1x512xi32> to vector<1x512xf32>
    %c0_i32_122 = arith.constant 0 : i32
    %503 = vector.broadcast %c0_i32_122 : i32 to vector<1x512xi32>
    %504 = arith.cmpi sge, %10, %503 : vector<1x512xi32>
    %c256_i32_123 = arith.constant 256 : i32
    %505 = vector.broadcast %c256_i32_123 : i32 to vector<1x512xi32>
    %506 = arith.cmpi slt, %10, %505 : vector<1x512xi32>
    %507 = arith.andi %504, %506 : vector<1x512xi1>
    %508 = arith.extui %507 : vector<1x512xi1> to vector<1x512xi32>
    %509 = arith.sitofp %508 : vector<1x512xi32> to vector<1x512xf32>
    %c-16_i32_124 = arith.constant -16 : i32
    %510 = vector.broadcast %c-16_i32_124 : i32 to vector<1x512xi32>
    %511 = arith.cmpi sge, %10, %510 : vector<1x512xi32>
    %c240_i32_125 = arith.constant 240 : i32
    %512 = vector.broadcast %c240_i32_125 : i32 to vector<1x512xi32>
    %513 = arith.cmpi slt, %10, %512 : vector<1x512xi32>
    %514 = arith.andi %511, %513 : vector<1x512xi1>
    %515 = arith.extui %514 : vector<1x512xi1> to vector<1x512xi32>
    %516 = arith.sitofp %515 : vector<1x512xi32> to vector<1x512xf32>
    %c-32_i32 = arith.constant -32 : i32
    %517 = vector.broadcast %c-32_i32 : i32 to vector<1x512xi32>
    %518 = arith.cmpi sge, %10, %517 : vector<1x512xi32>
    %c224_i32 = arith.constant 224 : i32
    %519 = vector.broadcast %c224_i32 : i32 to vector<1x512xi32>
    %520 = arith.cmpi slt, %10, %519 : vector<1x512xi32>
    %521 = arith.andi %518, %520 : vector<1x512xi1>
    %522 = arith.extui %521 : vector<1x512xi1> to vector<1x512xi32>
    %523 = arith.sitofp %522 : vector<1x512xi32> to vector<1x512xf32>
    %c-48_i32 = arith.constant -48 : i32
    %524 = vector.broadcast %c-48_i32 : i32 to vector<1x512xi32>
    %525 = arith.cmpi sge, %10, %524 : vector<1x512xi32>
    %c208_i32 = arith.constant 208 : i32
    %526 = vector.broadcast %c208_i32 : i32 to vector<1x512xi32>
    %527 = arith.cmpi slt, %10, %526 : vector<1x512xi32>
    %528 = arith.andi %525, %527 : vector<1x512xi1>
    %529 = arith.extui %528 : vector<1x512xi1> to vector<1x512xi32>
    %530 = arith.sitofp %529 : vector<1x512xi32> to vector<1x512xf32>
    %c-64_i32 = arith.constant -64 : i32
    %531 = vector.broadcast %c-64_i32 : i32 to vector<1x512xi32>
    %532 = arith.cmpi sge, %10, %531 : vector<1x512xi32>
    %c192_i32 = arith.constant 192 : i32
    %533 = vector.broadcast %c192_i32 : i32 to vector<1x512xi32>
    %534 = arith.cmpi slt, %10, %533 : vector<1x512xi32>
    %535 = arith.andi %532, %534 : vector<1x512xi1>
    %536 = arith.extui %535 : vector<1x512xi1> to vector<1x512xi32>
    %537 = arith.sitofp %536 : vector<1x512xi32> to vector<1x512xf32>
    %538 = tpu.concatenate %481, %488, %495, %502, %509, %516, %523, %530, %537 in 0 : vector<1x512xf32>, vector<1x512xf32>, vector<1x512xf32>, vector<1x512xf32>, vector<1x512xf32>, vector<1x512xf32>, vector<1x512xf32>, vector<1x512xf32>, vector<1x512xf32> -> vector<9x512xf32>
    %c4_i32 = arith.constant 4 : i32
    %539 = vector.broadcast %c4_i32 : i32 to vector<1x512xi32>
    %540 = arith.cmpi sge, %12, %539 : vector<1x512xi32>
    %c20_i32 = arith.constant 20 : i32
    %541 = vector.broadcast %c20_i32 : i32 to vector<1x512xi32>
    %542 = arith.cmpi slt, %12, %541 : vector<1x512xi32>
    %543 = arith.andi %540, %542 : vector<1x512xi1>
    %544 = arith.extui %543 : vector<1x512xi1> to vector<1x512xi32>
    %545 = arith.sitofp %544 : vector<1x512xi32> to vector<1x512xf32>
    %c3_i32 = arith.constant 3 : i32
    %546 = vector.broadcast %c3_i32 : i32 to vector<1x512xi32>
    %547 = arith.cmpi sge, %12, %546 : vector<1x512xi32>
    %c19_i32 = arith.constant 19 : i32
    %548 = vector.broadcast %c19_i32 : i32 to vector<1x512xi32>
    %549 = arith.cmpi slt, %12, %548 : vector<1x512xi32>
    %550 = arith.andi %547, %549 : vector<1x512xi1>
    %551 = arith.extui %550 : vector<1x512xi1> to vector<1x512xi32>
    %552 = arith.sitofp %551 : vector<1x512xi32> to vector<1x512xf32>
    %c2_i32 = arith.constant 2 : i32
    %553 = vector.broadcast %c2_i32 : i32 to vector<1x512xi32>
    %554 = arith.cmpi sge, %12, %553 : vector<1x512xi32>
    %c18_i32 = arith.constant 18 : i32
    %555 = vector.broadcast %c18_i32 : i32 to vector<1x512xi32>
    %556 = arith.cmpi slt, %12, %555 : vector<1x512xi32>
    %557 = arith.andi %554, %556 : vector<1x512xi1>
    %558 = arith.extui %557 : vector<1x512xi1> to vector<1x512xi32>
    %559 = arith.sitofp %558 : vector<1x512xi32> to vector<1x512xf32>
    %c1_i32_126 = arith.constant 1 : i32
    %560 = vector.broadcast %c1_i32_126 : i32 to vector<1x512xi32>
    %561 = arith.cmpi sge, %12, %560 : vector<1x512xi32>
    %c17_i32_127 = arith.constant 17 : i32
    %562 = vector.broadcast %c17_i32_127 : i32 to vector<1x512xi32>
    %563 = arith.cmpi slt, %12, %562 : vector<1x512xi32>
    %564 = arith.andi %561, %563 : vector<1x512xi1>
    %565 = arith.extui %564 : vector<1x512xi1> to vector<1x512xi32>
    %566 = arith.sitofp %565 : vector<1x512xi32> to vector<1x512xf32>
    %c0_i32_128 = arith.constant 0 : i32
    %567 = vector.broadcast %c0_i32_128 : i32 to vector<1x512xi32>
    %568 = arith.cmpi sge, %12, %567 : vector<1x512xi32>
    %c16_i32_129 = arith.constant 16 : i32
    %569 = vector.broadcast %c16_i32_129 : i32 to vector<1x512xi32>
    %570 = arith.cmpi slt, %12, %569 : vector<1x512xi32>
    %571 = arith.andi %568, %570 : vector<1x512xi1>
    %572 = arith.extui %571 : vector<1x512xi1> to vector<1x512xi32>
    %573 = arith.sitofp %572 : vector<1x512xi32> to vector<1x512xf32>
    %c-1_i32_130 = arith.constant -1 : i32
    %574 = vector.broadcast %c-1_i32_130 : i32 to vector<1x512xi32>
    %575 = arith.cmpi sge, %12, %574 : vector<1x512xi32>
    %c15_i32_131 = arith.constant 15 : i32
    %576 = vector.broadcast %c15_i32_131 : i32 to vector<1x512xi32>
    %577 = arith.cmpi slt, %12, %576 : vector<1x512xi32>
    %578 = arith.andi %575, %577 : vector<1x512xi1>
    %579 = arith.extui %578 : vector<1x512xi1> to vector<1x512xi32>
    %580 = arith.sitofp %579 : vector<1x512xi32> to vector<1x512xf32>
    %c-2_i32 = arith.constant -2 : i32
    %581 = vector.broadcast %c-2_i32 : i32 to vector<1x512xi32>
    %582 = arith.cmpi sge, %12, %581 : vector<1x512xi32>
    %c14_i32 = arith.constant 14 : i32
    %583 = vector.broadcast %c14_i32 : i32 to vector<1x512xi32>
    %584 = arith.cmpi slt, %12, %583 : vector<1x512xi32>
    %585 = arith.andi %582, %584 : vector<1x512xi1>
    %586 = arith.extui %585 : vector<1x512xi1> to vector<1x512xi32>
    %587 = arith.sitofp %586 : vector<1x512xi32> to vector<1x512xf32>
    %c-3_i32 = arith.constant -3 : i32
    %588 = vector.broadcast %c-3_i32 : i32 to vector<1x512xi32>
    %589 = arith.cmpi sge, %12, %588 : vector<1x512xi32>
    %c13_i32 = arith.constant 13 : i32
    %590 = vector.broadcast %c13_i32 : i32 to vector<1x512xi32>
    %591 = arith.cmpi slt, %12, %590 : vector<1x512xi32>
    %592 = arith.andi %589, %591 : vector<1x512xi1>
    %593 = arith.extui %592 : vector<1x512xi1> to vector<1x512xi32>
    %594 = arith.sitofp %593 : vector<1x512xi32> to vector<1x512xf32>
    %c-4_i32 = arith.constant -4 : i32
    %595 = vector.broadcast %c-4_i32 : i32 to vector<1x512xi32>
    %596 = arith.cmpi sge, %12, %595 : vector<1x512xi32>
    %c12_i32 = arith.constant 12 : i32
    %597 = vector.broadcast %c12_i32 : i32 to vector<1x512xi32>
    %598 = arith.cmpi slt, %12, %597 : vector<1x512xi32>
    %599 = arith.andi %596, %598 : vector<1x512xi1>
    %600 = arith.extui %599 : vector<1x512xi1> to vector<1x512xi32>
    %601 = arith.sitofp %600 : vector<1x512xi32> to vector<1x512xf32>
    %602 = tpu.concatenate %545, %552, %559, %566, %573, %580, %587, %594, %601 in 0 : vector<1x512xf32>, vector<1x512xf32>, vector<1x512xf32>, vector<1x512xf32>, vector<1x512xf32>, vector<1x512xf32>, vector<1x512xf32>, vector<1x512xf32>, vector<1x512xf32> -> vector<9x512xf32>
    %c0_132 = arith.constant 0 : index
    %c0_133 = arith.constant 0 : index
    %603 = vector.load %arg16[%c0_132, %c0_133] : memref<9x36xf32, #tpu.memory_space<vmem>>, vector<9x36xf32>
    %cst_134 = arith.constant 0.000000e+00 : f32
    %604 = vector.broadcast %cst_134 : f32 to vector<1x512xf32>
    %c64_i32_135 = arith.constant 64 : i32
    %605 = tpu.dynamic_rotate %474 by %c64_i32_135 dim 1 : vector<4x512xf32>, i32 -> vector<4x512xf32>
    %606 = vector.extract_strided_slice %538 {offsets = [0, 0], sizes = [1, 512], strides = [1, 1]} : vector<9x512xf32> to vector<1x512xf32>
    %607 = vector.broadcast %606 : vector<1x512xf32> to vector<4x512xf32>
    %608 = arith.mulf %605, %607 : vector<4x512xf32>
    %c4_i32_136 = arith.constant 4 : i32
    %609 = tpu.dynamic_rotate %608 by %c4_i32_136 dim 1 : vector<4x512xf32>, i32 -> vector<4x512xf32>
    %610 = vector.extract_strided_slice %602 {offsets = [0, 0], sizes = [1, 512], strides = [1, 1]} : vector<9x512xf32> to vector<1x512xf32>
    %611 = vector.broadcast %610 : vector<1x512xf32> to vector<4x512xf32>
    %612 = arith.mulf %609, %611 : vector<4x512xf32>
    %c3_i32_137 = arith.constant 3 : i32
    %613 = tpu.dynamic_rotate %608 by %c3_i32_137 dim 1 : vector<4x512xf32>, i32 -> vector<4x512xf32>
    %614 = vector.extract_strided_slice %602 {offsets = [1, 0], sizes = [1, 512], strides = [1, 1]} : vector<9x512xf32> to vector<1x512xf32>
    %615 = vector.broadcast %614 : vector<1x512xf32> to vector<4x512xf32>
    %616 = arith.mulf %613, %615 : vector<4x512xf32>
    %c2_i32_138 = arith.constant 2 : i32
    %617 = tpu.dynamic_rotate %608 by %c2_i32_138 dim 1 : vector<4x512xf32>, i32 -> vector<4x512xf32>
    %618 = vector.extract_strided_slice %602 {offsets = [2, 0], sizes = [1, 512], strides = [1, 1]} : vector<9x512xf32> to vector<1x512xf32>
    %619 = vector.broadcast %618 : vector<1x512xf32> to vector<4x512xf32>
    %620 = arith.mulf %617, %619 : vector<4x512xf32>
    %c1_i32_139 = arith.constant 1 : i32
    %621 = tpu.dynamic_rotate %608 by %c1_i32_139 dim 1 : vector<4x512xf32>, i32 -> vector<4x512xf32>
    %622 = vector.extract_strided_slice %602 {offsets = [3, 0], sizes = [1, 512], strides = [1, 1]} : vector<9x512xf32> to vector<1x512xf32>
    %623 = vector.broadcast %622 : vector<1x512xf32> to vector<4x512xf32>
    %624 = arith.mulf %621, %623 : vector<4x512xf32>
    %c511_i32_140 = arith.constant 511 : i32
    %625 = tpu.dynamic_rotate %608 by %c511_i32_140 dim 1 : vector<4x512xf32>, i32 -> vector<4x512xf32>
    %626 = vector.extract_strided_slice %602 {offsets = [5, 0], sizes = [1, 512], strides = [1, 1]} : vector<9x512xf32> to vector<1x512xf32>
    %627 = vector.broadcast %626 : vector<1x512xf32> to vector<4x512xf32>
    %628 = arith.mulf %625, %627 : vector<4x512xf32>
    %c510_i32 = arith.constant 510 : i32
    %629 = tpu.dynamic_rotate %608 by %c510_i32 dim 1 : vector<4x512xf32>, i32 -> vector<4x512xf32>
    %630 = vector.extract_strided_slice %602 {offsets = [6, 0], sizes = [1, 512], strides = [1, 1]} : vector<9x512xf32> to vector<1x512xf32>
    %631 = vector.broadcast %630 : vector<1x512xf32> to vector<4x512xf32>
    %632 = arith.mulf %629, %631 : vector<4x512xf32>
    %c509_i32 = arith.constant 509 : i32
    %633 = tpu.dynamic_rotate %608 by %c509_i32 dim 1 : vector<4x512xf32>, i32 -> vector<4x512xf32>
    %634 = vector.extract_strided_slice %602 {offsets = [7, 0], sizes = [1, 512], strides = [1, 1]} : vector<9x512xf32> to vector<1x512xf32>
    %635 = vector.broadcast %634 : vector<1x512xf32> to vector<4x512xf32>
    %636 = arith.mulf %633, %635 : vector<4x512xf32>
    %c508_i32 = arith.constant 508 : i32
    %637 = tpu.dynamic_rotate %608 by %c508_i32 dim 1 : vector<4x512xf32>, i32 -> vector<4x512xf32>
    %638 = vector.extract_strided_slice %602 {offsets = [8, 0], sizes = [1, 512], strides = [1, 1]} : vector<9x512xf32> to vector<1x512xf32>
    %639 = vector.broadcast %638 : vector<1x512xf32> to vector<4x512xf32>
    %640 = arith.mulf %637, %639 : vector<4x512xf32>
    %641 = tpu.concatenate %612, %616, %620, %624, %608, %628, %632, %636, %640 in 0 : vector<4x512xf32>, vector<4x512xf32>, vector<4x512xf32>, vector<4x512xf32>, vector<4x512xf32>, vector<4x512xf32>, vector<4x512xf32>, vector<4x512xf32>, vector<4x512xf32> -> vector<36x512xf32>
    %642 = vector.extract_strided_slice %603 {offsets = [0, 0], sizes = [1, 36], strides = [1, 1]} : vector<9x36xf32> to vector<1x36xf32>
    %cst_141 = arith.constant dense<0.000000e+00> : vector<1x512xf32>
    %643 = tpu.matmul %642, %641, %cst_141 {dimension_numbers = #tpu.dot_dimension_numbers<[1], [0], [0], [1], [0, 0, 1, 1], [], []>} : vector<1x36xf32>, vector<36x512xf32>, vector<1x512xf32> -> vector<1x512xf32>
    %644 = arith.addf %604, %643 : vector<1x512xf32>
    %c48_i32_142 = arith.constant 48 : i32
    %645 = tpu.dynamic_rotate %474 by %c48_i32_142 dim 1 : vector<4x512xf32>, i32 -> vector<4x512xf32>
    %646 = vector.extract_strided_slice %538 {offsets = [1, 0], sizes = [1, 512], strides = [1, 1]} : vector<9x512xf32> to vector<1x512xf32>
    %647 = vector.broadcast %646 : vector<1x512xf32> to vector<4x512xf32>
    %648 = arith.mulf %645, %647 : vector<4x512xf32>
    %c4_i32_143 = arith.constant 4 : i32
    %649 = tpu.dynamic_rotate %648 by %c4_i32_143 dim 1 : vector<4x512xf32>, i32 -> vector<4x512xf32>
    %650 = vector.extract_strided_slice %602 {offsets = [0, 0], sizes = [1, 512], strides = [1, 1]} : vector<9x512xf32> to vector<1x512xf32>
    %651 = vector.broadcast %650 : vector<1x512xf32> to vector<4x512xf32>
    %652 = arith.mulf %649, %651 : vector<4x512xf32>
    %c3_i32_144 = arith.constant 3 : i32
    %653 = tpu.dynamic_rotate %648 by %c3_i32_144 dim 1 : vector<4x512xf32>, i32 -> vector<4x512xf32>
    %654 = vector.extract_strided_slice %602 {offsets = [1, 0], sizes = [1, 512], strides = [1, 1]} : vector<9x512xf32> to vector<1x512xf32>
    %655 = vector.broadcast %654 : vector<1x512xf32> to vector<4x512xf32>
    %656 = arith.mulf %653, %655 : vector<4x512xf32>
    %c2_i32_145 = arith.constant 2 : i32
    %657 = tpu.dynamic_rotate %648 by %c2_i32_145 dim 1 : vector<4x512xf32>, i32 -> vector<4x512xf32>
    %658 = vector.extract_strided_slice %602 {offsets = [2, 0], sizes = [1, 512], strides = [1, 1]} : vector<9x512xf32> to vector<1x512xf32>
    %659 = vector.broadcast %658 : vector<1x512xf32> to vector<4x512xf32>
    %660 = arith.mulf %657, %659 : vector<4x512xf32>
    %c1_i32_146 = arith.constant 1 : i32
    %661 = tpu.dynamic_rotate %648 by %c1_i32_146 dim 1 : vector<4x512xf32>, i32 -> vector<4x512xf32>
    %662 = vector.extract_strided_slice %602 {offsets = [3, 0], sizes = [1, 512], strides = [1, 1]} : vector<9x512xf32> to vector<1x512xf32>
    %663 = vector.broadcast %662 : vector<1x512xf32> to vector<4x512xf32>
    %664 = arith.mulf %661, %663 : vector<4x512xf32>
    %c511_i32_147 = arith.constant 511 : i32
    %665 = tpu.dynamic_rotate %648 by %c511_i32_147 dim 1 : vector<4x512xf32>, i32 -> vector<4x512xf32>
    %666 = vector.extract_strided_slice %602 {offsets = [5, 0], sizes = [1, 512], strides = [1, 1]} : vector<9x512xf32> to vector<1x512xf32>
    %667 = vector.broadcast %666 : vector<1x512xf32> to vector<4x512xf32>
    %668 = arith.mulf %665, %667 : vector<4x512xf32>
    %c510_i32_148 = arith.constant 510 : i32
    %669 = tpu.dynamic_rotate %648 by %c510_i32_148 dim 1 : vector<4x512xf32>, i32 -> vector<4x512xf32>
    %670 = vector.extract_strided_slice %602 {offsets = [6, 0], sizes = [1, 512], strides = [1, 1]} : vector<9x512xf32> to vector<1x512xf32>
    %671 = vector.broadcast %670 : vector<1x512xf32> to vector<4x512xf32>
    %672 = arith.mulf %669, %671 : vector<4x512xf32>
    %c509_i32_149 = arith.constant 509 : i32
    %673 = tpu.dynamic_rotate %648 by %c509_i32_149 dim 1 : vector<4x512xf32>, i32 -> vector<4x512xf32>
    %674 = vector.extract_strided_slice %602 {offsets = [7, 0], sizes = [1, 512], strides = [1, 1]} : vector<9x512xf32> to vector<1x512xf32>
    %675 = vector.broadcast %674 : vector<1x512xf32> to vector<4x512xf32>
    %676 = arith.mulf %673, %675 : vector<4x512xf32>
    %c508_i32_150 = arith.constant 508 : i32
    %677 = tpu.dynamic_rotate %648 by %c508_i32_150 dim 1 : vector<4x512xf32>, i32 -> vector<4x512xf32>
    %678 = vector.extract_strided_slice %602 {offsets = [8, 0], sizes = [1, 512], strides = [1, 1]} : vector<9x512xf32> to vector<1x512xf32>
    %679 = vector.broadcast %678 : vector<1x512xf32> to vector<4x512xf32>
    %680 = arith.mulf %677, %679 : vector<4x512xf32>
    %681 = tpu.concatenate %652, %656, %660, %664, %648, %668, %672, %676, %680 in 0 : vector<4x512xf32>, vector<4x512xf32>, vector<4x512xf32>, vector<4x512xf32>, vector<4x512xf32>, vector<4x512xf32>, vector<4x512xf32>, vector<4x512xf32>, vector<4x512xf32> -> vector<36x512xf32>
    %682 = vector.extract_strided_slice %603 {offsets = [1, 0], sizes = [1, 36], strides = [1, 1]} : vector<9x36xf32> to vector<1x36xf32>
    %cst_151 = arith.constant dense<0.000000e+00> : vector<1x512xf32>
    %683 = tpu.matmul %682, %681, %cst_151 {dimension_numbers = #tpu.dot_dimension_numbers<[1], [0], [0], [1], [0, 0, 1, 1], [], []>} : vector<1x36xf32>, vector<36x512xf32>, vector<1x512xf32> -> vector<1x512xf32>
    %684 = arith.addf %644, %683 : vector<1x512xf32>
    %c32_i32_152 = arith.constant 32 : i32
    %685 = tpu.dynamic_rotate %474 by %c32_i32_152 dim 1 : vector<4x512xf32>, i32 -> vector<4x512xf32>
    %686 = vector.extract_strided_slice %538 {offsets = [2, 0], sizes = [1, 512], strides = [1, 1]} : vector<9x512xf32> to vector<1x512xf32>
    %687 = vector.broadcast %686 : vector<1x512xf32> to vector<4x512xf32>
    %688 = arith.mulf %685, %687 : vector<4x512xf32>
    %c4_i32_153 = arith.constant 4 : i32
    %689 = tpu.dynamic_rotate %688 by %c4_i32_153 dim 1 : vector<4x512xf32>, i32 -> vector<4x512xf32>
    %690 = vector.extract_strided_slice %602 {offsets = [0, 0], sizes = [1, 512], strides = [1, 1]} : vector<9x512xf32> to vector<1x512xf32>
    %691 = vector.broadcast %690 : vector<1x512xf32> to vector<4x512xf32>
    %692 = arith.mulf %689, %691 : vector<4x512xf32>
    %c3_i32_154 = arith.constant 3 : i32
    %693 = tpu.dynamic_rotate %688 by %c3_i32_154 dim 1 : vector<4x512xf32>, i32 -> vector<4x512xf32>
    %694 = vector.extract_strided_slice %602 {offsets = [1, 0], sizes = [1, 512], strides = [1, 1]} : vector<9x512xf32> to vector<1x512xf32>
    %695 = vector.broadcast %694 : vector<1x512xf32> to vector<4x512xf32>
    %696 = arith.mulf %693, %695 : vector<4x512xf32>
    %c2_i32_155 = arith.constant 2 : i32
    %697 = tpu.dynamic_rotate %688 by %c2_i32_155 dim 1 : vector<4x512xf32>, i32 -> vector<4x512xf32>
    %698 = vector.extract_strided_slice %602 {offsets = [2, 0], sizes = [1, 512], strides = [1, 1]} : vector<9x512xf32> to vector<1x512xf32>
    %699 = vector.broadcast %698 : vector<1x512xf32> to vector<4x512xf32>
    %700 = arith.mulf %697, %699 : vector<4x512xf32>
    %c1_i32_156 = arith.constant 1 : i32
    %701 = tpu.dynamic_rotate %688 by %c1_i32_156 dim 1 : vector<4x512xf32>, i32 -> vector<4x512xf32>
    %702 = vector.extract_strided_slice %602 {offsets = [3, 0], sizes = [1, 512], strides = [1, 1]} : vector<9x512xf32> to vector<1x512xf32>
    %703 = vector.broadcast %702 : vector<1x512xf32> to vector<4x512xf32>
    %704 = arith.mulf %701, %703 : vector<4x512xf32>
    %c511_i32_157 = arith.constant 511 : i32
    %705 = tpu.dynamic_rotate %688 by %c511_i32_157 dim 1 : vector<4x512xf32>, i32 -> vector<4x512xf32>
    %706 = vector.extract_strided_slice %602 {offsets = [5, 0], sizes = [1, 512], strides = [1, 1]} : vector<9x512xf32> to vector<1x512xf32>
    %707 = vector.broadcast %706 : vector<1x512xf32> to vector<4x512xf32>
    %708 = arith.mulf %705, %707 : vector<4x512xf32>
    %c510_i32_158 = arith.constant 510 : i32
    %709 = tpu.dynamic_rotate %688 by %c510_i32_158 dim 1 : vector<4x512xf32>, i32 -> vector<4x512xf32>
    %710 = vector.extract_strided_slice %602 {offsets = [6, 0], sizes = [1, 512], strides = [1, 1]} : vector<9x512xf32> to vector<1x512xf32>
    %711 = vector.broadcast %710 : vector<1x512xf32> to vector<4x512xf32>
    %712 = arith.mulf %709, %711 : vector<4x512xf32>
    %c509_i32_159 = arith.constant 509 : i32
    %713 = tpu.dynamic_rotate %688 by %c509_i32_159 dim 1 : vector<4x512xf32>, i32 -> vector<4x512xf32>
    %714 = vector.extract_strided_slice %602 {offsets = [7, 0], sizes = [1, 512], strides = [1, 1]} : vector<9x512xf32> to vector<1x512xf32>
    %715 = vector.broadcast %714 : vector<1x512xf32> to vector<4x512xf32>
    %716 = arith.mulf %713, %715 : vector<4x512xf32>
    %c508_i32_160 = arith.constant 508 : i32
    %717 = tpu.dynamic_rotate %688 by %c508_i32_160 dim 1 : vector<4x512xf32>, i32 -> vector<4x512xf32>
    %718 = vector.extract_strided_slice %602 {offsets = [8, 0], sizes = [1, 512], strides = [1, 1]} : vector<9x512xf32> to vector<1x512xf32>
    %719 = vector.broadcast %718 : vector<1x512xf32> to vector<4x512xf32>
    %720 = arith.mulf %717, %719 : vector<4x512xf32>
    %721 = tpu.concatenate %692, %696, %700, %704, %688, %708, %712, %716, %720 in 0 : vector<4x512xf32>, vector<4x512xf32>, vector<4x512xf32>, vector<4x512xf32>, vector<4x512xf32>, vector<4x512xf32>, vector<4x512xf32>, vector<4x512xf32>, vector<4x512xf32> -> vector<36x512xf32>
    %722 = vector.extract_strided_slice %603 {offsets = [2, 0], sizes = [1, 36], strides = [1, 1]} : vector<9x36xf32> to vector<1x36xf32>
    %cst_161 = arith.constant dense<0.000000e+00> : vector<1x512xf32>
    %723 = tpu.matmul %722, %721, %cst_161 {dimension_numbers = #tpu.dot_dimension_numbers<[1], [0], [0], [1], [0, 0, 1, 1], [], []>} : vector<1x36xf32>, vector<36x512xf32>, vector<1x512xf32> -> vector<1x512xf32>
    %724 = arith.addf %684, %723 : vector<1x512xf32>
    %c16_i32_162 = arith.constant 16 : i32
    %725 = tpu.dynamic_rotate %474 by %c16_i32_162 dim 1 : vector<4x512xf32>, i32 -> vector<4x512xf32>
    %726 = vector.extract_strided_slice %538 {offsets = [3, 0], sizes = [1, 512], strides = [1, 1]} : vector<9x512xf32> to vector<1x512xf32>
    %727 = vector.broadcast %726 : vector<1x512xf32> to vector<4x512xf32>
    %728 = arith.mulf %725, %727 : vector<4x512xf32>
    %c4_i32_163 = arith.constant 4 : i32
    %729 = tpu.dynamic_rotate %728 by %c4_i32_163 dim 1 : vector<4x512xf32>, i32 -> vector<4x512xf32>
    %730 = vector.extract_strided_slice %602 {offsets = [0, 0], sizes = [1, 512], strides = [1, 1]} : vector<9x512xf32> to vector<1x512xf32>
    %731 = vector.broadcast %730 : vector<1x512xf32> to vector<4x512xf32>
    %732 = arith.mulf %729, %731 : vector<4x512xf32>
    %c3_i32_164 = arith.constant 3 : i32
    %733 = tpu.dynamic_rotate %728 by %c3_i32_164 dim 1 : vector<4x512xf32>, i32 -> vector<4x512xf32>
    %734 = vector.extract_strided_slice %602 {offsets = [1, 0], sizes = [1, 512], strides = [1, 1]} : vector<9x512xf32> to vector<1x512xf32>
    %735 = vector.broadcast %734 : vector<1x512xf32> to vector<4x512xf32>
    %736 = arith.mulf %733, %735 : vector<4x512xf32>
    %c2_i32_165 = arith.constant 2 : i32
    %737 = tpu.dynamic_rotate %728 by %c2_i32_165 dim 1 : vector<4x512xf32>, i32 -> vector<4x512xf32>
    %738 = vector.extract_strided_slice %602 {offsets = [2, 0], sizes = [1, 512], strides = [1, 1]} : vector<9x512xf32> to vector<1x512xf32>
    %739 = vector.broadcast %738 : vector<1x512xf32> to vector<4x512xf32>
    %740 = arith.mulf %737, %739 : vector<4x512xf32>
    %c1_i32_166 = arith.constant 1 : i32
    %741 = tpu.dynamic_rotate %728 by %c1_i32_166 dim 1 : vector<4x512xf32>, i32 -> vector<4x512xf32>
    %742 = vector.extract_strided_slice %602 {offsets = [3, 0], sizes = [1, 512], strides = [1, 1]} : vector<9x512xf32> to vector<1x512xf32>
    %743 = vector.broadcast %742 : vector<1x512xf32> to vector<4x512xf32>
    %744 = arith.mulf %741, %743 : vector<4x512xf32>
    %c511_i32_167 = arith.constant 511 : i32
    %745 = tpu.dynamic_rotate %728 by %c511_i32_167 dim 1 : vector<4x512xf32>, i32 -> vector<4x512xf32>
    %746 = vector.extract_strided_slice %602 {offsets = [5, 0], sizes = [1, 512], strides = [1, 1]} : vector<9x512xf32> to vector<1x512xf32>
    %747 = vector.broadcast %746 : vector<1x512xf32> to vector<4x512xf32>
    %748 = arith.mulf %745, %747 : vector<4x512xf32>
    %c510_i32_168 = arith.constant 510 : i32
    %749 = tpu.dynamic_rotate %728 by %c510_i32_168 dim 1 : vector<4x512xf32>, i32 -> vector<4x512xf32>
    %750 = vector.extract_strided_slice %602 {offsets = [6, 0], sizes = [1, 512], strides = [1, 1]} : vector<9x512xf32> to vector<1x512xf32>
    %751 = vector.broadcast %750 : vector<1x512xf32> to vector<4x512xf32>
    %752 = arith.mulf %749, %751 : vector<4x512xf32>
    %c509_i32_169 = arith.constant 509 : i32
    %753 = tpu.dynamic_rotate %728 by %c509_i32_169 dim 1 : vector<4x512xf32>, i32 -> vector<4x512xf32>
    %754 = vector.extract_strided_slice %602 {offsets = [7, 0], sizes = [1, 512], strides = [1, 1]} : vector<9x512xf32> to vector<1x512xf32>
    %755 = vector.broadcast %754 : vector<1x512xf32> to vector<4x512xf32>
    %756 = arith.mulf %753, %755 : vector<4x512xf32>
    %c508_i32_170 = arith.constant 508 : i32
    %757 = tpu.dynamic_rotate %728 by %c508_i32_170 dim 1 : vector<4x512xf32>, i32 -> vector<4x512xf32>
    %758 = vector.extract_strided_slice %602 {offsets = [8, 0], sizes = [1, 512], strides = [1, 1]} : vector<9x512xf32> to vector<1x512xf32>
    %759 = vector.broadcast %758 : vector<1x512xf32> to vector<4x512xf32>
    %760 = arith.mulf %757, %759 : vector<4x512xf32>
    %761 = tpu.concatenate %732, %736, %740, %744, %728, %748, %752, %756, %760 in 0 : vector<4x512xf32>, vector<4x512xf32>, vector<4x512xf32>, vector<4x512xf32>, vector<4x512xf32>, vector<4x512xf32>, vector<4x512xf32>, vector<4x512xf32>, vector<4x512xf32> -> vector<36x512xf32>
    %762 = vector.extract_strided_slice %603 {offsets = [3, 0], sizes = [1, 36], strides = [1, 1]} : vector<9x36xf32> to vector<1x36xf32>
    %cst_171 = arith.constant dense<0.000000e+00> : vector<1x512xf32>
    %763 = tpu.matmul %762, %761, %cst_171 {dimension_numbers = #tpu.dot_dimension_numbers<[1], [0], [0], [1], [0, 0, 1, 1], [], []>} : vector<1x36xf32>, vector<36x512xf32>, vector<1x512xf32> -> vector<1x512xf32>
    %764 = arith.addf %724, %763 : vector<1x512xf32>
    %c4_i32_172 = arith.constant 4 : i32
    %765 = tpu.dynamic_rotate %474 by %c4_i32_172 dim 1 : vector<4x512xf32>, i32 -> vector<4x512xf32>
    %766 = vector.extract_strided_slice %602 {offsets = [0, 0], sizes = [1, 512], strides = [1, 1]} : vector<9x512xf32> to vector<1x512xf32>
    %767 = vector.broadcast %766 : vector<1x512xf32> to vector<4x512xf32>
    %768 = arith.mulf %765, %767 : vector<4x512xf32>
    %c3_i32_173 = arith.constant 3 : i32
    %769 = tpu.dynamic_rotate %474 by %c3_i32_173 dim 1 : vector<4x512xf32>, i32 -> vector<4x512xf32>
    %770 = vector.extract_strided_slice %602 {offsets = [1, 0], sizes = [1, 512], strides = [1, 1]} : vector<9x512xf32> to vector<1x512xf32>
    %771 = vector.broadcast %770 : vector<1x512xf32> to vector<4x512xf32>
    %772 = arith.mulf %769, %771 : vector<4x512xf32>
    %c2_i32_174 = arith.constant 2 : i32
    %773 = tpu.dynamic_rotate %474 by %c2_i32_174 dim 1 : vector<4x512xf32>, i32 -> vector<4x512xf32>
    %774 = vector.extract_strided_slice %602 {offsets = [2, 0], sizes = [1, 512], strides = [1, 1]} : vector<9x512xf32> to vector<1x512xf32>
    %775 = vector.broadcast %774 : vector<1x512xf32> to vector<4x512xf32>
    %776 = arith.mulf %773, %775 : vector<4x512xf32>
    %c1_i32_175 = arith.constant 1 : i32
    %777 = tpu.dynamic_rotate %474 by %c1_i32_175 dim 1 : vector<4x512xf32>, i32 -> vector<4x512xf32>
    %778 = vector.extract_strided_slice %602 {offsets = [3, 0], sizes = [1, 512], strides = [1, 1]} : vector<9x512xf32> to vector<1x512xf32>
    %779 = vector.broadcast %778 : vector<1x512xf32> to vector<4x512xf32>
    %780 = arith.mulf %777, %779 : vector<4x512xf32>
    %c511_i32_176 = arith.constant 511 : i32
    %781 = tpu.dynamic_rotate %474 by %c511_i32_176 dim 1 : vector<4x512xf32>, i32 -> vector<4x512xf32>
    %782 = vector.extract_strided_slice %602 {offsets = [5, 0], sizes = [1, 512], strides = [1, 1]} : vector<9x512xf32> to vector<1x512xf32>
    %783 = vector.broadcast %782 : vector<1x512xf32> to vector<4x512xf32>
    %784 = arith.mulf %781, %783 : vector<4x512xf32>
    %c510_i32_177 = arith.constant 510 : i32
    %785 = tpu.dynamic_rotate %474 by %c510_i32_177 dim 1 : vector<4x512xf32>, i32 -> vector<4x512xf32>
    %786 = vector.extract_strided_slice %602 {offsets = [6, 0], sizes = [1, 512], strides = [1, 1]} : vector<9x512xf32> to vector<1x512xf32>
    %787 = vector.broadcast %786 : vector<1x512xf32> to vector<4x512xf32>
    %788 = arith.mulf %785, %787 : vector<4x512xf32>
    %c509_i32_178 = arith.constant 509 : i32
    %789 = tpu.dynamic_rotate %474 by %c509_i32_178 dim 1 : vector<4x512xf32>, i32 -> vector<4x512xf32>
    %790 = vector.extract_strided_slice %602 {offsets = [7, 0], sizes = [1, 512], strides = [1, 1]} : vector<9x512xf32> to vector<1x512xf32>
    %791 = vector.broadcast %790 : vector<1x512xf32> to vector<4x512xf32>
    %792 = arith.mulf %789, %791 : vector<4x512xf32>
    %c508_i32_179 = arith.constant 508 : i32
    %793 = tpu.dynamic_rotate %474 by %c508_i32_179 dim 1 : vector<4x512xf32>, i32 -> vector<4x512xf32>
    %794 = vector.extract_strided_slice %602 {offsets = [8, 0], sizes = [1, 512], strides = [1, 1]} : vector<9x512xf32> to vector<1x512xf32>
    %795 = vector.broadcast %794 : vector<1x512xf32> to vector<4x512xf32>
    %796 = arith.mulf %793, %795 : vector<4x512xf32>
    %797 = tpu.concatenate %768, %772, %776, %780, %474, %784, %788, %792, %796 in 0 : vector<4x512xf32>, vector<4x512xf32>, vector<4x512xf32>, vector<4x512xf32>, vector<4x512xf32>, vector<4x512xf32>, vector<4x512xf32>, vector<4x512xf32>, vector<4x512xf32> -> vector<36x512xf32>
    %798 = vector.extract_strided_slice %603 {offsets = [4, 0], sizes = [1, 36], strides = [1, 1]} : vector<9x36xf32> to vector<1x36xf32>
    %cst_180 = arith.constant dense<0.000000e+00> : vector<1x512xf32>
    %799 = tpu.matmul %798, %797, %cst_180 {dimension_numbers = #tpu.dot_dimension_numbers<[1], [0], [0], [1], [0, 0, 1, 1], [], []>} : vector<1x36xf32>, vector<36x512xf32>, vector<1x512xf32> -> vector<1x512xf32>
    %800 = arith.addf %764, %799 : vector<1x512xf32>
    %c496_i32_181 = arith.constant 496 : i32
    %801 = tpu.dynamic_rotate %474 by %c496_i32_181 dim 1 : vector<4x512xf32>, i32 -> vector<4x512xf32>
    %802 = vector.extract_strided_slice %538 {offsets = [5, 0], sizes = [1, 512], strides = [1, 1]} : vector<9x512xf32> to vector<1x512xf32>
    %803 = vector.broadcast %802 : vector<1x512xf32> to vector<4x512xf32>
    %804 = arith.mulf %801, %803 : vector<4x512xf32>
    %c4_i32_182 = arith.constant 4 : i32
    %805 = tpu.dynamic_rotate %804 by %c4_i32_182 dim 1 : vector<4x512xf32>, i32 -> vector<4x512xf32>
    %806 = vector.extract_strided_slice %602 {offsets = [0, 0], sizes = [1, 512], strides = [1, 1]} : vector<9x512xf32> to vector<1x512xf32>
    %807 = vector.broadcast %806 : vector<1x512xf32> to vector<4x512xf32>
    %808 = arith.mulf %805, %807 : vector<4x512xf32>
    %c3_i32_183 = arith.constant 3 : i32
    %809 = tpu.dynamic_rotate %804 by %c3_i32_183 dim 1 : vector<4x512xf32>, i32 -> vector<4x512xf32>
    %810 = vector.extract_strided_slice %602 {offsets = [1, 0], sizes = [1, 512], strides = [1, 1]} : vector<9x512xf32> to vector<1x512xf32>
    %811 = vector.broadcast %810 : vector<1x512xf32> to vector<4x512xf32>
    %812 = arith.mulf %809, %811 : vector<4x512xf32>
    %c2_i32_184 = arith.constant 2 : i32
    %813 = tpu.dynamic_rotate %804 by %c2_i32_184 dim 1 : vector<4x512xf32>, i32 -> vector<4x512xf32>
    %814 = vector.extract_strided_slice %602 {offsets = [2, 0], sizes = [1, 512], strides = [1, 1]} : vector<9x512xf32> to vector<1x512xf32>
    %815 = vector.broadcast %814 : vector<1x512xf32> to vector<4x512xf32>
    %816 = arith.mulf %813, %815 : vector<4x512xf32>
    %c1_i32_185 = arith.constant 1 : i32
    %817 = tpu.dynamic_rotate %804 by %c1_i32_185 dim 1 : vector<4x512xf32>, i32 -> vector<4x512xf32>
    %818 = vector.extract_strided_slice %602 {offsets = [3, 0], sizes = [1, 512], strides = [1, 1]} : vector<9x512xf32> to vector<1x512xf32>
    %819 = vector.broadcast %818 : vector<1x512xf32> to vector<4x512xf32>
    %820 = arith.mulf %817, %819 : vector<4x512xf32>
    %c511_i32_186 = arith.constant 511 : i32
    %821 = tpu.dynamic_rotate %804 by %c511_i32_186 dim 1 : vector<4x512xf32>, i32 -> vector<4x512xf32>
    %822 = vector.extract_strided_slice %602 {offsets = [5, 0], sizes = [1, 512], strides = [1, 1]} : vector<9x512xf32> to vector<1x512xf32>
    %823 = vector.broadcast %822 : vector<1x512xf32> to vector<4x512xf32>
    %824 = arith.mulf %821, %823 : vector<4x512xf32>
    %c510_i32_187 = arith.constant 510 : i32
    %825 = tpu.dynamic_rotate %804 by %c510_i32_187 dim 1 : vector<4x512xf32>, i32 -> vector<4x512xf32>
    %826 = vector.extract_strided_slice %602 {offsets = [6, 0], sizes = [1, 512], strides = [1, 1]} : vector<9x512xf32> to vector<1x512xf32>
    %827 = vector.broadcast %826 : vector<1x512xf32> to vector<4x512xf32>
    %828 = arith.mulf %825, %827 : vector<4x512xf32>
    %c509_i32_188 = arith.constant 509 : i32
    %829 = tpu.dynamic_rotate %804 by %c509_i32_188 dim 1 : vector<4x512xf32>, i32 -> vector<4x512xf32>
    %830 = vector.extract_strided_slice %602 {offsets = [7, 0], sizes = [1, 512], strides = [1, 1]} : vector<9x512xf32> to vector<1x512xf32>
    %831 = vector.broadcast %830 : vector<1x512xf32> to vector<4x512xf32>
    %832 = arith.mulf %829, %831 : vector<4x512xf32>
    %c508_i32_189 = arith.constant 508 : i32
    %833 = tpu.dynamic_rotate %804 by %c508_i32_189 dim 1 : vector<4x512xf32>, i32 -> vector<4x512xf32>
    %834 = vector.extract_strided_slice %602 {offsets = [8, 0], sizes = [1, 512], strides = [1, 1]} : vector<9x512xf32> to vector<1x512xf32>
    %835 = vector.broadcast %834 : vector<1x512xf32> to vector<4x512xf32>
    %836 = arith.mulf %833, %835 : vector<4x512xf32>
    %837 = tpu.concatenate %808, %812, %816, %820, %804, %824, %828, %832, %836 in 0 : vector<4x512xf32>, vector<4x512xf32>, vector<4x512xf32>, vector<4x512xf32>, vector<4x512xf32>, vector<4x512xf32>, vector<4x512xf32>, vector<4x512xf32>, vector<4x512xf32> -> vector<36x512xf32>
    %838 = vector.extract_strided_slice %603 {offsets = [5, 0], sizes = [1, 36], strides = [1, 1]} : vector<9x36xf32> to vector<1x36xf32>
    %cst_190 = arith.constant dense<0.000000e+00> : vector<1x512xf32>
    %839 = tpu.matmul %838, %837, %cst_190 {dimension_numbers = #tpu.dot_dimension_numbers<[1], [0], [0], [1], [0, 0, 1, 1], [], []>} : vector<1x36xf32>, vector<36x512xf32>, vector<1x512xf32> -> vector<1x512xf32>
    %840 = arith.addf %800, %839 : vector<1x512xf32>
    %c480_i32 = arith.constant 480 : i32
    %841 = tpu.dynamic_rotate %474 by %c480_i32 dim 1 : vector<4x512xf32>, i32 -> vector<4x512xf32>
    %842 = vector.extract_strided_slice %538 {offsets = [6, 0], sizes = [1, 512], strides = [1, 1]} : vector<9x512xf32> to vector<1x512xf32>
    %843 = vector.broadcast %842 : vector<1x512xf32> to vector<4x512xf32>
    %844 = arith.mulf %841, %843 : vector<4x512xf32>
    %c4_i32_191 = arith.constant 4 : i32
    %845 = tpu.dynamic_rotate %844 by %c4_i32_191 dim 1 : vector<4x512xf32>, i32 -> vector<4x512xf32>
    %846 = vector.extract_strided_slice %602 {offsets = [0, 0], sizes = [1, 512], strides = [1, 1]} : vector<9x512xf32> to vector<1x512xf32>
    %847 = vector.broadcast %846 : vector<1x512xf32> to vector<4x512xf32>
    %848 = arith.mulf %845, %847 : vector<4x512xf32>
    %c3_i32_192 = arith.constant 3 : i32
    %849 = tpu.dynamic_rotate %844 by %c3_i32_192 dim 1 : vector<4x512xf32>, i32 -> vector<4x512xf32>
    %850 = vector.extract_strided_slice %602 {offsets = [1, 0], sizes = [1, 512], strides = [1, 1]} : vector<9x512xf32> to vector<1x512xf32>
    %851 = vector.broadcast %850 : vector<1x512xf32> to vector<4x512xf32>
    %852 = arith.mulf %849, %851 : vector<4x512xf32>
    %c2_i32_193 = arith.constant 2 : i32
    %853 = tpu.dynamic_rotate %844 by %c2_i32_193 dim 1 : vector<4x512xf32>, i32 -> vector<4x512xf32>
    %854 = vector.extract_strided_slice %602 {offsets = [2, 0], sizes = [1, 512], strides = [1, 1]} : vector<9x512xf32> to vector<1x512xf32>
    %855 = vector.broadcast %854 : vector<1x512xf32> to vector<4x512xf32>
    %856 = arith.mulf %853, %855 : vector<4x512xf32>
    %c1_i32_194 = arith.constant 1 : i32
    %857 = tpu.dynamic_rotate %844 by %c1_i32_194 dim 1 : vector<4x512xf32>, i32 -> vector<4x512xf32>
    %858 = vector.extract_strided_slice %602 {offsets = [3, 0], sizes = [1, 512], strides = [1, 1]} : vector<9x512xf32> to vector<1x512xf32>
    %859 = vector.broadcast %858 : vector<1x512xf32> to vector<4x512xf32>
    %860 = arith.mulf %857, %859 : vector<4x512xf32>
    %c511_i32_195 = arith.constant 511 : i32
    %861 = tpu.dynamic_rotate %844 by %c511_i32_195 dim 1 : vector<4x512xf32>, i32 -> vector<4x512xf32>
    %862 = vector.extract_strided_slice %602 {offsets = [5, 0], sizes = [1, 512], strides = [1, 1]} : vector<9x512xf32> to vector<1x512xf32>
    %863 = vector.broadcast %862 : vector<1x512xf32> to vector<4x512xf32>
    %864 = arith.mulf %861, %863 : vector<4x512xf32>
    %c510_i32_196 = arith.constant 510 : i32
    %865 = tpu.dynamic_rotate %844 by %c510_i32_196 dim 1 : vector<4x512xf32>, i32 -> vector<4x512xf32>
    %866 = vector.extract_strided_slice %602 {offsets = [6, 0], sizes = [1, 512], strides = [1, 1]} : vector<9x512xf32> to vector<1x512xf32>
    %867 = vector.broadcast %866 : vector<1x512xf32> to vector<4x512xf32>
    %868 = arith.mulf %865, %867 : vector<4x512xf32>
    %c509_i32_197 = arith.constant 509 : i32
    %869 = tpu.dynamic_rotate %844 by %c509_i32_197 dim 1 : vector<4x512xf32>, i32 -> vector<4x512xf32>
    %870 = vector.extract_strided_slice %602 {offsets = [7, 0], sizes = [1, 512], strides = [1, 1]} : vector<9x512xf32> to vector<1x512xf32>
    %871 = vector.broadcast %870 : vector<1x512xf32> to vector<4x512xf32>
    %872 = arith.mulf %869, %871 : vector<4x512xf32>
    %c508_i32_198 = arith.constant 508 : i32
    %873 = tpu.dynamic_rotate %844 by %c508_i32_198 dim 1 : vector<4x512xf32>, i32 -> vector<4x512xf32>
    %874 = vector.extract_strided_slice %602 {offsets = [8, 0], sizes = [1, 512], strides = [1, 1]} : vector<9x512xf32> to vector<1x512xf32>
    %875 = vector.broadcast %874 : vector<1x512xf32> to vector<4x512xf32>
    %876 = arith.mulf %873, %875 : vector<4x512xf32>
    %877 = tpu.concatenate %848, %852, %856, %860, %844, %864, %868, %872, %876 in 0 : vector<4x512xf32>, vector<4x512xf32>, vector<4x512xf32>, vector<4x512xf32>, vector<4x512xf32>, vector<4x512xf32>, vector<4x512xf32>, vector<4x512xf32>, vector<4x512xf32> -> vector<36x512xf32>
    %878 = vector.extract_strided_slice %603 {offsets = [6, 0], sizes = [1, 36], strides = [1, 1]} : vector<9x36xf32> to vector<1x36xf32>
    %cst_199 = arith.constant dense<0.000000e+00> : vector<1x512xf32>
    %879 = tpu.matmul %878, %877, %cst_199 {dimension_numbers = #tpu.dot_dimension_numbers<[1], [0], [0], [1], [0, 0, 1, 1], [], []>} : vector<1x36xf32>, vector<36x512xf32>, vector<1x512xf32> -> vector<1x512xf32>
    %880 = arith.addf %840, %879 : vector<1x512xf32>
    %c464_i32 = arith.constant 464 : i32
    %881 = tpu.dynamic_rotate %474 by %c464_i32 dim 1 : vector<4x512xf32>, i32 -> vector<4x512xf32>
    %882 = vector.extract_strided_slice %538 {offsets = [7, 0], sizes = [1, 512], strides = [1, 1]} : vector<9x512xf32> to vector<1x512xf32>
    %883 = vector.broadcast %882 : vector<1x512xf32> to vector<4x512xf32>
    %884 = arith.mulf %881, %883 : vector<4x512xf32>
    %c4_i32_200 = arith.constant 4 : i32
    %885 = tpu.dynamic_rotate %884 by %c4_i32_200 dim 1 : vector<4x512xf32>, i32 -> vector<4x512xf32>
    %886 = vector.extract_strided_slice %602 {offsets = [0, 0], sizes = [1, 512], strides = [1, 1]} : vector<9x512xf32> to vector<1x512xf32>
    %887 = vector.broadcast %886 : vector<1x512xf32> to vector<4x512xf32>
    %888 = arith.mulf %885, %887 : vector<4x512xf32>
    %c3_i32_201 = arith.constant 3 : i32
    %889 = tpu.dynamic_rotate %884 by %c3_i32_201 dim 1 : vector<4x512xf32>, i32 -> vector<4x512xf32>
    %890 = vector.extract_strided_slice %602 {offsets = [1, 0], sizes = [1, 512], strides = [1, 1]} : vector<9x512xf32> to vector<1x512xf32>
    %891 = vector.broadcast %890 : vector<1x512xf32> to vector<4x512xf32>
    %892 = arith.mulf %889, %891 : vector<4x512xf32>
    %c2_i32_202 = arith.constant 2 : i32
    %893 = tpu.dynamic_rotate %884 by %c2_i32_202 dim 1 : vector<4x512xf32>, i32 -> vector<4x512xf32>
    %894 = vector.extract_strided_slice %602 {offsets = [2, 0], sizes = [1, 512], strides = [1, 1]} : vector<9x512xf32> to vector<1x512xf32>
    %895 = vector.broadcast %894 : vector<1x512xf32> to vector<4x512xf32>
    %896 = arith.mulf %893, %895 : vector<4x512xf32>
    %c1_i32_203 = arith.constant 1 : i32
    %897 = tpu.dynamic_rotate %884 by %c1_i32_203 dim 1 : vector<4x512xf32>, i32 -> vector<4x512xf32>
    %898 = vector.extract_strided_slice %602 {offsets = [3, 0], sizes = [1, 512], strides = [1, 1]} : vector<9x512xf32> to vector<1x512xf32>
    %899 = vector.broadcast %898 : vector<1x512xf32> to vector<4x512xf32>
    %900 = arith.mulf %897, %899 : vector<4x512xf32>
    %c511_i32_204 = arith.constant 511 : i32
    %901 = tpu.dynamic_rotate %884 by %c511_i32_204 dim 1 : vector<4x512xf32>, i32 -> vector<4x512xf32>
    %902 = vector.extract_strided_slice %602 {offsets = [5, 0], sizes = [1, 512], strides = [1, 1]} : vector<9x512xf32> to vector<1x512xf32>
    %903 = vector.broadcast %902 : vector<1x512xf32> to vector<4x512xf32>
    %904 = arith.mulf %901, %903 : vector<4x512xf32>
    %c510_i32_205 = arith.constant 510 : i32
    %905 = tpu.dynamic_rotate %884 by %c510_i32_205 dim 1 : vector<4x512xf32>, i32 -> vector<4x512xf32>
    %906 = vector.extract_strided_slice %602 {offsets = [6, 0], sizes = [1, 512], strides = [1, 1]} : vector<9x512xf32> to vector<1x512xf32>
    %907 = vector.broadcast %906 : vector<1x512xf32> to vector<4x512xf32>
    %908 = arith.mulf %905, %907 : vector<4x512xf32>
    %c509_i32_206 = arith.constant 509 : i32
    %909 = tpu.dynamic_rotate %884 by %c509_i32_206 dim 1 : vector<4x512xf32>, i32 -> vector<4x512xf32>
    %910 = vector.extract_strided_slice %602 {offsets = [7, 0], sizes = [1, 512], strides = [1, 1]} : vector<9x512xf32> to vector<1x512xf32>
    %911 = vector.broadcast %910 : vector<1x512xf32> to vector<4x512xf32>
    %912 = arith.mulf %909, %911 : vector<4x512xf32>
    %c508_i32_207 = arith.constant 508 : i32
    %913 = tpu.dynamic_rotate %884 by %c508_i32_207 dim 1 : vector<4x512xf32>, i32 -> vector<4x512xf32>
    %914 = vector.extract_strided_slice %602 {offsets = [8, 0], sizes = [1, 512], strides = [1, 1]} : vector<9x512xf32> to vector<1x512xf32>
    %915 = vector.broadcast %914 : vector<1x512xf32> to vector<4x512xf32>
    %916 = arith.mulf %913, %915 : vector<4x512xf32>
    %917 = tpu.concatenate %888, %892, %896, %900, %884, %904, %908, %912, %916 in 0 : vector<4x512xf32>, vector<4x512xf32>, vector<4x512xf32>, vector<4x512xf32>, vector<4x512xf32>, vector<4x512xf32>, vector<4x512xf32>, vector<4x512xf32>, vector<4x512xf32> -> vector<36x512xf32>
    %918 = vector.extract_strided_slice %603 {offsets = [7, 0], sizes = [1, 36], strides = [1, 1]} : vector<9x36xf32> to vector<1x36xf32>
    %cst_208 = arith.constant dense<0.000000e+00> : vector<1x512xf32>
    %919 = tpu.matmul %918, %917, %cst_208 {dimension_numbers = #tpu.dot_dimension_numbers<[1], [0], [0], [1], [0, 0, 1, 1], [], []>} : vector<1x36xf32>, vector<36x512xf32>, vector<1x512xf32> -> vector<1x512xf32>
    %920 = arith.addf %880, %919 : vector<1x512xf32>
    %c448_i32 = arith.constant 448 : i32
    %921 = tpu.dynamic_rotate %474 by %c448_i32 dim 1 : vector<4x512xf32>, i32 -> vector<4x512xf32>
    %922 = vector.extract_strided_slice %538 {offsets = [8, 0], sizes = [1, 512], strides = [1, 1]} : vector<9x512xf32> to vector<1x512xf32>
    %923 = vector.broadcast %922 : vector<1x512xf32> to vector<4x512xf32>
    %924 = arith.mulf %921, %923 : vector<4x512xf32>
    %c4_i32_209 = arith.constant 4 : i32
    %925 = tpu.dynamic_rotate %924 by %c4_i32_209 dim 1 : vector<4x512xf32>, i32 -> vector<4x512xf32>
    %926 = vector.extract_strided_slice %602 {offsets = [0, 0], sizes = [1, 512], strides = [1, 1]} : vector<9x512xf32> to vector<1x512xf32>
    %927 = vector.broadcast %926 : vector<1x512xf32> to vector<4x512xf32>
    %928 = arith.mulf %925, %927 : vector<4x512xf32>
    %c3_i32_210 = arith.constant 3 : i32
    %929 = tpu.dynamic_rotate %924 by %c3_i32_210 dim 1 : vector<4x512xf32>, i32 -> vector<4x512xf32>
    %930 = vector.extract_strided_slice %602 {offsets = [1, 0], sizes = [1, 512], strides = [1, 1]} : vector<9x512xf32> to vector<1x512xf32>
    %931 = vector.broadcast %930 : vector<1x512xf32> to vector<4x512xf32>
    %932 = arith.mulf %929, %931 : vector<4x512xf32>
    %c2_i32_211 = arith.constant 2 : i32
    %933 = tpu.dynamic_rotate %924 by %c2_i32_211 dim 1 : vector<4x512xf32>, i32 -> vector<4x512xf32>
    %934 = vector.extract_strided_slice %602 {offsets = [2, 0], sizes = [1, 512], strides = [1, 1]} : vector<9x512xf32> to vector<1x512xf32>
    %935 = vector.broadcast %934 : vector<1x512xf32> to vector<4x512xf32>
    %936 = arith.mulf %933, %935 : vector<4x512xf32>
    %c1_i32_212 = arith.constant 1 : i32
    %937 = tpu.dynamic_rotate %924 by %c1_i32_212 dim 1 : vector<4x512xf32>, i32 -> vector<4x512xf32>
    %938 = vector.extract_strided_slice %602 {offsets = [3, 0], sizes = [1, 512], strides = [1, 1]} : vector<9x512xf32> to vector<1x512xf32>
    %939 = vector.broadcast %938 : vector<1x512xf32> to vector<4x512xf32>
    %940 = arith.mulf %937, %939 : vector<4x512xf32>
    %c511_i32_213 = arith.constant 511 : i32
    %941 = tpu.dynamic_rotate %924 by %c511_i32_213 dim 1 : vector<4x512xf32>, i32 -> vector<4x512xf32>
    %942 = vector.extract_strided_slice %602 {offsets = [5, 0], sizes = [1, 512], strides = [1, 1]} : vector<9x512xf32> to vector<1x512xf32>
    %943 = vector.broadcast %942 : vector<1x512xf32> to vector<4x512xf32>
    %944 = arith.mulf %941, %943 : vector<4x512xf32>
    %c510_i32_214 = arith.constant 510 : i32
    %945 = tpu.dynamic_rotate %924 by %c510_i32_214 dim 1 : vector<4x512xf32>, i32 -> vector<4x512xf32>
    %946 = vector.extract_strided_slice %602 {offsets = [6, 0], sizes = [1, 512], strides = [1, 1]} : vector<9x512xf32> to vector<1x512xf32>
    %947 = vector.broadcast %946 : vector<1x512xf32> to vector<4x512xf32>
    %948 = arith.mulf %945, %947 : vector<4x512xf32>
    %c509_i32_215 = arith.constant 509 : i32
    %949 = tpu.dynamic_rotate %924 by %c509_i32_215 dim 1 : vector<4x512xf32>, i32 -> vector<4x512xf32>
    %950 = vector.extract_strided_slice %602 {offsets = [7, 0], sizes = [1, 512], strides = [1, 1]} : vector<9x512xf32> to vector<1x512xf32>
    %951 = vector.broadcast %950 : vector<1x512xf32> to vector<4x512xf32>
    %952 = arith.mulf %949, %951 : vector<4x512xf32>
    %c508_i32_216 = arith.constant 508 : i32
    %953 = tpu.dynamic_rotate %924 by %c508_i32_216 dim 1 : vector<4x512xf32>, i32 -> vector<4x512xf32>
    %954 = vector.extract_strided_slice %602 {offsets = [8, 0], sizes = [1, 512], strides = [1, 1]} : vector<9x512xf32> to vector<1x512xf32>
    %955 = vector.broadcast %954 : vector<1x512xf32> to vector<4x512xf32>
    %956 = arith.mulf %953, %955 : vector<4x512xf32>
    %957 = tpu.concatenate %928, %932, %936, %940, %924, %944, %948, %952, %956 in 0 : vector<4x512xf32>, vector<4x512xf32>, vector<4x512xf32>, vector<4x512xf32>, vector<4x512xf32>, vector<4x512xf32>, vector<4x512xf32>, vector<4x512xf32>, vector<4x512xf32> -> vector<36x512xf32>
    %958 = vector.extract_strided_slice %603 {offsets = [8, 0], sizes = [1, 36], strides = [1, 1]} : vector<9x36xf32> to vector<1x36xf32>
    %cst_217 = arith.constant dense<0.000000e+00> : vector<1x512xf32>
    %959 = tpu.matmul %958, %957, %cst_217 {dimension_numbers = #tpu.dot_dimension_numbers<[1], [0], [0], [1], [0, 0, 1, 1], [], []>} : vector<1x36xf32>, vector<36x512xf32>, vector<1x512xf32> -> vector<1x512xf32>
    %960 = arith.addf %920, %959 : vector<1x512xf32>
    %961 = vector.broadcast %7 : vector<1x1xf32> to vector<1x512xf32>
    %962 = arith.addf %960, %961 : vector<1x512xf32>
    %963 = arith.negf %962 : vector<1x512xf32>
    %964 = math.exp %963 : vector<1x512xf32>
    %cst_218 = arith.constant 1.000000e+00 : f32
    %965 = vector.broadcast %cst_218 : f32 to vector<1x512xf32>
    %966 = arith.addf %965, %964 : vector<1x512xf32>
    %967 = arith.divf %965, %966 : vector<1x512xf32>
    %968 = vector.broadcast %6 : vector<1x1xf32> to vector<1x512xf32>
    %969 = arith.mulf %967, %968 : vector<1x512xf32>
    %970 = vector.broadcast %969 : vector<1x512xf32> to vector<16x512xf32>
    %971 = arith.mulf %409, %970 : vector<16x512xf32>
    %972 = vector.broadcast %3 : vector<1x1xf32> to vector<16x512xf32>
    %973 = arith.mulf %972, %971 : vector<16x512xf32>
    %974 = vector.broadcast %4 : vector<1x1xf32> to vector<16x512xf32>
    %975 = arith.mulf %974, %284 : vector<16x512xf32>
    %976 = arith.addf %973, %975 : vector<16x512xf32>
    %977 = vector.broadcast %467 : vector<1x512xf32> to vector<16x512xf32>
    %978 = arith.mulf %971, %977 : vector<16x512xf32>
    %979 = vector.broadcast %5 : vector<1x1xf32> to vector<16x512xf32>
    %980 = arith.mulf %979, %978 : vector<16x512xf32>
    %981 = arith.addf %976, %980 : vector<16x512xf32>
    %982 = arith.addf %981, %1 : vector<16x512xf32>
    %983 = vector.shape_cast %982 : vector<16x512xf32> to vector<1x16x512xf32>
    %c0_219 = arith.constant 0 : index
    %c0_220 = arith.constant 0 : index
    %c0_221 = arith.constant 0 : index
    %984 = vector.load %arg18[%c0_219, %c0_220, %c0_221] : memref<1x16x512xf32, #tpu.memory_space<vmem>>, vector<1x16x512xf32>
    tpu.vector_store %arg18[%c0_219, %c0_220, %c0_221], %983 {strides = array<i32>} : memref<1x16x512xf32, #tpu.memory_space<vmem>>, vector<1x16x512xf32>,
    return
  }
  func.func @transform_0(%arg0: i32) -> (i32, i32, i32) {
    %c0_i32 = arith.constant 0 : i32
    %c0_i32_0 = arith.constant 0 : i32
    %c0_i32_1 = arith.constant 0 : i32
    return %arg0, %c0_i32, %c0_i32_0 : i32, i32, i32
  }
  func.func @transform_1(%arg0: i32) -> (i32, i32) {
    %c0_i32 = arith.constant 0 : i32
    %c0_i32_0 = arith.constant 0 : i32
    %c0_i32_1 = arith.constant 0 : i32
    return %c0_i32, %c0_i32_0 : i32, i32
  }
  func.func @transform_2(%arg0: i32) -> (i32, i32) {
    %c0_i32 = arith.constant 0 : i32
    %c0_i32_0 = arith.constant 0 : i32
    %c0_i32_1 = arith.constant 0 : i32
    return %c0_i32, %c0_i32_0 : i32, i32
  }
  func.func @transform_3(%arg0: i32) -> (i32, i32) {
    %c0_i32 = arith.constant 0 : i32
    %c0_i32_0 = arith.constant 0 : i32
    %c0_i32_1 = arith.constant 0 : i32
    return %c0_i32, %c0_i32_0 : i32, i32
  }
  func.func @transform_4(%arg0: i32) -> (i32, i32) {
    %c0_i32 = arith.constant 0 : i32
    %c0_i32_0 = arith.constant 0 : i32
    %c0_i32_1 = arith.constant 0 : i32
    return %c0_i32, %c0_i32_0 : i32, i32
  }
  func.func @transform_5(%arg0: i32) -> (i32, i32) {
    %c0_i32 = arith.constant 0 : i32
    %c0_i32_0 = arith.constant 0 : i32
    %c0_i32_1 = arith.constant 0 : i32
    return %c0_i32, %c0_i32_0 : i32, i32
  }
  func.func @transform_6(%arg0: i32) -> (i32, i32) {
    %c0_i32 = arith.constant 0 : i32
    %c0_i32_0 = arith.constant 0 : i32
    %c0_i32_1 = arith.constant 0 : i32
    return %c0_i32, %c0_i32_0 : i32, i32
  }
  func.func @transform_7(%arg0: i32) -> (i32, i32) {
    %c0_i32 = arith.constant 0 : i32
    %c0_i32_0 = arith.constant 0 : i32
    %c0_i32_1 = arith.constant 0 : i32
    return %c0_i32, %c0_i32_0 : i32, i32
  }
  func.func @transform_8(%arg0: i32) -> (i32, i32) {
    %c0_i32 = arith.constant 0 : i32
    %c0_i32_0 = arith.constant 0 : i32
    %c0_i32_1 = arith.constant 0 : i32
    return %c0_i32, %c0_i32_0 : i32, i32
  }
  func.func @transform_9(%arg0: i32) -> (i32, i32) {
    %c0_i32 = arith.constant 0 : i32
    %c0_i32_0 = arith.constant 0 : i32
    %c0_i32_1 = arith.constant 0 : i32
    return %c0_i32, %c0_i32_0 : i32, i32
  }
  func.func @transform_10(%arg0: i32) -> (i32, i32) {
    %c0_i32 = arith.constant 0 : i32
    %c0_i32_0 = arith.constant 0 : i32
    %c0_i32_1 = arith.constant 0 : i32
    return %c0_i32, %c0_i32_0 : i32, i32
  }
  func.func @transform_11(%arg0: i32) -> (i32, i32) {
    %c0_i32 = arith.constant 0 : i32
    %c0_i32_0 = arith.constant 0 : i32
    %c0_i32_1 = arith.constant 0 : i32
    return %c0_i32, %c0_i32_0 : i32, i32
  }
  func.func @transform_12(%arg0: i32) -> (i32, i32) {
    %c0_i32 = arith.constant 0 : i32
    %c0_i32_0 = arith.constant 0 : i32
    %c0_i32_1 = arith.constant 0 : i32
    return %c0_i32, %c0_i32_0 : i32, i32
  }
  func.func @transform_13(%arg0: i32) -> (i32, i32) {
    %c0_i32 = arith.constant 0 : i32
    %c0_i32_0 = arith.constant 0 : i32
    %c0_i32_1 = arith.constant 0 : i32
    return %c0_i32, %c0_i32_0 : i32, i32
  }
  func.func @transform_14(%arg0: i32) -> (i32, i32) {
    %c0_i32 = arith.constant 0 : i32
    %c0_i32_0 = arith.constant 0 : i32
    %c0_i32_1 = arith.constant 0 : i32
    return %c0_i32, %c0_i32_0 : i32, i32
  }
  func.func @transform_15(%arg0: i32) -> (i32, i32) {
    %c0_i32 = arith.constant 0 : i32
    %c0_i32_0 = arith.constant 0 : i32
    %c0_i32_1 = arith.constant 0 : i32
    return %c0_i32, %c0_i32_0 : i32, i32
  }
  func.func @transform_16(%arg0: i32) -> (i32, i32) {
    %c0_i32 = arith.constant 0 : i32
    %c0_i32_0 = arith.constant 0 : i32
    %c0_i32_1 = arith.constant 0 : i32
    return %c0_i32, %c0_i32_0 : i32, i32
  }
  func.func @transform_17(%arg0: i32) -> (i32, i32, i32) {
    %c0_i32 = arith.constant 0 : i32
    %c0_i32_0 = arith.constant 0 : i32
    %c0_i32_1 = arith.constant 0 : i32
    return %arg0, %c0_i32, %c0_i32_0 : i32, i32, i32
  }
}

</mosaic_0001>

<bundles_post_ra>
// kernel: cbam_forward.1
= control target key start
LH: loop header
LB: loop body
LE: loop exit
PB: predicated region body
PF: predicated region fallthrough
CT: control target
= control target key end

     0   :  { %v13368_v3 = vmov 0   ;;  %s6773_s30 = smov 17   ;;  %v13358_v4 = vmov 1   ;;  %s6775_s28 = smov 16   ;;  %v13350_v12 = vmov 2   ;;  %v13348_v13 = vmov 3   ;;  %s13322_s0 = inlined_call_operand.vmem [shape: f32[1,16,512], index: 0, kind: input, shape index: {}]   ;;  %s13323_s1 = inlined_call_operand.vmem [shape: f32[16,9], index: 1, kind: input, shape index: {}]   ;;  %s13324_s3 = inlined_call_operand.vmem [shape: f32[16,9], index: 3, kind: input, shape index: {}]   ;;  %s13325_s2 = inlined_call_operand.vmem [shape: f32[16,2], index: 2, kind: input, shape index: {}]   ;;  %s13326_s4 = inlined_call_operand.vmem [shape: f32[16,2], index: 4, kind: input, shape index: {}]   ;;  %s13327_s6 = inlined_call_operand.vmem [shape: f32[28,2], index: 6, kind: input, shape index: {}]   ;;  %s13328_s8 = inlined_call_operand.vmem [shape: f32[35,2], index: 8, kind: input, shape index: {}]   ;;  %s13329_s5 = inlined_call_operand.vmem [shape: f32[28,16], index: 5, kind: input, shape index: {}]   ;;  %s13330_s7 = inlined_call_operand.vmem [shape: f32[35,28], index: 7, kind: input, shape index: {}]   ;;  %s13331_s12 = inlined_call_operand.vmem [shape: f32[32,2], index: 12, kind: input, shape index: {}]   ;;  %s13332_s9 = inlined_call_operand.vmem [shape: f32[2,16], index: 9, kind: input, shape index: {}]   ;;  %s13333_s10 = inlined_call_operand.vmem [shape: f32[16,2], index: 10, kind: input, shape index: {}]   ;;  %s13334_s14 = inlined_call_operand.vmem [shape: f32[2,1], index: 14, kind: input, shape index: {}]   ;;  %s13335_s16 = inlined_call_operand.vmem [shape: f32[1,8], index: 16, kind: input, shape index: {}]   ;;  %s13336_s11 = inlined_call_operand.vmem [shape: f32[32,54], index: 11, kind: input, shape index: {}]   ;;  %s13337_s13 = inlined_call_operand.vmem [shape: f32[2,32], index: 13, kind: input, shape index: {}]   ;;  %s13338_s15 = inlined_call_operand.vmem [shape: f32[9,36], index: 15, kind: input, shape index: {}]   ;;  %s13339_s17 = inlined_call_operand.vmem [shape: f32[1,16,512], index: 17, kind: output, shape index: {}]  }
   0x1   :  { %13834 = sst [smem:[#allocation179_spill]] %s13322_s0  ;;  %6636 = vset.pattern.permute.xlu2 %v13368_v3  ;;  %6635 = vset.pattern.permute.xlu1 %v13368_v3  ;;  %s6777_s20 = smov 15   ;;  %v65_v14 = vlaneseq  ;;  %v13352_v19 = vmov 0.0   ;;  %vm13560_vm4 = vcmask 1040384   ;;  %vm263_vm6 = vcmask 1041408  }
   0x2   :  { %13835 = sst [smem:[#allocation180_spill]] %s13323_s1  ;;  %6638 = vset.pattern.permute.xlu0 %v13358_v4  ;;  %s6779_s21 = smov 1   ;;  %vm268_vm7 = vcmask 1042432   ;;  %vm273_vm8 = vcmask 1043456   ;;  %vm13384_vm9 = vcmask 1044480   ;;  %v13346_v43 = vmov 6  }
   0x3   :  { %s13836_s26 = sld [smem:[#allocation179_spill]]  ;;  %v7004_v15 = vand.u32 127, %v65_v14  ;;  %s6781_s22 = smov 127   ;;  %v13344_v44 = vmov 5   ;;  %v13356_v63 = vmov 8  }
   0x4   :  { %s13843_s18 = sld [smem:[#allocation180_spill]]  ;;  %s6784_s23 = smov 113  }
   0x5   :  { %v69_v16 = vadd.s32 384, %v7004_v15  ;;  %v67_v23 = vadd.s32 128, %v7004_v15  ;;  %s6785_s24 = smov 112   ;;  %s6787_s25 = smov 111  }
   0x6   :  { %s6796_s0 = smov 124  }
   0x7   :  { %v7009_v17 = vand.u32 255, %v69_v16  ;;  %v7050_v31 = vand.u32 255, %v67_v23  ;;  %v13342_v23 = vmov 7  }
   0x9   :  { %v6896_v0 = vld [vmem:[%s13836_s26 + $0x10] sm:$0xff]  ;;  %v6901_v1 = vld [vmem:[%s13836_s26 + $0x8] sm:$0xff]  ;;  %v6906_v2 = vld [vmem:[%s13836_s26] sm:$0xff]  ;;  %13844 = vst [vmem:[#allocation8_spill] sm:$0xff] %v7009_v17  ;;  %v7016_v18 = vand.u32 15, %v7009_v17  ;;  %v7063_v33 = vand.u32 15, %v7050_v31 }
   0xa   :  { %13837 = vst [vmem:[#allocation2_spill] sm:$0xff] %v6896_v0  ;;  %323 = vrot.lane.b32.xlu0 %v6896_v0, %s6773_s30  ;;  %319 = vrot.lane.b32.xlu2 %v6901_v1, %s6773_s30  ;;  %v6920_v5 = vld [vmem:[%s13836_s26 + $0x38] sm:$0xff]  ;;  %v6925_v6 = vld [vmem:[%s13836_s26 + $0x28] sm:$0xff] }
   0xb   :  { %13838 = vst [vmem:[#allocation3_spill] sm:$0xff] %v6906_v2  ;;  %315 = vrot.lane.b32.xlu1 %v6906_v2, %s6773_s30  ;;  %v6930_v7 = vld [vmem:[%s13836_s26 + $0x20] sm:$0xff]  ;;  %v6941_v8 = vld [vmem:[%s13836_s26 + $0x18] sm:$0xff]  ;;  %v6946_v9 = vld [vmem:[%s13836_s26 + $0x30] sm:$0xff]  ;;  %vm3208_vm0 = vcmp.ge.s32.totalorder %v7016_v18, 4  ;;  %vm3228_vm1 = vcmp.ge.s32.totalorder %v7016_v18, 3 }
   0xc   :  { %13839 = vst [vmem:[#allocation4_spill] sm:$0xff] %v6920_v5  ;;  %v6957_v10 = vld [vmem:[%s13843_s18 + $0x8] sm:$0xff]  ;;  %v6962_v11 = vld [vmem:[%s13843_s18] sm:$0xff]  ;;  %v6499_v20 = vsel %vm3208_vm0, 1.0, %v13352_v19  ;;  %v6503_v21 = vsel %vm3228_vm1, 1.0, %v13352_v19  ;;  %vm3248_vm2 = vcmp.ge.s32.totalorder %v7016_v18, 2 }
   0xd   :  { %13840 = vst [vmem:[#allocation5_spill] sm:$0xff] %v6925_v6  ;;  %vm93_vm3 = vcmp.ge.s32.totalorder %v7016_v18, 1  ;;  %v6507_v22 = vsel %vm3248_vm2, 1.0, %v13352_v19  ;;  %vm13380_vm5 = vcmp.lt.s32.totalorder %v7016_v18, 15  ;;  %v3352_v25 = vsel %vm13560_vm4, %v6499_v20, %v6503_v21  ;;  %s6797_s18 = smov 32  }
   0xe   :  { %13841 = vst [vmem:[#allocation6_spill] sm:$0xff] %v6930_v7  ;;  %v7039_v26 = vsel %vm93_vm3, 1.0, %v13352_v19  ;;  %v3356_v27 = vsel %vm263_vm6, %v3352_v25, %v6507_v22  ;;  %v7047_v29 = vsel %vm13380_vm5, 1.0, %v13352_v19  ;;  %vm3206_vm10 = vcmp.ge.s32.totalorder %v7063_v33, 4 }
   0xf   :  { %13842 = vst [vmem:[#allocation7_spill] sm:$0xff] %v6941_v8  ;;  %v3360_v28 = vsel %vm268_vm7, %v3356_v27, %v7039_v26  ;;  %vm3226_vm11 = vcmp.ge.s32.totalorder %v7063_v33, 3  ;;  %vm3246_vm12 = vcmp.ge.s32.totalorder %v7063_v33, 2  ;;  %v6497_v35 = vsel %vm3206_vm10, 1.0, %v13352_v19 }
  0x10   :  { %13845 = vst [vmem:[#allocation9_spill] sm:$0xff] %v7016_v18  ;;  %v3364_v30 = vsel %vm273_vm8, %v3360_v28, 1.0  ;;  %v6501_v36 = vsel %vm3226_vm11, 1.0, %v13352_v19  ;;  %vm91_vm13 = vcmp.ge.s32.totalorder %v7063_v33, 1  ;;  %v6505_v37 = vsel %vm3246_vm12, 1.0, %v13352_v19 }
  0x11   :  { %13846 = vst [vmem:[#allocation10_spill] sm:$0xff] %v7050_v31  ;;  %v7054_v32 = vsel %vm13384_vm9, %v3364_v30, %v7047_v29  ;;  %vm13377_vm14 = vcmp.lt.s32.totalorder %v7063_v33, 15  ;;  %v3350_v38 = vsel %vm13560_vm4, %v6497_v35, %v6501_v36  ;;  %v7086_v40 = vsel %vm91_vm13, 1.0, %v13352_v19 }
  0x12   :  { %329 = vrot.lane.b32.xlu0 %v6920_v5, %s6773_s30  ;;  %321 = vrot.lane.b32.xlu2 %v6925_v6, %s6773_s30  ;;  %13847 = vst [vmem:[#allocation11_spill] sm:$0xff] %v7054_v32  ;;  %v3354_v41 = vsel %vm263_vm6, %v3350_v38, %v6505_v37  ;;  %v7096_v45 = vsel %vm13377_vm14, 1.0, %v13352_v19 }
  0x13   :  { %317 = vrot.lane.b32.xlu1 %v6930_v7, %s6773_s30  ;;  %13848 = vst [vmem:[#allocation12_spill] sm:$0xff] %v7063_v33  ;;  %v3358_v42 = vsel %vm268_vm7, %v3354_v41, %v7086_v40 }
  0x14   :  { %v3362_v46 = vsel %vm273_vm8, %v3358_v42, 1.0 }
  0x15   :  { %v7101_v47 = vsel %vm13384_vm9, %v3362_v46, %v7096_v45  ;;  %v13354_v46 = vmov 4  }
  0x16   :  { %13849 = vst [vmem:[#allocation13_spill] sm:$0xff] %v7101_v47  ;;  %v295_v47 = vld [vmem:[%s13325_s2] sm:$0xff] }
  0x1a   :  { %327 = vrot.lane.b32.xlu2 %v6941_v8, %s6773_s30  ;;  %376 = vrot.lane.b32.xlu0 %v6906_v2, %s6775_s28 }
  0x1b   :  { %325 = vrot.lane.b32.xlu1 %v6946_v9, %s6773_s30 }
  0x22   :  { %357 = vperm.xlu2 %6636, %v6957_v10   ;;  %382 = vrot.lane.b32.xlu0 %v6925_v6, %s6775_s28 }
  0x23   :  { %353 = vperm.xlu1 %6635, %v6962_v11  }
  0x2a   :  { %380 = vrot.lane.b32.xlu2 %v6901_v1, %s6775_s28  ;;  %388 = vrot.lane.b32.xlu0 %v6941_v8, %s6775_s28 }
  0x2b   :  { %378 = vrot.lane.b32.xlu1 %v6930_v7, %s6775_s28  ;;  %6637 = vset.pattern.permute.xlu2 %v13358_v4 }
  0x2c   :  { %6639 = vset.pattern.permute.xlu1 %v13350_v12 }
  0x32   :  { %386 = vrot.lane.b32.xlu2 %v6946_v9, %s6775_s28  ;;  %418 = vperm.xlu0 %6638, %v6957_v10  }
  0x33   :  { %384 = vrot.lane.b32.xlu1 %v6896_v0, %s6775_s28 }
  0x3a   :  { %414 = vperm.xlu2 %6637, %v6962_v11   ;;  %445 = vrot.lane.b32.xlu0 %v6896_v0, %s6777_s20 }
  0x3b   :  { %390 = vrot.lane.b32.xlu1 %v6920_v5, %s6775_s28  ;;  %6642 = vset.pattern.permute.xlu0 %v13348_v13 }
  0x42   :  { %439 = vrot.lane.b32.xlu2 %v6930_v7, %s6777_s20  ;;  %451 = vrot.lane.b32.xlu0 %v6920_v5, %s6777_s20 }
  0x43   :  { %437 = vrot.lane.b32.xlu1 %v6906_v2, %s6777_s20  ;;  %6640 = vset.pattern.permute.xlu2 %v13350_v12 }
  0x4a   :  { %443 = vrot.lane.b32.xlu2 %v6925_v6, %s6777_s20  ;;  %498 = vrot.lane.b32.xlu0 %v6906_v2, %s6779_s21 }
  0x4b   :  { %441 = vrot.lane.b32.xlu1 %v6901_v1, %s6777_s20 }
  0x52   :  { %449 = vrot.lane.b32.xlu2 %v6941_v8, %s6777_s20  ;;  %504 = vrot.lane.b32.xlu0 %v6925_v6, %s6779_s21 }
  0x53   :  { %447 = vrot.lane.b32.xlu1 %v6946_v9, %s6777_s20 }
  0x5a   :  { %479 = vperm.xlu2 %6640, %v6957_v10   ;;  %510 = vrot.lane.b32.xlu0 %v6941_v8, %s6779_s21 }
  0x5b   :  { %475 = vperm.xlu1 %6639, %v6962_v11  }
  0x62   :  { %502 = vrot.lane.b32.xlu2 %v6901_v1, %s6779_s21  ;;  %540 = vperm.xlu0 %6642, %v6957_v10  }
  0x63   :  { %500 = vrot.lane.b32.xlu1 %v6930_v7, %s6779_s21  ;;  %6641 = vset.pattern.permute.xlu2 %v13348_v13 }
  0x64   :  { %v7032_v24 = vpop.permute.xlu2 %319  ;;  %6643 = vset.pattern.permute.xlu1 %v13344_v44 }
  0x6a   :  { %508 = vrot.lane.b32.xlu2 %v6946_v9, %s6779_s21  ;;  %567 = vrot.lane.b32.xlu0 %v6896_v0, %s6781_s22 }
  0x6b   :  { %506 = vrot.lane.b32.xlu1 %v6896_v0, %s6779_s21  ;;  %6646 = vset.pattern.permute.xlu0 %v13346_v43 }
  0x6c   :  { %v7065_v34 = vpop.permute.xlu2 %321 }
  0x72   :  { %536 = vperm.xlu2 %6641, %v6962_v11   ;;  %573 = vrot.lane.b32.xlu0 %v6920_v5, %s6781_s22 }
  0x73   :  { %512 = vrot.lane.b32.xlu1 %v6920_v5, %s6779_s21 }
  0x74   :  { %v7081_v39 = vpop.permute.xlu2 %327 }
  0x7a   :  { %561 = vrot.lane.b32.xlu2 %v6930_v7, %s6781_s22  ;;  %620 = vrot.lane.b32.xlu0 %v6906_v2, %s6784_s23 }
  0x7b   :  { %559 = vrot.lane.b32.xlu1 %v6906_v2, %s6781_s22  ;;  %6644 = vset.pattern.permute.xlu2 %v13344_v44 }
  0x7c   :  { %v7110_v48 = vpop.permute.xlu0 %323  ;;  %v7112_v49 = vpop.permute.xlu2 %357 }
  0x7d   :  { %v7114_v50 = vpop.permute.xlu1 %315 }
  0x82   :  { %565 = vrot.lane.b32.xlu2 %v6925_v6, %s6781_s22  ;;  %626 = vrot.lane.b32.xlu0 %v6925_v6, %s6784_s23 }
  0x83   :  { %563 = vrot.lane.b32.xlu1 %v6901_v1, %s6781_s22 }
  0x84   :  { %v7122_v51 = vpop.permute.xlu0 %329  ;;  %v7124_v52 = vpop.permute.xlu2 %380 }
  0x85   :  { %v7126_v53 = vpop.permute.xlu1 %317 }
  0x8a   :  { %571 = vrot.lane.b32.xlu2 %v6941_v8, %s6781_s22  ;;  %632 = vrot.lane.b32.xlu0 %v6941_v8, %s6784_s23 }
  0x8b   :  { %569 = vrot.lane.b32.xlu1 %v6946_v9, %s6781_s22 }
  0x8c   :  { %v7134_v54 = vpop.permute.xlu2 %386  ;;  %v7136_v55 = vpop.permute.xlu0 %376 }
  0x8d   :  { %v7138_v56 = vpop.permute.xlu1 %325 }
  0x92   :  { %601 = vperm.xlu2 %6644, %v6957_v10   ;;  %662 = vperm.xlu0 %6646, %v6957_v10  }
  0x93   :  { %597 = vperm.xlu1 %6643, %v6962_v11  }
  0x94   :  { %v7143_v57 = vpop.permute.xlu2 %414  ;;  %v7145_v58 = vpop.permute.xlu0 %382 }
  0x95   :  { %v7147_v59 = vpop.permute.xlu1 %353 }
  0x9a   :  { %624 = vrot.lane.b32.xlu2 %v6901_v1, %s6784_s23  ;;  %689 = vrot.lane.b32.xlu0 %v6896_v0, %s6785_s24 }
  0x9b   :  { %622 = vrot.lane.b32.xlu1 %v6930_v7, %s6784_s23  ;;  %6645 = vset.pattern.permute.xlu2 %v13346_v43 }
  0x9c   :  { %v7156_v60 = vpop.permute.xlu2 %439  ;;  %v7158_v61 = vpop.permute.xlu0 %388  ;;  %6650 = vset.pattern.permute.xlu0 %v13356_v63  ;;  %6647 = vset.pattern.permute.xlu1 %v13342_v23 }
  0x9d   :  { %v7160_v62 = vpop.permute.xlu1 %378 }
  0xa2   :  { %630 = vrot.lane.b32.xlu2 %v6946_v9, %s6784_s23  ;;  %695 = vrot.lane.b32.xlu0 %v6920_v5, %s6785_s24 }
  0xa3   :  { %628 = vrot.lane.b32.xlu1 %v6896_v0, %s6784_s23 }
  0xa4   :  { %v7169_v14 = vpop.permute.xlu2 %443  ;;  %v7171_v16 = vpop.permute.xlu0 %418 }
  0xa5   :  { %v7173_v20 = vpop.permute.xlu1 %384 }
  0xaa   :  { %658 = vperm.xlu2 %6645, %v6962_v11   ;;  %742 = vrot.lane.b32.xlu0 %v6906_v2, %s6787_s25 }
  0xab   :  { %634 = vrot.lane.b32.xlu1 %v6920_v5, %s6784_s23 }
  0xac   :  { %v7180_v21 = vpop.permute.xlu2 %449  ;;  %v7182_v22 = vpop.permute.xlu0 %445 }
  0xad   :  { %v7185_v25 = vpop.permute.xlu1 %390 }
  0xb2   :  { %683 = vrot.lane.b32.xlu2 %v6930_v7, %s6785_s24  ;;  %748 = vrot.lane.b32.xlu0 %v6925_v6, %s6787_s25 }
  0xb3   :  { %681 = vrot.lane.b32.xlu1 %v6906_v2, %s6785_s24  ;;  %6648 = vset.pattern.permute.xlu2 %v13342_v23 }
  0xb4   :  { %v7194_v27 = vpop.permute.xlu2 %479  ;;  %v7196_v28 = vpop.permute.xlu0 %451 }
  0xb5   :  { %v7198_v30 = vpop.permute.xlu1 %437 }
  0xba   :  { %687 = vrot.lane.b32.xlu2 %v6925_v6, %s6785_s24  ;;  %754 = vrot.lane.b32.xlu0 %v6941_v8, %s6787_s25 }
  0xbb   :  { %685 = vrot.lane.b32.xlu1 %v6901_v1, %s6785_s24 }
  0xbc   :  { %v7206_v35 = vpop.permute.xlu2 %502  ;;  %v7208_v36 = vpop.permute.xlu0 %498 }
  0xbd   :  { %v7210_v37 = vpop.permute.xlu1 %441 }
  0xc2   :  { %693 = vrot.lane.b32.xlu2 %v6941_v8, %s6785_s24  ;;  %784 = vperm.xlu0 %6650, %v6957_v10  }
  0xc3   :  { %691 = vrot.lane.b32.xlu1 %v6946_v9, %s6785_s24 }
  0xc4   :  { %v7217_v38 = vpop.permute.xlu2 %508  ;;  %v7219_v41 = vpop.permute.xlu0 %504 }
  0xc5   :  { %v7221_v42 = vpop.permute.xlu1 %447 }
  0xca   :  { %723 = vperm.xlu2 %6648, %v6957_v10   ;;  %6651 = vset.pattern.permute.xlu0 %v13354_v46  ;;  %v7249_v46 = vld [vmem:[%s13324_s3] sm:$0xff] }
  0xcb   :  { %719 = vperm.xlu1 %6647, %v6962_v11   ;;  %299 = vperm.xlu0 %6651, %v6962_v11   ;;  %13852 = vst [vmem:[#allocation16_spill] sm:$0xff] %v7249_v46 }
  0xcc   :  { %v7227_v23 = vpop.permute.xlu2 %536  ;;  %v7229_v44 = vpop.permute.xlu0 %510 }
  0xcd   :  { %v7231_v43 = vpop.permute.xlu1 %475 }
  0xd2   :  { %746 = vrot.lane.b32.xlu2 %v6901_v1, %s6787_s25 }
  0xd3   :  { %744 = vrot.lane.b32.xlu1 %v6930_v7, %s6787_s25  ;;  %304 = vperm.xlu0 %6651, %v6957_v10   ;;  %v68_v7 = vadd.s32 256, %v7004_v15 }
  0xd4   :  { %v7238_v13 = vpop.permute.xlu2 %561  ;;  %v7240_v12 = vpop.permute.xlu0 %540  ;;  %6649 = vset.pattern.permute.xlu2 %v13356_v63  ;;  %6652 = vset.pattern.permute.xlu1 %v13368_v3 }
  0xd5   :  { %13850 = vst [vmem:[#allocation14_spill] sm:$0xff] %v7238_v13  ;;  %v7244_v19 = vpop.permute.xlu1 %500  ;;  %v7288_v8 = vand.u32 255, %v68_v7  ;;  %v7308_v7 = vld [vmem:[%s13324_s3 + $0x8] sm:$0xff] }
  0xd6   :  { %13851 = vst [vmem:[#allocation15_spill] sm:$0xff] %v7240_v12 }
  0xd7   :  { %13862 = vst [vmem:[#allocation25_spill] sm:$0xff] %v7288_v8  ;;  %vm80_vm15 = vcmp.ge.s32.totalorder %v7288_v8, 16 }
  0xd8   :  { %13869 = vst [vmem:[#allocation32_spill] sm:$0xff] %v7308_v7 }
  0xda   :  { %752 = vrot.lane.b32.xlu2 %v6946_v9, %s6787_s25 }
  0xdb   :  { %750 = vrot.lane.b32.xlu1 %v6896_v0, %s6787_s25  ;;  %851 = vperm.xlu0 %6651, %v7249_v46   ;;  %v296_v46 = vld [vmem:[%s13325_s2 + $0x8] sm:$0xff]  ;;  %v13861_v0 = vmov 1  }
  0xdc   :  { %v7256_v1 = vpop.permute.xlu2 %565  ;;  %v7258_v10 = vpop.permute.xlu0 %567 }
  0xdd   :  { %13853 = vst [vmem:[#allocation17_spill] sm:$0xff] %v7256_v1  ;;  %v7260_v63 = vpop.permute.xlu1 %506 }
  0xde   :  { %13854 = vst [vmem:[#allocation18_spill] sm:$0xff] %v7258_v10 }
  0xe2   :  { %780 = vperm.xlu2 %6649, %v6962_v11  }
  0xe3   :  { %756 = vrot.lane.b32.xlu1 %v6920_v5, %s6787_s25  ;;  %6658 = vset.pattern.permute.xlu0 %v13368_v3 }
  0xe4   :  { %v7266_v4 = vpop.permute.xlu2 %571  ;;  %v7268_v9 = vpop.permute.xlu0 %573 }
  0xe5   :  { %13855 = vst [vmem:[#allocation19_spill] sm:$0xff] %v7266_v4  ;;  %v7270_v32 = vpop.permute.xlu1 %512 }
  0xe6   :  { %13856 = vst [vmem:[#allocation20_spill] sm:$0xff] %v7268_v9 }
  0xe7   :  { %13857 = vst [vmem:[#allocation21_spill] sm:$0xff] %v7270_v32 }
  0xea   :  { %6653 = vset.pattern.permute.xlu2 %v13368_v3 }
  0xeb   :  { %805 = vperm.xlu1 %6652, %v295_v47   ;;  %810 = vperm.xlu2 %6653, %v296_v46  }
  0xec   :  { %v7279_v11 = vpop.permute.xlu2 %601  ;;  %v7281_v5 = vpop.permute.xlu0 %620 }
  0xed   :  { %13858 = vst [vmem:[#allocation22_spill] sm:$0xff] %v7279_v11  ;;  %v7283_v6 = vpop.permute.xlu1 %559  ;;  %v7295_v11 = vand.u32 255, %v7004_v15 }
  0xee   :  { %13859 = vst [vmem:[#allocation23_spill] sm:$0xff] %v7281_v5 }
  0xef   :  { %13860 = vst [vmem:[#allocation24_spill] sm:$0xff] %v7283_v6  ;;  %v7300_v6 = vand.u32 15, %v7288_v8  ;;  %v7303_v9 = vand.u32 15, %v7295_v11  ;;  %vm78_vm1 = vcmp.ge.s32.totalorder %v7295_v11, 16  ;;  %v262_v8 = vsel %vm13560_vm4, %v7039_v26, 1.0 }
  0xf0   :  { %13865 = vst [vmem:[#allocation28_spill] sm:$0xff] %v7295_v11 }
  0xf1   :  { %13867 = vst [vmem:[#allocation30_spill] sm:$0xff] %v7300_v6  ;;  %vm92_vm0 = vcmp.ge.s32.totalorder %v7300_v6, 1  ;;  %vm90_vm2 = vcmp.ge.s32.totalorder %v7303_v9, 1  ;;  %vm144_vm11 = vcmp.lt.s32.totalorder %v7300_v6, 15  ;;  %vm142_vm14 = vcmp.lt.s32.totalorder %v7303_v9, 15 }
  0xf2   :  { %13868 = vst [vmem:[#allocation31_spill] sm:$0xff] %v7303_v9  ;;  %vm104_vm10 = vmand %vm80_vm15, %vm92_vm0 }
  0xf3   :  { %6654 = vset.pattern.permute.xlu1 %v13861_v0  ;;  %6655 = vset.pattern.permute.xlu2 %v13861_v0  ;;  %vm102_vm12 = vmand %vm78_vm1, %vm90_vm2 }
  0xf4   :  { %822 = vperm.xlu1 %6654, %v295_v47   ;;  %v7290_v2 = vpop.permute.xlu2 %624  ;;  %v7292_v3 = vpop.permute.xlu0 %626  ;;  %826 = vperm.xlu2 %6655, %v296_v46   ;;  %v13870_v47 = vmov 4   ;;  %vm152_vm5 = vmand %vm80_vm15, %vm144_vm11 }
  0xf5   :  { %13863 = vst [vmem:[#allocation26_spill] sm:$0xff] %v7290_v2  ;;  %v7297_v5 = vpop.permute.xlu1 %563  ;;  %vm150_vm9 = vmand %vm78_vm1, %vm142_vm14 }
  0xf6   :  { %13864 = vst [vmem:[#allocation27_spill] sm:$0xff] %v7292_v3 }
  0xf7   :  { %13866 = vst [vmem:[#allocation29_spill] sm:$0xff] %v7297_v5  ;;  %v13873_v5 = vmov 0  }
  0xfc   :  { %6656 = vset.pattern.permute.xlu1 %v13870_v47  ;;  %v7313_v46 = vpop.permute.xlu2 %630  ;;  %v7315_v3 = vpop.permute.xlu0 %632  ;;  %6657 = vset.pattern.permute.xlu2 %v13873_v5  ;;  %v13875_v47 = vmov 0.0  }
  0xfd   :  { %13871 = vst [vmem:[#allocation33_spill] sm:$0xff] %v7313_v46  ;;  %856 = vperm.xlu1 %6656, %v7308_v7   ;;  %v7321_v2 = vpop.permute.xlu1 %569  ;;  %v6374_v11 = vsel %vm104_vm10, 1.0, %v13875_v47  ;;  %v7335_v5 = vsel %vm80_vm15, 1.0, %v13875_v47  ;;  %v6372_v7 = vsel %vm102_vm12, 1.0, %v13875_v47  ;;  %v7343_v46 = vsel %vm78_vm1, 1.0, %v13875_v47 }
  0xfe   :  { %13872 = vst [vmem:[#allocation34_spill] sm:$0xff] %v7315_v3  ;;  %v6380_v10 = vsel %vm152_vm5, 1.0, %v13875_v47  ;;  %v261_v4 = vsel %vm13560_vm4, %v6374_v11, %v7335_v5  ;;  %v6378_v13 = vsel %vm150_vm9, 1.0, %v13875_v47  ;;  %v259_v1 = vsel %vm13560_vm4, %v6372_v7, %v7343_v46 }
  0xff   :  { %13874 = vst [vmem:[#allocation35_spill] sm:$0xff] %v7321_v2  ;;  %v266_v11 = vsel %vm263_vm6, %v261_v4, %v6380_v10  ;;  %v264_v7 = vsel %vm263_vm6, %v259_v1, %v6378_v13  ;;  %vm217_vm5 = vcmp.lt.s32.totalorder %v7009_v17, 240  ;;  %vm215_vm9 = vcmp.lt.s32.totalorder %v7050_v31, 240 }
 0x100   :  { %13876 = vst [vmem:[#allocation36_spill] sm:$0xff] %v7335_v5  ;;  %v267_v5 = vsel %vm263_vm6, %v262_v8, %v7047_v29  ;;  %v7399_v1 = vsel %vm144_vm11, 1.0, %v13875_v47  ;;  %vm225_vm15 = vmand %vm217_vm5, %vm93_vm3  ;;  %vm13887_vm3 = vcmask 1044480   ;;  %vm13561_vm11 = vcmp.lt.s32.totalorder %v7004_v15, 17 }
 0x101   :  { %13877 = vst [vmem:[#allocation37_spill] sm:$0xff] %v7343_v46  ;;  %v272_v4 = vsel %vm268_vm7, %v267_v5, %v7039_v26  ;;  %vm13888_vm1 = vmmov %vm13887_vm3  ;;  %vm13562_vm12 = vcmp.lt.s32.totalorder %v7004_v15, 16 }
 0x102   :  { %13885 = vst [vmem:[#allocation45_spill] sm:$0xff] %v7399_v1  ;;  %v277_v26 = vsel %vm273_vm8, %v272_v4, 1.0  ;;  %vm13890_vm10 = vmmov %vm13888_vm1 }
 0x103   :  { %v282_v4 = vsel %vm13888_vm1, %v277_v26, %v7047_v29 }
 0x104   :  { %v7347_v3 = vpop.permute.xlu2 %658  ;;  %v7349_v2 = vpop.permute.xlu0 %662 }
 0x105   :  { %13878 = vst [vmem:[#allocation38_spill] sm:$0xff] %v7347_v3  ;;  %v7356_v12 = vpop.permute.xlu1 %597  ;;  %6659 = vset.pattern.permute.xlu1 %v13861_v0  ;;  %v7367_v3 = vsel %vm92_vm0, 1.0, %v13875_v47  ;;  %v7375_v0 = vsel %vm90_vm2, 1.0, %v13875_v47  ;;  %vm223_vm0 = vmand %vm215_vm9, %vm91_vm13  ;;  %vm283_vm2 = vcmask 1045504   ;;  %vm13461_vm13 = vcmask 1046528  }
 0x106   :  { %13879 = vst [vmem:[#allocation39_spill] sm:$0xff] %v7349_v2  ;;  %v260_v2 = vsel %vm13560_vm4, %v7086_v40, 1.0  ;;  %v269_v8 = vsel %vm268_vm7, %v264_v7, %v7375_v0  ;;  %v6393_v7 = vsel %vm225_vm15, 1.0, %v13875_v47  ;;  %vm13564_vm15 = vcmp.lt.s32.totalorder %v7004_v15, 15 }
 0x107   :  { %13880 = vst [vmem:[#allocation40_spill] sm:$0xff] %v7356_v12  ;;  %v265_v46 = vsel %vm263_vm6, %v260_v2, %v7096_v45  ;;  %v271_v12 = vsel %vm268_vm7, %v266_v11, %v7367_v3  ;;  %vm1936_vm4 = vcmask 23552  }
 0x108   :  { %13881 = vst [vmem:[#allocation41_spill] sm:$0xff] %v7367_v3  ;;  %v270_v2 = vsel %vm268_vm7, %v265_v46, %v7086_v40  ;;  %v276_v5 = vsel %vm273_vm8, %v271_v12, 1.0  ;;  %v7410_v40 = vsel %vm142_vm14, 1.0, %v13875_v47  ;;  %v274_v46 = vsel %vm273_vm8, %v269_v8, 1.0  ;;  %vm13889_vm14 = vmmov %vm13888_vm1 }
 0x109   :  { %13882 = vst [vmem:[#allocation42_spill] sm:$0xff] %v7375_v0  ;;  %v275_v11 = vsel %vm273_vm8, %v270_v2, 1.0  ;;  %v281_v12 = vsel %vm13887_vm3, %v276_v5, %v7399_v1  ;;  %v279_v9 = vsel %vm13889_vm14, %v274_v46, %v7410_v40  ;;  %v6391_v8 = vsel %vm223_vm0, 1.0, %v13875_v47 }
 0x10a   :  { %13886 = vst [vmem:[#allocation46_spill] sm:$0xff] %v7410_v40  ;;  %v280_v6 = vsel %vm13890_vm10, %v275_v11, %v7096_v45  ;;  %v7431_v2 = vsel %vm217_vm5, 1.0, %v13875_v47  ;;  %v286_v5 = vsel %vm283_vm2, %v281_v12, %v7367_v3  ;;  %v287_v1 = vsel %vm283_vm2, %v282_v4, %v6393_v7 }
 0x10b   :  { %13891 = vst [vmem:[#allocation47_spill] sm:$0xff] %v7431_v2  ;;  %v284_v46 = vsel %vm283_vm2, %v279_v9, %v7375_v0  ;;  %v7447_v45 = vsel %vm215_vm9, 1.0, %v13875_v47  ;;  %v285_v11 = vsel %vm283_vm2, %v280_v6, %v6391_v8  ;;  %v7451_v12 = vsel %vm13461_vm13, %v286_v5, 1.0 }
 0x10c   :  { %v7387_v10 = vpop.permute.xlu2 %683  ;;  %v7389_v32 = vpop.permute.xlu0 %689  ;;  %13895 = vst [vmem:[#allocation51_spill] sm:$0xff] %v7447_v45  ;;  %v7455_v7 = vsel %vm13461_vm13, %v287_v1, %v7431_v2  ;;  %v7458_v4 = vsel %vm13461_vm13, %v284_v46, 1.0  ;;  %v7463_v9 = vsel %vm13461_vm13, %v285_v11, %v7447_v45  ;;  %v7467_v6 = vperm.slane %v7451_v12, 0 }
 0x10d   :  { %13883 = vst [vmem:[#allocation43_spill] sm:$0xff] %v7387_v10  ;;  %v7394_v13 = vpop.permute.xlu1 %622  ;;  %v7470_v8 = vperm.slane %v7455_v7, 0  ;;  %v339_v1 = vsel %vm13561_vm11, %v7122_v51, %v7126_v53  ;;  %v7477_v5 = vperm.slane %v7458_v4, 0  ;;  %v337_v46 = vsel %vm13561_vm11, %v7126_v53, %v7065_v34 }
 0x10e   :  { %13884 = vst [vmem:[#allocation44_spill] sm:$0xff] %v7389_v32  ;;  %v7484_v11 = vperm.slane %v7463_v9, 1  ;;  %v335_v0 = vsel %vm13561_vm11, %v7065_v34, %v7138_v56  ;;  %v334_v3 = vsel %vm13561_vm11, %v7032_v24, %v7110_v48  ;;  %v7495_v2 = vperm.slane %v7463_v9, 0 }
 0x10f   :  { %13896 = vst [vmem:[#allocation52_spill] sm:$0xff] %v7467_v6  ;;  %v397_v53 = vsel %vm13562_vm12, %v7136_v55, %v7124_v52  ;;  %v333_v45 = vsel %vm13561_vm11, %v7138_v56, %v7122_v51  ;;  %v336_v10 = vsel %vm13561_vm11, %v7114_v50, %v7032_v24  ;;  %v348_v51 = vmul.f32 %v7477_v5, %v339_v1 }
 0x110   :  { %13897 = vst [vmem:[#allocation53_spill] sm:$0xff] %v7470_v8  ;;  %v346_v40 = vmul.f32 %v7467_v6, %v334_v3  ;;  %v406_v24 = vmul.f32 %v7484_v11, %v397_v53  ;;  %v351_v31 = vmul.f32 %v7470_v8, %v333_v45  ;;  %v7533_v33 = vperm.slane %v7458_v4, 1 }
 0x111   :  { %13898 = vst [vmem:[#allocation54_spill] sm:$0xff] %v7477_v5  ;;  %v345_v1 = vmul.f32 %v7495_v2, %v336_v10  ;;  %v396_v3 = vsel %vm13562_vm12, %v7145_v58, %v7134_v54  ;;  %v7547_v45 = vperm.slane %v7463_v9, 2  ;;  %v7563_v53 = vperm.slane %v7455_v7, 2 }
 0x112   :  { %13899 = vst [vmem:[#allocation55_spill] sm:$0xff] %v7484_v11  ;;  %vm13563_vm0 = vcmp.lt.s32.totalorder %v7004_v15, 1  ;;  %vm575_vm3 = vcmp.lt.s32.totalorder %v7004_v15, 127  ;;  %vm636_vm1 = vcmp.lt.s32.totalorder %v7004_v15, 113  ;;  %vm697_vm14 = vcmp.lt.s32.totalorder %v7004_v15, 112 }
 0x113   :  { %13900 = vst [vmem:[#allocation56_spill] sm:$0xff] %v7495_v2  ;;  %vm13960_vm10 = vcmp.lt.s32.totalorder %v7016_v18, 15  ;;  %v7904_v18 = vperm.slane %v7451_v12, 7 }
 0x114   :  { %v7436_v29 = vpop.permute.xlu2 %687  ;;  %v7438_v26 = vpop.permute.xlu0 %695  ;;  %13904 = vst [vmem:[#allocation60_spill] sm:$0xff] %v7533_v33  ;;  %vm249_vm13 = vmand %vm217_vm5, %vm13960_vm10 }
 0x115   :  { %13892 = vst [vmem:[#allocation48_spill] sm:$0xff] %v7436_v29  ;;  %v7442_v32 = vpop.permute.xlu1 %628  ;;  %v338_v29 = vsel %vm13561_vm11, %v7081_v39, %v7114_v50 }
 0x116   :  { %13893 = vst [vmem:[#allocation49_spill] sm:$0xff] %v7438_v26  ;;  %v332_v26 = vsel %vm13561_vm11, %v7110_v48, %v7081_v39  ;;  %v7527_v48 = vperm.slane %v7451_v12, 1  ;;  %v344_v50 = vmul.f32 %v7477_v5, %v338_v29  ;;  %v7569_v5 = vmul.f32 %v7143_v57, %v406_v24 }
 0x117   :  { %13894 = vst [vmem:[#allocation50_spill] sm:$0xff] %v7442_v32  ;;  %v347_v39 = vmul.f32 %v7470_v8, %v332_v26  ;;  %v399_v26 = vsel %vm13562_vm12, %v7158_v61, %v7136_v55 }
 0x118   :  { %13903 = vst [vmem:[#allocation59_spill] sm:$0xff] %v7527_v48  ;;  %v7580_v55 = vmul.f32 %v7147_v59, %v344_v50  ;;  %v394_v50 = vsel %vm13562_vm12, %v7134_v54, %v7185_v25 }
 0x119   :  { %13905 = vst [vmem:[#allocation61_spill] sm:$0xff] %v7547_v45 }
 0x11a   :  { %13908 = vst [vmem:[#allocation64_spill] sm:$0xff] %v7563_v53 }
 0x11b   :  { %13909 = vst [vmem:[#allocation65_spill] sm:$0xff] %v7569_v5  ;;  %v13952_v5 = vld [vmem:[#allocation29_spill] sm:$0xff] }
 0x11c   :  { %v7505_v32 = vpop.permute.xlu2 %693  ;;  %v7507_v34 = vpop.permute.xlu0 %742 }
 0x11d   :  { %13901 = vst [vmem:[#allocation57_spill] sm:$0xff] %v7505_v32  ;;  %v7522_v56 = vpop.permute.xlu1 %634  ;;  %v350_v32 = vmul.f32 %v7467_v6, %v335_v0  ;;  %v7540_v0 = vmul.f32 %v7112_v49, %v348_v51  ;;  %v7566_v51 = vmul.f32 %v7112_v49, %v351_v31  ;;  %v398_v31 = vsel %vm13562_vm12, %v7160_v62, %v7145_v58 }
 0x11e   :  { %13902 = vst [vmem:[#allocation58_spill] sm:$0xff] %v7507_v34  ;;  %v349_v34 = vmul.f32 %v7495_v2, %v337_v46  ;;  %v7550_v46 = vperm.slane %v7455_v7, 1  ;;  %v411_v2 = vmul.f32 %v7527_v48, %v396_v3  ;;  %v405_v3 = vmul.f32 %v7533_v33, %v399_v26 }
 0x11f   :  { %v7556_v10 = vmul.f32 %v7112_v49, %v350_v32  ;;  %v395_v32 = vsel %vm13562_vm12, %v7124_v52, %v7173_v20  ;;  %v7593_v52 = vmul.f32 %v7147_v59, %v345_v1  ;;  %v400_v58 = vsel %vm13562_vm12, %v7185_v25, %v7160_v62 }
 0x120   :  { %13906 = vst [vmem:[#allocation62_spill] sm:$0xff] %v7550_v46  ;;  %v7553_v29 = vmul.f32 %v7112_v49, %v349_v34  ;;  %v7576_v34 = vperm.slane %v7458_v4, 2  ;;  %v393_v49 = vsel %vm13562_vm12, %v7173_v20, %v7158_v61  ;;  %v7607_v61 = vmul.f32 %v7147_v59, %v346_v40 }
 0x121   :  { %13907 = vst [vmem:[#allocation63_spill] sm:$0xff] %v7556_v10  ;;  %v7610_v20 = vmul.f32 %v7147_v59, %v347_v39  ;;  %v407_v1 = vmul.f32 %v7527_v48, %v395_v32  ;;  %v410_v54 = vmul.f32 %v7484_v11, %v398_v31  ;;  %v459_v62 = vsel %vm13564_vm15, %v7156_v60, %v7169_v14 }
 0x122   :  { %13910 = vst [vmem:[#allocation66_spill] sm:$0xff] %v7576_v34  ;;  %v408_v25 = vmul.f32 %v7550_v46, %v393_v49  ;;  %v461_v59 = vsel %vm13564_vm15, %v7196_v28, %v7156_v60  ;;  %v409_v40 = vmul.f32 %v7533_v33, %v400_v58  ;;  %v412_v39 = vmul.f32 %v7550_v46, %v394_v50 }
 0x123   :  { %v7629_v32 = vperm.slane %v7463_v9, 3  ;;  %v7632_v31 = vperm.slane %v7451_v12, 2  ;;  %v7635_v11 = vmul.f32 %v7143_v57, %v405_v3  ;;  %v7638_v49 = vmul.f32 %v7171_v16, %v410_v54 }
 0x124   :  { %v7590_v24 = vpop.permute.xlu0 %748  ;;  %v7614_v26 = vpop.permute.xlu2 %723  ;;  %v454_v60 = vsel %vm13564_vm15, %v7182_v22, %v7180_v21  ;;  %v7645_v58 = vperm.slane %v7451_v12, 3  ;;  %v471_v50 = vmul.f32 %v7547_v45, %v459_v62  ;;  %v7649_v33 = vmul.f32 %v7171_v16, %v411_v2 }
 0x125   :  { %v7604_v8 = vpop.permute.xlu1 %681  ;;  %13912 = vst [vmem:[#allocation68_spill] sm:$0xff] %v7614_v26  ;;  %v7652_v46 = vmul.f32 %v7143_v57, %v407_v1  ;;  %v470_v3 = vmul.f32 %v7576_v34, %v461_v59  ;;  %v7656_v54 = vmul.f32 %v7143_v57, %v408_v25  ;;  %v460_v48 = vsel %vm13564_vm15, %v7180_v21, %v7198_v30 }
 0x126   :  { %13911 = vst [vmem:[#allocation67_spill] sm:$0xff] %v7604_v8  ;;  %v457_v62 = vsel %vm13564_vm15, %v7169_v14, %v7221_v42  ;;  %v7667_v2 = vperm.slane %v7458_v4, 3  ;;  %v469_v1 = vmul.f32 %v7563_v53, %v454_v60  ;;  %v7671_v59 = vmul.f32 %v7171_v16, %v409_v40 }
 0x127   :  { %13913 = vst [vmem:[#allocation69_spill] sm:$0xff] %v7629_v32  ;;  %v7674_v57 = vmul.f32 %v7171_v16, %v412_v39  ;;  %v455_v21 = vsel %vm13564_vm15, %v7221_v42, %v7196_v28  ;;  %v7683_v14 = vmul.f32 %v7194_v27, %v471_v50  ;;  %v519_v60 = vsel %vm13563_vm0, %v7208_v36, %v7206_v35 }
 0x128   :  { %13914 = vst [vmem:[#allocation70_spill] sm:$0xff] %v7632_v31  ;;  %v456_v16 = vsel %vm13564_vm15, %v7210_v37, %v7182_v22  ;;  %v458_v28 = vsel %vm13564_vm15, %v7198_v30, %v7210_v37  ;;  %v7700_v40 = vmul.f32 %v7194_v27, %v470_v3  ;;  %v466_v39 = vmul.f32 %v7576_v34, %v460_v48 }
 0x129   :  { %13915 = vst [vmem:[#allocation71_spill] sm:$0xff] %v7645_v58  ;;  %v518_v50 = vsel %vm13563_vm0, %v7219_v41, %v7217_v38  ;;  %v472_v6 = vmul.f32 %v7632_v31, %v457_v62  ;;  %v473_v22 = vmul.f32 %v7563_v53, %v455_v21  ;;  %v521_v30 = vsel %vm13563_vm0, %v7229_v44, %v7208_v36 }
 0x12a   :  { %13916 = vst [vmem:[#allocation72_spill] sm:$0xff] %v7649_v33  ;;  %v7715_v37 = vperm.slane %v7458_v4, 5  ;;  %v528_v48 = vmul.f32 %v7629_v32, %v519_v60  ;;  %v467_v3 = vmul.f32 %v7547_v45, %v458_v28  ;;  %v468_v34 = vmul.f32 %v7632_v31, %v456_v16 }
 0x12b   :  { %13917 = vst [vmem:[#allocation73_spill] sm:$0xff] %v7667_v2  ;;  %v7721_v62 = vperm.slane %v7455_v7, 3  ;;  %v533_v53 = vmul.f32 %v7645_v58, %v518_v50  ;;  %v520_v36 = vsel %vm13563_vm0, %v7244_v19, %v7219_v41  ;;  %v7734_v60 = vperm.slane %v7455_v7, 5 }
 0x12c   :  { %v7680_v25 = vpop.permute.xlu0 %754  ;;  %13920 = vst [vmem:[#allocation76_spill] sm:$0xff] %v7715_v37  ;;  %v7723_v21 = vpop.permute.xlu2 %746  ;;  %v7737_v16 = vmul.f32 %v7194_v27, %v472_v6  ;;  %v527_v28 = vmul.f32 %v7667_v2, %v521_v30  ;;  %v515_v50 = vsel %vm13563_vm0, %v7260_v63, %v7229_v44  ;;  %v517_v41 = vsel %vm13563_vm0, %v7206_v35, %v7260_v63 }
 0x12d   :  { %13918 = vst [vmem:[#allocation74_spill] sm:$0xff] %v7680_v25  ;;  %v7697_v42 = vpop.permute.xlu1 %685  ;;  %v7731_v25 = vperm.slane %v7451_v12, 5  ;;  %v7749_v45 = vmul.f32 %v7194_v27, %v473_v22  ;;  %v7752_v31 = vmul.f32 %v7227_v23, %v528_v48  ;;  %v7755_v6 = vmul.f32 %v7231_v43, %v466_v39  ;;  %v13932_v22 = vld [vmem:[#allocation17_spill] sm:$0xff] }
 0x12e   :  { %13919 = vst [vmem:[#allocation75_spill] sm:$0xff] %v7697_v42  ;;  %v7758_v30 = vmul.f32 %v7231_v43, %v467_v3  ;;  %v532_v44 = vmul.f32 %v7629_v32, %v520_v36  ;;  %v7775_v39 = vmul.f32 %v7231_v43, %v469_v1  ;;  %v529_v3 = vmul.f32 %v7645_v58, %v517_v41  ;;  %v13938_v1 = vld [vmem:[#allocation19_spill] sm:$0xff] }
 0x12f   :  { %13921 = vst [vmem:[#allocation77_spill] sm:$0xff] %v7721_v62  ;;  %v530_v36 = vmul.f32 %v7721_v62, %v515_v50  ;;  %v7786_v32 = vmul.f32 %v7227_v23, %v527_v28  ;;  %v13940_v50 = vld [vmem:[#allocation20_spill] sm:$0xff]  ;;  %v7813_v42 = vperm.slane %v7463_v9, 6 }
 0x130   :  { %13922 = vst [vmem:[#allocation78_spill] sm:$0xff] %v7723_v21  ;;  %v13930_v21 = vld [vmem:[#allocation21_spill] sm:$0xff]  ;;  %v7816_v10 = vmul.f32 %v7227_v23, %v529_v3 }
 0x131   :  { %13923 = vst [vmem:[#allocation79_spill] sm:$0xff] %v7731_v25  ;;  %v516_v63 = vsel %vm13563_vm0, %v7217_v38, %v13930_v21  ;;  %v522_v27 = vsel %vm13563_vm0, %v13930_v21, %v7244_v19  ;;  %v13935_v19 = vld [vmem:[#allocation15_spill] sm:$0xff] }
 0x132   :  { %13924 = vst [vmem:[#allocation80_spill] sm:$0xff] %v7734_v60  ;;  %v7789_v21 = vmul.f32 %v13935_v19, %v533_v53  ;;  %v531_v28 = vmul.f32 %v7667_v2, %v522_v27  ;;  %v534_v53 = vmul.f32 %v7721_v62, %v516_v63  ;;  %v7822_v27 = vperm.slane %v7455_v7, 6  ;;  %v13946_v63 = vld [vmem:[#allocation35_spill] sm:$0xff]  ;;  %v13947_v62 = vld [vmem:[#allocation24_spill] sm:$0xff] }
 0x133   :  { %13925 = vst [vmem:[#allocation81_spill] sm:$0xff] %v7737_v16  ;;  %v7761_v16 = vmul.f32 %v7231_v43, %v468_v34  ;;  %v13933_v34 = vld [vmem:[#allocation14_spill] sm:$0xff]  ;;  %v7793_v43 = vperm.slane %v7458_v4, 6  ;;  %v582_v3 = vsel %vm575_vm3, %v13938_v1, %v13947_v62 }
 0x134   :  { %13926 = vst [vmem:[#allocation82_spill] sm:$0xff] %v7749_v45  ;;  %v7772_v35 = vpop.permute.xlu0 %784  ;;  %v581_v48 = vsel %vm575_vm3, %v13933_v34, %v13932_v22  ;;  %v583_v58 = vsel %vm575_vm3, %v13940_v50, %v13933_v34  ;;  %v7819_v34 = vmul.f32 %v7227_v23, %v530_v36  ;;  %v577_v23 = vsel %vm575_vm3, %v13946_v63, %v13940_v50  ;;  %v7838_v36 = vpop.permute.xlu2 %752  ;;  %v13950_v45 = vld [vmem:[#allocation26_spill] sm:$0xff] }
 0x135   :  { %13927 = vst [vmem:[#allocation83_spill] sm:$0xff] %v7752_v31  ;;  %v7783_v38 = vpop.permute.xlu1 %691  ;;  %v13939_v31 = vld [vmem:[#allocation18_spill] sm:$0xff]  ;;  %v592_v33 = vmul.f32 %v7715_v37, %v581_v48  ;;  %v595_v2 = vmul.f32 %v7734_v60, %v583_v58 }
 0x136   :  { %13928 = vst [vmem:[#allocation84_spill] sm:$0xff] %v7758_v30  ;;  %v576_v41 = vsel %vm575_vm3, %v13939_v31, %v13938_v1  ;;  %v7810_v30 = vperm.slane %v7463_v9, 5  ;;  %v578_v50 = vsel %vm575_vm3, %v13952_v5, %v13939_v31 }
 0x137   :  { %13929 = vst [vmem:[#allocation85_spill] sm:$0xff] %v7761_v16  ;;  %v590_v48 = vmul.f32 %v7731_v25, %v576_v41  ;;  %v13949_v41 = vld [vmem:[#allocation22_spill] sm:$0xff]  ;;  %v594_v16 = vmul.f32 %v7731_v25, %v577_v23 }
 0x138   :  { %13931 = vst [vmem:[#allocation21_spill] sm:$0xff] %v7772_v35  ;;  %v7847_v58 = vmul.f32 %v13949_v41, %v592_v33  ;;  %v13955_v35 = vld [vmem:[#allocation33_spill] sm:$0xff] }
 0x139   :  { %13934 = vst [vmem:[#allocation17_spill] sm:$0xff] %v7786_v32  ;;  %v13956_v32 = vld [vmem:[#allocation27_spill] sm:$0xff] }
 0x13a   :  { %13936 = vst [vmem:[#allocation14_spill] sm:$0xff] %v7789_v21  ;;  %v7806_v21 = vmul.f32 %v13935_v19, %v532_v44  ;;  %v579_v44 = vsel %vm575_vm3, %v13932_v22, %v13946_v63  ;;  %v7844_v22 = vmul.f32 %v13935_v19, %v534_v53  ;;  %v7867_v63 = vmul.f32 %v13949_v41, %v595_v2 }
 0x13b   :  { %13937 = vst [vmem:[#allocation15_spill] sm:$0xff] %v7793_v43  ;;  %v593_v53 = vmul.f32 %v7810_v30, %v579_v44  ;;  %v640_v31 = vsel %vm636_vm1, %v13956_v32, %v13955_v35  ;;  %v7883_v2 = vperm.slane %v7455_v7, 7  ;;  %v642_v7 = vsel %vm636_vm1, %v7394_v13, %v13956_v32  ;;  %v13970_v32 = vld [vmem:[#allocation39_spill] sm:$0xff] }
 0x13c   :  { %13941 = vst [vmem:[#allocation19_spill] sm:$0xff] %v7810_v30 }
 0x13d   :  { %13942 = vst [vmem:[#allocation18_spill] sm:$0xff] %v7813_v42 }
 0x13e   :  { %13943 = vst [vmem:[#allocation20_spill] sm:$0xff] %v7816_v10  ;;  %v7841_v10 = vmul.f32 %v13935_v19, %v531_v28  ;;  %v580_v28 = vsel %vm575_vm3, %v13947_v62, %v13952_v5  ;;  %v13953_v19 = vld [vmem:[#allocation34_spill] sm:$0xff]  ;;  %v7875_v5 = vpop.permute.xlu1 %719  ;;  %v300_v62 = vpop.permute.xlu0 %299 }
 0x13f   :  { %13944 = vst [vmem:[#allocation86_spill] sm:$0xff] %v7819_v34  ;;  %v13951_v34 = vld [vmem:[#allocation23_spill] sm:$0xff]  ;;  %v588_v44 = vmul.f32 %v7715_v37, %v580_v28  ;;  %v13964_v28 = vld [vmem:[#allocation38_spill] sm:$0xff] }
 0x140   :  { %13945 = vst [vmem:[#allocation87_spill] sm:$0xff] %v7822_v27  ;;  %v641_v1 = vsel %vm636_vm1, %v13951_v34, %v13950_v45  ;;  %v643_v33 = vsel %vm636_vm1, %v13953_v19, %v13951_v34  ;;  %v7880_v34 = vperm.slane %v7458_v4, 7  ;;  %v654_v4 = vmul.f32 %v7813_v42, %v640_v31  ;;  %v13967_v31 = vld [vmem:[#allocation12_spill] sm:$0xff] }
 0x141   :  { %13948 = vst [vmem:[#allocation35_spill] sm:$0xff] %v7844_v22  ;;  %v591_v22 = vmul.f32 %v7734_v60, %v582_v3  ;;  %v649_v8 = vmul.f32 %v7793_v43, %v641_v1  ;;  %v589_v3 = vmul.f32 %v7810_v30, %v578_v50  ;;  %v652_v23 = vmul.f32 %v7822_v27, %v643_v33  ;;  %v13978_v30 = vld [vmem:[#allocation7_spill] sm:$0xff] }
 0x142   :  { %13954 = vst [vmem:[#allocation24_spill] sm:$0xff] %v7867_v63  ;;  %v7893_v1 = vperm.slane %v7451_v12, 6  ;;  %v7897_v60 = vmul.f32 %v13949_v41, %v593_v53  ;;  %v7907_v50 = vmul.f32 %v13949_v41, %v594_v16  ;;  %v6399_v53 = vsel %vm249_vm13, 1.0, %v13875_v47  ;;  %v13972_v12 = vld [vmem:[#allocation40_spill] sm:$0xff] }
 0x143   :  { %13957 = vst [vmem:[#allocation22_spill] sm:$0xff] %v7875_v5  ;;  %v7910_v33 = vmul.f32 %v13964_v28, %v649_v8  ;;  %v7913_v17 = vmul.f32 %v13964_v28, %v652_v23  ;;  %vm13968_vm5 = vcmp.lt.s32.totalorder %v13967_v31, 15  ;;  %v7921_v37 = vmul.f32 %v13970_v32, %v654_v4  ;;  %v13975_v8 = vld [vmem:[#allocation3_spill] sm:$0xff]  ;;  %v13979_v4 = vld [vmem:[#allocation46_spill] sm:$0xff] }
 0x144   :  { %13958 = vst [vmem:[#allocation26_spill] sm:$0xff] %v7880_v34  ;;  %vm247_vm10 = vmand %vm215_vm9, %vm13968_vm5  ;;  %v7924_v25 = vmul.f32 %v13972_v12, %v588_v44  ;;  %v7927_v16 = vmul.f32 %v13972_v12, %v589_v3  ;;  %v307_v41 = vmul.f32 %v300_v62, %v13975_v8  ;;  %v7931_v23 = vmul.f32 %v13972_v12, %v590_v48  ;;  %v7945_v8 = vpop.permute.xlu2 %780  ;;  %v13983_v48 = vld [vmem:[#allocation48_spill] sm:$0xff] }
 0x145   :  { %13959 = vst [vmem:[#allocation23_spill] sm:$0xff] %v7883_v2  ;;  %v653_v31 = vmul.f32 %v7793_v43, %v642_v7  ;;  %vm758_vm9 = vcmp.lt.s32.totalorder %v7004_v15, 111  ;;  %v7940_v44 = vperm.slane %v13979_v4, 0  ;;  %v7942_v63 = vperm.slane %v6399_v53, 0  ;;  %v13985_v7 = vld [vmem:[#allocation49_spill] sm:$0xff]  ;;  %v13987_v4 = vld [vmem:[#allocation2_spill] sm:$0xff] }
 0x146   :  { %13961 = vst [vmem:[#allocation29_spill] sm:$0xff] %v7893_v1  ;;  %v6397_v3 = vsel %vm247_vm10, 1.0, %v13875_v47  ;;  %v309_v43 = vmul.f32 %v300_v62, %v13987_v4  ;;  %v7960_v47 = vpop.permute.xlu1 %744  ;;  %v368_v5 = vadd.f32 %v7580_v55, %v307_v41  ;;  %vm1365_vm13 = vcmask 130048  }
 0x147   :  { %13962 = vst [vmem:[#allocation34_spill] sm:$0xff] %v7904_v18  ;;  %v7976_v26 = vperm.slane %v6397_v3, 0  ;;  %vm1588_vm5 = vcmask 228352   ;;  %vm1930_vm10 = vcmask 7168  }
 0x148   :  { %13963 = vst [vmem:[#allocation33_spill] sm:$0xff] %v7907_v50  ;;  %v7934_v50 = vmul.f32 %v13972_v12, %v591_v22  ;;  %v13986_v12 = vld [vmem:[#allocation50_spill] sm:$0xff]  ;;  %v429_v3 = vadd.f32 %v7635_v11, %v368_v5 }
 0x149   :  { %13965 = vst [vmem:[#allocation27_spill] sm:$0xff] %v7910_v33  ;;  %v637_v53 = vsel %vm636_vm1, %v13986_v12, %v13953_v19  ;;  %v13988_v33 = vld [vmem:[#allocation6_spill] sm:$0xff]  ;;  %v7971_v19 = vperm.slane %v7463_v9, 7 }
 0x14a   :  { %13966 = vst [vmem:[#allocation38_spill] sm:$0xff] %v7913_v17  ;;  %v310_v17 = vmul.f32 %v300_v62, %v13978_v30 }
 0x14b   :  { %13971 = vst [vmem:[#allocation39_spill] sm:$0xff] %v7921_v37  ;;  %v651_v37 = vmul.f32 %v7893_v1, %v637_v53 }
 0x14c   :  { %13973 = vst [vmem:[#allocation40_spill] sm:$0xff] %v7924_v25  ;;  %v371_v4 = vadd.f32 %v7610_v20, %v310_v17  ;;  %v13991_v25 = vld [vmem:[#allocation4_spill] sm:$0xff]  ;;  %v370_v17 = vadd.f32 %v7607_v61, %v309_v43  ;;  %v13993_v20 = vld [vmem:[#allocation57_spill] sm:$0xff]  ;;  %v6750_v61 = vld [vmem:[%s13836_s26 + $0x8] sm:$0xff] }
 0x14d   :  { %13974 = vst [vmem:[#allocation88_spill] sm:$0xff] %v7927_v16  ;;  %v13984_v16 = vld [vmem:[#allocation43_spill] sm:$0xff]  ;;  %v308_v43 = vmul.f32 %v6750_v61, %v300_v62  ;;  %v8005_v11 = vmul.f32 %v13964_v28, %v651_v37  ;;  %v764_v37 = vsel %vm758_vm9, %v7960_v47, %v7590_v24  ;;  %v490_v62 = vadd.f32 %v7755_v6, %v429_v3  ;;  %v14001_v61 = vld [vmem:[#allocation65_spill] sm:$0xff] }
 0x14e   :  { %13976 = vst [vmem:[#allocation3_spill] sm:$0xff] %v7931_v23  ;;  %v703_v22 = vsel %vm697_vm14, %v13984_v16, %v13983_v48  ;;  %v705_v30 = vsel %vm697_vm14, %v13985_v7, %v13984_v16  ;;  %v13989_v16 = vld [vmem:[#allocation5_spill] sm:$0xff]  ;;  %v775_v53 = vmul.f32 %v7940_v44, %v764_v37 }
 0x14f   :  { %13977 = vst [vmem:[#allocation89_spill] sm:$0xff] %v7934_v50  ;;  %v669_v50 = vmul.f32 %v13970_v32, %v653_v31  ;;  %v7982_v41 = vmul.f32 %v7883_v2, %v705_v30 }
 0x150   :  { %13980 = vst [vmem:[#allocation7_spill] sm:$0xff] %v7940_v44 }
 0x151   :  { %13981 = vst [vmem:[#allocation90_spill] sm:$0xff] %v7942_v63  ;;  %v639_v63 = vsel %vm636_vm1, %v13950_v45, %v13986_v12 }
 0x152   :  { %13982 = vst [vmem:[#allocation91_spill] sm:$0xff] %v7945_v8  ;;  %v305_v8 = vpop.permute.xlu0 %304  ;;  %v7985_v9 = vmul.f32 %v7813_v42, %v639_v63  ;;  %v432_v63 = vadd.f32 %v7656_v54, %v371_v4  ;;  %v431_v54 = vadd.f32 %v7652_v46, %v370_v17  ;;  %v369_v46 = vadd.f32 %v7593_v52, %v308_v43  ;;  %v14003_v43 = vld [vmem:[#allocation82_spill] sm:$0xff] }
 0x153   :  { %v311_v23 = vmul.f32 %v305_v8, %v13988_v33  ;;  %v312_v7 = vmul.f32 %v305_v8, %v13989_v16  ;;  %13990 = vst [vmem:[#allocation48_spill] sm:$0xff] %v7971_v19  ;;  %v314_v27 = vmul.f32 %v305_v8, %v13991_v25  ;;  %v714_v33 = vmul.f32 %v7880_v34, %v703_v22  ;;  %v13994_v25 = vld [vmem:[#allocation44_spill] sm:$0xff] }
 0x154   :  { %13992 = vst [vmem:[#allocation43_spill] sm:$0xff] %v7976_v26  ;;  %v698_v31 = vsel %vm697_vm14, %v13994_v25, %v13993_v20  ;;  %v493_v12 = vadd.f32 %v7775_v39, %v432_v63  ;;  %v6751_v16 = vld [vmem:[%s13836_s26 + $0x30] sm:$0xff]  ;;  %v644_v52 = vsel %vm636_vm1, %v7522_v56, %v7394_v13  ;;  %v430_v13 = vadd.f32 %v14001_v61, %v369_v46 }
 0x155   :  { %v372_v45 = vadd.f32 %v7540_v0, %v311_v23  ;;  %v373_v55 = vadd.f32 %v7553_v29, %v312_v7  ;;  %v701_v23 = vsel %vm697_vm14, %v13983_v48, %v7783_v38  ;;  %v375_v22 = vadd.f32 %v7566_v51, %v314_v27  ;;  %v8025_v27 = vpop.permute.xlu1 %750 }
 0x156   :  { %v8014_v48 = vmul.f32 %v7904_v18, %v698_v31  ;;  %v638_v51 = vsel %vm636_vm1, %v13955_v35, %v7522_v56  ;;  %v313_v4 = vmul.f32 %v6751_v16, %v305_v8  ;;  %v13998_v31 = vld [vmem:[#allocation17_spill] sm:$0xff]  ;;  %v14002_v56 = vld [vmem:[#allocation86_spill] sm:$0xff] }
 0x157   :  { %v433_v0 = vadd.f32 %v7671_v59, %v372_v45  ;;  %v434_v29 = vadd.f32 %v7638_v49, %v373_v55  ;;  %v762_v49 = vsel %vm758_vm9, %v7590_v24, %v7838_v36  ;;  %v436_v24 = vadd.f32 %v7674_v57, %v375_v22  ;;  %v13996_v45 = vld [vmem:[#allocation67_spill] sm:$0xff]  ;;  %v13997_v55 = vld [vmem:[#allocation85_spill] sm:$0xff] }
 0x158   :  { %v776_v35 = vmul.f32 %v7976_v26, %v762_v49  ;;  %v704_v57 = vsel %vm697_vm14, %v13993_v20, %v13996_v45  ;;  %v492_v17 = vadd.f32 %v13997_v55, %v431_v54  ;;  %v14004_v20 = vld [vmem:[#allocation63_spill] sm:$0xff]  ;;  %v8063_v54 = vmul.f32 %v7893_v1, %v638_v51  ;;  %v14010_v51 = vld [vmem:[#allocation45_spill] sm:$0xff] }
 0x159   :  { %v494_v59 = vadd.f32 %v7700_v40, %v433_v0  ;;  %v495_v5 = vadd.f32 %v7683_v14, %v434_v29  ;;  %v8027_v40 = vpop.permute.xlu2 %810  ;;  %v715_v14 = vmul.f32 %v7971_v19, %v701_v23  ;;  %v14000_v29 = vld [vmem:[#allocation21_spill] sm:$0xff]  ;;  %v497_v63 = vadd.f32 %v14003_v43, %v436_v24 }
 0x15a   :  { %v792_v23 = vmul.f32 %v14000_v29, %v776_v35  ;;  %v791_v22 = vmul.f32 %v14000_v29, %v775_v53  ;;  %v374_v49 = vadd.f32 %v14004_v20, %v313_v4  ;;  %v14007_v35 = vld [vmem:[#allocation75_spill] sm:$0xff]  ;;  %v14008_v53 = vld [vmem:[#allocation40_spill] sm:$0xff]  ;;  %v14013_v55 = vld [vmem:[#allocation89_spill] sm:$0xff] }
 0x15b   :  { %v555_v7 = vadd.f32 %v7841_v10, %v494_v59  ;;  %v556_v30 = vadd.f32 %v7806_v21, %v495_v5  ;;  %v13995_v21 = vld [vmem:[#allocation68_spill] sm:$0xff]  ;;  %v702_v46 = vsel %vm697_vm14, %v13996_v45, %v14007_v35 }
 0x15c   :  { %v730_v39 = vmul.f32 %v13995_v21, %v714_v33  ;;  %v731_v8 = vmul.f32 %v13995_v21, %v715_v14  ;;  %v554_v33 = vadd.f32 %v14002_v56, %v493_v12  ;;  %v713_v14 = vmul.f32 %v7883_v2, %v704_v57  ;;  %v14009_v4 = vld [vmem:[#allocation84_spill] sm:$0xff] }
 0x15d   :  { %v616_v6 = vadd.f32 %v7847_v58, %v555_v7  ;;  %v617_v10 = vadd.f32 %v7897_v60, %v556_v30  ;;  %v551_v58 = vadd.f32 %v13998_v31, %v490_v62  ;;  %v13999_v60 = vld [vmem:[#allocation39_spill] sm:$0xff]  ;;  %v14006_v62 = vld [vmem:[#allocation20_spill] sm:$0xff]  ;;  %v757_v30 = vpop.permute.xlu1 %756  ;;  %v710_v56 = vmul.f32 %v7880_v34, %v702_v46 }
 0x15e   :  { %v553_v7 = vadd.f32 %v14006_v62, %v492_v17  ;;  %v615_v17 = vadd.f32 %v14013_v55, %v554_v33  ;;  %v14018_v33 = vld [vmem:[#allocation3_spill] sm:$0xff] }
 0x15f   :  { %v677_v3 = vadd.f32 %v669_v50, %v616_v6  ;;  %v678_v0 = vadd.f32 %v13999_v60, %v617_v10  ;;  %v14005_v50 = vld [vmem:[#allocation87_spill] sm:$0xff]  ;;  %v612_v16 = vadd.f32 %v14008_v53, %v551_v58  ;;  %v491_v6 = vadd.f32 %v14009_v4, %v430_v13  ;;  %v14022_v4 = vld [vmem:[#allocation38_spill] sm:$0xff] }
 0x160   :  { %v656_v37 = vmul.f32 %v14005_v50, %v644_v52  ;;  %v8075_v10 = vperm.slane %v14010_v51, 0  ;;  %v14012_v52 = vld [vmem:[#allocation35_spill] sm:$0xff]  ;;  %v614_v43 = vadd.f32 %v14018_v33, %v553_v7  ;;  %v676_v46 = vadd.f32 %v14022_v4, %v615_v17 }
 0x161   :  { %v738_v59 = vadd.f32 %v730_v39, %v677_v3  ;;  %v739_v5 = vadd.f32 %v731_v8, %v678_v0  ;;  %v558_v39 = vadd.f32 %v14012_v52, %v497_v63  ;;  %v8078_v57 = vpop.permute.xlu2 %826  ;;  %v14014_v8 = vld [vmem:[#allocation72_spill] sm:$0xff]  ;;  %v14015_v3 = vld [vmem:[#allocation74_spill] sm:$0xff]  ;;  %v766_v63 = vsel %vm758_vm9, %v757_v30, %v7960_v47  ;;  %v14023_v52 = vld [vmem:[#allocation81_spill] sm:$0xff] }
 0x162   :  { %14011 = vst [vmem:[#allocation50_spill] sm:$0xff] %v8075_v10  ;;  %v435_v31 = vadd.f32 %v14014_v8, %v374_v49  ;;  %v759_v45 = vsel %vm758_vm9, %v8025_v27, %v14015_v3  ;;  %v14016_v0 = vld [vmem:[#allocation78_spill] sm:$0xff]  ;;  %v14019_v49 = vld [vmem:[#allocation27_spill] sm:$0xff] }
 0x163   :  { %v799_v12 = vadd.f32 %v791_v22, %v738_v59  ;;  %v800_v24 = vadd.f32 %v792_v23, %v739_v5  ;;  %v14017_v23 = vld [vmem:[#allocation58_spill] sm:$0xff]  ;;  %v673_v59 = vadd.f32 %v14019_v49, %v612_v16  ;;  %v14024_v55 = vld [vmem:[#allocation83_spill] sm:$0xff] }
 0x164   :  { %v763_v61 = vsel %vm758_vm9, %v14017_v23, %v14016_v0  ;;  %v765_v13 = vsel %vm758_vm9, %v14015_v3, %v14017_v23  ;;  %v14020_v5 = vld [vmem:[#allocation22_spill] sm:$0xff]  ;;  %v496_v7 = vadd.f32 %v14023_v52, %v435_v31  ;;  %v552_v8 = vadd.f32 %v14024_v55, %v491_v6  ;;  %v848_v34 = vld [vmem:[%s13326_s4 + $0x8] sm:$0xff] }
 0x165   :  { %v817_v58 = vmul.f32 %v8027_v40, %v799_v12  ;;  %v818_v60 = vmul.f32 %v8027_v40, %v800_v24  ;;  %v726_v62 = vmul.f32 %v14020_v5, %v710_v56  ;;  %v773_v12 = vmul.f32 %v8075_v10, %v759_v45  ;;  %v14021_v24 = vld [vmem:[#allocation24_spill] sm:$0xff]  ;;  %v14025_v23 = vld [vmem:[#allocation90_spill] sm:$0xff]  ;;  %v806_v56 = vpop.permute.xlu1 %805 }
 0x166   :  { %v619_v53 = vadd.f32 %v14021_v24, %v558_v39  ;;  %v729_v16 = vmul.f32 %v14020_v5, %v713_v14  ;;  %v778_v45 = vmul.f32 %v14025_v23, %v766_v63  ;;  %v771_v39 = vmul.f32 %v7940_v44, %v763_v61 }
 0x167   :  { %v833_v22 = vadd.f32 %v8078_v57, %v817_v58  ;;  %v834_v20 = vadd.f32 %v8078_v57, %v818_v60  ;;  %v672_v58 = vmul.f32 %v13970_v32, %v656_v37  ;;  %v675_v60 = vadd.f32 %v8005_v11, %v614_v43  ;;  %v14026_v11 = vld [vmem:[#allocation91_spill] sm:$0xff] }
 0x168   :  { %v774_v17 = vmul.f32 %v14025_v23, %v765_v13  ;;  %v728_v6 = vmul.f32 %v14020_v5, %v8014_v48  ;;  %v734_v31 = vadd.f32 %v726_v62, %v673_v59  ;;  %v761_v37 = vsel %vm758_vm9, %v14016_v0, %v8025_v27  ;;  %v14027_v13 = vld [vmem:[#allocation88_spill] sm:$0xff] }
 0x169   :  { %v8110_v3 = vmax.f32 %v833_v22, 0.0  ;;  %v8112_v47 = vmax.f32 %v834_v20, 0.0  ;;  %v789_v14 = vmul.f32 %v14026_v11, %v773_v12  ;;  %v680_v33 = vadd.f32 %v672_v58, %v619_v53  ;;  %v14028_v22 = vld [vmem:[#allocation14_spill] sm:$0xff] }
 0x16a   :  { %v737_v43 = vadd.f32 %v729_v16, %v676_v46  ;;  %v733_v61 = vmul.f32 %v13995_v21, %v7982_v41  ;;  %v787_v48 = vmul.f32 %v14026_v11, %v771_v39  ;;  %v613_v63 = vadd.f32 %v14027_v13, %v552_v8  ;;  %v14029_v41 = vld [vmem:[#allocation49_spill] sm:$0xff] }
 0x16b   :  { %873 = vrot.lane.b32.xlu0 %v8112_v47, %s6773_s30  ;;  %869 = vrot.lane.b32.xlu1 %v8110_v3, %s6773_s30  ;;  %v557_v20 = vadd.f32 %v14028_v22, %v496_v7  ;;  %v700_v27 = vsel %vm697_vm14, %v14007_v35, %v13994_v25  ;;  %v790_v0 = vmul.f32 %v14026_v11, %v774_v17  ;;  %v14030_v7 = vld [vmem:[#allocation33_spill] sm:$0xff] }
 0x16c   :  { %v736_v49 = vadd.f32 %v728_v6, %v675_v60  ;;  %v794_v59 = vmul.f32 %v14000_v29, %v778_v45  ;;  %v666_v62 = vmul.f32 %v13964_v28, %v7985_v9  ;;  %v699_v12 = vsel %vm697_vm14, %v7783_v38, %v14029_v41 }
 0x16d   :  { %v772_v24 = vmul.f32 %v7976_v26, %v761_v37  ;;  %v795_v53 = vadd.f32 %v787_v48, %v734_v31  ;;  %v741_v46 = vadd.f32 %v733_v61, %v680_v33  ;;  %v760_v25 = vsel %vm758_vm9, %v7838_v36, %v757_v30  ;;  %v823_v30 = vpop.permute.xlu1 %822 }
 0x16e   :  { %v797_v4 = vadd.f32 %v789_v14, %v736_v49  ;;  %v798_v35 = vadd.f32 %v790_v0, %v737_v43  ;;  %v671_v52 = vmul.f32 %v13970_v32, %v8063_v54  ;;  %v711_v28 = vmul.f32 %v7971_v19, %v700_v27  ;;  %v14031_v0 = vld [vmem:[#allocation32_spill] sm:$0xff] }
 0x16f   :  { %v674_v9 = vadd.f32 %v666_v62, %v613_v63  ;;  %v618_v55 = vadd.f32 %v14030_v7, %v557_v20  ;;  %v802_v8 = vadd.f32 %v794_v59, %v741_v46  ;;  %v813_v38 = vmul.f32 %v806_v56, %v795_v53 }
 0x170   :  { %v815_v58 = vmul.f32 %v806_v56, %v797_v4  ;;  %v816_v16 = vmul.f32 %v806_v56, %v798_v35  ;;  %v716_v60 = vmul.f32 %v7904_v18, %v699_v12  ;;  %v727_v45 = vmul.f32 %v14020_v5, %v711_v28 }
 0x171   :  { %v788_v39 = vmul.f32 %v14026_v11, %v772_v24  ;;  %v777_v36 = vmul.f32 %v8075_v10, %v760_v25  ;;  %v829_v17 = vadd.f32 %v823_v30, %v813_v38  ;;  %v679_v31 = vadd.f32 %v671_v52, %v618_v55  ;;  %v8257_v24 = vpop.permute.xlu0 %851  ;;  %v1360_v10 = vld [vmem:[%s13327_s6 + $0x18] sm:$0xf] }
 0x172   :  { %v831_v32 = vadd.f32 %v823_v30, %v815_v58  ;;  %v832_v54 = vadd.f32 %v823_v30, %v816_v16  ;;  %v735_v6 = vadd.f32 %v727_v45, %v674_v9  ;;  %v820_v37 = vmul.f32 %v8027_v40, %v802_v8 }
 0x173   :  { %v8161_v14 = vmax.f32 %v829_v17, 0.0  ;;  %v732_v5 = vmul.f32 %v13995_v21, %v716_v60  ;;  %v793_v11 = vmul.f32 %v14000_v29, %v777_v36  ;;  %v14034_v59 = vmov 1  }
 0x174   :  { %v8163_v33 = vmax.f32 %v831_v32, 0.0  ;;  %v8165_v43 = vmax.f32 %v832_v54, 0.0  ;;  %v796_v61 = vadd.f32 %v788_v39, %v735_v6  ;;  %v836_v63 = vadd.f32 %v8078_v57, %v820_v37  ;;  %v6752_v32 = vld [vmem:[%s13324_s3 + $0x8] sm:$0xff] }
 0x175   :  { %v740_v48 = vadd.f32 %v732_v5, %v679_v31  ;;  %867 = vrot.lane.b32.xlu2 %v8161_v14, %s6773_s30  ;;  %v14035_v62 = vmov 3   ;;  %v14036_v41 = vmov 6   ;;  %v8259_v53 = vpop.permute.xlu1 %856  ;;  %v14037_v46 = vmov 5  }
 0x176   :  { %879 = vrot.lane.b32.xlu0 %v8165_v43, %s6773_s30  ;;  %875 = vrot.lane.b32.xlu1 %v8163_v33, %s6773_s30  ;;  %v814_v13 = vmul.f32 %v806_v56, %v796_v61  ;;  %v8176_v27 = vmax.f32 %v836_v63, 0.0  ;;  %v14039_v45 = vmov 7   ;;  %v14040_v36 = vmov 8   ;;  %v847_v61 = vld [vmem:[%s13326_s4] sm:$0xff]  ;;  %s6792_s4 = smov 3  }
 0x177   :  { %v801_v22 = vadd.f32 %v793_v11, %v740_v48  ;;  %v6753_v11 = vld [vmem:[%s13324_s3] sm:$0xff] }
 0x178   :  { %v830_v20 = vadd.f32 %v823_v30, %v814_v13 }
 0x179   :  { %v819_v21 = vmul.f32 %v8027_v40, %v801_v22  ;;  %v14032_v40 = vmov 2  }
 0x17a   :  { %v8179_v29 = vmax.f32 %v830_v20, 0.0 }
 0x17b   :  { %v835_v56 = vadd.f32 %v8078_v57, %v819_v21  ;;  %v14033_v57 = vld [vmem:[#allocation16_spill] sm:$0xff] }
 0x17d   :  { %871 = vrot.lane.b32.xlu2 %v8179_v29, %s6773_s30  ;;  %v8187_v49 = vmax.f32 %v835_v56, 0.0 }
 0x17e   :  { %904 = vperm.xlu0 %6658, %v14031_v0   ;;  %881 = vrot.lane.b32.xlu1 %v8176_v27, %s6773_s30 }
 0x185   :  { %877 = vrot.lane.b32.xlu2 %v8187_v49, %s6773_s30 }
 0x186   :  { %931 = vrot.lane.b32.xlu0 %v8163_v33, %s6775_s28  ;;  %923 = vrot.lane.b32.xlu1 %v8161_v14, %s6775_s28 }
 0x187   :  { %6662 = vset.pattern.permute.xlu0 %v14032_v40 }
 0x18d   :  { %900 = vperm.xlu2 %6657, %v14033_v57  }
 0x18e   :  { %937 = vrot.lane.b32.xlu0 %v8176_v27, %s6775_s28  ;;  %927 = vrot.lane.b32.xlu1 %v8179_v29, %s6775_s28 }
 0x195   :  { %925 = vrot.lane.b32.xlu2 %v8110_v3, %s6775_s28 }
 0x196   :  { %979 = vrot.lane.b32.xlu0 %v8161_v14, %s6777_s20  ;;  %933 = vrot.lane.b32.xlu1 %v8187_v49, %s6775_s28 }
 0x197   :  { %6660 = vset.pattern.permute.xlu2 %v14034_v59 }
 0x19d   :  { %929 = vrot.lane.b32.xlu2 %v8112_v47, %s6775_s28 }
 0x19e   :  { %985 = vrot.lane.b32.xlu0 %v8112_v47, %s6777_s20  ;;  %956 = vperm.xlu1 %6659, %v14033_v57  }
 0x1a5   :  { %935 = vrot.lane.b32.xlu2 %v8165_v43, %s6775_s28 }
 0x1a6   :  { %991 = vrot.lane.b32.xlu0 %v8165_v43, %s6777_s20  ;;  %981 = vrot.lane.b32.xlu1 %v8110_v3, %s6777_s20 }
 0x1a7   :  { %6663 = vset.pattern.permute.xlu1 %v14035_v62 }
 0x1ad   :  { %960 = vperm.xlu2 %6660, %v14031_v0  }
 0x1ae   :  { %1016 = vperm.xlu0 %6662, %v14031_v0   ;;  %987 = vrot.lane.b32.xlu1 %v8163_v33, %s6777_s20 }
 0x1b5   :  { %983 = vrot.lane.b32.xlu2 %v8179_v29, %s6777_s20 }
 0x1b6   :  { %1043 = vrot.lane.b32.xlu0 %v8163_v33, %s6779_s21  ;;  %993 = vrot.lane.b32.xlu1 %v8176_v27, %s6777_s20 }
 0x1b7   :  { %6667 = vset.pattern.permute.xlu0 %v14036_v41  ;;  %6661 = vset.pattern.permute.xlu2 %v14032_v40 }
 0x1bd   :  { %989 = vrot.lane.b32.xlu2 %v8187_v49, %s6777_s20 }
 0x1be   :  { %1049 = vrot.lane.b32.xlu0 %v8176_v27, %s6779_s21  ;;  %1035 = vrot.lane.b32.xlu1 %v8161_v14, %s6779_s21 }
 0x1c5   :  { %1012 = vperm.xlu2 %6661, %v14033_v57  }
 0x1c6   :  { %1091 = vrot.lane.b32.xlu0 %v8161_v14, %s6781_s22  ;;  %1039 = vrot.lane.b32.xlu1 %v8179_v29, %s6779_s21 }
 0x1cd   :  { %1037 = vrot.lane.b32.xlu2 %v8110_v3, %s6779_s21 }
 0x1ce   :  { %1101 = vrot.lane.b32.xlu0 %v8187_v49, %s6781_s22  ;;  %1045 = vrot.lane.b32.xlu1 %v8187_v49, %s6779_s21 }
 0x1cf   :  { %6664 = vset.pattern.permute.xlu2 %v14035_v62  ;;  %v8250_v12 = vpop.permute.xlu2 %867  ;;  %v14049_v62 = vmov 0  }
 0x1d5   :  { %1041 = vrot.lane.b32.xlu2 %v8112_v47, %s6779_s21 }
 0x1d6   :  { %1103 = vrot.lane.b32.xlu0 %v8165_v43, %s6781_s22  ;;  %1068 = vperm.xlu1 %6663, %v14033_v57  }
 0x1d7   :  { %v8261_v4 = vpop.permute.xlu2 %871 }
 0x1dd   :  { %1047 = vrot.lane.b32.xlu2 %v8165_v43, %s6779_s21  ;;  %v8270_v25 = vpop.permute.xlu0 %873  ;;  %v8272_v35 = vpop.permute.xlu1 %869 }
 0x1de   :  { %1161 = vrot.lane.b32.xlu0 %v8176_v27, %s6784_s23  ;;  %1093 = vrot.lane.b32.xlu1 %v8110_v3, %s6781_s22 }
 0x1df   :  { %6665 = vset.pattern.permute.xlu1 %v14037_v46  ;;  %v8274_v52 = vpop.permute.xlu2 %877 }
 0x1e5   :  { %1072 = vperm.xlu2 %6664, %v14031_v0  }
 0x1e6   :  { %1155 = vrot.lane.b32.xlu0 %v8163_v33, %s6784_s23  ;;  %1105 = vrot.lane.b32.xlu1 %v8176_v27, %s6781_s22 }
 0x1e7   :  { %v8285_v7 = vpop.permute.xlu2 %900 }
 0x1e8   :  { %v8281_v28 = vpop.permute.xlu0 %879  ;;  %v8283_v9 = vpop.permute.xlu1 %875 }
 0x1ed   :  { %1095 = vrot.lane.b32.xlu2 %v8179_v29, %s6781_s22 }
 0x1ee   :  { %1213 = vrot.lane.b32.xlu0 %v8187_v49, %s6785_s24  ;;  %1149 = vrot.lane.b32.xlu1 %v8110_v3, %s6784_s23 }
 0x1ef   :  { %6666 = vset.pattern.permute.xlu2 %v14037_v46  ;;  %v8298_v38 = vpop.permute.xlu2 %925  ;;  %v8390_v46 = vld [vmem:[%s13328_s8 + $0x10] sm:$0xff] }
 0x1f0   :  { %v8293_v55 = vpop.permute.xlu1 %881  ;;  %v8296_v8 = vpop.permute.xlu0 %904 }
 0x1f5   :  { %1099 = vrot.lane.b32.xlu2 %v8163_v33, %s6781_s22 }
 0x1f6   :  { %1184 = vperm.xlu0 %6667, %v14031_v0   ;;  %1128 = vperm.xlu1 %6665, %v14031_v0   ;;  %v1359_v0 = vld [vmem:[%s13327_s6 + $0x10] sm:$0xff] }
 0x1f7   :  { %v8306_v16 = vpop.permute.xlu2 %929 }
 0x1f8   :  { %v8304_v58 = vpop.permute.xlu1 %923  ;;  %v8308_v60 = vpop.permute.xlu0 %931 }
 0x1f9   :  { %14038 = vst [vmem:[#allocation2_spill] sm:$0xff] %v8304_v58 }
 0x1fd   :  { %1157 = vrot.lane.b32.xlu2 %v8187_v49, %s6784_s23 }
 0x1fe   :  { %1269 = vrot.lane.b32.xlu0 %v8187_v49, %s6787_s25  ;;  %1159 = vrot.lane.b32.xlu1 %v8165_v43, %s6784_s23 }
 0x1ff   :  { %6669 = vset.pattern.permute.xlu0 %v14039_v45  ;;  %6672 = vset.pattern.permute.xlu1 %v14040_v36  ;;  %v8320_v30 = vpop.permute.xlu2 %935 }
 0x200   :  { %v8317_v39 = vpop.permute.xlu1 %927  ;;  %v8322_v17 = vpop.permute.xlu0 %937 }
 0x205   :  { %1147 = vrot.lane.b32.xlu2 %v8161_v14, %s6784_s23 }
 0x206   :  { %1240 = vperm.xlu0 %6669, %v6752_v32   ;;  %1217 = vrot.lane.b32.xlu1 %v8176_v27, %s6785_s24 }
 0x207   :  { %v8333_v6 = vpop.permute.xlu2 %960 }
 0x208   :  { %v8331_v54 = vpop.permute.xlu1 %933  ;;  %v8338_v31 = vpop.permute.xlu0 %979 }
 0x209   :  { %14041 = vst [vmem:[#allocation6_spill] sm:$0xff] %v8338_v31 }
 0x20d   :  { %1205 = vrot.lane.b32.xlu2 %v8110_v3, %s6785_s24 }
 0x20e   :  { %6671 = vset.pattern.permute.xlu0 %v14040_v36  ;;  %1203 = vrot.lane.b32.xlu1 %v8161_v14, %s6785_s24 }
 0x20f   :  { %1296 = vperm.xlu0 %6671, %v6752_v32   ;;  %v8344_v5 = vpop.permute.xlu2 %983 }
 0x210   :  { %v8342_v37 = vpop.permute.xlu1 %956  ;;  %v8357_v13 = vpop.permute.xlu0 %985 }
 0x215   :  { %1124 = vperm.xlu2 %6666, %v6753_v11  }
 0x216   :  { %1215 = vrot.lane.b32.xlu1 %v8165_v43, %s6785_s24 }
 0x217   :  { %6676 = vset.pattern.permute.xlu0 %v14034_v59  ;;  %v8359_v63 = vpop.permute.xlu2 %989 }
 0x218   :  { %1334 = vperm.xlu0 %6676, %v847_v61   ;;  %v8355_v48 = vpop.permute.xlu1 %981  ;;  %v8372_v21 = vpop.permute.xlu0 %991 }
 0x219   :  { %14042 = vst [vmem:[#allocation5_spill] sm:$0xff] %v8355_v48 }
 0x21d   :  { %1211 = vrot.lane.b32.xlu2 %v8163_v33, %s6785_s24 }
 0x21e   :  { %1273 = vrot.lane.b32.xlu1 %v8176_v27, %s6787_s25  ;;  %6668 = vset.pattern.permute.xlu2 %v14036_v41 }
 0x21f   :  { %v8370_v20 = vpop.permute.xlu2 %1012 }
 0x220   :  { %1207 = vrot.lane.b32.xlu0 %v8179_v29, %s6785_s24  ;;  %v8367_v22 = vpop.permute.xlu1 %987  ;;  %14043 = vst [vmem:[#allocation4_spill] sm:$0xff] %v8370_v20  ;;  %v8385_v41 = vpop.permute.xlu0 %1016 }
 0x221   :  { %14045 = vst [vmem:[#allocation44_spill] sm:$0xff] %v8385_v41 }
 0x225   :  { %1261 = vrot.lane.b32.xlu2 %v8110_v3, %s6787_s25 }
 0x226   :  { %1259 = vrot.lane.b32.xlu1 %v8161_v14, %s6787_s25 }
 0x227   :  { %v8383_v57 = vpop.permute.xlu2 %1037 }
 0x228   :  { %v8381_v56 = vpop.permute.xlu1 %993  ;;  %1539 = vperm.xlu0 %6676, %v1359_v0   ;;  %14044 = vst [vmem:[#allocation57_spill] sm:$0xff] %v8383_v57  ;;  %v8399_v40 = vpop.permute.xlu0 %1043 }
 0x22d   :  { %1180 = vperm.xlu2 %6668, %v6753_v11  }
 0x22e   :  { %1271 = vrot.lane.b32.xlu1 %v8165_v43, %s6787_s25 }
 0x22f   :  { %v8397_v32 = vpop.permute.xlu2 %1041 }
 0x230   :  { %v8394_v36 = vpop.permute.xlu1 %1035  ;;  %1798 = vperm.xlu0 %6676, %v8390_v46   ;;  %14047 = vst [vmem:[#allocation67_spill] sm:$0xff] %v8397_v32  ;;  %v8412_v42 = vpop.permute.xlu0 %1049 }
 0x231   :  { %14046 = vst [vmem:[#allocation68_spill] sm:$0xff] %v8394_v36 }
 0x235   :  { %1267 = vrot.lane.b32.xlu2 %v8163_v33, %s6787_s25 }
 0x236   :  { %1292 = vperm.xlu1 %6672, %v6753_v11   ;;  %6670 = vset.pattern.permute.xlu2 %v14039_v45 }
 0x237   :  { %v8407_v26 = vpop.permute.xlu2 %1047 }
 0x238   :  { %v8403_v51 = vpop.permute.xlu1 %1039  ;;  %6684 = vset.pattern.permute.xlu0 %v14049_v62 }
 0x239   :  { %14048 = vst [vmem:[#allocation85_spill] sm:$0xff] %v8403_v51 }
 0x23d   :  { %1236 = vperm.xlu2 %6670, %v6753_v11  }
 0x23e   :  { %6674 = vset.pattern.permute.xlu1 %v14049_v62 }
 0x23f   :  { %1317 = vperm.xlu1 %6674, %v847_v61   ;;  %v8414_v19 = vpop.permute.xlu2 %1072  ;;  %v8426_v61 = vpop.permute.xlu0 %1091 }
 0x240   :  { %v8410_v44 = vpop.permute.xlu1 %1045  ;;  %14050 = vst [vmem:[#allocation17_spill] sm:$0xff] %v8414_v19 }
 0x241   :  { %14053 = vst [vmem:[#allocation65_spill] sm:$0xff] %v8426_v61  ;;  %v1357_v61 = vld [vmem:[%s13327_s6] sm:$0xff] }
 0x242   :  { %1496 = vperm.xlu0 %6684, %v1357_v61  }
 0x245   :  { %6673 = vset.pattern.permute.xlu2 %v14049_v62 }
 0x246   :  { %1322 = vperm.xlu2 %6673, %v848_v34  }
 0x247   :  { %1097 = vrot.lane.b32.xlu1 %v8112_v47, %s6781_s22  ;;  %v8424_v11 = vpop.permute.xlu2 %1095  ;;  %v8435_v48 = vpop.permute.xlu0 %1101 }
 0x248   :  { %v8422_v45 = vpop.permute.xlu1 %1068  ;;  %14052 = vst [vmem:[#allocation21_spill] sm:$0xff] %v8424_v11 }
 0x249   :  { %14051 = vst [vmem:[#allocation39_spill] sm:$0xff] %v8422_v45 }
 0x24a   :  { %14056 = vst [vmem:[#allocation63_spill] sm:$0xff] %v8435_v48  ;;  %1756 = vperm.xlu0 %6684, %v8390_v46   ;;  %v887_v46 = vsel %vm13561_vm11, %v8250_v12, %v8261_v4 }
 0x24e   :  { %6675 = vset.pattern.permute.xlu2 %v14034_v59 }
 0x24f   :  { %1151 = vrot.lane.b32.xlu1 %v8179_v29, %s6784_s23  ;;  %1338 = vperm.xlu2 %6675, %v848_v34   ;;  %v8433_v57 = vpop.permute.xlu2 %1099  ;;  %v1358_v34 = vld [vmem:[%s13327_s6 + $0x8] sm:$0xff]  ;;  %v8449_v58 = vpop.permute.xlu0 %1103  ;;  %s6793_s6 = smov 64  }
 0x250   :  { %v8431_v36 = vpop.permute.xlu1 %1093  ;;  %14055 = vst [vmem:[#allocation82_spill] sm:$0xff] %v8433_v57 }
 0x251   :  { %14054 = vst [vmem:[#allocation86_spill] sm:$0xff] %v8431_v36 }
 0x252   :  { %14058 = vst [vmem:[#allocation75_spill] sm:$0xff] %v8449_v58  ;;  %v1578_v58 = vld [vmem:[%s13328_s8] sm:$0xff] }
 0x257   :  { %1265 = vrot.lane.b32.xlu1 %v8112_v47, %s6787_s25  ;;  %1153 = vrot.lane.b32.xlu2 %v8112_v47, %s6784_s23  ;;  %v8443_v11 = vpop.permute.xlu2 %1157  ;;  %v8462_v1 = vpop.permute.xlu0 %1161 }
 0x258   :  { %v8439_v31 = vpop.permute.xlu1 %1105  ;;  %14057 = vst [vmem:[#allocation20_spill] sm:$0xff] %v8443_v11  ;;  %6677 = vset.pattern.permute.xlu2 %v14049_v62 }
 0x259   :  { %14062 = vst [vmem:[#allocation89_spill] sm:$0xff] %v8462_v1  ;;  %v14073_v1 = vld [vmem:[#allocation53_spill] sm:$0xff] }
 0x25f   :  { %1501 = vperm.xlu1 %6674, %v1358_v34   ;;  %1209 = vrot.lane.b32.xlu2 %v8112_v47, %s6785_s24  ;;  %v8455_v23 = vpop.permute.xlu2 %1147  ;;  %v8473_v57 = vpop.permute.xlu0 %1155 }
 0x260   :  { %v8451_v45 = vpop.permute.xlu1 %1149  ;;  %14060 = vst [vmem:[#allocation84_spill] sm:$0xff] %v8455_v23 }
 0x261   :  { %14059 = vst [vmem:[#allocation40_spill] sm:$0xff] %v8451_v45 }
 0x262   :  { %14066 = vst [vmem:[#allocation58_spill] sm:$0xff] %v8473_v57 }
 0x267   :  { %1511 = vperm.xlu1 %6674, %v1360_v10   ;;  %1263 = vrot.lane.b32.xlu2 %v8179_v29, %s6787_s25  ;;  %v8466_v2 = vpop.permute.xlu2 %1205 }
 0x268   :  { %v8460_v50 = vpop.permute.xlu1 %1128  ;;  %14063 = vst [vmem:[#allocation72_spill] sm:$0xff] %v8466_v2 }
 0x269   :  { %14061 = vst [vmem:[#allocation35_spill] sm:$0xff] %v8460_v50 }
 0x26f   :  { %6679 = vset.pattern.permute.xlu1 %v14034_v59  ;;  %v8471_v23 = vpop.permute.xlu2 %1124  ;;  %1506 = vperm.xlu2 %6677, %v1359_v0   ;;  %v8487_v0 = vpop.permute.xlu0 %1213 }
 0x270   :  { %v8469_v18 = vpop.permute.xlu1 %1159  ;;  %1535 = vperm.xlu1 %6679, %v1358_v34   ;;  %14065 = vst [vmem:[#allocation78_spill] sm:$0xff] %v8471_v23  ;;  %v8492_v34 = vld [vmem:[%s13328_s8 + $0x18] sm:$0xff] }
 0x271   :  { %14064 = vst [vmem:[#allocation74_spill] sm:$0xff] %v8469_v18 }
 0x272   :  { %14069 = vst [vmem:[#allocation22_spill] sm:$0xff] %v8487_v0  ;;  %v14074_v0 = vld [vmem:[#allocation56_spill] sm:$0xff] }
 0x277   :  { %v8484_v18 = vpop.permute.xlu2 %1211  ;;  %6678 = vset.pattern.permute.xlu2 %v14034_v59 }
 0x278   :  { %v8481_v45 = vpop.permute.xlu1 %1217  ;;  %6680 = vset.pattern.permute.xlu1 %v14049_v62  ;;  %14068 = vst [vmem:[#allocation27_spill] sm:$0xff] %v8484_v18  ;;  %1543 = vperm.xlu2 %6678, %v1360_v10   ;;  %v883_v10 = vsel %vm13561_vm11, %v8283_v9, %v8281_v28  ;;  %v885_v18 = vsel %vm13561_vm11, %v8261_v4, %v8283_v9 }
 0x279   :  { %14067 = vst [vmem:[#allocation3_spill] sm:$0xff] %v8481_v45  ;;  %1746 = vperm.xlu1 %6680, %v1578_v58   ;;  %v894_v2 = vmul.f32 %v883_v10, %v14073_v1  ;;  %v892_v45 = vmul.f32 %v887_v46, %v14074_v0  ;;  %v860_v9 = vmul.f32 %v8257_v24, %v8179_v29  ;;  %v1579_v29 = vld [vmem:[%s13328_s8 + $0x8] sm:$0xff] }
 0x27a   :  { %v888_v4 = vsel %vm13561_vm11, %v8272_v35, %v8270_v25  ;;  %v8534_v10 = vmul.f32 %v8257_v24, %v8161_v14  ;;  %v8553_v14 = vmul.f32 %v8259_v53, %v8110_v3 }
 0x27b   :  { %v910_v19 = vmul.f32 %v8285_v7, %v894_v2  ;;  %v861_v2 = vmul.f32 %v8257_v24, %v8163_v33  ;;  %v896_v3 = vmul.f32 %v888_v4, %v14074_v0  ;;  %v940_v33 = vsel %vm13562_vm12, %v8331_v54, %v8322_v17 }
 0x27c   :  { %14077 = vst [vmem:[#allocation83_spill] sm:$0xff] %v8534_v10  ;;  %v866_v10 = vmul.f32 %v8259_v53, %v8176_v27  ;;  %v939_v4 = vsel %vm13562_vm12, %v8308_v60, %v8320_v30 }
 0x27d   :  { %14078 = vst [vmem:[#allocation91_spill] sm:$0xff] %v8553_v14 }
 0x27f   :  { %v8497_v57 = vpop.permute.xlu2 %1261 }
 0x280   :  { %v8495_v23 = vpop.permute.xlu1 %1203  ;;  %14071 = vst [vmem:[#allocation38_spill] sm:$0xff] %v8497_v57  ;;  %1531 = vperm.xlu2 %6678, %v1357_v61   ;;  %v14072_v57 = vld [vmem:[#allocation52_spill] sm:$0xff]  ;;  %v8521_v61 = vpop.permute.xlu0 %1184 }
 0x281   :  { %14070 = vst [vmem:[#allocation24_spill] sm:$0xff] %v8495_v23  ;;  %1761 = vperm.xlu1 %6680, %v8492_v34   ;;  %v889_v23 = vsel %vm13561_vm11, %v8281_v28, %v8250_v12  ;;  %v893_v11 = vmul.f32 %v885_v18, %v14072_v57  ;;  %v886_v12 = vsel %vm13561_vm11, %v8270_v25, %v8274_v52  ;;  %v14076_v18 = vld [vmem:[#allocation54_spill] sm:$0xff] }
 0x282   :  { %14075 = vst [vmem:[#allocation81_spill] sm:$0xff] %v8521_v61  ;;  %v891_v28 = vmul.f32 %v889_v23, %v14076_v18  ;;  %v908_v61 = vmul.f32 %v8285_v7, %v892_v45  ;;  %v884_v23 = vsel %vm13561_vm11, %v8274_v52, %v8293_v55  ;;  %v8557_v45 = vmul.f32 %v8259_v53, %v8112_v47 }
 0x283   :  { %v909_v50 = vmul.f32 %v8285_v7, %v893_v11  ;;  %v862_v11 = vmul.f32 %v8257_v24, %v8165_v43  ;;  %v865_v52 = vmul.f32 %v8259_v53, %v8187_v49  ;;  %v897_v47 = vmul.f32 %v886_v12, %v14072_v57 }
 0x284   :  { %v898_v14 = vmul.f32 %v884_v23, %v14073_v1  ;;  %v942_v43 = vsel %vm13562_vm12, %v8306_v16, %v8331_v54  ;;  %v8580_v27 = vmul.f32 %v8285_v7, %v891_v28  ;;  %v8582_v49 = vadd.f32 %v908_v61, %v860_v9  ;;  %v14080_v9 = vld [vmem:[#allocation62_spill] sm:$0xff] }
 0x285   :  { %v917_v24 = vadd.f32 %v909_v50, %v861_v2  ;;  %v918_v53 = vadd.f32 %v910_v19, %v862_v11  ;;  %v941_v7 = vsel %vm13562_vm12, %v8317_v39, %v8308_v60  ;;  %v997_v19 = vsel %vm13564_vm15, %v8344_v5, %v8367_v22  ;;  %v14079_v50 = vld [vmem:[#allocation59_spill] sm:$0xff] }
 0x286   :  { %v953_v54 = vmul.f32 %v942_v43, %v14079_v50  ;;  %v954_v61 = vmul.f32 %v940_v33, %v14080_v9  ;;  %v8611_v60 = vmul.f32 %v8296_v8, %v896_v3  ;;  %v913_v12 = vmul.f32 %v8296_v8, %v897_v47  ;;  %v14081_v3 = vld [vmem:[#allocation70_spill] sm:$0xff] }
 0x287   :  { %v8548_v25 = vpop.permute.xlu2 %1180  ;;  %v914_v28 = vmul.f32 %v8296_v8, %v898_v14  ;;  %v998_v23 = vsel %vm13564_vm15, %v8357_v13, %v8359_v63  ;;  %v950_v11 = vmul.f32 %v939_v4, %v14080_v9  ;;  %v949_v33 = vmul.f32 %v941_v7, %v14079_v50  ;;  %v14083_v14 = vld [vmem:[#allocation64_spill] sm:$0xff] }
 0x288   :  { %v8536_v46 = vpop.permute.xlu1 %1215  ;;  %6681 = vset.pattern.permute.xlu2 %v14049_v62  ;;  %v1005_v43 = vmul.f32 %v997_v19, %v14081_v3  ;;  %v8627_v0 = vpop.permute.xlu0 %1269  ;;  %v969_v4 = vmul.f32 %v8333_v6, %v953_v54  ;;  %v970_v7 = vmul.f32 %v8333_v6, %v954_v61  ;;  %v1009_v19 = vmul.f32 %v998_v23, %v14081_v3  ;;  %v14084_v54 = vld [vmem:[#allocation71_spill] sm:$0xff]  ;;  %v14085_v61 = vld [vmem:[#allocation77_spill] sm:$0xff] }
 0x289   :  { %6682 = vset.pattern.permute.xlu1 %v14034_v59  ;;  %1751 = vperm.xlu2 %6681, %v1579_v29   ;;  %14082 = vst [vmem:[#allocation88_spill] sm:$0xff] %v8627_v0  ;;  %v966_v9 = vmul.f32 %v8342_v37, %v950_v11 }
 0x28a   :  { %1790 = vperm.xlu1 %6682, %v1578_v58   ;;  %v890_v58 = vsel %vm13561_vm11, %v8293_v55, %v8272_v35  ;;  %v995_v35 = vsel %vm13564_vm15, %v8367_v22, %v8372_v21  ;;  %v996_v55 = vsel %vm13564_vm15, %v8359_v63, %v8381_v56  ;;  %v1052_v63 = vsel %vm13563_vm0, %v8410_v44, %v8412_v42 }
 0x28b   :  { %v8622_v22 = vmul.f32 %v890_v58, %v14076_v18  ;;  %v1006_v1 = vmul.f32 %v995_v35, %v14083_v14  ;;  %v1010_v57 = vmul.f32 %v996_v55, %v14083_v14  ;;  %v1054_v58 = vsel %vm13563_vm0, %v8397_v32, %v8410_v44 }
 0x28c   :  { %v922_v35 = vadd.f32 %v914_v28, %v866_v10  ;;  %v921_v55 = vadd.f32 %v913_v12, %v865_v52  ;;  %v965_v18 = vmul.f32 %v8342_v37, %v949_v33  ;;  %v1025_v14 = vmul.f32 %v8385_v41, %v1009_v19  ;;  %v14086_v33 = vld [vmem:[#allocation17_spill] sm:$0xff] }
 0x28d   :  { %v1021_v44 = vmul.f32 %v8370_v20, %v1005_v43  ;;  %v1065_v50 = vmul.f32 %v1054_v58, %v14084_v54  ;;  %v1066_v32 = vmul.f32 %v1052_v63, %v14085_v61  ;;  %v1022_v23 = vmul.f32 %v8370_v20, %v1006_v1  ;;  %v8695_v58 = vld [vmem:[%s13328_s8 + $0x20] sm:$0x7] }
 0x28e   :  { %v1026_v3 = vmul.f32 %v8385_v41, %v1010_v57  ;;  %v1114_v10 = vsel %vm575_vm3, %v8439_v31, %v8431_v36  ;;  %v8672_v1 = vsel %vm13562_vm12, %v8322_v17, %v8298_v38  ;;  %v977_v57 = vadd.f32 %v969_v4, %v921_v55  ;;  %v14087_v17 = vld [vmem:[#allocation79_spill] sm:$0xff]  ;;  %14089 = vst [vmem:[#allocation14_spill] sm:$0xff] %v8695_v58 }
 0x28f   :  { %v8629_v47 = vpop.permute.xlu2 %1267  ;;  %v978_v52 = vadd.f32 %v970_v7, %v922_v35  ;;  %v973_v12 = vadd.f32 %v965_v18, %v917_v24  ;;  %v974_v28 = vadd.f32 %v966_v9, %v918_v53  ;;  %v1081_v43 = vmul.f32 %v14086_v33, %v1065_v50  ;;  %v14088_v18 = vld [vmem:[#allocation80_spill] sm:$0xff]  ;;  %v14090_v50 = vld [vmem:[#allocation35_spill] sm:$0xff] }
 0x290   :  { %v8619_v2 = vpop.permute.xlu1 %1273  ;;  %v1122_v24 = vmul.f32 %v1114_v10, %v14088_v18  ;;  %v8688_v53 = vpop.permute.xlu0 %1240  ;;  %v1033_v19 = vadd.f32 %v1025_v14, %v977_v57  ;;  %v14091_v55 = vld [vmem:[#allocation3_spill] sm:$0xff]  ;;  %v14094_v14 = vld [vmem:[#allocation89_spill] sm:$0xff] }
 0x291   :  { %6683 = vset.pattern.permute.xlu2 %v14034_v59  ;;  %v1030_v4 = vadd.f32 %v1022_v23, %v974_v28  ;;  %v1034_v7 = vadd.f32 %v1026_v3, %v978_v52  ;;  %v14093_v59 = vld [vmem:[#allocation72_spill] sm:$0xff] }
 0x292   :  { %1802 = vperm.xlu1 %6682, %v8492_v34   ;;  %1794 = vperm.xlu2 %6683, %v1579_v29   ;;  %v1108_v34 = vsel %vm575_vm3, %v8435_v48, %v8439_v31  ;;  %v8666_v29 = vsel %vm13562_vm12, %v8298_v38, %v8306_v16  ;;  %v1051_v31 = vsel %vm13563_vm0, %v8399_v40, %v8407_v26  ;;  %v14095_v23 = vld [vmem:[#allocation20_spill] sm:$0xff] }
 0x293   :  { %v1053_v16 = vsel %vm13563_vm0, %v8403_v51, %v8399_v40  ;;  %v1082_v38 = vmul.f32 %v14086_v33, %v1066_v32  ;;  %v1121_v63 = vmul.f32 %v1108_v34, %v14087_v17  ;;  %v1029_v40 = vadd.f32 %v1021_v44, %v973_v12  ;;  %v14092_v34 = vld [vmem:[#allocation22_spill] sm:$0xff]  ;;  %v14096_v52 = vld [vmem:[#allocation40_spill] sm:$0xff] }
 0x294   :  { %v1138_v32 = vmul.f32 %v14090_v50, %v1122_v24  ;;  %v1220_v10 = vsel %vm697_vm14, %v14092_v34, %v14091_v55  ;;  %v1226_v33 = vsel %vm697_vm14, %v14091_v55, %v14093_v59  ;;  %v1062_v44 = vmul.f32 %v1051_v31, %v14085_v61  ;;  %v14098_v55 = vld [vmem:[#allocation65_spill] sm:$0xff]  ;;  %v14099_v61 = vld [vmem:[#allocation75_spill] sm:$0xff]  ;;  %v14107_v48 = vld [vmem:[#allocation84_spill] sm:$0xff] }
 0x295   :  { %v1137_v35 = vmul.f32 %v14090_v50, %v1121_v63  ;;  %v1061_v3 = vmul.f32 %v1053_v16, %v14084_v54  ;;  %v1164_v57 = vsel %vm636_vm1, %v14095_v23, %v14094_v14  ;;  %v1170_v12 = vsel %vm636_vm1, %v14094_v14, %v14096_v52  ;;  %v14097_v16 = vld [vmem:[#allocation38_spill] sm:$0xff]  ;;  %v14104_v34 = vld [vmem:[#allocation87_spill] sm:$0xff] }
 0x296   :  { %v1089_v28 = vadd.f32 %v1081_v43, %v1033_v19  ;;  %v1090_v63 = vadd.f32 %v1082_v38, %v1034_v7  ;;  %v1276_v31 = vsel %vm758_vm9, %v8627_v0, %v8619_v2  ;;  %v1282_v24 = vsel %vm758_vm9, %v8619_v2, %v14097_v16  ;;  %v14100_v14 = vld [vmem:[#allocation82_spill] sm:$0xff]  ;;  %v14102_v19 = vld [vmem:[#allocation23_spill] sm:$0xff]  ;;  %v14103_v0 = vld [vmem:[#allocation29_spill] sm:$0xff] }
 0x297   :  { %v8690_v9 = vpop.permute.xlu2 %1236  ;;  %v1113_v54 = vsel %vm575_vm3, %v14099_v61, %v14098_v55  ;;  %v1107_v43 = vsel %vm575_vm3, %v14100_v14, %v14099_v61  ;;  %v14101_v38 = vld [vmem:[#allocation34_spill] sm:$0xff]  ;;  %v1177_v59 = vmul.f32 %v1164_v57, %v14103_v0  ;;  %v1178_v50 = vmul.f32 %v1170_v12, %v14104_v34  ;;  %v14110_v57 = vld [vmem:[#allocation39_spill] sm:$0xff] }
 0x298   :  { %v8682_v11 = vpop.permute.xlu1 %1259  ;;  %v1233_v7 = vmul.f32 %v1220_v10, %v14101_v38  ;;  %v1145_v52 = vadd.f32 %v1137_v35, %v1089_v28  ;;  %v1146_v2 = vadd.f32 %v1138_v32, %v1090_v63  ;;  %v14105_v16 = vld [vmem:[#allocation74_spill] sm:$0xff]  ;;  %v1077_v41 = vmul.f32 %v14110_v57, %v1061_v3  ;;  %v14111_v32 = vld [vmem:[#allocation81_spill] sm:$0xff] }
 0x299   :  { %v14106_v23 = vld [vmem:[#allocation58_spill] sm:$0xff]  ;;  %v1169_v61 = vsel %vm636_vm1, %v14105_v16, %v14107_v48  ;;  %v1078_v35 = vmul.f32 %v14110_v57, %v1062_v44  ;;  %v1193_v12 = vmul.f32 %v14111_v32, %v1177_v59  ;;  %v1194_v28 = vmul.f32 %v14111_v32, %v1178_v50  ;;  %v8761_v48 = vpop.permute.xlu0 %1296  ;;  %v14112_v50 = vld [vmem:[#allocation27_spill] sm:$0xff] }
 0x29a   :  { %6686 = vset.pattern.permute.xlu1 %v14049_v62  ;;  %1806 = vperm.xlu2 %6683, %v8695_v58   ;;  %v1234_v58 = vmul.f32 %v1226_v33, %v14102_v19  ;;  %v1163_v36 = vsel %vm636_vm1, %v14106_v23, %v14105_v16  ;;  %v14108_v14 = vld [vmem:[#allocation50_spill] sm:$0xff]  ;;  %v1118_v63 = vmul.f32 %v1113_v54, %v14088_v18 }
 0x29b   :  { %v1289_v10 = vmul.f32 %v1276_v31, %v14108_v14  ;;  %v14109_v55 = vld [vmem:[#allocation90_spill] sm:$0xff]  ;;  %v1117_v23 = vmul.f32 %v1107_v43, %v14087_v17  ;;  %v1249_v51 = vmul.f32 %v8688_v53, %v1233_v7  ;;  %v1174_v3 = vmul.f32 %v1169_v61, %v14104_v34  ;;  %v14113_v43 = vld [vmem:[#allocation24_spill] sm:$0xff] }
 0x29c   :  { %v1290_v33 = vmul.f32 %v1282_v24, %v14109_v55  ;;  %v1250_v16 = vmul.f32 %v8688_v53, %v1234_v58  ;;  %v1173_v24 = vmul.f32 %v1163_v36, %v14103_v0  ;;  %v1201_v44 = vadd.f32 %v1193_v12, %v1145_v52  ;;  %v14114_v52 = vld [vmem:[#allocation78_spill] sm:$0xff] }
 0x29d   :  { %v1202_v59 = vadd.f32 %v1194_v28, %v1146_v2  ;;  %v1219_v54 = vsel %vm697_vm14, %v14112_v50, %v8536_v46  ;;  %v1225_v58 = vsel %vm697_vm14, %v8536_v46, %v14113_v43  ;;  %v1305_v7 = vmul.f32 %v8761_v48, %v1289_v10 }
 0x29e   :  { %v1306_v36 = vmul.f32 %v8761_v48, %v1290_v33  ;;  %v1085_v61 = vadd.f32 %v1077_v41, %v1029_v40  ;;  %v1086_v34 = vadd.f32 %v1078_v35, %v1030_v4  ;;  %v1133_v2 = vmul.f32 %v14114_v52, %v1117_v23  ;;  %v14115_v40 = vld [vmem:[#allocation2_spill] sm:$0xff] }
 0x29f   :  { %v1134_v12 = vmul.f32 %v14114_v52, %v1118_v63  ;;  %v1189_v28 = vmul.f32 %v8548_v25, %v1173_v24  ;;  %v1190_v18 = vmul.f32 %v8548_v25, %v1174_v3  ;;  %v1257_v17 = vadd.f32 %v1249_v51, %v1201_v44 }
 0x2a0   :  { %v1272_v20 = vpop.permute.xlu1 %1271  ;;  %v8757_v31 = vpop.permute.xlu2 %1322  ;;  %v1258_v0 = vadd.f32 %v1250_v16, %v1202_v59  ;;  %v1229_v46 = vmul.f32 %v1219_v54, %v14101_v38  ;;  %v1230_v10 = vmul.f32 %v1225_v58, %v14102_v19  ;;  %v945_v4 = vsel %vm13562_vm12, %v8320_v30, %v14115_v40 }
 0x2a1   :  { %v1275_v33 = vsel %vm758_vm9, %v8629_v47, %v1272_v20  ;;  %v1281_v41 = vsel %vm758_vm9, %v1272_v20, %v8682_v11  ;;  %v943_v51 = vsel %vm13562_vm12, %v14115_v40, %v8317_v39  ;;  %v1313_v23 = vadd.f32 %v1305_v7, %v1257_v17 }
 0x2a2   :  { %6685 = vset.pattern.permute.xlu2 %v14049_v62  ;;  %v1314_v35 = vadd.f32 %v1306_v36, %v1258_v0  ;;  %v1141_v16 = vadd.f32 %v1133_v2, %v1085_v61  ;;  %v1142_v24 = vadd.f32 %v1134_v12, %v1086_v34  ;;  %v1245_v3 = vmul.f32 %v8690_v9, %v1229_v46  ;;  %v14116_v0 = vld [vmem:[#allocation55_spill] sm:$0xff]  ;;  %v14117_v46 = vld [vmem:[#allocation60_spill] sm:$0xff] }
 0x2a3   :  { %v1246_v20 = vmul.f32 %v8690_v9, %v1230_v10  ;;  %v1285_v44 = vmul.f32 %v1275_v33, %v14108_v14  ;;  %v1286_v59 = vmul.f32 %v1281_v41, %v14109_v55  ;;  %v1331_v30 = vmul.f32 %v8757_v31, %v1313_v23 }
 0x2a4   :  { %v1332_v54 = vmul.f32 %v8757_v31, %v1314_v35  ;;  %v911_v39 = vmul.f32 %v8296_v8, %v8622_v22  ;;  %v952_v17 = vmul.f32 %v8666_v29, %v14116_v0  ;;  %v1197_v58 = vadd.f32 %v1189_v28, %v1141_v16 }
 0x2a5   :  { %v1198_v34 = vadd.f32 %v1190_v18, %v1142_v24  ;;  %v951_v10 = vmul.f32 %v8672_v1, %v14117_v46  ;;  %v947_v8 = vmul.f32 %v945_v4, %v14117_v46  ;;  %v948_v22 = vmul.f32 %v943_v51, %v14116_v0  ;;  %v14120_v4 = vld [vmem:[#allocation6_spill] sm:$0xff] }
 0x2a6   :  { %v968_v29 = vmul.f32 %v8333_v6, %v952_v17  ;;  %v1253_v18 = vadd.f32 %v1245_v3, %v1197_v58  ;;  %v920_v40 = vadd.f32 %v8611_v60, %v8557_v45  ;;  %v999_v51 = vsel %vm13564_vm15, %v14120_v4, %v8344_v5  ;;  %v14121_v3 = vld [vmem:[#allocation83_spill] sm:$0xff] }
 0x2a7   :  { %v1254_v28 = vadd.f32 %v1246_v20, %v1198_v34  ;;  %v967_v23 = vmul.f32 %v8333_v6, %v951_v10  ;;  %v963_v35 = vmul.f32 %v8342_v37, %v947_v8  ;;  %v964_v1 = vmul.f32 %v8342_v37, %v948_v22  ;;  %v14122_v60 = vld [vmem:[#allocation91_spill] sm:$0xff]  ;;  %v14123_v20 = vld [vmem:[#allocation5_spill] sm:$0xff] }
 0x2a8   :  { %v8794_v63 = vpop.permute.xlu1 %1292  ;;  %v915_v45 = vadd.f32 %v8580_v27, %v14121_v3  ;;  %v919_v6 = vadd.f32 %v911_v39, %v14122_v60  ;;  %v1001_v37 = vsel %vm13564_vm15, %v8372_v21, %v14120_v4  ;;  %v1002_v5 = vsel %vm13564_vm15, %v8381_v56, %v14123_v20  ;;  %v14124_v21 = vld [vmem:[#allocation61_spill] sm:$0xff] }
 0x2a9   :  { %v8806_v7 = vpop.permute.xlu2 %1338  ;;  %v1301_v36 = vmul.f32 %v8794_v63, %v1285_v44  ;;  %v1302_v61 = vmul.f32 %v8794_v63, %v1286_v59  ;;  %v8843_v44 = vpop.permute.xlu0 %1334  ;;  %v1000_v27 = vsel %vm13564_vm15, %v14123_v20, %v8357_v13  ;;  %v1004_v17 = vmul.f32 %v999_v51, %v14124_v21  ;;  %v14126_v22 = vld [vmem:[#allocation57_spill] sm:$0xff]  ;;  %v14132_v51 = vld [vmem:[#allocation44_spill] sm:$0xff] }
 0x2aa   :  { %v1347_v2 = vadd.f32 %v8806_v7, %v1331_v30  ;;  %v1348_v12 = vadd.f32 %v8806_v7, %v1332_v54  ;;  %v976_v30 = vadd.f32 %v968_v29, %v920_v40  ;;  %v971_v58 = vadd.f32 %v963_v35, %v915_v45  ;;  %v14134_v45 = vld [vmem:[#allocation21_spill] sm:$0xff] }
 0x2ab   :  { %v1309_v16 = vadd.f32 %v1301_v36, %v1253_v18  ;;  %v1310_v24 = vadd.f32 %v1302_v61, %v1254_v28  ;;  %v972_v34 = vadd.f32 %v964_v1, %v8582_v49  ;;  %v975_v56 = vadd.f32 %v967_v23, %v919_v6  ;;  %v14125_v61 = vld [vmem:[#allocation66_spill] sm:$0xff]  ;;  %v14127_v18 = vld [vmem:[#allocation67_spill] sm:$0xff]  ;;  %v14128_v28 = vld [vmem:[#allocation68_spill] sm:$0xff] }
 0x2ac   :  { %v8817_v33 = vmax.f32 %v1347_v2, 0.0  ;;  %v8819_v41 = vmax.f32 %v1348_v12, 0.0  ;;  %v1003_v2 = vmul.f32 %v1001_v37, %v14125_v61  ;;  %v1007_v12 = vmul.f32 %v1002_v5, %v14125_v61  ;;  %v14129_v23 = vld [vmem:[#allocation85_spill] sm:$0xff] }
 0x2ad   :  { %v1008_v13 = vmul.f32 %v1000_v27, %v14124_v21  ;;  %v1058_v29 = vsel %vm13563_vm0, %v8412_v42, %v14126_v22  ;;  %v1056_v49 = vsel %vm13563_vm0, %v14126_v22, %v14127_v18  ;;  %v1057_v40 = vsel %vm13563_vm0, %v8407_v26, %v14128_v28  ;;  %v8883_v42 = vld [vmem:[%s13329_s5] sm:$0xff]  ;;  %v14135_v60 = vld [vmem:[#allocation65_spill] sm:$0xff]  ;;  %v14140_v18 = vld [vmem:[#allocation63_spill] sm:$0xff] }
 0x2ae   :  { %14118 = vst [vmem:[#allocation49_spill] sm:$0xff] %v8817_v33  ;;  %1450 = vmatpush.msra.mxu2 %v8817_v33  ;;  %1479 = vmatpush.msra.mxu3 %v8819_v41  ;;  %v1055_v35 = vsel %vm13563_vm0, %v14128_v28, %v14129_v23  ;;  %v1111_v6 = vsel %vm575_vm3, %v14135_v60, %v14134_v45  ;;  %v14136_v20 = vld [vmem:[#allocation73_spill] sm:$0xff]  ;;  %v14137_v27 = vld [vmem:[#allocation82_spill] sm:$0xff] }
 0x2af   :  { %14119 = vst [vmem:[#allocation33_spill] sm:$0xff] %v8819_v41  ;;  %v1023_v37 = vmul.f32 %v14132_v51, %v1007_v12  ;;  %v1059_v5 = vmul.f32 %v1057_v40, %v14136_v20  ;;  %v14142_v23 = vld [vmem:[#allocation17_spill] sm:$0xff] }
 0x2b1   :  { %v8845_v59 = vpop.permute.xlu1 %1317  ;;  %v1154_v36 = vpop.permute.xlu2 %1153  ;;  %v1075_v22 = vmul.f32 %v14110_v57, %v1059_v5 }
 0x2b2   :  { %v1327_v54 = vmul.f32 %v8845_v59, %v1309_v16  ;;  %v1328_v39 = vmul.f32 %v8845_v59, %v1310_v24  ;;  %v1024_v16 = vmul.f32 %v14132_v51, %v1008_v13  ;;  %v14133_v24 = vld [vmem:[#allocation4_spill] sm:$0xff]  ;;  %v1208_v60 = vpop.permute.xlu0 %1207 }
 0x2b3   :  { %v1019_v3 = vmul.f32 %v14133_v24, %v1003_v2  ;;  %v1020_v26 = vmul.f32 %v14133_v24, %v1004_v17  ;;  %v14138_v17 = vld [vmem:[#allocation69_spill] sm:$0xff]  ;;  %v14143_v24 = vld [vmem:[#allocation19_spill] sm:$0xff] }
 0x2b4   :  { %v1343_v10 = vadd.f32 %v8843_v44, %v1327_v54  ;;  %v1344_v8 = vadd.f32 %v8843_v44, %v1328_v39  ;;  %v1109_v54 = vsel %vm575_vm3, %v14134_v45, %v14137_v27  ;;  %v1063_v39 = vmul.f32 %v1058_v29, %v14136_v20  ;;  %v14141_v29 = vld [vmem:[#allocation86_spill] sm:$0xff] }
 0x2b5   :  { %v1064_v2 = vmul.f32 %v1056_v49, %v14138_v17  ;;  %v1027_v40 = vadd.f32 %v1019_v3, %v971_v58  ;;  %v1116_v45 = vmul.f32 %v1109_v54, %v14143_v24  ;;  %v1028_v46 = vadd.f32 %v1020_v26, %v972_v34  ;;  %v14144_v34 = vld [vmem:[#allocation20_spill] sm:$0xff]  ;;  %v14146_v26 = vld [vmem:[#allocation35_spill] sm:$0xff] }
 0x2b6   :  { %v8876_v1 = vmax.f32 %v1343_v10, 0.0  ;;  %v8878_v4 = vmax.f32 %v1344_v8, 0.0  ;;  %v1060_v10 = vmul.f32 %v1055_v35, %v14138_v17  ;;  %v14139_v8 = vld [vmem:[#allocation76_spill] sm:$0xff]  ;;  %v1079_v35 = vmul.f32 %v14142_v23, %v1063_v39 }
 0x2b7   :  { %v1115_v13 = vmul.f32 %v1111_v6, %v14139_v8  ;;  %v1080_v6 = vmul.f32 %v14142_v23, %v1064_v2  ;;  %v1031_v17 = vadd.f32 %v1023_v37, %v975_v56  ;;  %v1132_v58 = vmul.f32 %v14114_v52, %v1116_v45  ;;  %v8932_v2 = vld [vmem:[%s13329_s5 + $0x8] sm:$0xff] }
 0x2b8   :  { %14130 = vst [vmem:[#allocation32_spill] sm:$0xff] %v8876_v1  ;;  %1451 = vmatpush.msra.mxu2 %v8876_v1  ;;  %1480 = vmatpush.msra.mxu3 %v8878_v4  ;;  %v1076_v51 = vmul.f32 %v14110_v57, %v1060_v10  ;;  %v1032_v3 = vadd.f32 %v1024_v16, %v976_v30  ;;  %v14145_v30 = vld [vmem:[#allocation40_spill] sm:$0xff] }
 0x2b9   :  { %14131 = vst [vmem:[#allocation16_spill] sm:$0xff] %v8878_v4  ;;  %6408 = vmatmul.msk.f32.vlgmr.msra.gmra.mxu2 %vm1365_vm13, %v8883_v42  ;;  %6412 = vmatmul.msk.f32.vlgmr.msra.gmra.mxu3 %vm1365_vm13, %v8883_v42  ;;  %v1098_v12 = vpop.permute.xlu1 %1097  ;;  %v1210_v27 = vpop.permute.xlu2 %1209  ;;  %v1131_v5 = vmul.f32 %v14114_v52, %v1115_v13  ;;  %v1083_v39 = vadd.f32 %v1075_v22, %v1027_v40  ;;  %v14147_v13 = vld [vmem:[#allocation26_spill] sm:$0xff] }
 0x2ba   :  { %v1110_v28 = vsel %vm575_vm3, %v1098_v12, %v14140_v18  ;;  %v1112_v49 = vsel %vm575_vm3, %v14141_v29, %v1098_v12  ;;  %v1221_v57 = vsel %vm697_vm14, %v1208_v60, %v14112_v50  ;;  %v1223_v54 = vsel %vm697_vm14, %v14113_v43, %v1208_v60  ;;  %v14150_v40 = vld [vmem:[#allocation18_spill] sm:$0xff] }
 0x2bb   :  { %v1119_v0 = vmul.f32 %v1112_v49, %v14139_v8  ;;  %v1120_v18 = vmul.f32 %v1110_v28, %v14143_v24  ;;  %v1084_v10 = vadd.f32 %v1076_v51, %v1028_v46  ;;  %v1166_v52 = vsel %vm636_vm1, %v1154_v36, %v14144_v34  ;;  %v14148_v28 = vld [vmem:[#allocation48_spill] sm:$0xff]  ;;  %v14153_v60 = vld [vmem:[#allocation22_spill] sm:$0xff] }
 0x2bc   :  { %v1168_v56 = vsel %vm636_vm1, %v14145_v30, %v1154_v36  ;;  %v1087_v16 = vadd.f32 %v1079_v35, %v1031_v17  ;;  %v1088_v50 = vadd.f32 %v1080_v6, %v1032_v3  ;;  %v1139_v12 = vadd.f32 %v1131_v5, %v1083_v39  ;;  %v14149_v36 = vld [vmem:[#allocation15_spill] sm:$0xff]  ;;  %v14152_v51 = vld [vmem:[#allocation84_spill] sm:$0xff] }
 0x2bd   :  { %v1135_v37 = vmul.f32 %v14146_v26, %v1119_v0  ;;  %v1136_v43 = vmul.f32 %v14146_v26, %v1120_v18  ;;  %v1227_v22 = vmul.f32 %v1223_v54, %v14147_v13  ;;  %v1228_v29 = vmul.f32 %v1221_v57, %v14148_v28  ;;  %v14151_v0 = vld [vmem:[#allocation58_spill] sm:$0xff]  ;;  %v14154_v5 = vld [vmem:[#allocation72_spill] sm:$0xff]  ;;  %v14156_v26 = vld [vmem:[#allocation43_spill] sm:$0xff] }
 0x2be   :  { %v1140_v46 = vadd.f32 %v1132_v58, %v1084_v10  ;;  %v1175_v17 = vmul.f32 %v1168_v56, %v14149_v36  ;;  %v1176_v23 = vmul.f32 %v1166_v52, %v14150_v40  ;;  %v1222_v6 = vsel %vm697_vm14, %v1210_v27, %v14153_v60 }
 0x2bf   :  { %v1224_v18 = vsel %vm697_vm14, %v14154_v5, %v1210_v27  ;;  %v1143_v57 = vadd.f32 %v1135_v37, %v1087_v16  ;;  %v1144_v54 = vadd.f32 %v1136_v43, %v1088_v50  ;;  %v14155_v27 = vld [vmem:[#allocation7_spill] sm:$0xff]  ;;  %v1243_v37 = vmul.f32 %v8690_v9, %v1227_v22 }
 0x2c0   :  { %v1192_v16 = vmul.f32 %v14111_v32, %v1176_v23  ;;  %v1231_v50 = vmul.f32 %v1224_v18, %v14147_v13 }
 0x2c1   :  { %6409 = vmatmul.msk.f32.gmra.mxu2 %vm1365_vm13, %v8932_v2  ;;  %6413 = vmatmul.msk.f32.gmra.mxu3 %vm1365_vm13, %v8932_v2  ;;  %v1152_v49 = vpop.permute.xlu1 %1151  ;;  %v1264_v39 = vpop.permute.xlu2 %1263 }
 0x2c2   :  { %v1165_v35 = vsel %vm636_vm1, %v1152_v49, %v14151_v0  ;;  %v1167_v45 = vsel %vm636_vm1, %v14152_v51, %v1152_v49  ;;  %v1277_v10 = vsel %vm758_vm9, %v1264_v39, %v8629_v47  ;;  %v1279_v34 = vsel %vm758_vm9, %v8682_v11, %v1264_v39  ;;  %v8981_v11 = vld [vmem:[%s13329_s5 + $0x10] sm:$0xff] }
 0x2c3   :  { %v1171_v58 = vmul.f32 %v1167_v45, %v14149_v36  ;;  %v1172_v3 = vmul.f32 %v1165_v35, %v14150_v40  ;;  %v1283_v56 = vmul.f32 %v1279_v34, %v14155_v27  ;;  %v1284_v49 = vmul.f32 %v1277_v10, %v14156_v26 }
 0x2c4   :  { %v1191_v0 = vmul.f32 %v14111_v32, %v1175_v17  ;;  %v1232_v47 = vmul.f32 %v1222_v6, %v14148_v28  ;;  %v1200_v45 = vadd.f32 %v1192_v16, %v1144_v54  ;;  %v1247_v22 = vmul.f32 %v8688_v53, %v1231_v50 }
 0x2c5   :  { %v1187_v52 = vmul.f32 %v8548_v25, %v1171_v58  ;;  %v1188_v30 = vmul.f32 %v8548_v25, %v1172_v3  ;;  %v1244_v25 = vmul.f32 %v8690_v9, %v1228_v29  ;;  %v1299_v17 = vmul.f32 %v8794_v63, %v1283_v56 }
 0x2c6   :  { %v1199_v51 = vadd.f32 %v1191_v0, %v1143_v57  ;;  %v1300_v60 = vmul.f32 %v8794_v63, %v1284_v49  ;;  %v1248_v9 = vmul.f32 %v8688_v53, %v1232_v47 }
 0x2c7   :  { %v1195_v43 = vadd.f32 %v1187_v52, %v1139_v12  ;;  %v1196_v35 = vadd.f32 %v1188_v30, %v1140_v46  ;;  %v14157_v12 = vld [vmem:[#allocation88_spill] sm:$0xff]  ;;  %v14158_v46 = vld [vmem:[#allocation38_spill] sm:$0xff]  ;;  %v1364_v52 = vld [vmem:[%s13329_s5 + $0x18] sm:$0xf]  ;;  %s6794_s5 = smov 126  }
 0x2c8   :  { %v1255_v39 = vadd.f32 %v1247_v22, %v1199_v51  ;;  %v1256_v57 = vadd.f32 %v1248_v9, %v1200_v45  ;;  %v1877_v51 = vmul.f32 0.0, %v8878_v4 }
 0x2c9   :  { %v1251_v32 = vadd.f32 %v1243_v37, %v1195_v43  ;;  %v1252_v23 = vadd.f32 %v1244_v25, %v1196_v35  ;;  %6410 = vmatmul.msk.f32.gmra.mxu2 %vm1365_vm13, %v8981_v11  ;;  %6414 = vmatmul.msk.f32.gmra.mxu3 %vm1365_vm13, %v8981_v11  ;;  %v1266_v6 = vpop.permute.xlu1 %1265 }
 0x2ca   :  { %v1278_v29 = vsel %vm758_vm9, %v1266_v6, %v14157_v12  ;;  %v1280_v5 = vsel %vm758_vm9, %v14158_v46, %v1266_v6  ;;  %v1881_v6 = vmul.f32 0.0, %v8819_v41  ;;  %v9054_v12 = vpop.permute.xlu0 %1539 }
 0x2cb   :  { %v1307_v63 = vadd.f32 %v1299_v17, %v1251_v32  ;;  %v1308_v18 = vadd.f32 %v1300_v60, %v1252_v23  ;;  %v1287_v58 = vmul.f32 %v1280_v5, %v14155_v27  ;;  %v1288_v3 = vmul.f32 %v1278_v29, %v14156_v26  ;;  %v1507_v29 = vpop.permute.xlu2 %1506 }
 0x2cc   :  { %v1880_v23 = vmul.f32 0.0, %v8817_v33 }
 0x2cd   :  { %v1325_v54 = vmul.f32 %v8845_v59, %v1307_v63  ;;  %v1326_v53 = vmul.f32 %v8845_v59, %v1308_v18  ;;  %v1303_v10 = vmul.f32 %v8761_v48, %v1287_v58  ;;  %v1304_v34 = vmul.f32 %v8761_v48, %v1288_v3 }
 0x2ce   :  { %v1876_v48 = vmul.f32 0.0, %v8876_v1 }
 0x2cf   :  { %v1341_v30 = vadd.f32 %v8843_v44, %v1325_v54  ;;  %v1342_v56 = vadd.f32 %v8843_v44, %v1326_v53  ;;  %v1311_v49 = vadd.f32 %v1303_v10, %v1255_v39  ;;  %v1312_v0 = vadd.f32 %v1304_v34, %v1256_v57 }
 0x2d1   :  { %v9010_v16 = vmax.f32 %v1341_v30, 0.0  ;;  %v9012_v50 = vmax.f32 %v1342_v56, 0.0  ;;  %v1329_v59 = vmul.f32 %v8757_v31, %v1311_v49  ;;  %v1330_v47 = vmul.f32 %v8757_v31, %v1312_v0  ;;  %6411 = vmatmul.msk.f32.gmra.mxu2 %vm1365_vm13, %v1364_v52  ;;  %6415 = vmatmul.msk.f32.gmra.mxu3 %vm1365_vm13, %v1364_v52  ;;  %v9056_v63 = vpop.permute.xlu1 %1501 }
 0x2d3   :  { %14159 = vst [vmem:[#allocation3_spill] sm:$0xff] %v9010_v16  ;;  %v1866_v37 = vmax.f32 %v9010_v16, %v9012_v50  ;;  %v1345_v44 = vadd.f32 %v8806_v7, %v1329_v59  ;;  %v1346_v25 = vadd.f32 %v8806_v7, %v1330_v47  ;;  %v1882_v43 = vadd.f32 %v9012_v50, %v9010_v16  ;;  %v9060_v3 = vpop.permute.xlu2 %1543 }
 0x2d4   :  { %14160 = vst [vmem:[#allocation89_spill] sm:$0xff] %v9012_v50 }
 0x2d5   :  { %1867 = vmax.xlane.f32.xlu1 %v1866_v37  ;;  %v9025_v35 = vmax.f32 %v1345_v44, 0.0  ;;  %v9027_v31 = vmax.f32 %v1346_v25, 0.0  ;;  %v1883_v45 = vadd.f32 %v1882_v43, %v1876_v48 }
 0x2d7   :  { %14161 = vst [vmem:[#allocation75_spill] sm:$0xff] %v9025_v35  ;;  %1392 = vmatpush.msra.mxu0 %v9025_v35  ;;  %1421 = vmatpush.msra.mxu1 %v9027_v31  ;;  %v1884_v17 = vadd.f32 %v1883_v45, %v1877_v51  ;;  %v1871_v32 = vmax.f32 %v9025_v35, %v9027_v31 }
 0x2d8   :  { %14162 = vst [vmem:[#allocation34_spill] sm:$0xff] %v9027_v31  ;;  %v1887_v7 = vadd.f32 %v9027_v31, %v9025_v35 }
 0x2d9   :  { %1885 = vadd.xlane.f32.xlu0 %v1884_v17  ;;  %1393 = vmatpush.msra.mxu0 %v9010_v16 }
 0x2da   :  { %1872 = vmax.xlane.f32.xlu2 %v1871_v32  ;;  %1422 = vmatpush.msra.mxu1 %v9012_v50  ;;  %v1888_v60 = vadd.f32 %v1887_v7, %v1880_v23 }
 0x2db   :  { %6400 = vmatmul.msk.f32.vlgmr.msra.gmra.mxu0 %vm1365_vm13, %v8883_v42  ;;  %6404 = vmatmul.msk.f32.vlgmr.msra.gmra.mxu1 %vm1365_vm13, %v8883_v42  ;;  %v9064_v47 = vpop.permute.xlu2 %1531 }
 0x2dc   :  { %v1889_v22 = vadd.f32 %v1888_v60, %v1881_v6 }
 0x2e2   :  { %1890 = vadd.xlane.f32.xlu2 %v1889_v22 }
 0x2e3   :  { %6401 = vmatmul.msk.f32.gmra.mxu0 %vm1365_vm13, %v8932_v2  ;;  %6405 = vmatmul.msk.f32.gmra.mxu1 %vm1365_vm13, %v8932_v2  ;;  %v9058_v2 = vpop.permute.xlu0 %1798 }
 0x2eb   :  { %6402 = vmatmul.msk.f32.gmra.mxu0 %vm1365_vm13, %v8981_v11  ;;  %6406 = vmatmul.msk.f32.gmra.mxu1 %vm1365_vm13, %v8981_v11  ;;  %v1512_v11 = vpop.permute.xlu1 %1511  ;;  %v1497_v39 = vpop.permute.xlu0 %1496 }
 0x2f3   :  { %6403 = vmatmul.msk.f32.gmra.mxu0 %vm1365_vm13, %v1364_v52  ;;  %6407 = vmatmul.msk.f32.gmra.mxu1 %vm1365_vm13, %v1364_v52  ;;  %v1536_v59 = vpop.permute.xlu1 %1535 }
 0x33c   :  { %v1453_v42 = vpop.f32.mrf.mxu2  ;;  %v1482_v9 = vpop.f32.mrf.mxu3 }
 0x33d   :  { %v1516_v53 = vmul.f32 %v1497_v39, %v1453_v42  ;;  %v1517_v10 = vmul.f32 %v1497_v39, %v1482_v9 }
 0x33f   :  { %v1548_v45 = vadd.f32 %v9064_v47, %v1516_v53  ;;  %v1549_v17 = vadd.f32 %v9064_v47, %v1517_v10 }
 0x344   :  { %v1456_v46 = vpop.f32.mrf.mxu2  ;;  %v1485_v5 = vpop.f32.mrf.mxu3 }
 0x345   :  { %v1520_v30 = vmul.f32 %v9056_v63, %v1456_v46  ;;  %v1521_v56 = vmul.f32 %v9056_v63, %v1485_v5  ;;  %v1564_v46 = vmax.f32 %v1548_v45, 0.0  ;;  %v1565_v5 = vmax.f32 %v1549_v17, 0.0 }
 0x347   :  { %v1552_v23 = vadd.f32 %v1536_v59, %v1520_v30  ;;  %v1553_v60 = vadd.f32 %v1536_v59, %v1521_v56  ;;  %v1585_v30 = vld [vmem:[%s13330_s7 + $0x10] sm:$0xff] }
 0x349   :  { %v1568_v42 = vmax.f32 %v1552_v23, 0.0  ;;  %v1569_v9 = vmax.f32 %v1553_v60, 0.0 }
 0x34c   :  { %v1459_v18 = vpop.f32.mrf.mxu2  ;;  %v1488_v58 = vpop.f32.mrf.mxu3 }
 0x34d   :  { %v1524_v57 = vmul.f32 %v1507_v29, %v1459_v18  ;;  %v1525_v54 = vmul.f32 %v1507_v29, %v1488_v58  ;;  %v1583_v18 = vld [vmem:[%s13330_s7] sm:$0xff] }
 0x34f   :  { %v1556_v44 = vadd.f32 %v9054_v12, %v1524_v57  ;;  %v1557_v25 = vadd.f32 %v9054_v12, %v1525_v54  ;;  %v1584_v54 = vld [vmem:[%s13330_s7 + $0x8] sm:$0xff] }
 0x351   :  { %v1572_v6 = vmax.f32 %v1556_v44, 0.0  ;;  %v1573_v22 = vmax.f32 %v1557_v25, 0.0 }
 0x354   :  { %v1462_v34 = vpop.f32.mrf.mxu2  ;;  %v1491_v52 = vpop.f32.mrf.mxu3 }
 0x355   :  { %v1528_v49 = vmul.f32 %v1512_v11, %v1462_v34  ;;  %v1529_v0 = vmul.f32 %v1512_v11, %v1491_v52 }
 0x357   :  { %v1560_v48 = vadd.f32 %v9060_v3, %v1528_v49  ;;  %v1561_v37 = vadd.f32 %v9060_v3, %v1529_v0 }
 0x358   :  { %v1395_v43 = vpop.f32.mrf.mxu0  ;;  %v1424_v51 = vpop.f32.mrf.mxu1 }
 0x359   :  { %v1576_v32 = vmax.f32 %v1560_v48, 0.0  ;;  %v1577_v7 = vmax.f32 %v1561_v37, 0.0  ;;  %v1514_v25 = vmul.f32 %v1497_v39, %v1395_v43  ;;  %v1515_v45 = vmul.f32 %v1497_v39, %v1424_v51 }
 0x35b   :  { %6428 = vmatpush.msk.msrb.mxu2 %vm273_vm8, %v1576_v32  ;;  %6434 = vmatpush.msk.msrb.mxu3 %vm273_vm8, %v1577_v7  ;;  %v1546_v43 = vadd.f32 %v9064_v47, %v1514_v25  ;;  %v1547_v51 = vadd.f32 %v9064_v47, %v1515_v45  ;;  %v1587_v47 = vld [vmem:[%s13330_s7 + $0x20] sm:$0x7] }
 0x35d   :  { %1693 = vmatpush.msrb.mxu2 %v1572_v6  ;;  %1725 = vmatpush.msrb.mxu3 %v1573_v22 }
 0x35f   :  { %1694 = vmatpush.msrb.mxu2 %v1568_v42  ;;  %1726 = vmatpush.msrb.mxu3 %v1569_v9  ;;  %v1563_v42 = vmax.f32 %v1547_v51, 0.0  ;;  %v1747_v9 = vpop.permute.xlu1 %1746 }
 0x360   :  { %v1398_v58 = vpop.f32.mrf.mxu0  ;;  %v1427_v57 = vpop.f32.mrf.mxu1 }
 0x361   :  { %1695 = vmatpush.msrb.mxu2 %v1564_v46  ;;  %1727 = vmatpush.msrb.mxu3 %v1565_v5  ;;  %v1518_v0 = vmul.f32 %v9056_v63, %v1398_v58  ;;  %v1519_v48 = vmul.f32 %v9056_v63, %v1427_v57  ;;  %v1752_v5 = vpop.permute.xlu2 %1751 }
 0x362   :  { %6429 = vmatmul.msk.f32.vlgmr.msrb.gmra.mxu2 %vm1588_vm5, %v1583_v18  ;;  %6435 = vmatmul.msk.f32.vlgmr.msrb.gmra.mxu3 %vm1588_vm5, %v1583_v18 }
 0x363   :  { %v1550_v6 = vadd.f32 %v1536_v59, %v1518_v0  ;;  %v1551_v63 = vadd.f32 %v1536_v59, %v1519_v48  ;;  %v1562_v59 = vmax.f32 %v1546_v43, 0.0 }
 0x365   :  { %v1567_v22 = vmax.f32 %v1551_v63, 0.0 }
 0x367   :  { %v9119_v46 = vpop.permute.xlu1 %1761 }
 0x368   :  { %v1401_v53 = vpop.f32.mrf.mxu0  ;;  %v1430_v10 = vpop.f32.mrf.mxu1 }
 0x369   :  { %v1522_v34 = vmul.f32 %v1507_v29, %v1401_v53  ;;  %v1523_v52 = vmul.f32 %v1507_v29, %v1430_v10 }
 0x36a   :  { %6430 = vmatmul.msk.f32.gmra.mxu2 %vm1588_vm5, %v1584_v54  ;;  %6436 = vmatmul.msk.f32.gmra.mxu3 %vm1588_vm5, %v1584_v54 }
 0x36b   :  { %v1554_v32 = vadd.f32 %v9054_v12, %v1522_v34  ;;  %v1555_v7 = vadd.f32 %v9054_v12, %v1523_v52  ;;  %v1566_v12 = vmax.f32 %v1550_v6, 0.0 }
 0x36d   :  { %v1571_v39 = vmax.f32 %v1555_v7, 0.0  ;;  %v1757_v7 = vpop.permute.xlu0 %1756 }
 0x36f   :  { %v1791_v53 = vpop.permute.xlu1 %1790 }
 0x370   :  { %v1404_v56 = vpop.f32.mrf.mxu0  ;;  %v1433_v49 = vpop.f32.mrf.mxu1 }
 0x371   :  { %v1526_v37 = vmul.f32 %v1512_v11, %v1404_v56  ;;  %v1527_v44 = vmul.f32 %v1512_v11, %v1433_v49  ;;  %v1570_v11 = vmax.f32 %v1554_v32, 0.0  ;;  %v1795_v49 = vpop.permute.xlu2 %1794 }
 0x372   :  { %6431 = vmatmul.msk.f32.gmra.mxu2 %vm1588_vm5, %v1585_v30  ;;  %6437 = vmatmul.msk.f32.gmra.mxu3 %vm1588_vm5, %v1585_v30 }
 0x373   :  { %v1558_v29 = vadd.f32 %v9060_v3, %v1526_v37  ;;  %v1559_v17 = vadd.f32 %v9060_v3, %v1527_v44  ;;  %v1586_v3 = vld [vmem:[%s13330_s7 + $0x18] sm:$0xff] }
 0x375   :  { %v1574_v23 = vmax.f32 %v1558_v29, 0.0  ;;  %v1575_v60 = vmax.f32 %v1559_v17, 0.0 }
 0x377   :  { %6416 = vmatpush.msk.msrb.mxu0 %vm273_vm8, %v1574_v23  ;;  %6422 = vmatpush.msk.msrb.mxu1 %vm273_vm8, %v1575_v60 }
 0x379   :  { %1629 = vmatpush.msrb.mxu0 %v1570_v11  ;;  %1661 = vmatpush.msrb.mxu1 %v1571_v39 }
 0x37a   :  { %6432 = vmatmul.msk.f32.gmra.mxu2 %vm1588_vm5, %v1586_v3  ;;  %6438 = vmatmul.msk.f32.gmra.mxu3 %vm1588_vm5, %v1586_v3 }
 0x37b   :  { %1630 = vmatpush.msrb.mxu0 %v1566_v12  ;;  %1662 = vmatpush.msrb.mxu1 %v1567_v22 }
 0x37d   :  { %1631 = vmatpush.msrb.mxu0 %v1562_v59  ;;  %1663 = vmatpush.msrb.mxu1 %v1563_v42 }
 0x37e   :  { %6417 = vmatmul.msk.f32.vlgmr.msrb.gmra.mxu0 %vm1588_vm5, %v1583_v18  ;;  %6423 = vmatmul.msk.f32.vlgmr.msrb.gmra.mxu1 %vm1588_vm5, %v1583_v18 }
 0x382   :  { %6433 = vmatmul.msk.f32.gmra.mxu2 %vm1588_vm5, %v1587_v47  ;;  %6439 = vmatmul.msk.f32.gmra.mxu3 %vm1588_vm5, %v1587_v47 }
 0x386   :  { %6418 = vmatmul.msk.f32.gmra.mxu0 %vm1588_vm5, %v1584_v54  ;;  %6424 = vmatmul.msk.f32.gmra.mxu1 %vm1588_vm5, %v1584_v54 }
 0x38e   :  { %6419 = vmatmul.msk.f32.gmra.mxu0 %vm1588_vm5, %v1585_v30  ;;  %6425 = vmatmul.msk.f32.gmra.mxu1 %vm1588_vm5, %v1585_v30 }
 0x396   :  { %6420 = vmatmul.msk.f32.gmra.mxu0 %vm1588_vm5, %v1586_v3  ;;  %6426 = vmatmul.msk.f32.gmra.mxu1 %vm1588_vm5, %v1586_v3 }
 0x39e   :  { %6421 = vmatmul.msk.f32.gmra.mxu0 %vm1588_vm5, %v1587_v47  ;;  %6427 = vmatmul.msk.f32.gmra.mxu1 %vm1588_vm5, %v1587_v47  ;;  %vm1933_vm5 = vcmask 15360  }
 0x3e5   :  { %v1697_v37 = vpop.f32.mrf.mxu2  ;;  %v1729_v44 = vpop.f32.mrf.mxu3 }
 0x3e6   :  { %v1771_v25 = vmul.f32 %v1747_v9, %v1697_v37  ;;  %v1772_v45 = vmul.f32 %v1747_v9, %v1729_v44 }
 0x3e8   :  { %v1811_v23 = vadd.f32 %v1791_v53, %v1771_v25  ;;  %v1812_v60 = vadd.f32 %v1791_v53, %v1772_v45 }
 0x3ea   :  { %v2143_v3 = vmax.f32 %v1811_v23, %v1812_v60  ;;  %v14163_v23 = vld [vmem:[#allocation14_spill] sm:$0xff] }
 0x3ed   :  { %v1700_v44 = vpop.f32.mrf.mxu2  ;;  %v1732_v25 = vpop.f32.mrf.mxu3 }
 0x3fb   :  { %v1633_v18 = vpop.f32.mrf.mxu0  ;;  %v1665_v58 = vpop.f32.mrf.mxu1 }
 0x3fc   :  { %v1769_v57 = vmul.f32 %v1747_v9, %v1633_v18  ;;  %v1770_v54 = vmul.f32 %v1747_v9, %v1665_v58  ;;  %v2117_v9 = vmul.f32 0.0, %v9025_v35  ;;  %v2118_v18 = vmul.f32 0.0, %v9027_v31  ;;  %v1803_v58 = vpop.permute.xlu1 %1802 }
 0x3fe   :  { %v1809_v10 = vadd.f32 %v1791_v53, %v1769_v57  ;;  %v1810_v34 = vadd.f32 %v1791_v53, %v1770_v54  ;;  %v2105_v53 = vmax.f32 %v8876_v1, %v8878_v4 }
 0x400   :  { %v1904_v52 = vmax.f32 %v1809_v10, %v1810_v34  ;;  %v2126_v34 = vadd.f32 %v2118_v18, %v2117_v9 }
 0x402   :  { %1905 = vmax.xlane.f32.xlu1 %v1904_v52  ;;  %v2127_v52 = vadd.f32 %v2126_v34, %v8817_v33 }
 0x403   :  { %v1636_v30 = vpop.f32.mrf.mxu0  ;;  %v1668_v56 = vpop.f32.mrf.mxu1 }
 0x404   :  { %v1773_v0 = vmul.f32 %v1752_v5, %v1636_v30  ;;  %v1774_v48 = vmul.f32 %v1752_v5, %v1668_v56  ;;  %v2113_v30 = vmul.f32 0.0, %v9010_v16  ;;  %v2114_v56 = vmul.f32 0.0, %v9012_v50 }
 0x406   :  { %v1813_v29 = vadd.f32 %v1795_v49, %v1773_v0  ;;  %v1814_v17 = vadd.f32 %v1795_v49, %v1774_v48  ;;  %v2110_v0 = vmax.f32 %v8817_v33, %v8819_v41  ;;  %v2128_v48 = vadd.f32 %v2127_v52, %v8819_v41 }
 0x407   :  { %v2121_v37 = vadd.f32 %v2114_v56, %v2113_v30 }
 0x408   :  { %v1909_v32 = vmax.f32 %v1813_v29, %v1814_v17  ;;  %v1775_v29 = vmul.f32 %v1752_v5, %v1700_v44  ;;  %v1776_v17 = vmul.f32 %v1752_v5, %v1732_v25 }
 0x409   :  { %v2122_v45 = vadd.f32 %v2121_v37, %v8876_v1 }
 0x40a   :  { %1910 = vmax.xlane.f32.xlu2 %v1909_v32  ;;  %v1815_v60 = vadd.f32 %v1795_v49, %v1775_v29 }
 0x40b   :  { %v1639_v6 = vpop.f32.mrf.mxu0  ;;  %v1671_v63 = vpop.f32.mrf.mxu1  ;;  %v2123_v32 = vadd.f32 %v2122_v45, %v8878_v4  ;;  %v14180_v4 = vld [vmem:[#allocation79_spill] sm:$0xff] }
 0x40c   :  { %v1777_v11 = vmul.f32 %v1757_v7, %v1639_v6  ;;  %v1778_v39 = vmul.f32 %v1757_v7, %v1671_v63  ;;  %v1816_v6 = vadd.f32 %v1795_v49, %v1776_v17  ;;  %v1703_v63 = vpop.f32.mrf.mxu2  ;;  %v1829_v17 = vld [vmem:[%s13332_s9] sm:$0x3]  ;;  %s6795_s9 = smov 48  }
 0x40e   :  { %v1817_v43 = vadd.f32 %v9058_v2, %v1777_v11  ;;  %v1818_v51 = vadd.f32 %v9058_v2, %v1778_v39  ;;  %v1735_v11 = vpop.f32.mrf.mxu3  ;;  %v1779_v39 = vmul.f32 %v1757_v7, %v1703_v63 }
 0x410   :  { %v1922_v12 = vmax.f32 %v1817_v43, %v1818_v51  ;;  %v1780_v43 = vmul.f32 %v1757_v7, %v1735_v11  ;;  %v2148_v51 = vmax.f32 %v1815_v60, %v1816_v6  ;;  %v9145_v7 = vld [vmem:[%s13331_s12 + $0x8] sm:$0xff] }
 0x412   :  { %1923 = vmax.xlane.f32.xlu0 %v1922_v12  ;;  %2144 = vmax.xlane.f32.xlu2 %v2143_v3  ;;  %v1819_v3 = vadd.f32 %v9058_v2, %v1779_v39  ;;  %v1820_v12 = vadd.f32 %v9058_v2, %v1780_v43  ;;  %v14164_v2 = vmov 1  }
 0x413   :  { %v1642_v22 = vpop.f32.mrf.mxu0  ;;  %v1674_v59 = vpop.f32.mrf.mxu1 }
 0x414   :  { %v1781_v42 = vmul.f32 %v9119_v46, %v1642_v22  ;;  %v1782_v47 = vmul.f32 %v9119_v46, %v1674_v59  ;;  %v1706_v22 = vpop.f32.mrf.mxu2 }
 0x415   :  { %v1783_v5 = vmul.f32 %v9119_v46, %v1706_v22 }
 0x416   :  { %v1821_v57 = vadd.f32 %v1803_v58, %v1781_v42  ;;  %v1822_v54 = vadd.f32 %v1803_v58, %v1782_v47  ;;  %v1738_v59 = vpop.f32.mrf.mxu3  ;;  %v2161_v47 = vmax.f32 %v1819_v3, %v1820_v12 }
 0x417   :  { %v1784_v42 = vmul.f32 %v9119_v46, %v1738_v59  ;;  %v1823_v9 = vadd.f32 %v1803_v58, %v1783_v5  ;;  %v1868_v46 = vpop.xlane.xlu1 %1867 }
 0x418   :  { %v1927_v10 = vmax.f32 %v1821_v57, %v1822_v54  ;;  %v9149_v57 = vpop.permute.xlu2 %1806 }
 0x419   :  { %v1824_v49 = vadd.f32 %v1803_v58, %v1784_v42 }
 0x41a   :  { %2106 = vmax.xlane.f32.xlu0 %v2105_v53  ;;  %1928 = vmax.xlane.f32.xlu1 %v1927_v10  ;;  %v1886_v53 = vpop.xlane.xlu0 %1885 }
 0x41b   :  { %v2166_v18 = vmax.f32 %v1823_v9, %v1824_v49  ;;  %v1892_v30 = vmul.f32 0.00390625, %v1886_v53  ;;  %v9168_v9 = vpop.f32.mrf.mxu0  ;;  %v1831_v53 = vld [vmem:[%s13333_s10 + $0x8] sm:$0xff] }
 0x41d   :  { %v1931_v25 = vsel %vm1930_vm10, %v1868_v46, %v1892_v30  ;;  %v2544_v46 = vld [vmem:[%s13331_s12 + $0x10] sm:$0xff] }
 0x420   :  { %v1873_v54 = vpop.xlane.xlu2 %1872 }
 0x422   :  { %2111 = vmax.xlane.f32.xlu0 %v2110_v0  ;;  %2129 = vadd.xlane.f32.xlu1 %v2128_v48 }
 0x428   :  { %v1891_v10 = vpop.xlane.xlu2 %1890 }
 0x429   :  { %v1893_v58 = vmul.f32 0.00390625, %v1891_v10  ;;  %v2542_v10 = vld [vmem:[%s13331_s12] sm:$0xff] }
 0x42a   :  { %2124 = vadd.xlane.f32.xlu0 %v2123_v32  ;;  %1766 = vperm.xlu2 %6685, %v14163_v23  }
 0x42b   :  { %v1932_v0 = vsel %vm1930_vm10, %v1873_v54, %v1893_v58  ;;  %v1830_v54 = vld [vmem:[%s13333_s10] sm:$0xff]  ;;  %v9190_v58 = vpop.f32.mrf.mxu2 }
 0x432   :  { %2149 = vmax.xlane.f32.xlu0 %v2148_v51  ;;  %2703 = vperm.xlu2 %6685, %v2544_v46  }
 0x43a   :  { %2162 = vmax.xlane.f32.xlu0 %v2161_v47  ;;  %6687 = vset.pattern.permute.xlu2 %v14164_v2 }
 0x43b   :  { %2693 = vperm.xlu1 %6686, %v2542_v10   ;;  %2728 = vperm.xlu2 %6687, %v2542_v10  }
 0x442   :  { %2167 = vmax.xlane.f32.xlu0 %v2166_v18 }
 0x456   :  { %2698 = vperm.xlu0 %6684, %v9145_v7  }
 0x45e   :  { %6689 = vset.pattern.permute.xlu0 %v14164_v2 }
 0x45f   :  { %2736 = vperm.xlu0 %6689, %v2544_v46  }
 0x475   :  { %v1906_v52 = vpop.xlane.xlu1 %1905 }
 0x476   :  { %v1934_v29 = vsel %vm1933_vm5, %v1931_v25, %v1906_v52  ;;  %v14165_v52 = vmov 3   ;;  %v9201_v25 = vpop.f32.mrf.mxu3 }
 0x477   :  { %6693 = vset.pattern.permute.xlu0 %v14165_v52 }
 0x47d   :  { %v1911_v56 = vpop.xlane.xlu2 %1910 }
 0x47e   :  { %v1935_v37 = vsel %vm1933_vm5, %v1932_v0, %v1911_v56  ;;  %v9199_v0 = vpop.f32.mrf.mxu1 }
 0x485   :  { %v1924_v34 = vpop.xlane.xlu0 %1923  ;;  %v2145_v59 = vpop.xlane.xlu2 %2144 }
 0x486   :  { %v1937_v32 = vsel %vm1936_vm4, %v1934_v29, %v1924_v34  ;;  %v2545_v34 = vld [vmem:[%s13331_s12 + $0x18] sm:$0xff] }
 0x487   :  { %2708 = vperm.xlu1 %6686, %v2545_v34   ;;  %2740 = vperm.xlu2 %6687, %v2545_v34  }
 0x48d   :  { %v2107_v48 = vpop.xlane.xlu0 %2106  ;;  %v1929_v44 = vpop.xlane.xlu1 %1928 }
 0x48e   :  { %v1938_v45 = vsel %vm1936_vm4, %v1935_v37, %v1929_v44 }
 0x48f   :  { %1956 = vmatpush.msra.mxu0 %v1938_v45  ;;  %6688 = vset.pattern.permute.xlu1 %v14164_v2 }
 0x490   :  { %2732 = vperm.xlu1 %6688, %v9145_v7   ;;  %6692 = vset.pattern.permute.xlu2 %v14165_v52 }
 0x491   :  { %1957 = vmatpush.msra.mxu0 %v1937_v32 }
 0x492   :  { %6440 = vmatmul.msk.f32.vlgmr.msra.gmra.mxu0 %vm1365_vm13, %v1829_v17 }
 0x495   :  { %v2112_v23 = vpop.xlane.xlu0 %2111  ;;  %v2130_v63 = vpop.xlane.xlu1 %2129 }
 0x496   :  { %v2132_v39 = vmul.f32 0.00390625, %v2130_v63 }
 0x498   :  { %v2170_v51 = vsel %vm1930_vm10, %v2112_v23, %v2132_v39  ;;  %6690 = vset.pattern.permute.xlu1 %v14049_v62  ;;  %v9203_v23 = vpop.permute.xlu2 %1766 }
 0x49d   :  { %v2125_v60 = vpop.xlane.xlu0 %2124 }
 0x49e   :  { %v2131_v43 = vmul.f32 0.00390625, %v2125_v60 }
 0x4a0   :  { %v2169_v3 = vsel %vm1930_vm10, %v2107_v48, %v2131_v43  ;;  %v9205_v60 = vpop.permute.xlu2 %2703 }
 0x4a1   :  { %v2171_v42 = vsel %vm1933_vm5, %v2169_v3, %v2145_v59 }
 0x4a5   :  { %v2150_v6 = vpop.xlane.xlu0 %2149 }
 0x4a6   :  { %v2172_v12 = vsel %vm1933_vm5, %v2170_v51, %v2150_v6 }
 0x4a8   :  { %v9207_v6 = vpop.permute.xlu2 %2728 }
 0x4a9   :  { %14166 = vst [vmem:[#allocation23_spill] sm:$0xff] %v9207_v6 }
 0x4ad   :  { %v2163_v11 = vpop.xlane.xlu0 %2162 }
 0x4ae   :  { %v2173_v47 = vsel %vm1936_vm4, %v2171_v42, %v2163_v11 }
 0x4b5   :  { %v2168_v22 = vpop.xlane.xlu0 %2167 }
 0x4b6   :  { %v2174_v5 = vsel %vm1936_vm4, %v2172_v12, %v2168_v22  ;;  %vm1995_vm4 = vcmask 31744  }
 0x4b7   :  { %2189 = vmatpush.msra.mxu2 %v2174_v5  ;;  %v2776_v5 = vld [vmem:[%s13334_s14] sm:$0x3]  ;;  %s6791_s14 = smov 2  }
 0x4b8   :  { %2779 = vperm.xlu1 %6690, %v2776_v5  }
 0x4b9   :  { %2190 = vmatpush.msra.mxu2 %v2173_v47 }
 0x4ba   :  { %6446 = vmatmul.msk.f32.vlgmr.msra.gmra.mxu2 %vm1365_vm13, %v1829_v17 }
 0x4c0   :  { %6691 = vset.pattern.permute.xlu1 %v14165_v52 }
 0x4c8   :  { %v9209_v63 = vpop.permute.xlu0 %2698 }
 0x4d1   :  { %v9213_v39 = vpop.permute.xlu0 %2736 }
 0x4d2   :  { %14168 = vst [vmem:[#allocation50_spill] sm:$0xff] %v9213_v39  ;;  %v14195_v39 = vld [vmem:[#allocation87_spill] sm:$0xff] }
 0x4e1   :  { %v9211_v11 = vpop.permute.xlu2 %2740 }
 0x4e2   :  { %14167 = vst [vmem:[#allocation74_spill] sm:$0xff] %v9211_v11 }
 0x50f   :  { %v1959_v49 = vpop.f32.mrf.mxu0 }
 0x510   :  { %v1962_v18 = vmax.f32 %v1959_v49, 0.0 }
 0x512   :  { %6441 = vmatpush.msk.msra.mxu1 %vm263_vm6, %v1962_v18 }
 0x513   :  { %6442 = vmatmul.msk.f32.vlgmr.msra.gmra.mxu1 %vm1933_vm5, %v1830_v54 }
 0x51b   :  { %6443 = vmatmul.msk.f32.gmra.mxu1 %vm1933_vm5, %v1831_v53 }
 0x53d   :  { %v2192_v30 = vpop.f32.mrf.mxu2 }
 0x53e   :  { %v2195_v56 = vmax.f32 %v2192_v30, 0.0 }
 0x540   :  { %6447 = vmatpush.msk.msra.mxu3 %vm263_vm6, %v2195_v56  ;;  %v9222_v56 = vld [vmem:[%s13335_s16] ss:$0 sm:$0xff] }
 0x541   :  { %6448 = vmatmul.msk.f32.vlgmr.msra.gmra.mxu3 %vm1933_vm5, %v1830_v54 }
 0x549   :  { %6449 = vmatmul.msk.f32.gmra.mxu3 %vm1933_vm5, %v1831_v53 }
 0x590   :  { %v1989_v48 = vpop.f32.mrf.mxu1 }
 0x591   :  { %v1996_v37 = vsel %vm1995_vm4, %v1989_v48, 0.0 }
 0x592   :  { %1997 = vadd.xlane.f32.xlu2 %v1996_v37 }
 0x598   :  { %v1992_v44 = vpop.f32.mrf.mxu1 }
 0x599   :  { %v1999_v7 = vsel %vm1995_vm4, %v1992_v44, 0.0 }
 0x59a   :  { %2000 = vadd.xlane.f32.xlu0 %v1999_v7 }
 0x5c4   :  { %v2216_v45 = vpop.f32.mrf.mxu3 }
 0x5c5   :  { %v2222_v29 = vsel %vm1995_vm4, %v2216_v45, 0.0 }
 0x5c6   :  { %2223 = vadd.xlane.f32.xlu0 %v2222_v29 }
 0x5cc   :  { %v2219_v17 = vpop.f32.mrf.mxu3 }
 0x5cd   :  { %v2225_v32 = vsel %vm1995_vm4, %v2219_v17, 0.0 }
 0x5ce   :  { %2226 = vadd.xlane.f32.xlu0 %v2225_v32 }
 0x605   :  { %v1998_v43 = vpop.xlane.xlu2 %1997 }
 0x606   :  { %v6444_v51 = vmul.f32 -1.442695, %v1998_v43 }
 0x608   :  { %6700 = vpow2.f32 %v6444_v51 }
 0x60d   :  { %v2001_v3 = vpop.xlane.xlu0 %2000 }
 0x60e   :  { %v6701_v12 = vpop.eup %6700  ;;  %v6445_v22 = vmul.f32 -1.442695, %v2001_v3 }
 0x60f   :  { %v2008_v59 = vadd.f32 1.0, %v6701_v12 }
 0x610   :  { %6702 = vpow2.f32 %v6445_v22 }
 0x611   :  { %6704 = vrcp.f32 %v2008_v59  ;;  %v2021_v54 = vand.u32 2147483648, %v2008_v59  ;;  %vm2015_vm13 = vweird.f32 %v2008_v59  ;;  %v2019_v46 = vand.u32 2147483647, %v2008_v59 }
 0x613   :  { %v2022_v34 = vor.u32 1.1754944e-38, %v2021_v54  ;;  %vm2020_vm4 = vcmp.eq.f32.partialorder %v2019_v46, 8.507059e+37 }
 0x616   :  { %v6703_v42 = vpop.eup %6702 }
 0x617   :  { %v6705_v47 = vpop.eup %6704  ;;  %v2009_v49 = vadd.f32 1.0, %v6703_v42 }
 0x618   :  { %v2011_v18 = vmul.f32 %v6705_v47, %v2008_v59  ;;  %vm2016_vm10 = vweird.f32 %v6705_v47 }
 0x619   :  { %6706 = vrcp.f32 %v2009_v49  ;;  %vm2017_vm5 = vmor %vm2015_vm13, %vm2016_vm10  ;;  %vm2030_vm11 = vweird.f32 %v2009_v49  ;;  %v2036_v45 = vand.u32 2147483648, %v2009_v49  ;;  %v2034_v52 = vand.u32 2147483647, %v2009_v49 }
 0x61a   :  { %v2012_v53 = vsub.f32 1.0, %v2011_v18 }
 0x61b   :  { %v2037_v43 = vor.u32 1.1754944e-38, %v2036_v45  ;;  %vm2035_vm10 = vcmp.eq.f32.partialorder %v2034_v52, 8.507059e+37 }
 0x61c   :  { %v2013_v10 = vmul.f32 %v6705_v47, %v2012_v53 }
 0x61e   :  { %v2014_v30 = vadd.f32 %v6705_v47, %v2013_v10 }
 0x61f   :  { %v6707_v48 = vpop.eup %6706 }
 0x620   :  { %v2026_v37 = vmul.f32 %v6707_v48, %v2009_v49  ;;  %v2018_v44 = vsel %vm2017_vm5, %v6705_v47, %v2014_v30  ;;  %vm2031_vm12 = vweird.f32 %v6707_v48 }
 0x621   :  { %v2023_v7 = vsel %vm2020_vm4, %v2022_v34, %v2018_v44  ;;  %vm2032_vm13 = vmor %vm2030_vm11, %vm2031_vm12 }
 0x622   :  { %v2027_v29 = vsub.f32 1.0, %v2026_v37  ;;  %v2043_v17 = vmul.f32 %v9222_v56, %v2023_v7 }
 0x624   :  { %2047 = vperm.xlu1 %6691, %v2043_v17   ;;  %v2028_v32 = vmul.f32 %v6707_v48, %v2027_v29 }
 0x626   :  { %v2029_v51 = vadd.f32 %v6707_v48, %v2028_v32 }
 0x628   :  { %v2033_v3 = vsel %vm2032_vm13, %v6707_v48, %v2029_v51 }
 0x629   :  { %v2038_v12 = vsel %vm2035_vm10, %v2037_v43, %v2033_v3 }
 0x62a   :  { %v2044_v22 = vmul.f32 %v9222_v56, %v2038_v12 }
 0x62c   :  { %2052 = vperm.xlu2 %6692, %v2044_v22  }
 0x634   :  { %6695 = vset.pattern.permute.xlu2 %v14049_v62 }
 0x639   :  { %v2224_v59 = vpop.xlane.xlu0 %2223 }
 0x63a   :  { %v6450_v5 = vmul.f32 -1.442695, %v2224_v59 }
 0x63c   :  { %6708 = vpow2.f32 %v6450_v5 }
 0x641   :  { %v2227_v42 = vpop.xlane.xlu0 %2226 }
 0x642   :  { %v6709_v47 = vpop.eup %6708  ;;  %v6451_v18 = vmul.f32 -1.442695, %v2227_v42 }
 0x643   :  { %v2234_v49 = vadd.f32 1.0, %v6709_v47  ;;  %v14169_v47 = vmov 4  }
 0x644   :  { %6710 = vpow2.f32 %v6451_v18  ;;  %v9230_v18 = vpop.permute.xlu1 %2693 }
 0x645   :  { %6712 = vrcp.f32 %v2234_v49  ;;  %v2247_v30 = vand.u32 2147483648, %v2234_v49  ;;  %v2245_v37 = vand.u32 2147483647, %v2234_v49  ;;  %vm2241_vm12 = vweird.f32 %v2234_v49  ;;  %14170 = vst [vmem:[#allocation90_spill] sm:$0xff] %v9230_v18 }
 0x647   :  { %v2248_v7 = vor.u32 1.1754944e-38, %v2247_v30  ;;  %vm2246_vm4 = vcmp.eq.f32.partialorder %v2245_v37, 8.507059e+37 }
 0x64a   :  { %v6711_v54 = vpop.eup %6710 }
 0x64b   :  { %v6713_v53 = vpop.eup %6712  ;;  %v2235_v46 = vadd.f32 1.0, %v6711_v54 }
 0x64c   :  { %v2237_v10 = vmul.f32 %v6713_v53, %v2234_v49  ;;  %vm2242_vm11 = vweird.f32 %v6713_v53  ;;  %v9232_v49 = vpop.permute.xlu1 %2708 }
 0x64d   :  { %6714 = vrcp.f32 %v2235_v46  ;;  %vm2243_vm5 = vmor %vm2241_vm12, %vm2242_vm11  ;;  %vm2256_vm13 = vweird.f32 %v2235_v46  ;;  %v2262_v52 = vand.u32 2147483648, %v2235_v46  ;;  %v2260_v51 = vand.u32 2147483647, %v2235_v46 }
 0x64e   :  { %v2238_v34 = vsub.f32 1.0, %v2237_v10  ;;  %v1787_v10 = vmul.f32 %v9203_v23, %v9190_v58  ;;  %v6755_v58 = vld [vmem:[%s13836_s26 + $0x18] sm:$0xff]  ;;  %vm14185_vm11 = vcmp.lt.s32.totalorder %v7004_v15, 16  ;;  %vm14187_vm12 = vcmp.lt.s32.totalorder %v7004_v15, 17 }
 0x64f   :  { %v2263_v12 = vor.u32 1.1754944e-38, %v2262_v52  ;;  %vm2261_vm15 = vcmp.eq.f32.partialorder %v2260_v51, 8.507059e+37 }
 0x650   :  { %v2239_v48 = vmul.f32 %v6713_v53, %v2238_v34  ;;  %v1788_v34 = vmul.f32 %v9203_v23, %v9201_v25 }
 0x652   :  { %v2240_v62 = vadd.f32 %v6713_v53, %v2239_v48  ;;  %v1828_v30 = vadd.f32 %v9149_v57, %v1788_v34 }
 0x653   :  { %v6715_v44 = vpop.eup %6714 }
 0x654   :  { %v2252_v45 = vmul.f32 %v6715_v44, %v2235_v46  ;;  %v2244_v29 = vsel %vm2243_vm5, %v6713_v53, %v2240_v62  ;;  %vm2257_vm10 = vweird.f32 %v6715_v44  ;;  %v9234_v54 = vpop.permute.xlu1 %2732  ;;  %vm2550_vm5 = vcmask 441344  }
 0x655   :  { %v2249_v17 = vsel %vm2246_vm4, %v2248_v7, %v2244_v29  ;;  %vm2258_vm0 = vmor %vm2256_vm13, %vm2257_vm10  ;;  %14171 = vst [vmem:[#allocation39_spill] sm:$0xff] %v9234_v54  ;;  %v2309_v7 = vrot.slane %v1828_v30, 5  ;;  %v14194_v54 = vld [vmem:[#allocation80_spill] sm:$0xff] }
 0x656   :  { %v2253_v32 = vsub.f32 1.0, %v2252_v45  ;;  %v2266_v43 = vmul.f32 %v9222_v56, %v2249_v17  ;;  %v6754_v45 = vld [vmem:[%s13836_s26 + $0x10] sm:$0xff]  ;;  %vm14191_vm10 = vmmov %vm14185_vm11 }
 0x658   :  { %2270 = vperm.xlu1 %6691, %v2266_v43   ;;  %v2254_v3 = vmul.f32 %v6715_v44, %v2253_v32  ;;  %v1786_v43 = vmul.f32 %v9203_v23, %v9199_v0  ;;  %v1785_v0 = vmul.f32 %v9203_v23, %v9168_v9  ;;  %v6757_v9 = vld [vmem:[%s13836_s26] sm:$0xff] }
 0x65a   :  { %v2255_v22 = vadd.f32 %v6715_v44, %v2254_v3  ;;  %v1826_v3 = vadd.f32 %v9149_v57, %v1786_v43 }
 0x65c   :  { %v2259_v59 = vsel %vm2258_vm0, %v6715_v44, %v2255_v22  ;;  %v9236_v53 = vpop.permute.xlu1 %2779  ;;  %vm14183_vm0 = vcmp.lt.s32.totalorder %v7004_v15, 1 }
 0x65d   :  { %v2264_v5 = vsel %vm2261_vm15, %v2263_v12, %v2259_v59  ;;  %14172 = vst [vmem:[#allocation81_spill] sm:$0xff] %v9236_v53  ;;  %v6756_v12 = vld [vmem:[%s13836_s26 + $0x8] sm:$0xff]  ;;  %v2307_v59 = vrot.slane %v1826_v3, 5  ;;  %vm14181_vm15 = vcmp.lt.s32.totalorder %v7004_v15, 15  ;;  %vm14190_vm13 = vmmov %vm14183_vm0 }
 0x65e   :  { %v2267_v42 = vmul.f32 %v9222_v56, %v2264_v5  ;;  %v1827_v56 = vadd.f32 %v9149_v57, %v1787_v10  ;;  %vm14189_vm4 = vmmov %vm14181_vm15 }
 0x660   :  { %2275 = vperm.xlu0 %6693, %v2267_v42   ;;  %6694 = vset.pattern.permute.xlu1 %v14169_v47  ;;  %v2308_v44 = vrot.slane %v1827_v56, 5  ;;  %v1825_v42 = vadd.f32 %v9149_v57, %v1785_v0 }
 0x662   :  { %v2306_v47 = vrot.slane %v1825_v42, 5  ;;  %v14179_v42 = vld [vmem:[#allocation29_spill] sm:$0xff] }
 0x686   :  { %v9348_v57 = vpop.permute.xlu2 %2052 }
 0x687   :  { %14177 = vst [vmem:[#allocation6_spill] sm:$0xff] %v9348_v57  ;;  %v14193_v57 = vld [vmem:[#allocation77_spill] sm:$0xff] }
 0x696   :  { %v2048_v46 = vpop.permute.xlu1 %2047 }
 0x697   :  { %v2057_v48 = vmul.f32 0.0, %v2048_v46 }
 0x6ca   :  { %v2271_v37 = vpop.permute.xlu1 %2270 }
 0x6cb   :  { %v2288_v62 = vadd.f32 %v2271_v37, %v2057_v48  ;;  %v2278_v32 = vmul.f32 0.0, %v2271_v37 }
 0x6cd   :  { %v9247_v29 = vmul.f32 %v6754_v45, %v2288_v62  ;;  %v9252_v25 = vmul.f32 %v6755_v58, %v2288_v62  ;;  %v2286_v51 = vadd.f32 %v2278_v32, %v2048_v46 }
 0x6cf   :  { %14173 = vst [vmem:[#allocation27_spill] sm:$0xff] %v9247_v29  ;;  %v9256_v17 = vsel %vm268_vm7, %v9247_v29, %v2308_v44  ;;  %v9260_v52 = vsel %vm268_vm7, %v9252_v25, %v2309_v7  ;;  %v9298_v22 = vmul.f32 %v6756_v12, %v2286_v51  ;;  %v9316_v23 = vmul.f32 %v6757_v9, %v2286_v51 }
 0x6d0   :  { %14174 = vst [vmem:[#allocation24_spill] sm:$0xff] %v9252_v25  ;;  %2324 = vrot.lane.b32.xlu1 %v9260_v52, %s6773_s30  ;;  %2338 = vrot.lane.b32.xlu0 %v9256_v17, %s6775_s28 }
 0x6d1   :  { %2322 = vrot.lane.b32.xlu2 %v9256_v17, %s6773_s30  ;;  %14175 = vst [vmem:[#allocation78_spill] sm:$0xff] %v9298_v22  ;;  %v9304_v5 = vsel %vm268_vm7, %v9298_v22, %v2307_v59  ;;  %v9320_v46 = vsel %vm268_vm7, %v9316_v23, %v2306_v47 }
 0x6d2   :  { %14176 = vst [vmem:[#allocation2_spill] sm:$0xff] %v9316_v23  ;;  %v9356_v56 = vpop.permute.xlu0 %2275 }
 0x6d3   :  { %14178 = vst [vmem:[#allocation83_spill] sm:$0xff] %v9356_v56 }
 0x6d8   :  { %2356 = vrot.lane.b32.xlu1 %v9260_v52, %s6777_s20  ;;  %2372 = vrot.lane.b32.xlu0 %v9260_v52, %s6779_s21 }
 0x6d9   :  { %2340 = vrot.lane.b32.xlu2 %v9260_v52, %s6775_s28 }
 0x6e0   :  { %2370 = vrot.lane.b32.xlu1 %v9256_v17, %s6779_s21  ;;  %2386 = vrot.lane.b32.xlu0 %v9256_v17, %s6781_s22 }
 0x6e1   :  { %2354 = vrot.lane.b32.xlu2 %v9256_v17, %s6777_s20 }
 0x6e8   :  { %2404 = vrot.lane.b32.xlu1 %v9260_v52, %s6784_s23  ;;  %2420 = vrot.lane.b32.xlu0 %v9260_v52, %s6785_s24 }
 0x6e9   :  { %2388 = vrot.lane.b32.xlu2 %v9260_v52, %s6781_s22 }
 0x6f0   :  { %2418 = vrot.lane.b32.xlu1 %v9256_v17, %s6785_s24  ;;  %2434 = vrot.lane.b32.xlu0 %v9256_v17, %s6787_s25 }
 0x6f1   :  { %2402 = vrot.lane.b32.xlu2 %v9256_v17, %s6784_s23 }
 0x6f8   :  { %2352 = vrot.lane.b32.xlu0 %v9304_v5, %s6777_s20  ;;  %2320 = vrot.lane.b32.xlu1 %v9304_v5, %s6773_s30 }
 0x6f9   :  { %2436 = vrot.lane.b32.xlu2 %v9260_v52, %s6787_s25 }
 0x700   :  { %2336 = vrot.lane.b32.xlu1 %v9304_v5, %s6775_s28  ;;  %2366 = vrot.lane.b32.xlu0 %v9320_v46, %s6779_s21 }
 0x701   :  { %2318 = vrot.lane.b32.xlu2 %v9320_v46, %s6773_s30  ;;  %s6798_s30 = smov 96  }
 0x708   :  { %2400 = vrot.lane.b32.xlu0 %v9304_v5, %s6784_s23  ;;  %2350 = vrot.lane.b32.xlu1 %v9320_v46, %s6777_s20  ;;  %s6799_s20 = smov 80  }
 0x709   :  { %2334 = vrot.lane.b32.xlu2 %v9320_v46, %s6775_s28 }
 0x710   :  { %2414 = vrot.lane.b32.xlu0 %v9320_v46, %s6785_s24  ;;  %2384 = vrot.lane.b32.xlu1 %v9304_v5, %s6781_s22 }
 0x711   :  { %2368 = vrot.lane.b32.xlu2 %v9304_v5, %s6779_s21 }
 0x718   :  { %2398 = vrot.lane.b32.xlu1 %v9320_v46, %s6784_s23  ;;  %s6800_s23 = smov 4  }
 0x719   :  { %2382 = vrot.lane.b32.xlu2 %v9320_v46, %s6781_s22 }
 0x720   :  { %2432 = vrot.lane.b32.xlu1 %v9304_v5, %s6787_s25 }
 0x721   :  { %2416 = vrot.lane.b32.xlu2 %v9304_v5, %s6785_s24 }
 0x729   :  { %2430 = vrot.lane.b32.xlu2 %v9320_v46, %s6787_s25  ;;  %s6801_s25 = smov 125  }
 0x72b   :  { %v9352_v10 = vpop.permute.xlu2 %2322 }
 0x733   :  { %v9354_v34 = vpop.permute.xlu2 %2340 }
 0x73b   :  { %v9358_v30 = vpop.permute.xlu2 %2354 }
 0x742   :  { %v9360_v48 = vpop.permute.xlu1 %2324  ;;  %v9362_v37 = vpop.permute.xlu0 %2338 }
 0x743   :  { %v9364_v62 = vpop.permute.xlu2 %2388 }
 0x74a   :  { %v9366_v44 = vpop.permute.xlu1 %2356  ;;  %v9368_v7 = vpop.permute.xlu0 %2372 }
 0x74b   :  { %v9370_v45 = vpop.permute.xlu2 %2402 }
 0x752   :  { %v9372_v58 = vpop.permute.xlu1 %2370  ;;  %v9374_v32 = vpop.permute.xlu0 %2386 }
 0x753   :  { %v2437_v43 = vpop.permute.xlu2 %2436  ;;  %v2390_v59 = vsel %vm575_vm3, %v9374_v32, %v9364_v62 }
 0x754   :  { %v2396_v1 = vmul.f32 %v2390_v59, %v14180_v4 }
 0x756   :  { %v2488_v2 = vrot.slane %v2396_v1, 2 }
 0x75a   :  { %v9376_v51 = vpop.permute.xlu1 %2404  ;;  %v2421_v3 = vpop.permute.xlu0 %2420 }
 0x75b   :  { %v9378_v12 = vpop.permute.xlu2 %2318  ;;  %v2406_v0 = vsel %vm636_vm1, %v9370_v45, %v9376_v51 }
 0x75c   :  { %v2412_v9 = vmul.f32 %v2406_v0, %v14179_v42 }
 0x75e   :  { %v2500_v42 = vrot.slane %v2412_v9, 4 }
 0x760   :  { %v2536_v53 = vsel %vm273_vm8, %v2488_v2, %v2500_v42 }
 0x762   :  { %v9389_v47 = vpop.permute.xlu1 %2418  ;;  %v9391_v31 = vpop.permute.xlu0 %2434 }
 0x763   :  { %v2422_v50 = vsel %vm697_vm14, %v9389_v47, %v2421_v3  ;;  %v2438_v41 = vsel %vm758_vm9, %v9391_v31, %v2437_v43  ;;  %v9399_v33 = vpop.permute.xlu2 %2334 }
 0x764   :  { %v2428_v35 = vmul.f32 %v2422_v50, %v14101_v38  ;;  %v2444_v0 = vmul.f32 %v2438_v41, %v14108_v14  ;;  %v14182_v41 = vld [vmem:[#allocation70_spill] sm:$0xff]  ;;  %v14184_v50 = vld [vmem:[#allocation71_spill] sm:$0xff] }
 0x766   :  { %v2512_v16 = vrot.slane %v2428_v35, 6  ;;  %6462 = vmatpush.msk.msrb.mxu1 %vm283_vm2, %v2444_v0 }
 0x768   :  { %v2540_v25 = vsel %vm263_vm6, %v2500_v42, %v2512_v16  ;;  %v2532_v16 = vsel %vm283_vm2, %v9256_v17, %v2488_v2 }
 0x769   :  { %2643 = vmatpush.msrb.mxu1 %v2540_v25 }
 0x76a   :  { %v9406_v22 = vpop.permute.xlu0 %2352  ;;  %v9408_v23 = vpop.permute.xlu1 %2320 }
 0x76b   :  { %v2359_v38 = vsel %vm14181_vm15, %v9406_v22, %v9358_v30  ;;  %v9415_v14 = vpop.permute.xlu2 %2368  ;;  %2644 = vmatpush.msrb.mxu1 %v2536_v53  ;;  %v2327_v2 = vsel %vm14187_vm12, %v9408_v23, %v9352_v10  ;;  %vm14196_vm15 = vmmov %vm14187_vm12 }
 0x76c   :  { %v2364_v4 = vmul.f32 %v2359_v38, %v14182_v41  ;;  %v2375_v1 = vsel %vm14183_vm0, %v9415_v14, %v9372_v58  ;;  %v14186_v41 = vld [vmem:[#allocation59_spill] sm:$0xff]  ;;  %vm14201_vm12 = vmmov %vm14189_vm4 }
 0x76d   :  { %v2380_v35 = vmul.f32 %v2375_v1, %v14184_v50  ;;  %2645 = vmatpush.msrb.mxu1 %v2532_v16  ;;  %v9441_v50 = vld [vmem:[%s13336_s11] sm:$0xff] }
 0x76e   :  { %v2464_v25 = vrot.slane %v2364_v4, 4  ;;  %v14188_v4 = vld [vmem:[#allocation52_spill] sm:$0xff] }
 0x76f   :  { %v2476_v59 = vrot.slane %v2380_v35, 6  ;;  %v2332_v1 = vmul.f32 %v2327_v2, %v14188_v4 }
 0x771   :  { %v2528_v9 = vsel %vm263_vm6, %v2464_v25, %v2476_v59 }
 0x772   :  { %2646 = vmatpush.msrb.mxu1 %v2528_v9  ;;  %v2337_v0 = vpop.permute.xlu1 %2336  ;;  %v9426_v53 = vpop.permute.xlu0 %2366 }
 0x773   :  { %v2343_v42 = vsel %vm14185_vm11, %v2337_v0, %v9362_v37  ;;  %v2383_v38 = vpop.permute.xlu2 %2382  ;;  %vm14200_vm11 = vmmov %vm14190_vm13 }
 0x774   :  { %v2348_v29 = vmul.f32 %v2343_v42, %v14186_v41  ;;  %v2393_v56 = vsel %vm575_vm3, %v9364_v62, %v2383_v38 }
 0x775   :  { %v2397_v11 = vmul.f32 %v2393_v56, %v14194_v54 }
 0x776   :  { %v2452_v17 = vrot.slane %v2348_v29, 2  ;;  %v9449_v29 = vld [vmem:[%s13336_s11 + $0x8] sm:$0xff] }
 0x778   :  { %v2524_v16 = vsel %vm273_vm8, %v2452_v17, %v2464_v25  ;;  %v2520_v9 = vsel %vm283_vm2, %v2332_v1, %v2452_v17 }
 0x779   :  { %2647 = vmatpush.msrb.mxu1 %v2524_v16  ;;  %v2358_v16 = vsel %vm14189_vm4, %v9358_v30, %v9366_v44  ;;  %v2342_v30 = vsel %vm14191_vm10, %v9362_v37, %v9354_v34 }
 0x77a   :  { %v2401_v35 = vpop.permute.xlu0 %2400  ;;  %v2351_v59 = vpop.permute.xlu1 %2350 }
 0x77b   :  { %v2417_v42 = vpop.permute.xlu2 %2416  ;;  %2648 = vmatpush.msrb.mxu1 %v2520_v9  ;;  %v2374_v9 = vsel %vm14190_vm13, %v9372_v58, %v9368_v7  ;;  %v2407_v58 = vsel %vm636_vm1, %v2401_v35, %v9370_v45  ;;  %vm14202_vm13 = vmmov %vm14200_vm11 }
 0x77c   :  { %6463 = vmatmul.msk.f32.vlgmr.msrb.gmra.mxu1 %vm2550_vm5, %v9441_v50  ;;  %v2423_v62 = vsel %vm697_vm14, %v2417_v42, %v9389_v47  ;;  %v2381_v6 = vmul.f32 %v2374_v9, %v14193_v57  ;;  %v14197_v57 = vld [vmem:[#allocation62_spill] sm:$0xff] }
 0x77d   :  { %v9504_v47 = vmul.f32 %v2342_v30, %v14197_v57  ;;  %v2427_v54 = vmul.f32 %v2423_v62, %v14148_v28 }
 0x77e   :  { %v2477_v9 = vrot.slane %v2381_v6, 6  ;;  %v2377_v6 = vsel %vm14200_vm11, %v9368_v7, %v9426_v53 }
 0x77f   :  { %v2511_v7 = vrot.slane %v2427_v54, 6 }
 0x782   :  { %v2385_v25 = vpop.permute.xlu1 %2384  ;;  %v2415_v2 = vpop.permute.xlu0 %2414 }
 0x783   :  { %v2431_v41 = vpop.permute.xlu2 %2430  ;;  %v2425_v17 = vsel %vm697_vm14, %v2421_v3, %v2415_v2  ;;  %v2424_v56 = vsel %vm697_vm14, %v2415_v2, %v2417_v42  ;;  %v2489_v42 = vrot.slane %v2397_v11, 2  ;;  %v2392_v2 = vsel %vm575_vm3, %v2383_v38, %v2385_v25 }
 0x784   :  { %6464 = vmatmul.msk.f32.gmra.mxu1 %vm2550_vm5, %v9449_v29  ;;  %v2441_v4 = vsel %vm758_vm9, %v2437_v43, %v2431_v41  ;;  %v2429_v43 = vmul.f32 %v2425_v17, %v14102_v19  ;;  %v2326_v19 = vsel %vm14196_vm15, %v9352_v10, %v9360_v48 }
 0x785   :  { %v2445_v1 = vmul.f32 %v2441_v4, %v14109_v55  ;;  %v9473_v55 = vld [vmem:[%s13336_s11 + $0x10] sm:$0xff] }
 0x786   :  { %v14192_v4 = vld [vmem:[#allocation64_spill] sm:$0xff] }
 0x787   :  { %6467 = vmatpush.msk.msrb.mxu3 %vm283_vm2, %v2445_v1  ;;  %v9487_v1 = vmul.f32 %v2358_v16, %v14192_v4 }
 0x789   :  { %v2465_v16 = vrot.slane %v9487_v1, 4 }
 0x78a   :  { %v2399_v3 = vpop.permute.xlu1 %2398 }
 0x78b   :  { %v2409_v37 = vsel %vm636_vm1, %v9376_v51, %v2399_v3  ;;  %v2408_v45 = vsel %vm636_vm1, %v2399_v3, %v2401_v35  ;;  %v2411_v51 = vmul.f32 %v2407_v58, %v14150_v40  ;;  %v2513_v35 = vrot.slane %v2429_v43, 6  ;;  %vm14198_vm1 = vmmov %vm14191_vm10  ;;  %v14203_v3 = vld [vmem:[#allocation53_spill] sm:$0xff] }
 0x78c   :  { %v2413_v18 = vmul.f32 %v2409_v37, %v14195_v39  ;;  %6465 = vmatmul.msk.f32.gmra.mxu1 %vm2550_vm5, %v9473_v55  ;;  %v2391_v39 = vsel %vm575_vm3, %v2385_v25, %v9374_v32  ;;  %v2345_v10 = vsel %vm14198_vm1, %v9354_v34, %v9399_v33  ;;  %v2410_v40 = vmul.f32 %v2408_v45, %v14149_v36  ;;  %vm14199_vm0 = vmmov %vm14198_vm1  ;;  %v14205_v37 = vld [vmem:[#allocation60_spill] sm:$0xff] }
 0x78d   :  { %v2344_v28 = vsel %vm14199_vm0, %v9399_v33, %v2337_v0  ;;  %v2360_v34 = vsel %vm14201_vm12, %v2351_v59, %v9406_v22  ;;  %v2426_v36 = vmul.f32 %v2424_v56, %v14147_v13  ;;  %v2395_v32 = vmul.f32 %v2391_v39, %v14143_v24  ;;  %v9537_v33 = vld [vmem:[%s13336_s11 + $0x18] sm:$0xff] }
 0x78e   :  { %v2501_v17 = vrot.slane %v2413_v18, 4  ;;  %v2499_v11 = vrot.slane %v2411_v51, 4  ;;  %v2361_v0 = vsel %vm14189_vm4, %v9366_v44, %v2351_v59  ;;  %v2394_v22 = vmul.f32 %v2392_v2, %v14139_v8  ;;  %v14209_v2 = vld [vmem:[#allocation54_spill] sm:$0xff] }
 0x78f   :  { %v2498_v13 = vrot.slane %v2410_v40, 4  ;;  %v2376_v44 = vsel %vm14202_vm13, %v9426_v53, %v9415_v14  ;;  %v2533_v8 = vsel %vm283_vm2, %v9260_v52, %v2489_v42  ;;  %v2510_v62 = vrot.slane %v2426_v36, 6  ;;  %v14204_v52 = vld [vmem:[#allocation69_spill] sm:$0xff] }
 0x790   :  { %v2541_v18 = vsel %vm263_vm6, %v2501_v17, %v2513_v35  ;;  %v2537_v25 = vsel %vm273_vm8, %v2489_v42, %v2501_v17  ;;  %v2487_v43 = vrot.slane %v2395_v32, 2  ;;  %v2333_v4 = vmul.f32 %v2326_v19, %v14203_v3  ;;  %v14206_v19 = vld [vmem:[#allocation55_spill] sm:$0xff] }
 0x791   :  { %2672 = vmatpush.msrb.mxu3 %v2541_v18  ;;  %v2453_v14 = vrot.slane %v9504_v47, 2  ;;  %v2379_v53 = vmul.f32 %v2376_v44, %v14204_v52  ;;  %v2539_v1 = vsel %vm263_vm6, %v2499_v11, %v2511_v7  ;;  %v2346_v45 = vmul.f32 %v2345_v10, %v14205_v37  ;;  %v14210_v18 = vld [vmem:[#allocation56_spill] sm:$0xff]  ;;  %v14214_v44 = vld [vmem:[#allocation39_spill] sm:$0xff] }
 0x792   :  { %v2433_v38 = vpop.permute.xlu1 %2432  ;;  %v2347_v57 = vmul.f32 %v2344_v28, %v14206_v19  ;;  %v2535_v56 = vsel %vm273_vm8, %v2487_v43, %v2499_v11  ;;  %vm14222_vm1 = vcmask 1040384  }
 0x793   :  { %v2439_v24 = vsel %vm758_vm9, %v2433_v38, %v9391_v31  ;;  %v2440_v30 = vsel %vm758_vm9, %v2431_v41, %v2433_v38  ;;  %2673 = vmatpush.msrb.mxu3 %v2537_v25  ;;  %v2362_v31 = vmul.f32 %v2361_v0, %v14125_v61  ;;  %v2363_v41 = vmul.f32 %v2360_v34, %v14124_v21  ;;  %vm14207_vm9 = vmmov %vm14196_vm15 }
 0x794   :  { %v2442_v59 = vmul.f32 %v2440_v30, %v14155_v27  ;;  %v2443_v58 = vmul.f32 %v2439_v24, %v14156_v26  ;;  %6466 = vmatmul.msk.f32.gmra.mxu1 %vm2550_vm5, %v9537_v33  ;;  %v2378_v27 = vmul.f32 %v2377_v6, %v14136_v20  ;;  %v2529_v26 = vsel %vm263_vm6, %v2465_v16, %v2477_v9  ;;  %vm14208_vm10 = vmmov %vm14207_vm9  ;;  %v14213_v24 = vld [vmem:[#allocation74_spill] sm:$0xff] }
 0x795   :  { %2674 = vmatpush.msrb.mxu3 %v2533_v8  ;;  %v2486_v61 = vrot.slane %v2394_v22, 2  ;;  %v2538_v21 = vsel %vm263_vm6, %v2498_v13, %v2510_v62  ;;  %v2525_v20 = vsel %vm273_vm8, %v2453_v14, %v2465_v16  ;;  %v2462_v47 = vrot.slane %v2362_v31, 4  ;;  %v14212_v22 = vld [vmem:[#allocation50_spill] sm:$0xff]  ;;  %vm14229_vm0 = vmmov %vm14222_vm1 }
 0x796   :  { %6452 = vmatpush.msk.msrb.mxu0 %vm283_vm2, %v2442_v59  ;;  %6457 = vmatpush.msk.msrb.mxu2 %vm283_vm2, %v2443_v58  ;;  %v2463_v51 = vrot.slane %v2363_v41, 4  ;;  %v2521_v35 = vsel %vm283_vm2, %v2333_v4, %v2453_v14  ;;  %v2474_v39 = vrot.slane %v2378_v27, 6  ;;  %v2475_v17 = vrot.slane %v2379_v53, 6  ;;  %vm14234_vm11 = vmmov %vm14229_vm0 }
 0x797   :  { %2675 = vmatpush.msrb.mxu3 %v2529_v26  ;;  %v2534_v54 = vsel %vm273_vm8, %v2486_v61, %v2498_v13  ;;  %v2530_v9 = vsel %vm283_vm2, %v9320_v46, %v2486_v61  ;;  %v2531_v16 = vsel %vm283_vm2, %v9304_v5, %v2487_v43  ;;  %v2329_v10 = vsel %vm14207_vm9, %v9360_v48, %v9378_v12  ;;  %v9631_v43 = vld [vmem:[%s13337_s13] sm:$0x3]  ;;  %vm14237_vm12 = vmmov %vm14229_vm0 }
 0x798   :  { %2585 = vmatpush.msrb.mxu0 %v2538_v21  ;;  %2614 = vmatpush.msrb.mxu2 %v2539_v1  ;;  %v2328_v40 = vsel %vm14208_vm10, %v9378_v12, %v9408_v23  ;;  %v2450_v28 = vrot.slane %v2346_v45, 2  ;;  %v2451_v42 = vrot.slane %v2347_v57, 2  ;;  %v2526_v46 = vsel %vm263_vm6, %v2462_v47, %v2474_v39 }
 0x799   :  { %2676 = vmatpush.msrb.mxu3 %v2525_v20  ;;  %v2527_v5 = vsel %vm263_vm6, %v2463_v51, %v2475_v17  ;;  %v2330_v48 = vmul.f32 %v2329_v10, %v14209_v2  ;;  %v2331_v6 = vmul.f32 %v2328_v40, %v14210_v18 }
 0x79a   :  { %2586 = vmatpush.msrb.mxu0 %v2534_v54  ;;  %2615 = vmatpush.msrb.mxu2 %v2535_v56  ;;  %v2522_v34 = vsel %vm273_vm8, %v2450_v28, %v2462_v47  ;;  %v2523_v23 = vsel %vm273_vm8, %v2451_v42, %v2463_v51 }
 0x79b   :  { %2677 = vmatpush.msrb.mxu3 %v2521_v35  ;;  %v2518_v12 = vsel %vm283_vm2, %v2330_v48, %v2450_v28  ;;  %v2519_v36 = vsel %vm283_vm2, %v2331_v6, %v2451_v42 }
 0x79c   :  { %2587 = vmatpush.msrb.mxu0 %v2530_v9  ;;  %2616 = vmatpush.msrb.mxu2 %v2531_v16 }
 0x79d   :  { %6468 = vmatmul.msk.f32.vlgmr.msrb.gmra.mxu3 %vm2550_vm5, %v9441_v50 }
 0x79e   :  { %2588 = vmatpush.msrb.mxu0 %v2526_v46  ;;  %2617 = vmatpush.msrb.mxu2 %v2527_v5 }
 0x7a0   :  { %2589 = vmatpush.msrb.mxu0 %v2522_v34  ;;  %2618 = vmatpush.msrb.mxu2 %v2523_v23 }
 0x7a2   :  { %2590 = vmatpush.msrb.mxu0 %v2518_v12  ;;  %2619 = vmatpush.msrb.mxu2 %v2519_v36 }
 0x7a3   :  { %6453 = vmatmul.msk.f32.vlgmr.msrb.gmra.mxu0 %vm2550_vm5, %v9441_v50  ;;  %6458 = vmatmul.msk.f32.vlgmr.msrb.gmra.mxu2 %vm2550_vm5, %v9441_v50 }
 0x7a5   :  { %6469 = vmatmul.msk.f32.gmra.mxu3 %vm2550_vm5, %v9449_v29 }
 0x7ab   :  { %6454 = vmatmul.msk.f32.gmra.mxu0 %vm2550_vm5, %v9449_v29  ;;  %6459 = vmatmul.msk.f32.gmra.mxu2 %vm2550_vm5, %v9449_v29 }
 0x7ad   :  { %6470 = vmatmul.msk.f32.gmra.mxu3 %vm2550_vm5, %v9473_v55 }
 0x7b3   :  { %6455 = vmatmul.msk.f32.gmra.mxu0 %vm2550_vm5, %v9473_v55  ;;  %6460 = vmatmul.msk.f32.gmra.mxu2 %vm2550_vm5, %v9473_v55  ;;  %v14211_v55 = vld [vmem:[#allocation90_spill] sm:$0xff] }
 0x7b5   :  { %6471 = vmatmul.msk.f32.gmra.mxu3 %vm2550_vm5, %v9537_v33 }
 0x7bb   :  { %6456 = vmatmul.msk.f32.gmra.mxu0 %vm2550_vm5, %v9537_v33  ;;  %6461 = vmatmul.msk.f32.gmra.mxu2 %vm2550_vm5, %v9537_v33  ;;  %v14215_v33 = vld [vmem:[#allocation23_spill] sm:$0xff]  ;;  %vm2782_vm5 = vcmask 261120  }
 0x7f9   :  { %v2650_v50 = vpop.f32.mrf.mxu1 }
 0x7fa   :  { %v2713_v25 = vmul.f32 %v14211_v55, %v2650_v50 }
 0x7fc   :  { %v2745_v8 = vadd.f32 %v14215_v33, %v2713_v25 }
 0x7fe   :  { %v2761_v62 = vmax.f32 %v2745_v8, 0.0 }
 0x801   :  { %v2653_v29 = vpop.f32.mrf.mxu1 }
 0x802   :  { %v2717_v7 = vmul.f32 %v9209_v63, %v2653_v29 }
 0x804   :  { %v2749_v59 = vadd.f32 %v14214_v44, %v2717_v7 }
 0x806   :  { %v2765_v41 = vmax.f32 %v2749_v59, 0.0 }
 0x809   :  { %v2656_v32 = vpop.f32.mrf.mxu1 }
 0x80a   :  { %v2721_v11 = vmul.f32 %v9205_v60, %v2656_v32 }
 0x80c   :  { %v2753_v13 = vadd.f32 %v14212_v22, %v2721_v11 }
 0x80e   :  { %v2769_v31 = vmax.f32 %v2753_v13, 0.0 }
 0x811   :  { %v2659_v0 = vpop.f32.mrf.mxu1 }
 0x812   :  { %v2725_v38 = vmul.f32 %v9232_v49, %v2659_v0 }
 0x814   :  { %v2757_v30 = vadd.f32 %v14213_v24, %v2725_v38 }
 0x816   :  { %v2773_v58 = vmax.f32 %v2757_v30, 0.0 }
 0x818   :  { %2838 = vmatpush.msra.mxu1 %v2773_v58  ;;  %v6790_v58 = vmov 16.0  }
 0x819   :  { %6716 = vrcp.f32 %v6790_v58 }
 0x81a   :  { %2839 = vmatpush.msra.mxu1 %v2769_v31 }
 0x81c   :  { %2840 = vmatpush.msra.mxu1 %v2765_v41 }
 0x81e   :  { %2841 = vmatpush.msra.mxu1 %v2761_v62 }
 0x81f   :  { %6474 = vmatmul.msk.f32.vlgmr.msra.gmra.mxu1 %vm2782_vm5, %v9631_v43  ;;  %v6717_v8 = vpop.eup %6716 }
 0x820   :  { %v2679_v3 = vpop.f32.mrf.mxu3  ;;  %v2592_v4 = vpop.f32.mrf.mxu0  ;;  %v2971_v62 = vmul.f32 16.0, %v6717_v8  ;;  %vm2975_vm15 = vweird.f32 %v6717_v8 }
 0x821   :  { %v2714_v54 = vmul.f32 %v14211_v55, %v2679_v3  ;;  %v2711_v56 = vmul.f32 %v14211_v55, %v2592_v4 }
 0x822   :  { %v2972_v4 = vsub.f32 1.0, %v2971_v62 }
 0x823   :  { %v2746_v42 = vadd.f32 %v14215_v33, %v2714_v54  ;;  %v2743_v2 = vadd.f32 %v14215_v33, %v2711_v56  ;;  %v14220_v54 = vld [vmem:[#allocation81_spill] sm:$0xff] }
 0x825   :  { %v2762_v29 = vmax.f32 %v2746_v42, 0.0  ;;  %v2759_v32 = vmax.f32 %v2743_v2, 0.0 }
 0x826   :  { %v2621_v14 = vpop.f32.mrf.mxu2 }
 0x827   :  { %v2712_v50 = vmul.f32 %v14211_v55, %v2621_v14  ;;  %v14216_v55 = vld [vmem:[#allocation6_spill] sm:$0xff] }
 0x828   :  { %v2682_v27 = vpop.f32.mrf.mxu3  ;;  %v2595_v26 = vpop.f32.mrf.mxu0  ;;  %v2061_v25 = vmul.f32 0.0, %v14216_v55 }
 0x829   :  { %v2718_v57 = vmul.f32 %v9209_v63, %v2682_v27  ;;  %v2715_v20 = vmul.f32 %v9209_v63, %v2595_v26  ;;  %v2973_v26 = vmul.f32 %v6717_v8, %v2972_v4 }
 0x82b   :  { %v2750_v16 = vadd.f32 %v14214_v44, %v2718_v57  ;;  %v2747_v10 = vadd.f32 %v14214_v44, %v2715_v20 }
 0x82d   :  { %v2766_v23 = vmax.f32 %v2750_v16, 0.0  ;;  %v2763_v12 = vmax.f32 %v2747_v10, 0.0 }
 0x82e   :  { %v2624_v52 = vpop.f32.mrf.mxu2 }
 0x82f   :  { %v2716_v34 = vmul.f32 %v9209_v63, %v2624_v52  ;;  %v2744_v63 = vadd.f32 %v14215_v33, %v2712_v50 }
 0x830   :  { %v2685_v53 = vpop.f32.mrf.mxu3  ;;  %v2598_v61 = vpop.f32.mrf.mxu0 }
 0x831   :  { %v2722_v1 = vmul.f32 %v9205_v60, %v2685_v53  ;;  %v2719_v37 = vmul.f32 %v9205_v60, %v2598_v61  ;;  %v2760_v38 = vmax.f32 %v2744_v63, 0.0  ;;  %v2974_v61 = vadd.f32 %v6717_v8, %v2973_v26  ;;  %v6761_v26 = vld [vmem:[%s13836_s26 + $0x38] sm:$0xff] }
 0x833   :  { %v2754_v35 = vadd.f32 %v14212_v22, %v2722_v1  ;;  %v2751_v39 = vadd.f32 %v14212_v22, %v2719_v37  ;;  %v9679_v37 = vsel %vm2975_vm15, %v6717_v8, %v2974_v61 }
 0x835   :  { %v2770_v48 = vmax.f32 %v2754_v35, 0.0  ;;  %v2767_v18 = vmax.f32 %v2751_v39, 0.0 }
 0x836   :  { %v2627_v21 = vpop.f32.mrf.mxu2 }
 0x837   :  { %v2720_v46 = vmul.f32 %v9205_v60, %v2627_v21 }
 0x838   :  { %v2688_v45 = vpop.f32.mrf.mxu3  ;;  %v2601_v19 = vpop.f32.mrf.mxu0 }
 0x839   :  { %v2726_v47 = vmul.f32 %v9232_v49, %v2688_v45  ;;  %v2723_v51 = vmul.f32 %v9232_v49, %v2601_v19  ;;  %v2752_v60 = vadd.f32 %v14212_v22, %v2720_v46  ;;  %v14217_v22 = vld [vmem:[#allocation83_spill] sm:$0xff] }
 0x83a   :  { %v9667_v13 = vadd.f32 %v14217_v22, %v2061_v25  ;;  %v2282_v19 = vmul.f32 0.0, %v14217_v22 }
 0x83b   :  { %v2758_v17 = vadd.f32 %v14213_v24, %v2726_v47  ;;  %v2755_v9 = vadd.f32 %v14213_v24, %v2723_v51  ;;  %v2768_v0 = vmax.f32 %v2752_v60, 0.0  ;;  %v14227_v60 = vld [vmem:[#allocation78_spill] sm:$0xff] }
 0x83c   :  { %v2290_v51 = vadd.f32 %v2282_v19, %v14216_v55 }
 0x83d   :  { %v2774_v40 = vmax.f32 %v2758_v17, 0.0  ;;  %v2771_v28 = vmax.f32 %v2755_v9, 0.0  ;;  %v6759_v9 = vld [vmem:[%s13836_s26 + $0x20] sm:$0xff] }
 0x83e   :  { %v2630_v5 = vpop.f32.mrf.mxu2  ;;  %v9693_v16 = vmul.f32 %v6759_v9, %v2290_v51 }
 0x83f   :  { %v2724_v6 = vmul.f32 %v9232_v49, %v2630_v5  ;;  %2858 = vmatpush.msra.mxu3 %v2774_v40  ;;  %2798 = vmatpush.msra.mxu0 %v2771_v28  ;;  %v2748_v49 = vadd.f32 %v14214_v44, %v2716_v34  ;;  %v14219_v44 = vld [vmem:[#allocation27_spill] sm:$0xff]  ;;  %v14225_v40 = vld [vmem:[#allocation2_spill] sm:$0xff] }
 0x840   :  { %14223 = vst [vmem:[#allocation61_spill] sm:$0xff] %v9693_v16  ;;  %v2942_v28 = vadd.f32 %v9693_v16, %v14225_v40  ;;  %v2981_v46 = vmax.f32 %v14225_v40, %v9693_v16 }
 0x841   :  { %v2756_v36 = vadd.f32 %v14213_v24, %v2724_v6  ;;  %2859 = vmatpush.msra.mxu3 %v2770_v48  ;;  %2799 = vmatpush.msra.mxu0 %v2767_v18  ;;  %v2764_v7 = vmax.f32 %v2748_v49, 0.0  ;;  %v6758_v24 = vld [vmem:[%s13836_s26 + $0x30] sm:$0xff] }
 0x842   :  { %v9673_v30 = vmul.f32 %v6758_v24, %v9667_v13  ;;  %v2943_v42 = vrot.slane %v2942_v28, 4  ;;  %v2982_v2 = vrot.slane %v2981_v46, 4 }
 0x843   :  { %v2772_v11 = vmax.f32 %v2756_v36, 0.0  ;;  %2860 = vmatpush.msra.mxu3 %v2766_v23  ;;  %2800 = vmatpush.msra.mxu0 %v2763_v12  ;;  %v6760_v23 = vld [vmem:[%s13836_s26 + $0x28] sm:$0xff] }
 0x844   :  { %14218 = vst [vmem:[#allocation91_spill] sm:$0xff] %v9673_v30  ;;  %v2956_v59 = vadd.f32 %v9673_v30, %v14219_v44  ;;  %v2995_v31 = vmax.f32 %v14219_v44, %v9673_v30  ;;  %v2944_v5 = vadd.f32 %v2943_v42, %v2942_v28  ;;  %v2983_v18 = vmax.f32 %v2981_v46, %v2982_v2 }
 0x845   :  { %2861 = vmatpush.msra.mxu3 %v2762_v29  ;;  %2801 = vmatpush.msra.mxu0 %v2759_v32  ;;  %v9723_v12 = vmul.f32 %v6760_v23, %v2290_v51 }
 0x846   :  { %2818 = vmatpush.msra.mxu2 %v2772_v11  ;;  %6475 = vmatmul.msk.f32.vlgmr.msra.gmra.mxu3 %vm2782_vm5, %v9631_v43  ;;  %v2957_v33 = vrot.slane %v2956_v59, 4  ;;  %v2945_v48 = vrot.slane %v2944_v5, 2  ;;  %v2984_v34 = vrot.slane %v2983_v18, 2 }
 0x847   :  { %6472 = vmatmul.msk.f32.vlgmr.msra.gmra.mxu0 %vm2782_vm5, %v9631_v43  ;;  %14226 = vst [vmem:[#allocation57_spill] sm:$0xff] %v9723_v12  ;;  %v2949_v29 = vadd.f32 %v9723_v12, %v14227_v60 }
 0x848   :  { %2819 = vmatpush.msra.mxu2 %v2768_v0  ;;  %v2958_v41 = vadd.f32 %v2957_v33, %v2956_v59  ;;  %v2946_v6 = vadd.f32 %v2945_v48, %v2944_v5  ;;  %v2985_v50 = vmax.f32 %v2983_v18, %v2984_v34  ;;  %v2988_v0 = vmax.f32 %v14227_v60, %v9723_v12 }
 0x849   :  { %v2950_v49 = vrot.slane %v2949_v29, 4 }
 0x84a   :  { %2820 = vmatpush.msra.mxu2 %v2764_v7  ;;  %v2959_v3 = vrot.slane %v2958_v41, 2  ;;  %v2947_v36 = vrot.slane %v2946_v6, 1  ;;  %v2986_v11 = vrot.slane %v2985_v50, 1  ;;  %v2989_v24 = vrot.slane %v2988_v0, 4 }
 0x84b   :  { %v2951_v55 = vadd.f32 %v2950_v49, %v2949_v29 }
 0x84c   :  { %2821 = vmatpush.msra.mxu2 %v2760_v38  ;;  %v2960_v27 = vadd.f32 %v2959_v3, %v2958_v41  ;;  %v2948_v32 = vadd.f32 %v2947_v36, %v2946_v6  ;;  %v2987_v7 = vmax.f32 %v2985_v50, %v2986_v11 }
 0x84d   :  { %6473 = vmatmul.msk.f32.vlgmr.msra.gmra.mxu2 %vm2782_vm5, %v9631_v43  ;;  %v2996_v43 = vrot.slane %v2995_v31, 4  ;;  %v2952_v33 = vrot.slane %v2951_v55, 2 }
 0x84e   :  { %v2961_v53 = vrot.slane %v2960_v27, 1  ;;  %v2977_v63 = vmul.f32 %v9679_v37, %v2948_v32 }
 0x84f   :  { %v2997_v14 = vmax.f32 %v2995_v31, %v2996_v43  ;;  %v2990_v31 = vmax.f32 %v2988_v0, %v2989_v24  ;;  %v2953_v41 = vadd.f32 %v2952_v33, %v2951_v55 }
 0x850   :  { %v2962_v1 = vadd.f32 %v2961_v53, %v2960_v27  ;;  %v3021_v22 = vsel %vm14229_vm0, %v2987_v7, %v2977_v63 }
 0x851   :  { %v2998_v52 = vrot.slane %v2997_v14, 2  ;;  %v3025_v58 = vsel %vm263_vm6, %v3021_v22, %v2977_v63  ;;  %v2991_v62 = vrot.slane %v2990_v31, 2  ;;  %v2954_v43 = vrot.slane %v2953_v41, 1 }
 0x852   :  { %v2979_v57 = vmul.f32 %v9679_v37, %v2962_v1  ;;  %v14233_v1 = vld [vmem:[#allocation24_spill] sm:$0xff] }
 0x853   :  { %v2999_v21 = vmax.f32 %v2997_v14, %v2998_v52  ;;  %v2992_v3 = vmax.f32 %v2990_v31, %v2991_v62  ;;  %v2955_v4 = vadd.f32 %v2954_v43, %v2953_v41  ;;  %v9763_v52 = vmul.f32 %v6761_v26, %v9667_v13 }
 0x855   :  { %v3000_v45 = vrot.slane %v2999_v21, 1  ;;  %v2993_v27 = vrot.slane %v2992_v3, 1  ;;  %14231 = vst [vmem:[#allocation85_spill] sm:$0xff] %v9763_v52  ;;  %v2978_v61 = vmul.f32 %v9679_v37, %v2955_v4  ;;  %v3002_v51 = vmax.f32 %v14233_v1, %v9763_v52  ;;  %v14250_v4 = vld [vmem:[#allocation28_spill] sm:$0xff] }
 0x856   :  { %vm3033_vm4 = vcmp.ge.s32.totalorder %v14250_v4, 64  ;;  %vm3053_vm13 = vcmp.ge.s32.totalorder %v14250_v4, 48  ;;  %vm3073_vm5 = vcmp.ge.s32.totalorder %v14250_v4, 32 }
 0x857   :  { %v3001_v20 = vmax.f32 %v2999_v21, %v3000_v45  ;;  %v2994_v21 = vmax.f32 %v2992_v3, %v2993_v27  ;;  %v2963_v45 = vadd.f32 %v9763_v52, %v14233_v1  ;;  %v14252_v27 = vmov 0.0  }
 0x858   :  { %v6480_v26 = vsel %vm3033_vm4, 1.0, %v14252_v27  ;;  %vm14260_vm4 = vcmask 1044480  }
 0x859   :  { %v3023_v35 = vsel %vm14222_vm1, %v3001_v20, %v2979_v57  ;;  %v3022_v19 = vsel %vm14234_vm11, %v2994_v21, %v2978_v61  ;;  %v2964_v20 = vrot.slane %v2963_v45, 4  ;;  %vm14256_vm1 = vmmov %vm14229_vm0 }
 0x85a   :  { %v3027_v17 = vsel %vm263_vm6, %v3023_v35, %v2979_v57  ;;  %v3026_v57 = vsel %vm263_vm6, %v3022_v19, %v2978_v61  ;;  %v6482_v61 = vsel %vm3053_vm13, 1.0, %v14252_v27  ;;  %vm14258_vm11 = vmmov %vm14256_vm1  ;;  %vm14266_vm13 = vcmask 1046528  }
 0x85b   :  { %v2965_v35 = vadd.f32 %v2964_v20, %v2963_v45  ;;  %v6484_v20 = vsel %vm3073_vm5, 1.0, %v14252_v27  ;;  %vm14269_vm5 = vmmov %vm14260_vm4 }
 0x89c   :  { %v2843_v47 = vpop.f32.mrf.mxu1 }
 0x89d   :  { %v9685_v56 = vadd.f32 %v2843_v47, %v14220_v54 }
 0x89f   :  { %14221 = vst [vmem:[#allocation5_spill] sm:$0xff] %v9685_v56  ;;  %v3015_v39 = vrot.slane %v9685_v56, 5 }
 0x8a1   :  { %v9696_v10 = vsel %vm268_vm7, %v3027_v17, %v3015_v39  ;;  %v3003_v39 = vrot.slane %v3002_v51, 4  ;;  %v2966_v17 = vrot.slane %v2965_v35, 2 }
 0x8a2   :  { %14224 = vst [vmem:[#allocation66_spill] sm:$0xff] %v9696_v10  ;;  %4693 = vrot.lane.b32.xlu1 %v9696_v10, %s6791_s14  ;;  %4677 = vrot.lane.b32.xlu2 %v9696_v10, %s6792_s4 }
 0x8a3   :  { %3383 = vrot.lane.b32.xlu0 %v9696_v10, %s6793_s6  ;;  %v3004_v9 = vmax.f32 %v3002_v51, %v3003_v39  ;;  %v2967_v28 = vadd.f32 %v2966_v17, %v2965_v35  ;;  %v3177_v51 = vsel %vm14256_vm1, %v6480_v26, %v6482_v61  ;;  %v14257_v35 = vld [vmem:[#allocation10_spill] sm:$0xff]  ;;  %vm14275_vm1 = vmmov %vm14266_vm13 }
 0x8a4   :  { %vm3122_vm0 = vcmp.lt.s32.totalorder %v14257_v35, 224 }
 0x8a5   :  { %v3005_v42 = vrot.slane %v3004_v9, 2  ;;  %v2968_v46 = vrot.slane %v2967_v28, 1 }
 0x8a7   :  { %v3006_v5 = vmax.f32 %v3004_v9, %v3005_v42  ;;  %v2969_v2 = vadd.f32 %v2968_v46, %v2967_v28  ;;  %v3181_v9 = vsel %vm263_vm6, %v3177_v51, %v6484_v20  ;;  %v6490_v28 = vsel %vm3122_vm0, 1.0, %v14252_v27  ;;  %v14259_v42 = vld [vmem:[#allocation51_spill] sm:$0xff]  ;;  %vm14277_vm0 = vmmov %vm14275_vm1 }
 0x8a8   :  { %v3194_v46 = vsel %vm14260_vm4, 1.0, %v14259_v42 }
 0x8a9   :  { %v3007_v18 = vrot.slane %v3006_v5, 1  ;;  %v2980_v34 = vmul.f32 %v9679_v37, %v2969_v2  ;;  %v14261_v2 = vld [vmem:[#allocation37_spill] sm:$0xff] }
 0x8aa   :  { %4741 = vrot.lane.b32.xlu1 %v9696_v10, %s6794_s5  ;;  %4725 = vrot.lane.b32.xlu2 %v9696_v10, %s6781_s22 }
 0x8ab   :  { %3634 = vrot.lane.b32.xlu0 %v9696_v10, %s6795_s9  ;;  %v3008_v23 = vmax.f32 %v3006_v5, %v3007_v18 }
 0x8ad   :  { %v3024_v50 = vsel %vm14237_vm12, %v3008_v23, %v2980_v34  ;;  %vm3142_vm12 = vcmp.lt.s32.totalorder %v14257_v35, 208 }
 0x8ae   :  { %v3028_v29 = vsel %vm263_vm6, %v3024_v50, %v2980_v34  ;;  %v6492_v23 = vsel %vm3142_vm12, 1.0, %v14252_v27  ;;  %vm14280_vm12 = vmmov %vm14260_vm4 }
 0x8b2   :  { %4952 = vrot.lane.b32.xlu1 %v9696_v10, %s6785_s24  ;;  %4773 = vrot.lane.b32.xlu2 %v9696_v10, %s6796_s0 }
 0x8b3   :  { %4038 = vrot.lane.b32.xlu0 %v9696_v10, %s6797_s18 }
 0x8ba   :  { %5263 = vrot.lane.b32.xlu1 %v9696_v10, %s6798_s30 }
 0x8bb   :  { %4350 = vrot.lane.b32.xlu0 %v9696_v10, %s6775_s28 }
 0x8c2   :  { %5575 = vrot.lane.b32.xlu1 %v9696_v10, %s6799_s20 }
 0x8c3   :  { %4661 = vrot.lane.b32.xlu0 %v9696_v10, %s6800_s23 }
 0x8c4   :  { %v2803_v38 = vpop.f32.mrf.mxu0 }
 0x8c5   :  { %v9739_v25 = vadd.f32 %v2803_v38, %v14220_v54 }
 0x8c7   :  { %14228 = vst [vmem:[#allocation67_spill] sm:$0xff] %v9739_v25  ;;  %v3013_v59 = vrot.slane %v9739_v25, 5 }
 0x8c9   :  { %v9745_v8 = vsel %vm268_vm7, %v3025_v58, %v3013_v59  ;;  %v2863_v48 = vpop.f32.mrf.mxu3 }
 0x8ca   :  { %14230 = vst [vmem:[#allocation68_spill] sm:$0xff] %v9745_v8  ;;  %3379 = vrot.lane.b32.xlu2 %v9745_v8, %s6793_s6  ;;  %4673 = vrot.lane.b32.xlu1 %v9745_v8, %s6792_s4  ;;  %v9804_v6 = vadd.f32 %v2863_v48, %v14220_v54  ;;  %v3185_v48 = vsel %vm268_vm7, %v3181_v9, %v14261_v2 }
 0x8cb   :  { %4709 = vrot.lane.b32.xlu0 %v9696_v10, %s6779_s21 }
 0x8cc   :  { %14236 = vst [vmem:[#allocation21_spill] sm:$0xff] %v9804_v6  ;;  %v3016_v36 = vrot.slane %v9804_v6, 5 }
 0x8d0   :  { %v2823_v14 = vpop.f32.mrf.mxu2 }
 0x8d1   :  { %v9766_v53 = vadd.f32 %v2823_v14, %v14220_v54  ;;  %v9817_v54 = vsel %vm268_vm7, %v3028_v29, %v3016_v36  ;;  %v14251_v14 = vld [vmem:[#allocation25_spill] sm:$0xff]  ;;  %v3198_v36 = vsel %vm283_vm2, %v3194_v46, %v6490_v28  ;;  %v14265_v29 = vld [vmem:[#allocation36_spill] sm:$0xff] }
 0x8d2   :  { %3630 = vrot.lane.b32.xlu2 %v9745_v8, %s6795_s9  ;;  %4721 = vrot.lane.b32.xlu1 %v9745_v8, %s6781_s22  ;;  %14238 = vst [vmem:[#allocation65_spill] sm:$0xff] %v9817_v54  ;;  %vm3035_vm9 = vcmp.ge.s32.totalorder %v14251_v14, 64  ;;  %vm3055_vm10 = vcmp.ge.s32.totalorder %v14251_v14, 48  ;;  %vm3075_vm15 = vcmp.ge.s32.totalorder %v14251_v14, 32  ;;  %v3189_v14 = vsel %vm273_vm8, %v3185_v48, 1.0 }
 0x8d3   :  { %4757 = vrot.lane.b32.xlu0 %v9696_v10, %s6801_s25  ;;  %14232 = vst [vmem:[#allocation44_spill] sm:$0xff] %v9766_v53  ;;  %v3014_v13 = vrot.slane %v9766_v53, 5  ;;  %v6483_v19 = vsel %vm3055_vm10, 1.0, %v14252_v27  ;;  %v6485_v39 = vsel %vm3075_vm15, 1.0, %v14252_v27  ;;  %v9946_v26 = vsel %vm14266_vm13, %v3198_v36, %v6492_v23  ;;  %v14279_v36 = vld [vmem:[#allocation47_spill] sm:$0xff] }
 0x8d4   :  { %14267 = vst [vmem:[#allocation72_spill] sm:$0xff] %v9946_v26  ;;  %vm3387_vm10 = vcmp.lt.s32.totalorder %v7004_v15, 64  ;;  %vm3638_vm13 = vcmp.lt.s32.totalorder %v7004_v15, 48 }
 0x8d5   :  { %v9781_v47 = vsel %vm268_vm7, %v3026_v57, %v3014_v13  ;;  %v6481_v13 = vsel %vm3035_vm9, 1.0, %v14252_v27  ;;  %vm14268_vm9 = vmmov %vm14260_vm4 }
 0x8d6   :  { %14235 = vst [vmem:[#allocation4_spill] sm:$0xff] %v9781_v47  ;;  %v3179_v17 = vsel %vm14258_vm11, %v6481_v13, %v6483_v19  ;;  %v3193_v13 = vsel %vm14268_vm9, %v3189_v14, 1.0  ;;  %v3393_v19 = vperm.slane %v9946_v26, 0  ;;  %vm14284_vm4 = vmmov %vm14277_vm0  ;;  %vm4042_vm9 = vcmp.lt.s32.totalorder %v7004_v15, 32 }
 0x8d7   :  { %v3183_v5 = vsel %vm263_vm6, %v3179_v17, %v6485_v39  ;;  %v3197_v17 = vsel %vm283_vm2, %v3193_v13, 1.0 }
 0x8d8   :  { %v3187_v4 = vsel %vm268_vm7, %v3183_v5, %v14265_v29  ;;  %v14274_v5 = vld [vmem:[#allocation8_spill] sm:$0xff]  ;;  %v9971_v2 = vsel %vm14275_vm1, %v3197_v17, 1.0  ;;  %v3196_v29 = vsel %vm14280_vm12, 1.0, %v14279_v36  ;;  %vm14350_vm12 = vcmask 1040384  }
 0x8d9   :  { %v3191_v61 = vsel %vm273_vm8, %v3187_v4, 1.0  ;;  %vm3124_vm15 = vcmp.lt.s32.totalorder %v14274_v5, 224  ;;  %14276 = vst [vmem:[#allocation14_spill] sm:$0xff] %v9971_v2  ;;  %vm3144_vm11 = vcmp.lt.s32.totalorder %v14274_v5, 208  ;;  %v3392_v4 = vperm.slane %v9971_v2, 0 }
 0x8da   :  { %4034 = vrot.lane.b32.xlu2 %v9745_v8, %s6797_s18  ;;  %4769 = vrot.lane.b32.xlu1 %v9745_v8, %s6796_s0  ;;  %v3195_v20 = vsel %vm14269_vm5, %v3191_v61, 1.0  ;;  %v6491_v23 = vsel %vm3124_vm15, 1.0, %v14252_v27  ;;  %v6493_v61 = vsel %vm3144_vm11, 1.0, %v14252_v27 }
 0x8db   :  { %4689 = vrot.lane.b32.xlu0 %v9745_v8, %s6791_s14  ;;  %v3199_v42 = vsel %vm283_vm2, %v3195_v20, 1.0  ;;  %v3200_v13 = vsel %vm283_vm2, %v3196_v29, %v6491_v23 }
 0x8dc   :  { %v9976_v48 = vsel %vm14277_vm0, %v3199_v42, 1.0  ;;  %v10004_v12 = vsel %vm14284_vm4, %v3200_v13, %v6493_v61  ;;  %vm14351_vm4 = vmmov %vm14350_vm12 }
 0x8dd   :  { %14278 = vst [vmem:[#allocation29_spill] sm:$0xff] %v9976_v48  ;;  %v3394_v14 = vperm.slane %v9976_v48, 0  ;;  %v3645_v35 = vperm.slane %v9976_v48, 1 }
 0x8de   :  { %14285 = vst [vmem:[#allocation59_spill] sm:$0xff] %v10004_v12 }
 0x8e2   :  { %4346 = vrot.lane.b32.xlu2 %v9745_v8, %s6775_s28  ;;  %3381 = vrot.lane.b32.xlu1 %v9781_v47, %s6793_s6 }
 0x8e3   :  { %4737 = vrot.lane.b32.xlu0 %v9745_v8, %s6794_s5 }
 0x8ea   :  { %4657 = vrot.lane.b32.xlu2 %v9745_v8, %s6800_s23  ;;  %3632 = vrot.lane.b32.xlu1 %v9781_v47, %s6795_s9 }
 0x8eb   :  { %4948 = vrot.lane.b32.xlu0 %v9745_v8, %s6785_s24 }
 0x8f2   :  { %4705 = vrot.lane.b32.xlu2 %v9745_v8, %s6779_s21  ;;  %4036 = vrot.lane.b32.xlu1 %v9781_v47, %s6797_s18 }
 0x8f3   :  { %5259 = vrot.lane.b32.xlu0 %v9745_v8, %s6798_s30 }
 0x8fa   :  { %4753 = vrot.lane.b32.xlu2 %v9745_v8, %s6801_s25  ;;  %4348 = vrot.lane.b32.xlu1 %v9781_v47, %s6775_s28 }
 0x8fb   :  { %5571 = vrot.lane.b32.xlu0 %v9745_v8, %s6799_s20 }
 0x8fc   :  { %v9825_v37 = vpop.permute.xlu2 %4677 }
 0x8fd   :  { %14239 = vst [vmem:[#allocation73_spill] sm:$0xff] %v9825_v37 }
 0x902   :  { %3385 = vrot.lane.b32.xlu2 %v9817_v54, %s6793_s6  ;;  %4659 = vrot.lane.b32.xlu1 %v9781_v47, %s6800_s23 }
 0x903   :  { %4675 = vrot.lane.b32.xlu0 %v9781_v47, %s6792_s4 }
 0x904   :  { %v9833_v32 = vpop.permute.xlu2 %4725 }
 0x905   :  { %14240 = vst [vmem:[#allocation82_spill] sm:$0xff] %v9833_v32 }
 0x90a   :  { %3636 = vrot.lane.b32.xlu2 %v9817_v54, %s6795_s9  ;;  %4679 = vrot.lane.b32.xlu1 %v9817_v54, %s6792_s4 }
 0x90b   :  { %4695 = vrot.lane.b32.xlu0 %v9817_v54, %s6791_s14 }
 0x90c   :  { %v9851_v63 = vpop.permute.xlu2 %4773 }
 0x90d   :  { %14242 = vst [vmem:[#allocation63_spill] sm:$0xff] %v9851_v63 }
 0x912   :  { %4040 = vrot.lane.b32.xlu2 %v9817_v54, %s6797_s18  ;;  %4707 = vrot.lane.b32.xlu1 %v9781_v47, %s6779_s21 }
 0x913   :  { %4723 = vrot.lane.b32.xlu0 %v9781_v47, %s6781_s22 }
 0x914   :  { %v9841_v11 = vpop.permute.xlu1 %4693 }
 0x915   :  { %14241 = vst [vmem:[#allocation76_spill] sm:$0xff] %v9841_v11  ;;  %v9843_v49 = vpop.permute.xlu0 %3383 }
 0x91a   :  { %4352 = vrot.lane.b32.xlu2 %v9817_v54, %s6775_s28  ;;  %4727 = vrot.lane.b32.xlu1 %v9817_v54, %s6781_s22 }
 0x91b   :  { %4743 = vrot.lane.b32.xlu0 %v9817_v54, %s6794_s5 }
 0x91c   :  { %v9853_v0 = vpop.permute.xlu1 %4741 }
 0x91d   :  { %14243 = vst [vmem:[#allocation86_spill] sm:$0xff] %v9853_v0  ;;  %v9855_v7 = vpop.permute.xlu0 %3634 }
 0x922   :  { %4663 = vrot.lane.b32.xlu2 %v9817_v54, %s6800_s23  ;;  %4755 = vrot.lane.b32.xlu1 %v9781_v47, %s6801_s25 }
 0x923   :  { %4771 = vrot.lane.b32.xlu0 %v9781_v47, %s6796_s0 }
 0x924   :  { %v9863_v38 = vpop.permute.xlu2 %3379  ;;  %v9865_v55 = vpop.permute.xlu1 %4952 }
 0x925   :  { %14244 = vst [vmem:[#allocation17_spill] sm:$0xff] %v9865_v55  ;;  %v9867_v22 = vpop.permute.xlu0 %4038 }
 0x92a   :  { %4691 = vrot.lane.b32.xlu2 %v9781_v47, %s6791_s14  ;;  %4775 = vrot.lane.b32.xlu1 %v9817_v54, %s6796_s0 }
 0x92b   :  { %4954 = vrot.lane.b32.xlu0 %v9817_v54, %s6785_s24 }
 0x92c   :  { %v9875_v24 = vpop.permute.xlu2 %3630  ;;  %v9877_v59 = vpop.permute.xlu1 %5263 }
 0x92d   :  { %14245 = vst [vmem:[#allocation19_spill] sm:$0xff] %v9877_v59  ;;  %v9879_v58 = vpop.permute.xlu0 %4350 }
 0x932   :  { %4711 = vrot.lane.b32.xlu2 %v9817_v54, %s6779_s21 }
 0x933   :  { %5265 = vrot.lane.b32.xlu0 %v9817_v54, %s6798_s30 }
 0x934   :  { %v9885_v33 = vpop.permute.xlu2 %4034  ;;  %v9887_v31 = vpop.permute.xlu1 %5575 }
 0x935   :  { %14246 = vst [vmem:[#allocation20_spill] sm:$0xff] %v9887_v31  ;;  %v9889_v41 = vpop.permute.xlu0 %4661 }
 0x936   :  { %14247 = vst [vmem:[#allocation40_spill] sm:$0xff] %v9889_v41 }
 0x93a   :  { %4739 = vrot.lane.b32.xlu2 %v9781_v47, %s6794_s5 }
 0x93b   :  { %5577 = vrot.lane.b32.xlu0 %v9817_v54, %s6799_s20 }
 0x93c   :  { %v9895_v62 = vpop.permute.xlu2 %4346  ;;  %v9897_v43 = vpop.permute.xlu1 %4673 }
 0x93d   :  { %14248 = vst [vmem:[#allocation35_spill] sm:$0xff] %v9897_v43  ;;  %v9899_v3 = vpop.permute.xlu0 %4709 }
 0x93e   :  { %14249 = vst [vmem:[#allocation26_spill] sm:$0xff] %v9899_v3 }
 0x942   :  { %4759 = vrot.lane.b32.xlu2 %v9817_v54, %s6801_s25  ;;  %v3646_v54 = vperm.slane %v10004_v12, 1 }
 0x944   :  { %v9910_v21 = vpop.permute.xlu2 %4657  ;;  %v9912_v45 = vpop.permute.xlu1 %4721 }
 0x945   :  { %14253 = vst [vmem:[#allocation48_spill] sm:$0xff] %v9910_v21  ;;  %v9917_v57 = vpop.permute.xlu0 %4757  ;;  %v4049_v21 = vperm.slane %v9976_v48, 2 }
 0x946   :  { %14254 = vst [vmem:[#allocation15_spill] sm:$0xff] %v9912_v45  ;;  %v4047_v45 = vperm.slane %v9971_v2, 2 }
 0x947   :  { %14255 = vst [vmem:[#allocation18_spill] sm:$0xff] %v9917_v57 }
 0x94a   :  { %4950 = vrot.lane.b32.xlu2 %v9781_v47, %s6785_s24 }
 0x94c   :  { %v9934_v18 = vpop.permute.xlu2 %4705  ;;  %v9936_v34 = vpop.permute.xlu1 %4769 }
 0x94d   :  { %14262 = vst [vmem:[#allocation58_spill] sm:$0xff] %v9934_v18  ;;  %v9940_v50 = vpop.permute.xlu0 %4689 }
 0x94e   :  { %14263 = vst [vmem:[#allocation84_spill] sm:$0xff] %v9936_v34 }
 0x94f   :  { %14264 = vst [vmem:[#allocation22_spill] sm:$0xff] %v9940_v50 }
 0x952   :  { %5261 = vrot.lane.b32.xlu2 %v9781_v47, %s6798_s30 }
 0x954   :  { %v9955_v51 = vpop.permute.xlu2 %4753  ;;  %v3382_v39 = vpop.permute.xlu1 %3381 }
 0x955   :  { %14270 = vst [vmem:[#allocation7_spill] sm:$0xff] %v9955_v51  ;;  %v9958_v9 = vpop.permute.xlu0 %4737  ;;  %v9963_v28 = vsel %vm3387_vm10, %v9863_v38, %v3382_v39  ;;  %v9991_v20 = vsel %vm3387_vm10, %v3382_v39, %v9843_v49 }
 0x956   :  { %14271 = vst [vmem:[#allocation43_spill] sm:$0xff] %v9958_v9  ;;  %v9967_v46 = vmul.f32 %v3393_v19, %v9963_v28  ;;  %v10007_v23 = vmul.f32 %v3394_v14, %v9991_v20 }
 0x957   :  { %14272 = vst [vmem:[#allocation88_spill] sm:$0xff] %v9963_v28  ;;  %v3644_v28 = vperm.slane %v9946_v26, 1 }
 0x958   :  { %14273 = vst [vmem:[#allocation38_spill] sm:$0xff] %v9967_v46  ;;  %3402 = vrot.lane.b32.xlu0 %v9967_v46, %s6800_s23 }
 0x959   :  { %14281 = vst [vmem:[#allocation79_spill] sm:$0xff] %v9991_v20 }
 0x95a   :  { %5573 = vrot.lane.b32.xlu2 %v9781_v47, %s6799_s20  ;;  %14286 = vst [vmem:[#allocation52_spill] sm:$0xff] %v10007_v23 }
 0x95c   :  { %v3386_v19 = vpop.permute.xlu2 %3385 }
 0x95d   :  { %v9996_v17 = vsel %vm3387_vm10, %v3386_v19, %v9863_v38  ;;  %v10001_v36 = vpop.permute.xlu0 %4948  ;;  %v3395_v38 = vperm.slane %v10004_v12, 0  ;;  %v10019_v39 = vsel %vm3387_vm10, %v9843_v49, %v3386_v19  ;;  %v3633_v19 = vpop.permute.xlu1 %3632 }
 0x95e   :  { %14282 = vst [vmem:[#allocation70_spill] sm:$0xff] %v9996_v17  ;;  %v9999_v42 = vmul.f32 %v3392_v4, %v9996_v17  ;;  %v3641_v5 = vsel %vm3638_vm13, %v9875_v24, %v3633_v19  ;;  %v3640_v10 = vsel %vm3638_vm13, %v3633_v19, %v9855_v7 }
 0x95f   :  { %14283 = vst [vmem:[#allocation71_spill] sm:$0xff] %v10001_v36  ;;  %v10024_v4 = vmul.f32 %v3395_v38, %v10019_v39  ;;  %v10131_v47 = vmul.f32 %v3644_v28, %v3641_v5 }
 0x960   :  { %3400 = vrot.lane.b32.xlu1 %v9999_v42, %s6800_s23  ;;  %3421 = vrot.lane.b32.xlu0 %v9999_v42, %s6792_s4  ;;  %14287 = vst [vmem:[#allocation64_spill] sm:$0xff] %v10019_v39 }
 0x961   :  { %14305 = vst [vmem:[#allocation81_spill] sm:$0xff] %v10131_v47 }
 0x962   :  { %3404 = vrot.lane.b32.xlu2 %v10007_v23, %s6800_s23 }
 0x964   :  { %v10021_v29 = vpop.permute.xlu2 %3636 }
 0x965   :  { %v10026_v14 = vpop.permute.xlu0 %5259  ;;  %v10062_v52 = vpop.permute.xlu1 %4036  ;;  %v3642_v28 = vsel %vm3638_vm13, %v10021_v29, %v9875_v24 }
 0x966   :  { %14288 = vst [vmem:[#allocation77_spill] sm:$0xff] %v10026_v14  ;;  %v4044_v3 = vsel %vm4042_vm9, %v10062_v52, %v9867_v22 }
 0x967   :  { %v10273_v41 = vmul.f32 %v4049_v21, %v4044_v3  ;;  %v4045_v3 = vsel %vm4042_vm9, %v9885_v33, %v10062_v52 }
 0x968   :  { %3406 = vrot.lane.b32.xlu1 %v10024_v4, %s6800_s23  ;;  %3427 = vrot.lane.b32.xlu0 %v10024_v4, %s6792_s4 }
 0x969   :  { %14324 = vst [vmem:[#allocation104_spill] sm:$0xff] %v10273_v41 }
 0x96a   :  { %3423 = vrot.lane.b32.xlu2 %v9967_v46, %s6792_s4 }
 0x96c   :  { %v10034_v61 = vpop.permute.xlu2 %4040 }
 0x96d   :  { %v10040_v49 = vpop.permute.xlu0 %5571  ;;  %v10076_v16 = vpop.permute.xlu1 %4348 }
 0x96e   :  { %14289 = vst [vmem:[#allocation80_spill] sm:$0xff] %v10040_v49 }
 0x970   :  { %3425 = vrot.lane.b32.xlu1 %v10007_v23, %s6792_s4  ;;  %3446 = vrot.lane.b32.xlu0 %v10007_v23, %s6791_s14 }
 0x972   :  { %3442 = vrot.lane.b32.xlu2 %v9999_v42, %s6791_s14 }
 0x974   :  { %v10044_v13 = vpop.permute.xlu2 %4352 }
 0x975   :  { %v10052_v38 = vpop.permute.xlu0 %4675  ;;  %v10088_v6 = vpop.permute.xlu1 %4659 }
 0x976   :  { %14290 = vst [vmem:[#allocation87_spill] sm:$0xff] %v10052_v38 }
 0x977   :  { %14297 = vst [vmem:[#allocation56_spill] sm:$0xff] %v10088_v6 }
 0x978   :  { %3444 = vrot.lane.b32.xlu1 %v9967_v46, %s6791_s14  ;;  %3465 = vrot.lane.b32.xlu0 %v9967_v46, %s6779_s21 }
 0x97a   :  { %3448 = vrot.lane.b32.xlu2 %v10024_v4, %s6791_s14 }
 0x97c   :  { %v10054_v60 = vpop.permute.xlu2 %4663 }
 0x97d   :  { %14291 = vst [vmem:[#allocation62_spill] sm:$0xff] %v10054_v60  ;;  %v10066_v30 = vpop.permute.xlu0 %4695  ;;  %v10104_v39 = vpop.permute.xlu1 %4679  ;;  %v4048_v60 = vperm.slane %v9946_v26, 2 }
 0x97e   :  { %14293 = vst [vmem:[#allocation69_spill] sm:$0xff] %v10066_v30 }
 0x97f   :  { %14300 = vst [vmem:[#allocation74_spill] sm:$0xff] %v10104_v39  ;;  %v10292_v37 = vmul.f32 %v4048_v60, %v4045_v3  ;;  %v4046_v60 = vsel %vm4042_vm9, %v10034_v61, %v9885_v33  ;;  %v4050_v39 = vperm.slane %v10004_v12, 2  ;;  %v4043_v33 = vsel %vm4042_vm9, %v9867_v22, %v10034_v61 }
 0x980   :  { %3463 = vrot.lane.b32.xlu1 %v9999_v42, %s6779_s21  ;;  %3483 = vrot.lane.b32.xlu0 %v9999_v42, %s6781_s22  ;;  %v10311_v3 = vmul.f32 %v4047_v45, %v4046_v60 }
 0x981   :  { %14327 = vst [vmem:[#allocation107_spill] sm:$0xff] %v10292_v37  ;;  %v10330_v60 = vmul.f32 %v4050_v39, %v4043_v33 }
 0x982   :  { %3467 = vrot.lane.b32.xlu2 %v10007_v23, %s6779_s21  ;;  %14330 = vst [vmem:[#allocation110_spill] sm:$0xff] %v10311_v3 }
 0x983   :  { %14333 = vst [vmem:[#allocation113_spill] sm:$0xff] %v10330_v60 }
 0x984   :  { %v10064_v1 = vpop.permute.xlu2 %4691 }
 0x985   :  { %14292 = vst [vmem:[#allocation53_spill] sm:$0xff] %v10064_v1  ;;  %v10078_v40 = vpop.permute.xlu0 %4723  ;;  %v10124_v31 = vpop.permute.xlu1 %4707  ;;  %v10135_v1 = vmul.f32 %v3645_v35, %v3640_v10 }
 0x986   :  { %14295 = vst [vmem:[#allocation55_spill] sm:$0xff] %v10078_v40 }
 0x987   :  { %14303 = vst [vmem:[#allocation6_spill] sm:$0xff] %v10124_v31 }
 0x988   :  { %3469 = vrot.lane.b32.xlu1 %v10024_v4, %s6779_s21  ;;  %3489 = vrot.lane.b32.xlu0 %v10024_v4, %s6781_s22  ;;  %14307 = vst [vmem:[#allocation25_spill] sm:$0xff] %v10135_v1 }
 0x98a   :  { %3485 = vrot.lane.b32.xlu2 %v9967_v46, %s6781_s22 }
 0x98c   :  { %v10074_v44 = vpop.permute.xlu2 %4711 }
 0x98d   :  { %14294 = vst [vmem:[#allocation60_spill] sm:$0xff] %v10074_v44  ;;  %v10094_v25 = vpop.permute.xlu0 %4743  ;;  %v10152_v35 = vpop.permute.xlu1 %4727 }
 0x98e   :  { %14298 = vst [vmem:[#allocation90_spill] sm:$0xff] %v10094_v25 }
 0x98f   :  { %14310 = vst [vmem:[#allocation36_spill] sm:$0xff] %v10152_v35 }
 0x990   :  { %3487 = vrot.lane.b32.xlu1 %v10007_v23, %s6781_s22  ;;  %3507 = vrot.lane.b32.xlu0 %v10007_v23, %s6794_s5 }
 0x992   :  { %3503 = vrot.lane.b32.xlu2 %v9999_v42, %s6794_s5 }
 0x994   :  { %v10086_v53 = vpop.permute.xlu2 %4739 }
 0x995   :  { %14296 = vst [vmem:[#allocation54_spill] sm:$0xff] %v10086_v53  ;;  %v10108_v17 = vpop.permute.xlu0 %4771 }
 0x996   :  { %14301 = vst [vmem:[#allocation39_spill] sm:$0xff] %v10108_v17 }
 0x998   :  { %3505 = vrot.lane.b32.xlu1 %v9967_v46, %s6794_s5  ;;  %3526 = vrot.lane.b32.xlu0 %v9967_v46, %s6801_s25 }
 0x99a   :  { %3509 = vrot.lane.b32.xlu2 %v10024_v4, %s6794_s5 }
 0x99c   :  { %v10098_v56 = vpop.permute.xlu2 %4759 }
 0x99d   :  { %14299 = vst [vmem:[#allocation50_spill] sm:$0xff] %v10098_v56  ;;  %v10133_v6 = vpop.permute.xlu0 %4954  ;;  %v3643_v56 = vperm.slane %v9971_v2, 1 }
 0x99e   :  { %14306 = vst [vmem:[#allocation28_spill] sm:$0xff] %v10133_v6 }
 0x99f   :  { %v10150_v10 = vmul.f32 %v3643_v56, %v3642_v28  ;;  %v3639_v56 = vsel %vm3638_vm13, %v9855_v7, %v10021_v29 }
 0x9a0   :  { %3524 = vrot.lane.b32.xlu1 %v9999_v42, %s6801_s25  ;;  %3545 = vrot.lane.b32.xlu0 %v9999_v42, %s6796_s0  ;;  %v10169_v28 = vmul.f32 %v3646_v54, %v3639_v56 }
 0x9a1   :  { %14309 = vst [vmem:[#allocation37_spill] sm:$0xff] %v10150_v10 }
 0x9a2   :  { %3528 = vrot.lane.b32.xlu2 %v10007_v23, %s6801_s25  ;;  %14313 = vst [vmem:[#allocation93_spill] sm:$0xff] %v10169_v28 }
 0x9a4   :  { %v10110_v20 = vpop.permute.xlu2 %4950 }
 0x9a5   :  { %14302 = vst [vmem:[#allocation23_spill] sm:$0xff] %v10110_v20  ;;  %v10154_v19 = vpop.permute.xlu0 %5265 }
 0x9a6   :  { %14311 = vst [vmem:[#allocation47_spill] sm:$0xff] %v10154_v19 }
 0x9a8   :  { %3530 = vrot.lane.b32.xlu1 %v10024_v4, %s6801_s25  ;;  %3551 = vrot.lane.b32.xlu0 %v10024_v4, %s6796_s0 }
 0x9aa   :  { %3547 = vrot.lane.b32.xlu2 %v9967_v46, %s6796_s0  ;;  %v14345_v46 = vld [vmem:[#allocation30_spill] sm:$0xff] }
 0x9ab   :  { %vm3207_vm10 = vcmp.ge.s32.totalorder %v14345_v46, 4  ;;  %vm3227_vm5 = vcmp.ge.s32.totalorder %v14345_v46, 3  ;;  %vm3247_vm0 = vcmp.ge.s32.totalorder %v14345_v46, 2  ;;  %vm3295_vm13 = vcmp.lt.s32.totalorder %v14345_v46, 14 }
 0x9ac   :  { %v10126_v49 = vpop.permute.xlu2 %5261 }
 0x9ad   :  { %14304 = vst [vmem:[#allocation83_spill] sm:$0xff] %v10126_v49  ;;  %v10177_v63 = vpop.permute.xlu0 %5577 }
 0x9ae   :  { %14315 = vst [vmem:[#allocation95_spill] sm:$0xff] %v10177_v63 }
 0x9b0   :  { %3549 = vrot.lane.b32.xlu1 %v10007_v23, %s6796_s0  ;;  %3653 = vrot.lane.b32.xlu0 %v10131_v47, %s6800_s23 }
 0x9b2   :  { %3655 = vrot.lane.b32.xlu2 %v10135_v1, %s6800_s23 }
 0x9b4   :  { %v10148_v5 = vpop.permute.xlu2 %5573 }
 0x9b5   :  { %14308 = vst [vmem:[#allocation51_spill] sm:$0xff] %v10148_v5  ;;  %v10171_v5 = vpop.permute.xlu1 %4755 }
 0x9b6   :  { %14314 = vst [vmem:[#allocation94_spill] sm:$0xff] %v10171_v5 }
 0x9b8   :  { %3651 = vrot.lane.b32.xlu1 %v10150_v10, %s6800_s23  ;;  %3667 = vrot.lane.b32.xlu0 %v10150_v10, %s6792_s4 }
 0x9ba   :  { %3669 = vrot.lane.b32.xlu2 %v10131_v47, %s6792_s4 }
 0x9bc   :  { %v10167_v24 = vpop.permute.xlu2 %3404 }
 0x9bd   :  { %14312 = vst [vmem:[#allocation92_spill] sm:$0xff] %v10167_v24  ;;  %v10187_v54 = vpop.permute.xlu1 %4775 }
 0x9be   :  { %14316 = vst [vmem:[#allocation96_spill] sm:$0xff] %v10187_v54 }
 0x9c0   :  { %3657 = vrot.lane.b32.xlu1 %v10169_v28, %s6800_s23  ;;  %3673 = vrot.lane.b32.xlu0 %v10169_v28, %s6792_s4 }
 0x9c2   :  { %3683 = vrot.lane.b32.xlu2 %v10150_v10, %s6791_s14 }
 0x9c4   :  { %v10181_v57 = vpop.permute.xlu2 %3423 }
 0x9c8   :  { %3671 = vrot.lane.b32.xlu1 %v10135_v1, %s6792_s4  ;;  %3687 = vrot.lane.b32.xlu0 %v10135_v1, %s6791_s14 }
 0x9ca   :  { %3689 = vrot.lane.b32.xlu2 %v10169_v28, %s6791_s14  ;;  %v10191_v7 = vpop.permute.xlu0 %3402 }
 0x9cb   :  { %14317 = vst [vmem:[#allocation97_spill] sm:$0xff] %v10191_v7  ;;  %v14346_v7 = vld [vmem:[#allocation31_spill] sm:$0xff] }
 0x9cc   :  { %v10193_v29 = vpop.permute.xlu2 %3442  ;;  %vm3205_vm15 = vcmp.ge.s32.totalorder %v14346_v7, 4  ;;  %vm3225_vm1 = vcmp.ge.s32.totalorder %v14346_v7, 3  ;;  %vm3245_vm11 = vcmp.ge.s32.totalorder %v14346_v7, 2 }
 0x9cd   :  { %14318 = vst [vmem:[#allocation98_spill] sm:$0xff] %v10193_v29 }
 0x9d0   :  { %3685 = vrot.lane.b32.xlu1 %v10131_v47, %s6791_s14  ;;  %3701 = vrot.lane.b32.xlu0 %v10131_v47, %s6779_s21 }
 0x9d2   :  { %v10199_v56 = vpop.permute.xlu1 %3400  ;;  %3703 = vrot.lane.b32.xlu2 %v10135_v1, %s6779_s21  ;;  %v10203_v63 = vpop.permute.xlu0 %3421 }
 0x9d3   :  { %14319 = vst [vmem:[#allocation99_spill] sm:$0xff] %v10199_v56 }
 0x9d4   :  { %v10205_v54 = vpop.permute.xlu2 %3448 }
 0x9d8   :  { %3699 = vrot.lane.b32.xlu1 %v10150_v10, %s6779_s21  ;;  %3715 = vrot.lane.b32.xlu0 %v10150_v10, %s6781_s22 }
 0x9da   :  { %v10211_v34 = vpop.permute.xlu1 %3406  ;;  %3717 = vrot.lane.b32.xlu2 %v10131_v47, %s6781_s22  ;;  %v10215_v17 = vpop.permute.xlu0 %3427 }
 0x9dc   :  { %v10217_v8 = vpop.permute.xlu2 %3467 }
 0x9e0   :  { %3705 = vrot.lane.b32.xlu1 %v10169_v28, %s6779_s21  ;;  %3721 = vrot.lane.b32.xlu0 %v10169_v28, %s6781_s22 }
 0x9e2   :  { %v10223_v53 = vpop.permute.xlu1 %3425  ;;  %3731 = vrot.lane.b32.xlu2 %v10150_v10, %s6794_s5  ;;  %v10227_v0 = vpop.permute.xlu0 %3446 }
 0x9e3   :  { %14320 = vst [vmem:[#allocation100_spill] sm:$0xff] %v10227_v0 }
 0x9e4   :  { %v10229_v25 = vpop.permute.xlu2 %3485 }
 0x9e8   :  { %3719 = vrot.lane.b32.xlu1 %v10135_v1, %s6781_s22  ;;  %3735 = vrot.lane.b32.xlu0 %v10135_v1, %s6794_s5 }
 0x9ea   :  { %v10235_v9 = vpop.permute.xlu1 %3444  ;;  %3737 = vrot.lane.b32.xlu2 %v10169_v28, %s6794_s5  ;;  %v10239_v31 = vpop.permute.xlu0 %3465 }
 0x9eb   :  { %14321 = vst [vmem:[#allocation101_spill] sm:$0xff] %v10235_v9 }
 0x9ec   :  { %v10241_v32 = vpop.permute.xlu2 %3503 }
 0x9f0   :  { %3733 = vrot.lane.b32.xlu1 %v10131_v47, %s6794_s5  ;;  %3749 = vrot.lane.b32.xlu0 %v10131_v47, %s6801_s25 }
 0x9f2   :  { %v10247_v51 = vpop.permute.xlu1 %3463  ;;  %3751 = vrot.lane.b32.xlu2 %v10135_v1, %s6801_s25  ;;  %v10251_v5 = vpop.permute.xlu0 %3483 }
 0x9f4   :  { %v10253_v50 = vpop.permute.xlu2 %3509 }
 0x9f5   :  { %14322 = vst [vmem:[#allocation102_spill] sm:$0xff] %v10253_v50 }
 0x9f8   :  { %3747 = vrot.lane.b32.xlu1 %v10150_v10, %s6801_s25  ;;  %3763 = vrot.lane.b32.xlu0 %v10150_v10, %s6796_s0 }
 0x9fa   :  { %v10260_v11 = vpop.permute.xlu1 %3469  ;;  %3765 = vrot.lane.b32.xlu2 %v10131_v47, %s6796_s0  ;;  %v10264_v30 = vpop.permute.xlu0 %3489  ;;  %v6496_v47 = vsel %vm3205_vm15, 1.0, %v14252_v27 }
 0x9fc   :  { %v10267_v35 = vpop.permute.xlu2 %3528 }
 0x9fd   :  { %14323 = vst [vmem:[#allocation103_spill] sm:$0xff] %v10267_v35 }
 0xa00   :  { %3753 = vrot.lane.b32.xlu1 %v10169_v28, %s6801_s25  ;;  %3769 = vrot.lane.b32.xlu0 %v10169_v28, %s6796_s0  ;;  %v6506_v28 = vsel %vm3247_vm0, 1.0, %v14252_v27  ;;  %vm3313_vm0 = vcmp.lt.s32.totalorder %v14346_v7, 13 }
 0xa02   :  { %v10280_v44 = vpop.permute.xlu1 %3487  ;;  %4059 = vrot.lane.b32.xlu2 %v10273_v41, %s6800_s23  ;;  %v10284_v18 = vpop.permute.xlu0 %3507 }
 0xa03   :  { %14325 = vst [vmem:[#allocation105_spill] sm:$0xff] %v10284_v18 }
 0xa04   :  { %v10290_v21 = vpop.permute.xlu2 %3547 }
 0xa05   :  { %14326 = vst [vmem:[#allocation106_spill] sm:$0xff] %v10290_v21 }
 0xa08   :  { %3767 = vrot.lane.b32.xlu1 %v10135_v1, %s6796_s0  ;;  %4057 = vrot.lane.b32.xlu0 %v10292_v37, %s6800_s23  ;;  %v6498_v1 = vsel %vm3207_vm10, 1.0, %v14252_v27  ;;  %vm3293_vm10 = vcmp.lt.s32.totalorder %v14346_v7, 14 }
 0xa0a   :  { %v10299_v40 = vpop.permute.xlu1 %3505  ;;  %4073 = vrot.lane.b32.xlu2 %v10292_v37, %s6792_s4  ;;  %v10303_v38 = vpop.permute.xlu0 %3526 }
 0xa0b   :  { %14328 = vst [vmem:[#allocation108_spill] sm:$0xff] %v10299_v40 }
 0xa0c   :  { %v10309_v52 = vpop.permute.xlu2 %3655 }
 0xa0d   :  { %14329 = vst [vmem:[#allocation109_spill] sm:$0xff] %v10309_v52 }
 0xa10   :  { %4055 = vrot.lane.b32.xlu1 %v10311_v3, %s6800_s23  ;;  %4071 = vrot.lane.b32.xlu0 %v10311_v3, %s6792_s4 }
 0xa12   :  { %v10318_v43 = vpop.permute.xlu1 %3524  ;;  %4087 = vrot.lane.b32.xlu2 %v10311_v3, %s6791_s14  ;;  %v10322_v59 = vpop.permute.xlu0 %3545 }
 0xa13   :  { %14331 = vst [vmem:[#allocation111_spill] sm:$0xff] %v10322_v59 }
 0xa14   :  { %v10328_v45 = vpop.permute.xlu2 %3669 }
 0xa15   :  { %14332 = vst [vmem:[#allocation112_spill] sm:$0xff] %v10328_v45 }
 0xa18   :  { %4061 = vrot.lane.b32.xlu1 %v10330_v60, %s6800_s23  ;;  %4077 = vrot.lane.b32.xlu0 %v10330_v60, %s6792_s4 }
 0xa1a   :  { %v10336_v19 = vpop.permute.xlu1 %3530  ;;  %4093 = vrot.lane.b32.xlu2 %v10330_v60, %s6791_s14  ;;  %v10340_v14 = vpop.permute.xlu0 %3551 }
 0xa1b   :  { %14334 = vst [vmem:[#allocation114_spill] sm:$0xff] %v10336_v19 }
 0xa1c   :  { %14335 = vst [vmem:[#allocation115_spill] sm:$0xff] %v10340_v14  ;;  %v10342_v49 = vpop.permute.xlu2 %3683 }
 0xa1d   :  { %14336 = vst [vmem:[#allocation116_spill] sm:$0xff] %v10342_v49 }
 0xa20   :  { %4075 = vrot.lane.b32.xlu1 %v10273_v41, %s6792_s4  ;;  %4091 = vrot.lane.b32.xlu0 %v10273_v41, %s6791_s14 }
 0xa22   :  { %v10348_v22 = vpop.permute.xlu1 %3549  ;;  %4107 = vrot.lane.b32.xlu2 %v10273_v41, %s6779_s21  ;;  %v10352_v39 = vpop.permute.xlu0 %3653 }
 0xa23   :  { %14337 = vst [vmem:[#allocation117_spill] sm:$0xff] %v10348_v22  ;;  %v6502_v22 = vsel %vm3227_vm5, 1.0, %v14252_v27  ;;  %vm14360_vm5 = vcmask 1044480  }
 0xa24   :  { %14338 = vst [vmem:[#allocation118_spill] sm:$0xff] %v10352_v39  ;;  %v10354_v61 = vpop.permute.xlu2 %3689  ;;  %v6500_v39 = vsel %vm3225_vm1, 1.0, %v14252_v27  ;;  %v3351_v10 = vsel %vm14350_vm12, %v6498_v1, %v6502_v22  ;;  %v14354_v22 = vld [vmem:[#allocation41_spill] sm:$0xff]  ;;  %vm14366_vm12 = vcmp.lt.s32.totalorder %v7004_v15, 16 }
 0xa25   :  { %14339 = vst [vmem:[#allocation119_spill] sm:$0xff] %v10354_v61  ;;  %v3355_v52 = vsel %vm263_vm6, %v3351_v10, %v6506_v28  ;;  %v14357_v10 = vld [vmem:[#allocation9_spill] sm:$0xff]  ;;  %v4360_v61 = vperm.slane %v9976_v48, 3  ;;  %v6520_v48 = vsel %vm3313_vm0, 1.0, %v14252_v27 }
 0xa26   :  { %vm3296_vm9 = vcmp.lt.s32.totalorder %v14357_v10, 14  ;;  %vm3316_vm1 = vcmp.lt.s32.totalorder %v14357_v10, 13 }
 0xa28   :  { %4089 = vrot.lane.b32.xlu1 %v10292_v37, %s6791_s14  ;;  %4105 = vrot.lane.b32.xlu0 %v10292_v37, %s6779_s21 }
 0xa2a   :  { %v10360_v33 = vpop.permute.xlu1 %3651  ;;  %4121 = vrot.lane.b32.xlu2 %v10292_v37, %s6781_s22  ;;  %v10364_v55 = vpop.permute.xlu0 %3667 }
 0xa2b   :  { %14340 = vst [vmem:[#allocation120_spill] sm:$0xff] %v10360_v33 }
 0xa2c   :  { %14341 = vst [vmem:[#allocation121_spill] sm:$0xff] %v10364_v55  ;;  %v10366_v6 = vpop.permute.xlu2 %3703  ;;  %v4355_v55 = vsel %vm14366_vm12, %v10076_v16, %v9879_v58 }
 0xa2d   :  { %14342 = vst [vmem:[#allocation122_spill] sm:$0xff] %v10366_v6 }
 0xa30   :  { %4103 = vrot.lane.b32.xlu1 %v10311_v3, %s6779_s21  ;;  %4119 = vrot.lane.b32.xlu0 %v10311_v3, %s6781_s22 }
 0xa32   :  { %v10372_v36 = vpop.permute.xlu1 %3657  ;;  %4135 = vrot.lane.b32.xlu2 %v10311_v3, %s6794_s5  ;;  %v10376_v20 = vpop.permute.xlu0 %3673 }
 0xa33   :  { %14343 = vst [vmem:[#allocation123_spill] sm:$0xff] %v10372_v36  ;;  %v14356_v36 = vld [vmem:[#allocation42_spill] sm:$0xff] }
 0xa34   :  { %14344 = vst [vmem:[#allocation124_spill] sm:$0xff] %v10376_v20  ;;  %v10378_v23 = vpop.permute.xlu2 %3717 }
 0xa38   :  { %4109 = vrot.lane.b32.xlu1 %v10330_v60, %s6779_s21  ;;  %4125 = vrot.lane.b32.xlu0 %v10330_v60, %s6781_s22 }
 0xa3a   :  { %v10388_v9 = vpop.permute.xlu1 %3671  ;;  %4141 = vrot.lane.b32.xlu2 %v10330_v60, %s6794_s5  ;;  %v10392_v18 = vpop.permute.xlu0 %3687 }
 0xa3b   :  { %14347 = vst [vmem:[#allocation30_spill] sm:$0xff] %v10388_v9  ;;  %v3349_v9 = vsel %vm14351_vm4, %v6496_v47, %v6500_v39  ;;  %v3359_v47 = vsel %vm268_vm7, %v3355_v52, %v14354_v22  ;;  %v6519_v52 = vsel %vm3296_vm9, 1.0, %v14252_v27  ;;  %vm14368_vm4 = vcmask 1046528  }
 0xa3c   :  { %14348 = vst [vmem:[#allocation31_spill] sm:$0xff] %v10392_v18  ;;  %v10400_v14 = vpop.permute.xlu2 %3731  ;;  %v6504_v18 = vsel %vm3245_vm11, 1.0, %v14252_v27  ;;  %vm14363_vm11 = vmmov %vm14360_vm5 }
 0xa3d   :  { %14349 = vst [vmem:[#allocation125_spill] sm:$0xff] %v10400_v14  ;;  %v3353_v45 = vsel %vm263_vm6, %v3349_v9, %v6504_v18  ;;  %v3363_v18 = vsel %vm273_vm8, %v3359_v47, 1.0  ;;  %v14358_v9 = vld [vmem:[#allocation12_spill] sm:$0xff]  ;;  %v14365_v14 = vld [vmem:[#allocation13_spill] sm:$0xff]  ;;  %vm14371_vm9 = vmmov %vm14368_vm4 }
 0xa3e   :  { %v3357_v33 = vsel %vm268_vm7, %v3353_v45, %v14356_v36  ;;  %vm3294_vm6 = vcmp.lt.s32.totalorder %v14358_v9, 14  ;;  %v6518_v36 = vsel %vm3295_vm13, 1.0, %v14252_v27  ;;  %vm3315_vm7 = vcmp.lt.s32.totalorder %v14345_v46, 13  ;;  %v14359_v45 = vld [vmem:[#allocation45_spill] sm:$0xff]  ;;  %vm14369_vm13 = vmmov %vm14368_vm4 }
 0xa3f   :  { %v3361_v28 = vsel %vm273_vm8, %v3357_v33, 1.0  ;;  %v3367_v22 = vsel %vm14360_vm5, %v3363_v18, %v14359_v45  ;;  %v6517_v47 = vsel %vm3294_vm6, 1.0, %v14252_v27  ;;  %vm3314_vm15 = vcmp.lt.s32.totalorder %v14358_v9, 13  ;;  %vm14372_vm6 = vmmov %vm14368_vm4 }
 0xa40   :  { %4123 = vrot.lane.b32.xlu1 %v10273_v41, %s6781_s22  ;;  %4139 = vrot.lane.b32.xlu0 %v10273_v41, %s6794_s5  ;;  %v6522_v45 = vsel %vm3315_vm7, 1.0, %v14252_v27  ;;  %v3371_v19 = vsel %vm283_vm2, %v3367_v22, %v6518_v36  ;;  %v3370_v20 = vsel %vm283_vm2, %v14365_v14, %v6517_v47  ;;  %v10475_v14 = vmul.f32 %v4360_v61, %v4355_v55 }
 0xa41   :  { %v10470_v36 = vsel %vm14368_vm4, %v3371_v19, %v6522_v45  ;;  %v4358_v19 = vperm.slane %v9971_v2, 3  ;;  %vm3450_vm7 = vcmp.lt.s32.totalorder %v7004_v15, 2  ;;  %vm3408_vm5 = vcmp.lt.s32.totalorder %v7004_v15, 4 }
 0xa42   :  { %v10412_v6 = vpop.permute.xlu1 %3685  ;;  %4155 = vrot.lane.b32.xlu2 %v10273_v41, %s6801_s25  ;;  %v10416_v1 = vpop.permute.xlu0 %3701  ;;  %14370 = vst [vmem:[#allocation12_spill] sm:$0xff] %v10475_v14  ;;  %v10505_v61 = vperm.slane %v10470_v36, 0  ;;  %vm3335_vm4 = vcmp.lt.s32.totalorder %v14345_v46, 12 }
 0xa43   :  { %14352 = vst [vmem:[#allocation126_spill] sm:$0xff] %v10412_v6 }
 0xa44   :  { %14353 = vst [vmem:[#allocation127_spill] sm:$0xff] %v10416_v1  ;;  %v10420_v39 = vpop.permute.xlu2 %3737  ;;  %v6516_v1 = vsel %vm3293_vm10, 1.0, %v14252_v27  ;;  %vm14384_vm10 = vmmov %vm14366_vm12  ;;  %vm3511_vm12 = vcmp.lt.s32.totalorder %v7004_v15, 126 }
 0xa45   :  { %14355 = vst [vmem:[#allocation41_spill] sm:$0xff] %v10420_v39  ;;  %v14362_v39 = vld [vmem:[#allocation46_spill] sm:$0xff]  ;;  %vm14395_vm0 = vmmov %vm14384_vm10 }
 0xa46   :  { %v3365_v18 = vsel %vm14363_vm11, %v3361_v28, %v14362_v39  ;;  %v6523_v39 = vsel %vm3316_vm1, 1.0, %v14252_v27  ;;  %v14367_v28 = vld [vmem:[#allocation11_spill] sm:$0xff]  ;;  %14378 = vst [vmem:[#allocation129_spill] sm:$0xff] %v10505_v61  ;;  %vm3334_vm1 = vcmp.lt.s32.totalorder %v14358_v9, 12  ;;  %vm14396_vm11 = vmmov %vm14395_vm0 }
 0xa47   :  { %v3372_v59 = vsel %vm283_vm2, %v14367_v28, %v6519_v52 }
 0xa48   :  { %4137 = vrot.lane.b32.xlu1 %v10292_v37, %s6794_s5  ;;  %4153 = vrot.lane.b32.xlu0 %v10292_v37, %s6801_s25  ;;  %v10482_v52 = vsel %vm14371_vm9, %v3372_v59, %v6523_v39  ;;  %vm14412_vm9 = vcmp.lt.s32.totalorder %v7004_v15, 1 }
 0xa49   :  { %v10510_v45 = vperm.slane %v10482_v52, 0  ;;  %v10515_v28 = vperm.slane %v10482_v52, 2  ;;  %v10527_v2 = vperm.slane %v10482_v52, 1  ;;  %v10572_v9 = vperm.slane %v10482_v52, 6 }
 0xa4a   :  { %v10441_v33 = vpop.permute.xlu1 %3699  ;;  %4169 = vrot.lane.b32.xlu2 %v10292_v37, %s6796_s0  ;;  %v10445_v6 = vpop.permute.xlu0 %3715  ;;  %v6521_v37 = vsel %vm3314_vm15, 1.0, %v14252_v27  ;;  %vm3333_vm15 = vcmp.lt.s32.totalorder %v14346_v7, 12  ;;  %v4357_v7 = vsel %vm14396_vm11, %v10044_v13, %v9895_v62  ;;  %v3474_v46 = vsel %vm14412_vm9, %v10260_v11, %v10247_v51 }
 0xa4b   :  { %14361 = vst [vmem:[#allocation42_spill] sm:$0xff] %v10441_v33  ;;  %v10473_v22 = vsel %vm14369_vm13, %v3370_v20, %v6521_v37  ;;  %v4361_v37 = vperm.slane %v10004_v12, 3  ;;  %v10595_v33 = vmul.f32 %v4358_v19, %v4357_v7  ;;  %vm3532_vm13 = vcmp.lt.s32.totalorder %v7004_v15, 125 }
 0xa4c   :  { %v10454_v49 = vpop.permute.xlu2 %3751  ;;  %v10496_v59 = vperm.slane %v10473_v22, 1  ;;  %14380 = vst [vmem:[#allocation131_spill] sm:$0xff] %v10510_v45  ;;  %v10530_v61 = vperm.slane %v10473_v22, 2  ;;  %v3494_v7 = vsel %vm575_vm3, %v10264_v30, %v10251_v5 }
 0xa4d   :  { %14364 = vst [vmem:[#allocation9_spill] sm:$0xff] %v10454_v49  ;;  %v3369_v49 = vsel %vm283_vm2, %v3365_v18, %v6516_v1  ;;  %v4359_v1 = vperm.slane %v9946_v26, 3  ;;  %vm3429_vm2 = vcmp.lt.s32.totalorder %v7004_v15, 3  ;;  %v4356_v26 = vsel %vm14384_vm10, %v9895_v62, %v10076_v16 }
 0xa4e   :  { %v3373_v47 = vsel %vm14372_vm6, %v3369_v49, %v6520_v48  ;;  %14375 = vst [vmem:[#allocation13_spill] sm:$0xff] %v10496_v59  ;;  %v10499_v48 = vperm.slane %v10470_v36, 1  ;;  %v10502_v49 = vperm.slane %v10473_v22, 0  ;;  %v10539_v59 = vperm.slane %v10473_v22, 5 }
 0xa4f   :  { %v10507_v18 = vperm.slane %v3373_v47, 0  ;;  %v10512_v39 = vperm.slane %v3373_v47, 2  ;;  %14382 = vst [vmem:[#allocation133_spill] sm:$0xff] %v10515_v28  ;;  %v10524_v12 = vperm.slane %v3373_v47, 1  ;;  %v10543_v16 = vperm.slane %v10473_v22, 3 }
 0xa50   :  { %4151 = vrot.lane.b32.xlu1 %v10311_v3, %s6801_s25  ;;  %4167 = vrot.lane.b32.xlu0 %v10311_v3, %s6796_s0  ;;  %14376 = vst [vmem:[#allocation11_spill] sm:$0xff] %v10499_v48  ;;  %v10536_v48 = vperm.slane %v3373_v47, 5  ;;  %v3433_v62 = vsel %vm3429_vm2, %v10215_v17, %v10203_v63  ;;  %vm3336_vm6 = vcmp.lt.s32.totalorder %v14357_v10, 12  ;;  %v3412_v10 = vsel %vm3408_vm5, %v10211_v34, %v10199_v56 }
 0xa51   :  { %14377 = vst [vmem:[#allocation128_spill] sm:$0xff] %v10502_v49  ;;  %v10534_v49 = vperm.slane %v10470_v36, 2  ;;  %vm3553_vm10 = vcmp.lt.s32.totalorder %v7004_v15, 124  ;;  %v3535_v56 = vsel %vm3532_vm13, %v10318_v43, %v10303_v38 }
 0xa52   :  { %v10489_v55 = vpop.permute.xlu1 %3705  ;;  %4370 = vrot.lane.b32.xlu2 %v10475_v14, %s6800_s23  ;;  %v10493_v20 = vpop.permute.xlu0 %3721  ;;  %14379 = vst [vmem:[#allocation130_spill] sm:$0xff] %v10507_v18  ;;  %v10546_v14 = vperm.slane %v10470_v36, 3 }
 0xa53   :  { %14373 = vst [vmem:[#allocation45_spill] sm:$0xff] %v10489_v55 }
 0xa54   :  { %14374 = vst [vmem:[#allocation46_spill] sm:$0xff] %v10493_v20  ;;  %v10517_v3 = vpop.permute.xlu2 %3765  ;;  %v10548_v20 = vperm.slane %v3373_v47, 3 }
 0xa55   :  { %14381 = vst [vmem:[#allocation132_spill] sm:$0xff] %v10512_v39 }
 0xa56   :  { %14383 = vst [vmem:[#allocation134_spill] sm:$0xff] %v10517_v3  ;;  %v10562_v3 = vperm.slane %v10482_v52, 3 }
 0xa57   :  { %14385 = vst [vmem:[#allocation135_spill] sm:$0xff] %v10524_v12 }
 0xa58   :  { %14386 = vst [vmem:[#allocation136_spill] sm:$0xff] %v10527_v2  ;;  %4157 = vrot.lane.b32.xlu1 %v10330_v60, %s6801_s25  ;;  %4173 = vrot.lane.b32.xlu0 %v10330_v60, %s6796_s0  ;;  %v10586_v60 = vperm.slane %v3373_v47, 6 }
 0xa59   :  { %14387 = vst [vmem:[#allocation137_spill] sm:$0xff] %v10530_v61  ;;  %v10551_v61 = vmul.f32 %v4359_v1, %v4356_v26  ;;  %v10569_v26 = vperm.slane %v10470_v36, 6  ;;  %v10584_v1 = vperm.slane %v10482_v52, 5 }
 0xa5a   :  { %14388 = vst [vmem:[#allocation138_spill] sm:$0xff] %v10534_v49  ;;  %v4354_v49 = vsel %vm14395_vm0, %v9879_v58, %v10044_v13  ;;  %v6524_v58 = vsel %vm3333_vm15, 1.0, %v14252_v27  ;;  %v10581_v13 = vperm.slane %v10470_v36, 5  ;;  %v10589_v21 = vpop.permute.xlu1 %3719  ;;  %v10593_v55 = vpop.permute.xlu0 %3735  ;;  %vm14419_vm15 = vmmov %vm14412_vm9 }
 0xa5b   :  { %14389 = vst [vmem:[#allocation139_spill] sm:$0xff] %v10536_v48  ;;  %4384 = vrot.lane.b32.xlu2 %v10551_v61, %s6792_s4  ;;  %v10597_v35 = vmul.f32 %v4361_v37, %v4354_v49  ;;  %v10615_v49 = vperm.slane %v3373_v47, 7  ;;  %v3454_v47 = vsel %vm3450_vm7, %v10205_v54, %v10193_v29  ;;  %v3479_v29 = vmul.f32 %v10548_v20, %v3474_v46 }
 0xa5c   :  { %14390 = vst [vmem:[#allocation140_spill] sm:$0xff] %v10539_v59  ;;  %v10603_v59 = vperm.slane %v6524_v58, 0  ;;  %v10611_v19 = vpop.permute.xlu2 %4059  ;;  %v10626_v58 = vperm.slane %v10473_v22, 7 }
 0xa5d   :  { %14391 = vst [vmem:[#allocation141_spill] sm:$0xff] %v10543_v16 }
 0xa5e   :  { %14392 = vst [vmem:[#allocation142_spill] sm:$0xff] %v10546_v14 }
 0xa5f   :  { %14393 = vst [vmem:[#allocation143_spill] sm:$0xff] %v10548_v20 }
 0xa60   :  { %14394 = vst [vmem:[#allocation144_spill] sm:$0xff] %v10551_v61  ;;  %4171 = vrot.lane.b32.xlu1 %v10273_v41, %s6796_s0  ;;  %4368 = vrot.lane.b32.xlu0 %v10551_v61, %s6800_s23 }
 0xa61   :  { %14397 = vst [vmem:[#allocation145_spill] sm:$0xff] %v10562_v3 }
 0xa62   :  { %14398 = vst [vmem:[#allocation146_spill] sm:$0xff] %v10569_v26  ;;  %v6525_v26 = vsel %vm3334_vm1, 1.0, %v14252_v27  ;;  %vm14420_vm1 = vmmov %vm14412_vm9 }
 0xa63   :  { %14399 = vst [vmem:[#allocation147_spill] sm:$0xff] %v10572_v9  ;;  %v10613_v37 = vperm.slane %v6525_v26, 0  ;;  %v6526_v26 = vsel %vm3335_vm4, 1.0, %v14252_v27  ;;  %4398 = vrot.lane.b32.xlu2 %v10595_v33, %s6791_s14  ;;  %vm14426_vm0 = vmmov %vm14420_vm1 }
 0xa64   :  { %14400 = vst [vmem:[#allocation148_spill] sm:$0xff] %v10581_v13  ;;  %v10600_v13 = vperm.slane %v10473_v22, 6  ;;  %vm14439_vm11 = vmmov %vm14426_vm0 }
 0xa65   :  { %14401 = vst [vmem:[#allocation149_spill] sm:$0xff] %v10584_v1  ;;  %vm14454_vm4 = vmmov %vm14426_vm0 }
 0xa66   :  { %14402 = vst [vmem:[#allocation150_spill] sm:$0xff] %v10586_v60  ;;  %vm14464_vm9 = vmmov %vm14426_vm0 }
 0xa67   :  { %14403 = vst [vmem:[#allocation151_spill] sm:$0xff] %v10589_v21  ;;  %v3438_v21 = vmul.f32 %v10524_v12, %v3433_v62  ;;  %v10635_v62 = vperm.slane %v10470_v36, 7  ;;  %v3502_v36 = vmul.f32 %v10584_v1, %v3494_v7  ;;  %v3430_v7 = vsel %vm3429_vm2, %v10223_v53, %v10215_v17 }
 0xa68   :  { %14404 = vst [vmem:[#allocation152_spill] sm:$0xff] %v10593_v55  ;;  %v3493_v55 = vsel %vm575_vm3, %v10251_v5, %v10229_v25  ;;  %v3409_v5 = vsel %vm3408_vm5, %v10167_v24, %v10211_v34  ;;  %v6527_v34 = vsel %vm3336_vm6, 1.0, %v14252_v27  ;;  %v10657_v24 = vperm.slane %v6526_v26, 0  ;;  %v10678_v27 = vpop.permute.xlu1 %3733  ;;  %4366 = vrot.lane.b32.xlu1 %v10595_v33, %s6800_s23  ;;  %4382 = vrot.lane.b32.xlu0 %v10595_v33, %s6792_s4  ;;  %vm14466_vm6 = vmmov %vm14426_vm0 }
 0xa69   :  { %14405 = vst [vmem:[#allocation153_spill] sm:$0xff] %v10595_v33  ;;  %v3499_v22 = vmul.f32 %v10536_v48, %v3493_v55  ;;  %v3417_v55 = vmul.f32 %v10507_v18, %v3412_v10  ;;  %v10668_v46 = vmul.f32 %v10510_v45, %v3409_v5  ;;  %v3451_v26 = vsel %vm3450_vm7, %v10227_v0, %v10205_v54  ;;  %v10700_v0 = vpop.permute.xlu2 %4073  ;;  %v14448_v33 = vld [vmem:[#allocation116_spill] sm:$0xff] }
 0xa6a   :  { %14406 = vst [vmem:[#allocation154_spill] sm:$0xff] %v10597_v35  ;;  %v3473_v17 = vsel %vm14420_vm1, %v10247_v51, %v10239_v31  ;;  %v3515_v54 = vsel %vm3511_vm12, %v10253_v50, %v10241_v32  ;;  %v3582_v10 = vrot.slane %v3479_v29, 4  ;;  %v3597_v41 = vrot.slane %v3502_v36, 4  ;;  %vm14538_vm1 = vmmov %vm14426_vm0 }
 0xa6b   :  { %14407 = vst [vmem:[#allocation155_spill] sm:$0xff] %v10600_v13  ;;  %v3570_v13 = vrot.slane %v3438_v21, 4  ;;  %v10663_v21 = vsel %vm3429_vm2, %v10203_v63, %v10181_v57  ;;  %v10682_v63 = vpop.permute.xlu0 %3749  ;;  %v3594_v5 = vrot.slane %v3499_v22, 4  ;;  %v10712_v51 = vmul.f32 %v10527_v2, %v3430_v7  ;;  %4404 = vrot.lane.b32.xlu2 %v10597_v35, %s6791_s14 }
 0xa6c   :  { %14408 = vst [vmem:[#allocation156_spill] sm:$0xff] %v10603_v59  ;;  %v10715_v29 = vmul.f32 %v10515_v28, %v3451_v26  ;;  %v3471_v22 = vsel %vm14426_vm0, %v10217_v8, %v10260_v11  ;;  %v10725_v36 = vmul.f32 %v10543_v16, %v3473_v17  ;;  %v3725_v11 = vsel %vm575_vm3, %v10445_v6, %v10378_v23  ;;  %v14436_v17 = vld [vmem:[#allocation103_spill] sm:$0xff] }
 0xa6d   :  { %14409 = vst [vmem:[#allocation157_spill] sm:$0xff] %v10611_v19  ;;  %v10647_v19 = vperm.slane %v10482_v52, 7  ;;  %v3459_v52 = vmul.f32 %v10512_v39, %v3454_v47  ;;  %v3472_v47 = vsel %vm14419_vm15, %v10239_v31, %v10217_v8  ;;  %v10709_v31 = vsel %vm3429_vm2, %v10181_v57, %v10223_v53 }
 0xa6e   :  { %14410 = vst [vmem:[#allocation158_spill] sm:$0xff] %v10613_v37  ;;  %v10728_v53 = vmul.f32 %v10572_v9, %v3515_v54  ;;  %v3492_v57 = vsel %vm575_vm3, %v10229_v25, %v10280_v44  ;;  %v3541_v8 = vmul.f32 %v10615_v49, %v3535_v56  ;;  %v10745_v7 = vsel %vm273_vm8, %v9999_v42, %v3594_v5  ;;  %v14438_v54 = vld [vmem:[#allocation45_spill] sm:$0xff] }
 0xa6f   :  { %14411 = vst [vmem:[#allocation159_spill] sm:$0xff] %v10615_v49  ;;  %v10747_v26 = vperm.slane %v6527_v34, 0  ;;  %v10750_v25 = vmul.f32 %v10562_v3, %v3471_v22  ;;  %v10761_v56 = vsel %vm273_vm8, %v10024_v4, %v3597_v41  ;;  %v10767_v42 = vsel %vm575_vm3, %v10280_v44, %v10264_v30  ;;  %v14434_v34 = vld [vmem:[#allocation140_spill] sm:$0xff]  ;;  %v14441_v22 = vld [vmem:[#allocation111_spill] sm:$0xff]  ;;  %v14442_v44 = vld [vmem:[#allocation121_spill] sm:$0xff] }
 0xa70   :  { %14413 = vst [vmem:[#allocation160_spill] sm:$0xff] %v10626_v58  ;;  %v3534_v5 = vsel %vm3532_vm13, %v10303_v38, %v14436_v17  ;;  %v3748_v38 = vpop.permute.xlu1 %3747  ;;  %4372 = vrot.lane.b32.xlu1 %v10597_v35, %s6800_s23  ;;  %4388 = vrot.lane.b32.xlu0 %v10597_v35, %s6792_s4  ;;  %vm3845_vm15 = vcmask 293888  }
 0xa71   :  { %14414 = vst [vmem:[#allocation161_spill] sm:$0xff] %v10635_v62 }
 0xa72   :  { %14415 = vst [vmem:[#allocation162_spill] sm:$0xff] %v10647_v19 }
 0xa73   :  { %14416 = vst [vmem:[#allocation163_spill] sm:$0xff] %v10657_v24 }
 0xa74   :  { %14417 = vst [vmem:[#allocation164_spill] sm:$0xff] %v10663_v21  ;;  %v3757_v21 = vsel %vm3532_vm13, %v3748_v38, %v10682_v63 }
 0xa75   :  { %14418 = vst [vmem:[#allocation165_spill] sm:$0xff] %v10668_v46  ;;  %v10703_v46 = vsel %vm273_vm8, %v3417_v55, %v3570_v13  ;;  %v10722_v13 = vmul.f32 %v10546_v14, %v3472_v47  ;;  %v3514_v55 = vsel %vm3511_vm12, %v10241_v32, %v10299_v40  ;;  %v10757_v32 = vsel %vm273_vm8, %v3459_v52, %v3582_v10  ;;  %v14437_v52 = vld [vmem:[#allocation42_spill] sm:$0xff] }
 0xa76   :  { %14421 = vst [vmem:[#allocation166_spill] sm:$0xff] %v10700_v0  ;;  %v10770_v47 = vmul.f32 %v14434_v34, %v3492_v57  ;;  %v3710_v41 = vsel %vm14439_vm11, %v14438_v54, %v14437_v52  ;;  %v3520_v4 = vmul.f32 %v10586_v60, %v3514_v55  ;;  %v14440_v10 = vld [vmem:[#allocation106_spill] sm:$0xff]  ;;  %v14443_v57 = vld [vmem:[#allocation124_spill] sm:$0xff]  ;;  %v14444_v55 = vld [vmem:[#allocation125_spill] sm:$0xff]  ;;  %v3759_v50 = vmul.f32 %v3757_v21, %v10615_v49 }
 0xa77   :  { %14422 = vst [vmem:[#allocation167_spill] sm:$0xff] %v10703_v46  ;;  %v3556_v30 = vsel %vm3553_vm10, %v14441_v22, %v14440_v10  ;;  %v3678_v0 = vsel %vm3429_vm2, %v14443_v57, %v14442_v44  ;;  %v10812_v10 = vmul.f32 %v10626_v58, %v3534_v5  ;;  %v14459_v49 = vld [vmem:[#allocation12_spill] sm:$0xff]  ;;  %vm14546_vm11 = vmmov %vm14426_vm0 }
 0xa78   :  { %14423 = vst [vmem:[#allocation168_spill] sm:$0xff] %v10709_v31  ;;  %v3741_v31 = vsel %vm3511_vm12, %v14444_v55, %v10678_v27  ;;  %4418 = vrot.lane.b32.xlu2 %v14459_v49, %s6779_s21  ;;  %4386 = vrot.lane.b32.xlu1 %v14459_v49, %s6792_s4 }
 0xa79   :  { %14424 = vst [vmem:[#allocation169_spill] sm:$0xff] %v10712_v51  ;;  %v3562_v51 = vmul.f32 %v10603_v59, %v3556_v30  ;;  %4402 = vrot.lane.b32.xlu0 %v14459_v49, %s6791_s14 }
 0xa7a   :  { %14425 = vst [vmem:[#allocation170_spill] sm:$0xff] %v10715_v29  ;;  %v14445_v29 = vld [vmem:[#allocation134_spill] sm:$0xff] }
 0xa7b   :  { %14427 = vst [vmem:[#allocation171_spill] sm:$0xff] %v10722_v13  ;;  %v3727_v13 = vmul.f32 %v3725_v11, %v10536_v48  ;;  %v14446_v11 = vld [vmem:[#allocation114_spill] sm:$0xff] }
 0xa7c   :  { %14428 = vst [vmem:[#allocation172_spill] sm:$0xff] %v10725_v36  ;;  %v3764_v36 = vpop.permute.xlu0 %3763  ;;  %v3536_v48 = vsel %vm3532_vm13, %v14446_v11, %v10318_v43  ;;  %v3679_v43 = vmul.f32 %v3678_v0, %v10524_v12  ;;  %v10830_v5 = vsel %vm3532_vm13, %v14436_v17, %v14446_v11  ;;  %v14451_v0 = vld [vmem:[#allocation120_spill] sm:$0xff] }
 0xa7d   :  { %14429 = vst [vmem:[#allocation173_spill] sm:$0xff] %v10728_v53  ;;  %v14449_v53 = vld [vmem:[#allocation119_spill] sm:$0xff]  ;;  %v10833_v30 = vmul.f32 %v10647_v19, %v3536_v48  ;;  %v14455_v17 = vld [vmem:[#allocation112_spill] sm:$0xff] }
 0xa7e   :  { %14430 = vst [vmem:[#allocation174_spill] sm:$0xff] %v10747_v26  ;;  %v3694_v46 = vsel %vm3450_vm7, %v14449_v53, %v14448_v33 }
 0xa7f   :  { %14431 = vst [vmem:[#allocation175_spill] sm:$0xff] %v10757_v32  ;;  %v3807_v32 = vrot.slane %v3727_v13, 4  ;;  %v14452_v13 = vld [vmem:[#allocation123_spill] sm:$0xff] }
 0xa80   :  { %14432 = vst [vmem:[#allocation176_spill] sm:$0xff] %v10761_v56  ;;  %v3773_v56 = vsel %vm3553_vm10, %v3764_v36, %v14445_v29  ;;  %v3662_v12 = vsel %vm3408_vm5, %v14452_v13, %v14451_v0  ;;  %4432 = vrot.lane.b32.xlu2 %v10551_v61, %s6781_s22  ;;  %4400 = vrot.lane.b32.xlu1 %v10551_v61, %s6791_s14 }
 0xa81   :  { %14433 = vst [vmem:[#allocation177_spill] sm:$0xff] %v10767_v42  ;;  %v3775_v40 = vmul.f32 %v3773_v56, %v10603_v59  ;;  %v10809_v42 = vpop.permute.xlu2 %4087  ;;  %v3743_v56 = vmul.f32 %v3741_v31, %v10586_v60  ;;  %v3754_v59 = vpop.permute.xlu1 %3753  ;;  %4416 = vrot.lane.b32.xlu0 %v10551_v61, %s6779_s21 }
 0xa82   :  { %14435 = vst [vmem:[#allocation178_spill] sm:$0xff] %v10770_v47  ;;  %v3606_v47 = vrot.slane %v3541_v8, 4  ;;  %v3711_v8 = vmul.f32 %v3710_v41, %v10548_v20  ;;  %v14450_v41 = vld [vmem:[#allocation46_spill] sm:$0xff] }
 0xa83   :  { %14447 = vst [vmem:[#allocation103_spill] sm:$0xff] %v10809_v42  ;;  %v3726_v21 = vsel %vm575_vm3, %v14450_v41, %v10445_v6  ;;  %v3819_v42 = vrot.slane %v3759_v50, 4  ;;  %6528 = vmatpush.msk.msrb.mxu0 %vm273_vm8, %v3775_v40  ;;  %v3695_v50 = vmul.f32 %v3694_v46, %v10512_v39  ;;  %v14453_v40 = vld [vmem:[#allocation122_spill] sm:$0xff]  ;;  %v14456_v46 = vld [vmem:[#allocation109_spill] sm:$0xff] }
 0xa84   :  { %v3626_v6 = vsel %vm273_vm8, %v3520_v4, %v3606_v47  ;;  %v3707_v31 = vsel %vm14454_vm4, %v14453_v40, %v14438_v54  ;;  %v3795_v60 = vrot.slane %v3711_v8, 4  ;;  %v10854_v47 = vsel %vm3429_vm2, %v14442_v44, %v14455_v17  ;;  %v14457_v39 = vld [vmem:[#allocation30_spill] sm:$0xff] }
 0xa85   :  { %v3839_v48 = vsel %vm273_vm8, %v3743_v56, %v3819_v42  ;;  %v3659_v54 = vsel %vm3408_vm5, %v14456_v46, %v14452_v13  ;;  %v3783_v4 = vrot.slane %v3679_v43, 4  ;;  %v3730_v11 = vmul.f32 %v3726_v21, %v10584_v1  ;;  %v14458_v56 = vld [vmem:[#allocation31_spill] sm:$0xff]  ;;  %v3770_v43 = vpop.permute.xlu0 %3769  ;;  %v14460_v13 = vld [vmem:[#allocation37_spill] sm:$0xff] }
 0xa86   :  { %3872 = vmatpush.msrb.mxu0 %v3839_v48  ;;  %v3663_v8 = vmul.f32 %v3662_v12, %v10507_v18  ;;  %v3675_v42 = vsel %vm3429_vm2, %v14457_v39, %v14443_v57  ;;  %v3691_v44 = vsel %vm3450_vm7, %v14458_v56, %v14449_v53  ;;  %v3835_v21 = vsel %vm273_vm8, %v14460_v13, %v3807_v32  ;;  %v14461_v12 = vld [vmem:[#allocation41_spill] sm:$0xff] }
 0xa87   :  { %v3742_v48 = vsel %vm3511_vm12, %v14461_v12, %v14444_v55  ;;  %v3714_v57 = vmul.f32 %v3707_v31, %v10562_v3  ;;  %v3758_v1 = vsel %vm3532_vm13, %v3754_v59, %v3748_v38  ;;  %v3774_v53 = vsel %vm3553_vm10, %v3770_v43, %v3764_v36  ;;  %v14462_v18 = vld [vmem:[#allocation9_spill] sm:$0xff] }
 0xa88   :  { %3873 = vmatpush.msrb.mxu0 %v3835_v21  ;;  %v3756_v20 = vsel %vm3532_vm13, %v10682_v63, %v14462_v18  ;;  %v3762_v32 = vmul.f32 %v3758_v1, %v10647_v19  ;;  %v3778_v13 = vmul.f32 %v3774_v53, %v10747_v26  ;;  %v3831_v55 = vsel %vm273_vm8, %v3695_v50, %v3795_v60  ;;  %v14463_v19 = vld [vmem:[#allocation127_spill] sm:$0xff] }
 0xa89   :  { %v10889_v35 = vpop.permute.xlu2 %4093  ;;  %v3666_v31 = vmul.f32 %v3659_v54, %v10510_v45  ;;  %v3810_v38 = vrot.slane %v3730_v11, 4  ;;  %v3755_v36 = vsel %vm3532_vm13, %v14462_v18, %v3754_v59  ;;  %v3827_v21 = vsel %vm273_vm8, %v3663_v8, %v3783_v4  ;;  %v14465_v50 = vld [vmem:[#allocation151_spill] sm:$0xff] }
 0xa8a   :  { %3874 = vmatpush.msrb.mxu0 %v3831_v55  ;;  %v3682_v63 = vmul.f32 %v3675_v42, %v10527_v2  ;;  %v3746_v1 = vmul.f32 %v3742_v48, %v10572_v9  ;;  %v3709_v53 = vsel %vm14464_vm9, %v14437_v52, %v14463_v19  ;;  %v3822_v60 = vrot.slane %v3762_v32, 4  ;;  %6534 = vmatpush.msk.msrb.mxu3 %vm273_vm8, %v3778_v13  ;;  %v14468_v48 = vld [vmem:[#allocation152_spill] sm:$0xff]  ;;  %vm14589_vm9 = vmmov %vm14426_vm0 }
 0xa8b   :  { %v3676_v59 = vsel %vm3429_vm2, %v14455_v17, %v14457_v39  ;;  %v3698_v18 = vmul.f32 %v3691_v44, %v10515_v28  ;;  %v3724_v54 = vsel %vm575_vm3, %v10378_v23, %v14465_v50  ;;  %v3760_v4 = vmul.f32 %v3756_v20, %v10626_v58  ;;  %v14470_v13 = vld [vmem:[#allocation148_spill] sm:$0xff] }
 0xa8c   :  { %3875 = vmatpush.msrb.mxu0 %v3827_v21  ;;  %v3798_v11 = vrot.slane %v3714_v57, 4  ;;  %v3723_v52 = vsel %vm575_vm3, %v14465_v50, %v14450_v41  ;;  %v3761_v8 = vmul.f32 %v3755_v36, %v10635_v62  ;;  %v3842_v39 = vsel %vm273_vm8, %v3746_v1, %v3822_v60  ;;  %v14467_v41 = vld [vmem:[#allocation93_spill] sm:$0xff]  ;;  %v14472_v50 = vld [vmem:[#allocation155_spill] sm:$0xff] }
 0xa8d   :  { %v3585_v23 = vrot.slane %v10750_v25, 4  ;;  %v3708_v20 = vsel %vm14466_vm6, %v14463_v19, %v14453_v40  ;;  %v10929_v17 = vmul.f32 %v3709_v53, %v10543_v16  ;;  %3932 = vmatpush.msrb.mxu3 %v3842_v39  ;;  %v3838_v42 = vsel %vm273_vm8, %v14467_v41, %v3810_v38  ;;  %v3768_v40 = vpop.permute.xlu1 %3767  ;;  %v10946_v32 = vpop.permute.xlu0 %4057  ;;  %vm14595_vm6 = vmmov %vm14426_vm0 }
 0xa8e   :  { %6536 = vmatpush.msk.msra.mxu0 %vm273_vm8, %v3562_v51  ;;  %v3786_v51 = vrot.slane %v3682_v63, 4  ;;  %v3728_v44 = vmul.f32 %v3724_v54, %v14434_v34  ;;  %v3739_v57 = vsel %vm3511_vm12, %v14468_v48, %v14461_v12  ;;  %v3740_v19 = vsel %vm3511_vm12, %v10678_v27, %v14468_v48  ;;  %14469 = vst [vmem:[#allocation42_spill] sm:$0xff] %v10946_v32  ;;  %v14478_v48 = vld [vmem:[#allocation118_spill] sm:$0xff] }
 0xa8f   :  { %v3729_v55 = vmul.f32 %v3723_v52, %v14470_v13  ;;  %v3820_v38 = vrot.slane %v3760_v4, 4  ;;  %v3771_v36 = vsel %vm3553_vm10, %v3768_v40, %v3770_v43  ;;  %v3772_v12 = vsel %vm3553_vm10, %v14445_v29, %v3768_v40  ;;  %3933 = vmatpush.msrb.mxu3 %v3838_v42  ;;  %v14471_v43 = vld [vmem:[#allocation115_spill] sm:$0xff]  ;;  %v14473_v4 = vld [vmem:[#allocation13_spill] sm:$0xff] }
 0xa90   :  { %3966 = vmatpush.msra.mxu0 %v3626_v6  ;;  %v3821_v21 = vrot.slane %v3761_v8, 4  ;;  %v3776_v27 = vmul.f32 %v3772_v12, %v10613_v37  ;;  %v3777_v63 = vmul.f32 %v3771_v36, %v10657_v24  ;;  %v3834_v1 = vsel %vm273_vm8, %v3698_v18, %v3798_v11  ;;  %v14474_v8 = vld [vmem:[#allocation146_spill] sm:$0xff]  ;;  %v14475_v18 = vld [vmem:[#allocation11_spill] sm:$0xff]  ;;  %v14482_v12 = vld [vmem:[#allocation81_spill] sm:$0xff] }
 0xa91   :  { %v10957_v6 = vpop.permute.xlu2 %4107  ;;  %v3609_v53 = vrot.slane %v10833_v30, 4  ;;  %v3557_v60 = vsel %vm3553_vm10, %v14471_v43, %v14441_v22  ;;  %v3713_v29 = vmul.f32 %v3708_v20, %v10546_v14  ;;  %v3744_v54 = vmul.f32 %v3740_v19, %v14472_v50  ;;  %3934 = vmatpush.msrb.mxu3 %v3834_v1  ;;  %v14476_v22 = vld [vmem:[#allocation126_spill] sm:$0xff]  ;;  %v14477_v42 = vld [vmem:[#allocation175_spill] sm:$0xff] }
 0xa92   :  { %3967 = vmatpush.msra.mxu0 %v10745_v7  ;;  %v3680_v52 = vmul.f32 %v10854_v47, %v14473_v4  ;;  %v3808_v7 = vrot.slane %v3728_v44, 4  ;;  %v3745_v39 = vmul.f32 %v3739_v57, %v14474_v8  ;;  %6530 = vmatpush.msk.msrb.mxu2 %vm273_vm8, %v3776_v27  ;;  %v3830_v30 = vsel %vm273_vm8, %v3666_v31, %v3786_v51 }
 0xa93   :  { %6532 = vmatpush.msk.msrb.mxu1 %vm273_vm8, %v3777_v63  ;;  %v3681_v11 = vmul.f32 %v3676_v59, %v14475_v18  ;;  %v3693_v20 = vsel %vm3450_vm7, %v14448_v33, %v14476_v22  ;;  %v3809_v41 = vrot.slane %v3729_v55, 4  ;;  %3935 = vmatpush.msrb.mxu3 %v3830_v30  ;;  %v3840_v47 = vsel %vm273_vm8, %v3744_v54, %v3820_v38  ;;  %v14483_v63 = vld [vmem:[#allocation117_spill] sm:$0xff] }
 0xa94   :  { %3968 = vmatpush.msra.mxu0 %v14477_v42  ;;  %v3565_v44 = vmul.f32 %v10747_v26, %v3557_v60  ;;  %v3692_v31 = vsel %vm3450_vm7, %v14476_v22, %v14458_v56  ;;  %v3796_v59 = vrot.slane %v10929_v17, 4  ;;  %3892 = vmatpush.msrb.mxu2 %v3840_v47  ;;  %v3841_v33 = vsel %vm273_vm8, %v3745_v39, %v3821_v21  ;;  %v14479_v56 = vld [vmem:[#allocation167_spill] sm:$0xff]  ;;  %v14480_v17 = vld [vmem:[#allocation173_spill] sm:$0xff] }
 0xa95   :  { %v10991_v51 = vmul.f32 %v10635_v62, %v10830_v5  ;;  %v3661_v57 = vsel %vm3408_vm5, %v14451_v0, %v14478_v48  ;;  %v3797_v19 = vrot.slane %v3713_v29, 4  ;;  %3912 = vmatpush.msrb.mxu1 %v3841_v33  ;;  %v3629_v40 = vsel %vm273_vm8, %v14480_v17, %v3609_v53  ;;  %v14481_v5 = vld [vmem:[#allocation137_spill] sm:$0xff]  ;;  %v11008_v0 = vpop.permute.xlu1 %4055  ;;  %v11012_v27 = vpop.permute.xlu0 %4071  ;;  %v14484_v53 = vld [vmem:[#allocation138_spill] sm:$0xff] }
 0xa96   :  { %3969 = vmatpush.msra.mxu0 %v14479_v56  ;;  %v3660_v55 = vsel %vm3408_vm5, %v14478_v48, %v14456_v46  ;;  %v3784_v38 = vrot.slane %v3680_v52, 4  ;;  %v3696_v36 = vmul.f32 %v3693_v20, %v14481_v5  ;;  %6542 = vmatpush.msk.msra.mxu3 %vm273_vm8, %v3565_v44  ;;  %v3836_v21 = vsel %vm273_vm8, %v14482_v12, %v3808_v7  ;;  %v14485_v29 = vld [vmem:[#allocation153_spill] sm:$0xff]  ;;  %v14488_v7 = vld [vmem:[#allocation106_spill] sm:$0xff]  ;;  %v14489_v20 = vld [vmem:[#allocation128_spill] sm:$0xff] }
 0xa97   :  { %v3554_v46 = vsel %vm3553_vm10, %v14483_v63, %v14471_v43  ;;  %v3785_v1 = vrot.slane %v3681_v11, 4  ;;  %v3697_v60 = vmul.f32 %v3692_v31, %v14484_v53  ;;  %4446 = vrot.lane.b32.xlu2 %v14485_v29, %s6794_s5  ;;  %3893 = vmatpush.msrb.mxu2 %v3836_v21  ;;  %v14486_v54 = vld [vmem:[#allocation25_spill] sm:$0xff]  ;;  %v3555_v22 = vsel %vm3553_vm10, %v14488_v7, %v14483_v63  ;;  %v14496_v21 = vld [vmem:[#allocation170_spill] sm:$0xff] }
 0xa98   :  { %v3837_v52 = vsel %vm273_vm8, %v14486_v54, %v3809_v41  ;;  %v14487_v39 = vld [vmem:[#allocation169_spill] sm:$0xff]  ;;  %v3664_v42 = vmul.f32 %v3661_v57, %v14489_v20  ;;  %4026 = vmatpush.msra.mxu3 %v3629_v40  ;;  %v3832_v43 = vsel %vm273_vm8, %v3696_v36, %v3796_v59  ;;  %v14492_v41 = vld [vmem:[#allocation108_spill] sm:$0xff]  ;;  %v14494_v57 = vld [vmem:[#allocation102_spill] sm:$0xff]  ;;  %v3607_v40 = vrot.slane %v10812_v10, 4  ;;  %4414 = vrot.lane.b32.xlu1 %v14485_v29, %s6779_s21 }
 0xa99   :  { %v3573_v30 = vrot.slane %v14487_v39, 4  ;;  %3913 = vmatpush.msrb.mxu1 %v3837_v52  ;;  %v11030_v11 = vpop.permute.xlu2 %4121  ;;  %v14490_v47 = vld [vmem:[#allocation177_spill] sm:$0xff]  ;;  %3894 = vmatpush.msrb.mxu2 %v3832_v43  ;;  %v3833_v17 = vsel %vm273_vm8, %v3697_v60, %v3797_v19  ;;  %v14495_v36 = vld [vmem:[#allocation176_spill] sm:$0xff]  ;;  %v3608_v63 = vrot.slane %v10991_v51, 4  ;;  %v3563_v19 = vmul.f32 %v10613_v37, %v3555_v22  ;;  %v14499_v7 = vld [vmem:[#allocation178_spill] sm:$0xff] }
 0xa9a   :  { %v3501_v44 = vmul.f32 %v14470_v13, %v14490_v47  ;;  %v14491_v31 = vld [vmem:[#allocation105_spill] sm:$0xff]  ;;  %4027 = vmatpush.msra.mxu3 %v14495_v36  ;;  %v3828_v12 = vsel %vm273_vm8, %v3664_v42, %v3784_v38  ;;  %v3564_v60 = vmul.f32 %v10657_v24, %v3554_v46  ;;  %v14497_v10 = vld [vmem:[#allocation164_spill] sm:$0xff]  ;;  %v3595_v25 = vrot.slane %v14499_v7, 4  ;;  %v14501_v51 = vld [vmem:[#allocation98_spill] sm:$0xff]  ;;  %4430 = vrot.lane.b32.xlu0 %v14485_v29, %s6781_s22 }
 0xa9b   :  { %v3513_v33 = vsel %vm3511_vm12, %v14492_v41, %v14491_v31  ;;  %v14493_v48 = vld [vmem:[#allocation129_spill] sm:$0xff]  ;;  %v3512_v59 = vsel %vm3511_vm12, %v14491_v31, %v14494_v57  ;;  %3914 = vmatpush.msrb.mxu1 %v3833_v17  ;;  %3895 = vmatpush.msrb.mxu2 %v3828_v12  ;;  %v3439_v52 = vmul.f32 %v14473_v4, %v14497_v10  ;;  %v14498_v39 = vld [vmem:[#allocation168_spill] sm:$0xff]  ;;  %v14506_v36 = vld [vmem:[#allocation99_spill] sm:$0xff]  ;;  %vm5267_vm4 = vcmp.lt.s32.totalorder %v7004_v15, 96 }
 0xa9c   :  { %v3665_v56 = vmul.f32 %v3660_v55, %v14493_v48  ;;  %v3621_v55 = vsel %vm273_vm8, %v14496_v21, %v3585_v23  ;;  %v3440_v38 = vmul.f32 %v14475_v18, %v14498_v39  ;;  %v3521_v42 = vmul.f32 %v14472_v50, %v3513_v33  ;;  %v14500_v23 = vld [vmem:[#allocation101_spill] sm:$0xff]  ;;  %v14503_v31 = vld [vmem:[#allocation100_spill] sm:$0xff]  ;;  %v14507_v12 = vld [vmem:[#allocation171_spill] sm:$0xff] }
 0xa9d   :  { %4028 = vmatpush.msra.mxu3 %v3621_v55  ;;  %v3453_v46 = vsel %vm3450_vm7, %v14501_v51, %v14500_v23  ;;  %v3596_v22 = vrot.slane %v3501_v44, 4  ;;  %6538 = vmatpush.msk.msra.mxu2 %vm273_vm8, %v3563_v19  ;;  %v14502_v43 = vld [vmem:[#allocation165_spill] sm:$0xff]  ;;  %v3452_v41 = vsel %vm3450_vm7, %v14500_v23, %v14503_v31  ;;  %v14504_v33 = vld [vmem:[#allocation172_spill] sm:$0xff]  ;;  %v11078_v17 = vpop.permute.xlu1 %4061  ;;  %v11080_v57 = vpop.permute.xlu0 %4077  ;;  %v3584_v21 = vrot.slane %v14507_v12, 4  ;;  %v14509_v10 = vld [vmem:[#allocation154_spill] sm:$0xff] }
 0xa9e   :  { %v3829_v54 = vsel %vm273_vm8, %v3665_v56, %v3785_v1  ;;  %v3522_v1 = vmul.f32 %v14474_v8, %v3512_v59  ;;  %v3617_v47 = vsel %vm273_vm8, %v14502_v43, %v3573_v30  ;;  %v3583_v56 = vrot.slane %v14504_v33, 4  ;;  %v14505_v59 = vld [vmem:[#allocation97_spill] sm:$0xff]  ;;  %v14508_v19 = vld [vmem:[#allocation92_spill] sm:$0xff]  ;;  %v14510_v39 = vld [vmem:[#allocation38_spill] sm:$0xff] }
 0xa9f   :  { %3915 = vmatpush.msrb.mxu1 %v3829_v54  ;;  %4029 = vmatpush.msra.mxu3 %v3617_v47  ;;  %v3627_v44 = vsel %vm273_vm8, %v3521_v42, %v3607_v40  ;;  %v3411_v30 = vsel %vm3408_vm5, %v14506_v36, %v14505_v59  ;;  %v3410_v40 = vsel %vm3408_vm5, %v14505_v59, %v14508_v19  ;;  %v3572_v23 = vrot.slane %v3440_v38, 4  ;;  %v14511_v51 = vld [vmem:[#allocation52_spill] sm:$0xff]  ;;  %v14513_v59 = vld [vmem:[#allocation14_spill] sm:$0xff]  ;;  %v14515_v12 = vld [vmem:[#allocation71_spill] sm:$0xff] }
 0xaa0   :  { %3986 = vmatpush.msra.mxu2 %v3627_v44  ;;  %v3628_v55 = vsel %vm273_vm8, %v3522_v1, %v3608_v63  ;;  %v3460_v54 = vmul.f32 %v14481_v5, %v3453_v46  ;;  %4452 = vrot.lane.b32.xlu2 %v14509_v10, %s6794_s5  ;;  %v3623_v7 = vsel %vm273_vm8, %v14510_v39, %v3595_v25  ;;  %v4960_v36 = vperm.slane %v14513_v59, 5 }
 0xaa1   :  { %6540 = vmatpush.msk.msra.mxu1 %vm273_vm8, %v3564_v60  ;;  %v3571_v60 = vrot.slane %v3439_v52, 4  ;;  %v11099_v42 = vpop.permute.xlu2 %4135  ;;  %v3461_v63 = vmul.f32 %v14484_v53, %v3452_v41  ;;  %v3624_v1 = vsel %vm273_vm8, %v14511_v51, %v3596_v22  ;;  %v3418_v52 = vmul.f32 %v14489_v20, %v3411_v30  ;;  %4420 = vrot.lane.b32.xlu1 %v14509_v10, %s6779_s21  ;;  %v14514_v30 = vld [vmem:[#allocation23_spill] sm:$0xff] }
 0xaa2   :  { %3987 = vmatpush.msra.mxu2 %v3623_v7  ;;  %v3619_v46 = vsel %vm273_vm8, %v3460_v54, %v3583_v56  ;;  %v3419_v43 = vmul.f32 %v14493_v48, %v3410_v40  ;;  %4436 = vrot.lane.b32.xlu0 %v14509_v10, %s6781_s22  ;;  %v14517_v54 = vld [vmem:[#allocation59_spill] sm:$0xff]  ;;  %v11157_v7 = vld [vmem:[%s13338_s15] sm:$0xff]  ;;  %v4066_v5 = vsel %vm3408_vm5, %v11078_v17, %v11008_v0 }
 0xaa3   :  { %4006 = vmatpush.msra.mxu1 %v3628_v55  ;;  %v3620_v47 = vsel %vm273_vm8, %v3461_v63, %v3584_v21  ;;  %v3615_v25 = vsel %vm273_vm8, %v3418_v52, %v3571_v60  ;;  %v4958_v21 = vsel %vm697_vm14, %v14515_v12, %v14514_v30  ;;  %v4963_v39 = vperm.slane %v14517_v54, 5  ;;  %14518 = vst [vmem:[#allocation121_spill] sm:$0xff] %v11157_v7  ;;  %v14535_v48 = vld [vmem:[#allocation103_spill] sm:$0xff] }
 0xaa4   :  { %3988 = vmatpush.msra.mxu2 %v3619_v46  ;;  %v3616_v38 = vsel %vm273_vm8, %v3419_v43, %v3572_v23  ;;  %v11139_v55 = vmul.f32 %v4960_v36, %v4958_v21  ;;  %v14519_v23 = vld [vmem:[#allocation28_spill] sm:$0xff]  ;;  %v3844_v51 = vrot.slane %v11157_v7, 1  ;;  %v14536_v20 = vld [vmem:[#allocation135_spill] sm:$0xff] }
 0xaa5   :  { %4007 = vmatpush.msra.mxu1 %v3624_v1  ;;  %v11112_v22 = vpop.permute.xlu1 %4075  ;;  %v11114_v31 = vpop.permute.xlu0 %4091  ;;  %v4959_v63 = vsel %vm697_vm14, %v14519_v23, %v14515_v12 }
 0xaa6   :  { %3989 = vmatpush.msra.mxu2 %v3615_v25  ;;  %14516 = vst [vmem:[#allocation111_spill] sm:$0xff] %v11139_v55  ;;  %6529 = vmatmul.msk.f32.vlgmr.msrb.gmra.mxu0 %vm3845_vm15, %v3844_v51  ;;  %v11166_v1 = vmul.f32 %v4963_v39, %v4959_v63  ;;  %v14526_v63 = vld [vmem:[#allocation72_spill] sm:$0xff] }
 0xaa7   :  { %4008 = vmatpush.msra.mxu1 %v3620_v47  ;;  %6535 = vmatmul.msk.f32.vlgmr.msrb.gmra.mxu3 %vm3845_vm15, %v3844_v51  ;;  %v14522_v47 = vld [vmem:[#allocation29_spill] sm:$0xff] }
 0xaa8   :  { %4466 = vrot.lane.b32.xlu2 %v14459_v49, %s6801_s25  ;;  %14520 = vst [vmem:[#allocation124_spill] sm:$0xff] %v11166_v1  ;;  %6531 = vmatmul.msk.f32.vlgmr.msrb.gmra.mxu2 %vm3845_vm15, %v3844_v51  ;;  %v4962_v25 = vperm.slane %v14522_v47, 5 }
 0xaa9   :  { %4009 = vmatpush.msra.mxu1 %v3616_v38  ;;  %v11120_v41 = vpop.permute.xlu2 %4141  ;;  %4434 = vrot.lane.b32.xlu1 %v14459_v49, %s6781_s22  ;;  %v14523_v38 = vld [vmem:[#allocation17_spill] sm:$0xff] }
 0xaaa   :  { %4450 = vrot.lane.b32.xlu0 %v14459_v49, %s6794_s5  ;;  %6533 = vmatmul.msk.f32.vlgmr.msrb.gmra.mxu1 %vm3845_vm15, %v3844_v51  ;;  %v4956_v36 = vsel %vm697_vm14, %v14523_v38, %v14519_v23  ;;  %v4961_v51 = vperm.slane %v14526_v63, 5 }
 0xaab   :  { %v11189_v12 = vmul.f32 %v4962_v25, %v4956_v36  ;;  %v4957_v25 = vsel %vm697_vm14, %v14514_v30, %v14523_v38  ;;  %vm14529_vm14 = vmmov %vm14426_vm0 }
 0xaac   :  { %v11212_v36 = vmul.f32 %v4961_v51, %v4957_v25  ;;  %v4082_v51 = vsel %vm3429_vm2, %v11080_v57, %v11012_v27  ;;  %v14530_v25 = vld [vmem:[#allocation139_spill] sm:$0xff] }
 0xaad   :  { %v11124_v33 = vpop.permute.xlu1 %4089  ;;  %v11126_v56 = vpop.permute.xlu0 %4105  ;;  %14524 = vst [vmem:[#allocation134_spill] sm:$0xff] %v11189_v12  ;;  %v4083_v53 = vmul.f32 %v4082_v51, %v14536_v20 }
 0xaae   :  { %14512 = vst [vmem:[#allocation45_spill] sm:$0xff] %v11124_v33  ;;  %6537 = vmatmul.msk.f32.vlgmr.msra.gmra.mxu0 %vm3845_vm15, %v11157_v7 }
 0xaaf   :  { %6543 = vmatmul.msk.f32.vlgmr.msra.gmra.mxu3 %vm3845_vm15, %v11157_v7  ;;  %14527 = vst [vmem:[#allocation116_spill] sm:$0xff] %v11212_v36 }
 0xab0   :  { %4480 = vrot.lane.b32.xlu2 %v10551_v61, %s6796_s0  ;;  %6539 = vmatmul.msk.f32.vlgmr.msra.gmra.mxu2 %vm3845_vm15, %v11157_v7 }
 0xab1   :  { %v11132_v44 = vpop.permute.xlu2 %4155  ;;  %4448 = vrot.lane.b32.xlu1 %v10551_v61, %s6794_s5 }
 0xab2   :  { %4464 = vrot.lane.b32.xlu0 %v10551_v61, %s6801_s25  ;;  %6541 = vmatmul.msk.f32.vlgmr.msra.gmra.mxu1 %vm3845_vm15, %v11157_v7 }
 0xab5   :  { %v11143_v19 = vpop.permute.xlu1 %4103  ;;  %v11145_v40 = vpop.permute.xlu0 %4119 }
 0xab6   :  { %v4129_v30 = vsel %vm575_vm3, %v11145_v40, %v11030_v11 }
 0xab8   :  { %4968 = vrot.lane.b32.xlu2 %v11139_v55, %s6800_s23 }
 0xab9   :  { %v11151_v60 = vpop.permute.xlu2 %4169  ;;  %4462 = vrot.lane.b32.xlu1 %v14485_v29, %s6801_s25 }
 0xaba   :  { %4478 = vrot.lane.b32.xlu0 %v14485_v29, %s6796_s0 }
 0xabd   :  { %v4110_v52 = vpop.permute.xlu1 %4109  ;;  %v11170_v46 = vpop.permute.xlu0 %4125 }
 0xabe   :  { %v4114_v38 = vsel %vm14529_vm14, %v4110_v52, %v11143_v19  ;;  %v4130_v51 = vsel %vm575_vm3, %v11170_v46, %v11145_v40  ;;  %v4079_v40 = vsel %vm3429_vm2, %v11112_v22, %v11080_v57  ;;  %vm14607_vm14 = vmmov %vm14426_vm0 }
 0xac0   :  { %4974 = vrot.lane.b32.xlu2 %v11166_v1, %s6800_s23 }
 0xac1   :  { %v11178_v43 = vpop.permute.xlu2 %4370  ;;  %4468 = vrot.lane.b32.xlu1 %v14509_v10, %s6801_s25 }
 0xac2   :  { %14521 = vst [vmem:[#allocation125_spill] sm:$0xff] %v11178_v43  ;;  %4484 = vrot.lane.b32.xlu0 %v14509_v10, %s6796_s0 }
 0xac5   :  { %v11193_v21 = vpop.permute.xlu1 %4123  ;;  %v11195_v39 = vpop.permute.xlu0 %4139 }
 0xac8   :  { %4988 = vrot.lane.b32.xlu2 %v11189_v12, %s6792_s4 }
 0xac9   :  { %v11205_v23 = vpop.permute.xlu2 %4384  ;;  %4482 = vrot.lane.b32.xlu1 %v14459_v49, %s6796_s0  ;;  %v4131_v49 = vmul.f32 %v4129_v30, %v14530_v25  ;;  %v14532_v25 = vld [vmem:[#allocation159_spill] sm:$0xff] }
 0xaca   :  { %14525 = vst [vmem:[#allocation114_spill] sm:$0xff] %v11205_v23  ;;  %4972 = vrot.lane.b32.xlu0 %v11189_v12, %s6800_s23 }
 0xacd   :  { %v11216_v61 = vpop.permute.xlu1 %4137  ;;  %v4154_v10 = vpop.permute.xlu0 %4153 }
 0xace   :  { %v4145_v7 = vsel %vm3511_vm12, %v11099_v42, %v11216_v61 }
 0xad0   :  { %5002 = vrot.lane.b32.xlu2 %v11212_v36, %s6791_s14 }
 0xad1   :  { %v11222_v29 = vpop.permute.xlu2 %4398  ;;  %4970 = vrot.lane.b32.xlu1 %v11212_v36, %s6800_s23 }
 0xad2   :  { %14528 = vst [vmem:[#allocation119_spill] sm:$0xff] %v11222_v29  ;;  %v14531_v29 = vld [vmem:[#allocation143_spill] sm:$0xff]  ;;  %4986 = vrot.lane.b32.xlu0 %v11212_v36, %s6792_s4  ;;  %v4098_v36 = vsel %vm3450_vm7, %v10889_v35, %v14535_v48  ;;  %v14540_v48 = vld [vmem:[#allocation166_spill] sm:$0xff] }
 0xad3   :  { %v4115_v63 = vmul.f32 %v4114_v38, %v14531_v29  ;;  %v14533_v38 = vld [vmem:[#allocation156_spill] sm:$0xff] }
 0xad5   :  { %v4152_v23 = vpop.permute.xlu1 %4151  ;;  %v4168_v43 = vpop.permute.xlu0 %4167 }
 0xad6   :  { %v4161_v47 = vsel %vm3532_vm13, %v4152_v23, %v4154_v10  ;;  %v4177_v30 = vsel %vm3553_vm10, %v4168_v43, %v11151_v60 }
 0xad7   :  { %v4163_v54 = vmul.f32 %v4161_v47, %v14532_v25  ;;  %v4179_v29 = vmul.f32 %v4177_v30, %v14533_v38  ;;  %v4211_v47 = vrot.slane %v4131_v49, 4  ;;  %v14537_v25 = vld [vmem:[#allocation150_spill] sm:$0xff]  ;;  %v4111_v30 = vsel %vm14538_vm1, %v10957_v6, %v4110_v52  ;;  %v14539_v38 = vld [vmem:[#allocation132_spill] sm:$0xff]  ;;  %vm14612_vm1 = vmmov %vm14426_vm0 }
 0xad8   :  { %5016 = vrot.lane.b32.xlu2 %v11139_v55, %s6779_s21  ;;  %v4147_v32 = vmul.f32 %v4145_v7, %v14537_v25  ;;  %v4099_v20 = vmul.f32 %v4098_v36, %v14539_v38  ;;  %v11279_v49 = vsel %vm3429_vm2, %v11012_v27, %v14540_v48  ;;  %v14542_v52 = vld [vmem:[#allocation130_spill] sm:$0xff]  ;;  %v4187_v25 = vrot.slane %v4083_v53, 4 }
 0xad9   :  { %v11254_v59 = vpop.permute.xlu2 %4404  ;;  %v4223_v33 = vrot.slane %v4163_v54, 4  ;;  %6544 = vmatpush.msk.msrb.mxu0 %vm273_vm8, %v4179_v29  ;;  %v14541_v54 = vld [vmem:[#allocation157_spill] sm:$0xff]  ;;  %v4146_v27 = vsel %vm3511_vm12, %v11120_v41, %v11099_v42  ;;  %4984 = vrot.lane.b32.xlu1 %v11139_v55, %s6792_s4 }
 0xada   :  { %14534 = vst [vmem:[#allocation46_spill] sm:$0xff] %v11254_v59  ;;  %v4199_v59 = vrot.slane %v4115_v63, 4  ;;  %v4063_v7 = vsel %vm3408_vm5, %v14541_v54, %v11078_v17  ;;  %v4067_v63 = vmul.f32 %v4066_v5, %v14542_v52  ;;  %v14544_v17 = vld [vmem:[#allocation110_spill] sm:$0xff]  ;;  %5000 = vrot.lane.b32.xlu0 %v11139_v55, %s6791_s14 }
 0xadb   :  { %v4243_v29 = vsel %vm273_vm8, %v4147_v32, %v4223_v33  ;;  %v4118_v32 = vmul.f32 %v4111_v30, %v10562_v3  ;;  %v14543_v33 = vld [vmem:[#allocation149_spill] sm:$0xff]  ;;  %v4239_v38 = vsel %vm273_vm8, %v14544_v17, %v4211_v47 }
 0xadc   :  { %4274 = vmatpush.msrb.mxu0 %v4243_v29  ;;  %v4134_v36 = vmul.f32 %v4130_v51, %v14543_v33  ;;  %v4235_v30 = vsel %vm273_vm8, %v4099_v20, %v4199_v59  ;;  %v4160_v51 = vsel %vm3532_vm13, %v4154_v10, %v11132_v44  ;;  %v14545_v29 = vld [vmem:[#allocation162_spill] sm:$0xff]  ;;  %v4095_v20 = vsel %vm3450_vm7, %v11114_v31, %v10889_v35 }
 0xadd   :  { %v4158_v5 = vpop.permute.xlu1 %4157  ;;  %v4174_v53 = vpop.permute.xlu0 %4173  ;;  %v4150_v10 = vmul.f32 %v4146_v27, %v10572_v9  ;;  %v4113_v59 = vsel %vm14426_vm0, %v11143_v19, %v11126_v56  ;;  %v4070_v35 = vmul.f32 %v4063_v7, %v10510_v45  ;;  %v4102_v27 = vmul.f32 %v4095_v20, %v10515_v28 }
 0xade   :  { %v4162_v57 = vsel %vm3532_vm13, %v4158_v5, %v4152_v23  ;;  %v4178_v42 = vsel %vm3553_vm10, %v4174_v53, %v4168_v43  ;;  %4275 = vmatpush.msrb.mxu0 %v4239_v38  ;;  %v4159_v47 = vsel %vm3532_vm13, %v11132_v44, %v4158_v5  ;;  %v4086_v43 = vmul.f32 %v4079_v40, %v10527_v2 }
 0xadf   :  { %v4166_v17 = vmul.f32 %v4162_v57, %v14545_v29  ;;  %v4182_v23 = vmul.f32 %v4178_v42, %v10747_v26  ;;  %v4231_v44 = vsel %vm273_vm8, %v4067_v63, %v4187_v25  ;;  %v4214_v38 = vrot.slane %v4134_v36, 4 }
 0xae0   :  { %5022 = vrot.lane.b32.xlu2 %v11166_v1, %s6779_s21  ;;  %4276 = vmatpush.msrb.mxu0 %v4235_v30  ;;  %v4128_v40 = vsel %vm575_vm3, %v11030_v11, %v11193_v21  ;;  %v4127_v25 = vsel %vm575_vm3, %v11193_v21, %v11170_v46  ;;  %v4164_v63 = vmul.f32 %v4160_v51, %v10626_v58  ;;  %v4202_v36 = vrot.slane %v4118_v32, 4  ;;  %v14548_v32 = vld [vmem:[#allocation113_spill] sm:$0xff] }
 0xae1   :  { %v11318_v52 = vpop.permute.xlu2 %4418  ;;  %v4226_v5 = vrot.slane %v4166_v17, 4  ;;  %6550 = vmatpush.msk.msrb.mxu3 %vm273_vm8, %v4182_v23  ;;  %v4165_v19 = vmul.f32 %v4159_v47, %v10635_v62  ;;  %v4080_v11 = vsel %vm3429_vm2, %v14540_v48, %v11112_v22  ;;  %v4190_v57 = vrot.slane %v4086_v43, 4  ;;  %4990 = vrot.lane.b32.xlu1 %v11166_v1, %s6792_s4  ;;  %v14602_v62 = vld [vmem:[#allocation94_spill] sm:$0xff] }
 0xae2   :  { %4277 = vmatpush.msrb.mxu0 %v4231_v44  ;;  %v4112_v46 = vsel %vm14546_vm11, %v11126_v56, %v10957_v6  ;;  %v4116_v21 = vmul.f32 %v4113_v59, %v10543_v16  ;;  %v4132_v42 = vmul.f32 %v4128_v40, %v14434_v34  ;;  %v4133_v30 = vmul.f32 %v4127_v25, %v14470_v13  ;;  %v14549_v40 = vld [vmem:[#allocation45_spill] sm:$0xff]  ;;  %vm14645_vm11 = vmmov %vm14426_vm0 }
 0xae3   :  { %v4246_v7 = vsel %vm273_vm8, %v4150_v10, %v4226_v5  ;;  %v4143_v48 = vsel %vm3511_vm12, %v11195_v39, %v11120_v41  ;;  %v4144_v22 = vsel %vm3511_vm12, %v11216_v61, %v11195_v39  ;;  %v4242_v51 = vsel %vm273_vm8, %v14548_v32, %v4214_v38  ;;  %5006 = vrot.lane.b32.xlu0 %v11166_v1, %s6791_s14  ;;  %v14550_v5 = vld [vmem:[#allocation103_spill] sm:$0xff] }
 0xae4   :  { %4334 = vmatpush.msrb.mxu3 %v4246_v7  ;;  %v4224_v47 = vrot.slane %v4164_v63, 4  ;;  %v4225_v17 = vrot.slane %v4165_v19, 4  ;;  %v4117_v39 = vmul.f32 %v4112_v46, %v10546_v14  ;;  %v4238_v10 = vsel %vm273_vm8, %v4102_v27, %v4202_v36  ;;  %v14551_v7 = vld [vmem:[#allocation42_spill] sm:$0xff] }
 0xae5   :  { %v4172_v6 = vpop.permute.xlu1 %4171  ;;  %v11366_v56 = vpop.permute.xlu0 %4368  ;;  %v4212_v44 = vrot.slane %v4132_v42, 4  ;;  %v4148_v59 = vmul.f32 %v4144_v22, %v14472_v50  ;;  %v4085_v38 = vmul.f32 %v4080_v11, %v14475_v18  ;;  %v4097_v25 = vsel %vm3450_vm7, %v14550_v5, %v14549_v40  ;;  %v14592_v18 = vld [vmem:[#allocation40_spill] sm:$0xff] }
 0xae6   :  { %14547 = vst [vmem:[#allocation120_spill] sm:$0xff] %v11366_v56  ;;  %v4175_v41 = vsel %vm3553_vm10, %v4172_v6, %v4174_v53  ;;  %v4176_v61 = vsel %vm3553_vm10, %v11151_v60, %v4172_v6  ;;  %4335 = vmatpush.msrb.mxu3 %v4242_v51  ;;  %v4084_v53 = vmul.f32 %v11279_v49, %v14473_v4  ;;  %v4213_v63 = vrot.slane %v4133_v30, 4  ;;  %v14553_v30 = vld [vmem:[#allocation107_spill] sm:$0xff]  ;;  %v14554_v6 = vld [vmem:[#allocation138_spill] sm:$0xff]  ;;  %v14555_v51 = vld [vmem:[#allocation104_spill] sm:$0xff] }
 0xae7   :  { %v4180_v23 = vmul.f32 %v4176_v61, %v10613_v37  ;;  %v4181_v43 = vmul.f32 %v4175_v41, %v10657_v24  ;;  %v4149_v60 = vmul.f32 %v4143_v48, %v14474_v8  ;;  %v4234_v49 = vsel %vm273_vm8, %v4070_v35, %v4190_v57  ;;  %v14552_v57 = vld [vmem:[#allocation137_spill] sm:$0xff]  ;;  %v14587_v56 = vld [vmem:[#allocation58_spill] sm:$0xff]  ;;  %v14599_v24 = vld [vmem:[#allocation76_spill] sm:$0xff] }
 0xae8   :  { %5036 = vrot.lane.b32.xlu2 %v11189_v12, %s6781_s22  ;;  %4336 = vmatpush.msrb.mxu3 %v4238_v10  ;;  %v4096_v19 = vsel %vm3450_vm7, %v14549_v40, %v11114_v31  ;;  %v4200_v27 = vrot.slane %v4116_v21, 4  ;;  %v4244_v11 = vsel %vm273_vm8, %v4148_v59, %v4224_v47  ;;  %v4065_v46 = vsel %vm3408_vm5, %v11008_v0, %v14551_v7  ;;  %v14591_v8 = vld [vmem:[#allocation62_spill] sm:$0xff] }
 0xae9   :  { %v11382_v20 = vpop.permute.xlu2 %4432  ;;  %6546 = vmatpush.msk.msrb.mxu2 %vm273_vm8, %v4180_v23  ;;  %6548 = vmatpush.msk.msrb.mxu1 %vm273_vm8, %v4181_v43  ;;  %v4245_v36 = vsel %vm273_vm8, %v4149_v60, %v4225_v17  ;;  %v4201_v42 = vrot.slane %v4117_v39, 4  ;;  %v4064_v35 = vsel %vm3408_vm5, %v14551_v7, %v14541_v54  ;;  %v4188_v31 = vrot.slane %v4084_v53, 4  ;;  %v14556_v54 = vld [vmem:[#allocation128_spill] sm:$0xff]  ;;  %v14557_v39 = vld [vmem:[#allocation129_spill] sm:$0xff]  ;;  %v14562_v7 = vld [vmem:[#allocation83_spill] sm:$0xff] }
 0xaea   :  { %4337 = vmatpush.msrb.mxu3 %v4234_v49  ;;  %v4100_v21 = vmul.f32 %v4097_v25, %v14552_v57  ;;  %v4240_v48 = vsel %vm273_vm8, %v14553_v30, %v4212_v44  ;;  %v4189_v22 = vrot.slane %v4085_v38, 4  ;;  %v4101_v32 = vmul.f32 %v4096_v19, %v14554_v6  ;;  %5004 = vrot.lane.b32.xlu1 %v11189_v12, %s6791_s14  ;;  %v14558_v43 = vld [vmem:[#allocation116_spill] sm:$0xff]  ;;  %v14565_v30 = vld [vmem:[#allocation59_spill] sm:$0xff] }
 0xaeb   :  { %4294 = vmatpush.msrb.mxu2 %v4244_v11  ;;  %4314 = vmatpush.msrb.mxu1 %v4245_v36  ;;  %v4241_v47 = vsel %vm273_vm8, %v14555_v51, %v4213_v63  ;;  %v4068_v41 = vmul.f32 %v4065_v46, %v14556_v54  ;;  %v4069_v23 = vmul.f32 %v4064_v35, %v14557_v39  ;;  %v14563_v46 = vld [vmem:[#allocation77_spill] sm:$0xff] }
 0xaec   :  { %5020 = vrot.lane.b32.xlu0 %v11189_v12, %s6779_s21  ;;  %v4236_v61 = vsel %vm273_vm8, %v4100_v21, %v4200_v27  ;;  %v4237_v10 = vsel %vm273_vm8, %v4101_v32, %v4201_v42  ;;  %v14561_v27 = vld [vmem:[#allocation14_spill] sm:$0xff]  ;;  %v5270_v42 = vsel %vm5267_vm4, %v14563_v46, %v14562_v7  ;;  %v14567_v32 = vld [vmem:[#allocation47_spill] sm:$0xff] }
 0xaed   :  { %v11417_v0 = vpop.permute.xlu1 %4366  ;;  %4295 = vmatpush.msrb.mxu2 %v4240_v48  ;;  %v11421_v17 = vpop.permute.xlu0 %4382  ;;  %4315 = vmatpush.msrb.mxu1 %v4241_v47  ;;  %v4232_v44 = vsel %vm273_vm8, %v4068_v41, %v4188_v31  ;;  %v4233_v60 = vsel %vm273_vm8, %v4069_v23, %v4189_v22  ;;  %v5272_v11 = vperm.slane %v14561_v27, 6  ;;  %v5275_v48 = vperm.slane %v14565_v30, 6 }
 0xaee   :  { %v5271_v51 = vsel %vm5267_vm4, %v14567_v32, %v14563_v46 }
 0xaef   :  { %4296 = vmatpush.msrb.mxu2 %v4236_v61  ;;  %4316 = vmatpush.msrb.mxu1 %v4237_v10  ;;  %v11477_v35 = vmul.f32 %v5272_v11, %v5270_v42  ;;  %v11496_v47 = vmul.f32 %v5275_v48, %v5271_v51  ;;  %v14569_v61 = vld [vmem:[#allocation29_spill] sm:$0xff] }
 0xaf0   :  { %5050 = vrot.lane.b32.xlu2 %v14558_v43, %s6794_s5  ;;  %v5274_v23 = vperm.slane %v14569_v61, 6  ;;  %v14574_v48 = vld [vmem:[#allocation121_spill] sm:$0xff] }
 0xaf1   :  { %v11431_v53 = vpop.permute.xlu2 %4446  ;;  %4297 = vmatpush.msrb.mxu2 %v4232_v44  ;;  %4317 = vmatpush.msrb.mxu1 %v4233_v60  ;;  %14564 = vst [vmem:[#allocation112_spill] sm:$0xff] %v11477_v35  ;;  %v14570_v44 = vld [vmem:[#allocation19_spill] sm:$0xff]  ;;  %v4247_v51 = vrot.slane %v14574_v48, 2 }
 0xaf2   :  { %5018 = vrot.lane.b32.xlu1 %v14558_v43, %s6779_s21  ;;  %14568 = vst [vmem:[#allocation30_spill] sm:$0xff] %v11496_v47  ;;  %v5268_v60 = vsel %vm5267_vm4, %v14570_v44, %v14567_v32  ;;  %v14577_v32 = vld [vmem:[#allocation87_spill] sm:$0xff] }
 0xaf3   :  { %v11521_v42 = vmul.f32 %v5274_v23, %v5268_v60  ;;  %6545 = vmatmul.msk.f32.vlgmr.msrb.gmra.mxu0 %vm3845_vm15, %v4247_v51  ;;  %v14578_v23 = vld [vmem:[#allocation55_spill] sm:$0xff]  ;;  %6551 = vmatmul.msk.f32.vlgmr.msrb.gmra.mxu3 %vm3845_vm15, %v4247_v51 }
 0xaf4   :  { %5034 = vrot.lane.b32.xlu0 %v14558_v43, %s6781_s22  ;;  %v14579_v60 = vld [vmem:[#allocation15_spill] sm:$0xff]  ;;  %6547 = vmatmul.msk.f32.vlgmr.msrb.gmra.mxu2 %vm3845_vm15, %v4247_v51 }
 0xaf5   :  { %v11437_v59 = vpop.permute.xlu1 %4372  ;;  %v11439_v38 = vpop.permute.xlu0 %4388  ;;  %14573 = vst [vmem:[#allocation41_spill] sm:$0xff] %v11521_v42  ;;  %v4731_v48 = vsel %vm575_vm3, %v14579_v60, %v14578_v23  ;;  %6549 = vmatmul.msk.f32.vlgmr.msrb.gmra.mxu1 %vm3845_vm15, %v4247_v51 }
 0xaf8   :  { %5064 = vrot.lane.b32.xlu2 %v11139_v55, %s6801_s25 }
 0xafa   :  { %v11445_v40 = vpop.permute.xlu2 %4452  ;;  %5032 = vrot.lane.b32.xlu1 %v11139_v55, %s6781_s22 }
 0xafc   :  { %5048 = vrot.lane.b32.xlu0 %v11139_v55, %s6794_s5 }
 0xafd   :  { %v11449_v5 = vpop.permute.xlu1 %4386  ;;  %v11453_v25 = vpop.permute.xlu0 %4402 }
 0xb00   :  { %5070 = vrot.lane.b32.xlu2 %v11166_v1, %s6801_s25 }
 0xb02   :  { %v11457_v63 = vpop.permute.xlu2 %4466  ;;  %5038 = vrot.lane.b32.xlu1 %v11166_v1, %s6781_s22 }
 0xb04   :  { %5054 = vrot.lane.b32.xlu0 %v11166_v1, %s6794_s5 }
 0xb05   :  { %v11461_v49 = vpop.permute.xlu1 %4400  ;;  %v11467_v19 = vpop.permute.xlu0 %4416 }
 0xb06   :  { %14559 = vst [vmem:[#allocation123_spill] sm:$0xff] %v11461_v49  ;;  %v14588_v49 = vld [vmem:[#allocation60_spill] sm:$0xff] }
 0xb07   :  { %14560 = vst [vmem:[#allocation122_spill] sm:$0xff] %v11467_v19  ;;  %v14610_v19 = vld [vmem:[#allocation132_spill] sm:$0xff] }
 0xb08   :  { %5084 = vrot.lane.b32.xlu2 %v11189_v12, %s6796_s0 }
 0xb0a   :  { %v11471_v36 = vpop.permute.xlu2 %4480  ;;  %5052 = vrot.lane.b32.xlu1 %v11189_v12, %s6794_s5 }
 0xb0c   :  { %5068 = vrot.lane.b32.xlu0 %v11189_v12, %s6801_s25  ;;  %v14575_v12 = vld [vmem:[#allocation35_spill] sm:$0xff] }
 0xb0d   :  { %v11483_v31 = vpop.permute.xlu1 %4414  ;;  %v11487_v21 = vpop.permute.xlu0 %4430  ;;  %v4683_v61 = vsel %vm3429_vm2, %v14575_v12, %v14577_v32 }
 0xb0e   :  { %v11559_v57 = vmul.f32 %v4683_v61, %v14473_v4  ;;  %v14596_v4 = vld [vmem:[#allocation36_spill] sm:$0xff] }
 0xb10   :  { %5280 = vrot.lane.b32.xlu2 %v11477_v35, %s6800_s23  ;;  %14586 = vst [vmem:[#allocation93_spill] sm:$0xff] %v11559_v57  ;;  %v14594_v57 = vld [vmem:[#allocation26_spill] sm:$0xff] }
 0xb11   :  { %v4713_v50 = vsel %vm14595_vm6, %v14594_v57, %v14588_v49  ;;  %vm14654_vm6 = vmmov %vm14426_vm0 }
 0xb12   :  { %v11490_v22 = vpop.permute.xlu2 %4968  ;;  %5066 = vrot.lane.b32.xlu1 %v14558_v43, %s6801_s25 }
 0xb13   :  { %14566 = vst [vmem:[#allocation109_spill] sm:$0xff] %v11490_v22 }
 0xb14   :  { %5082 = vrot.lane.b32.xlu0 %v14558_v43, %s6796_s0  ;;  %v14576_v43 = vld [vmem:[#allocation74_spill] sm:$0xff] }
 0xb15   :  { %v11502_v41 = vpop.permute.xlu1 %4420  ;;  %v11507_v10 = vpop.permute.xlu0 %4436  ;;  %v4684_v30 = vsel %vm3429_vm2, %v14576_v43, %v14575_v12  ;;  %v14582_v12 = vld [vmem:[#allocation72_spill] sm:$0xff] }
 0xb16   :  { %v5273_v39 = vperm.slane %v14582_v12, 6  ;;  %v5269_v12 = vsel %vm5267_vm4, %v14562_v7, %v14570_v44  ;;  %v14597_v7 = vld [vmem:[#allocation48_spill] sm:$0xff]  ;;  %vm14650_vm4 = vmmov %vm14426_vm0 }
 0xb17   :  { %v4668_v44 = vsel %vm3408_vm5, %v14591_v8, %v14597_v7 }
 0xb18   :  { %5286 = vrot.lane.b32.xlu2 %v11496_v47, %s6800_s23 }
 0xb1a   :  { %v11513_v11 = vpop.permute.xlu2 %4974  ;;  %5080 = vrot.lane.b32.xlu1 %v11139_v55, %s6796_s0  ;;  %v14581_v55 = vld [vmem:[#allocation135_spill] sm:$0xff] }
 0xb1b   :  { %14571 = vst [vmem:[#allocation31_spill] sm:$0xff] %v11513_v11  ;;  %v11519_v46 = vsel %vm3408_vm5, %v11513_v11, %v11490_v22  ;;  %v14584_v22 = vld [vmem:[#allocation73_spill] sm:$0xff]  ;;  %v4732_v11 = vsel %vm575_vm3, %v14596_v4, %v14579_v60 }
 0xb1c   :  { %14572 = vst [vmem:[#allocation37_spill] sm:$0xff] %v11519_v46  ;;  %5284 = vrot.lane.b32.xlu0 %v11521_v42, %s6800_s23  ;;  %v4685_v46 = vmul.f32 %v4684_v30, %v14581_v55  ;;  %v11556_v6 = vsel %vm3429_vm2, %v14577_v32, %v14584_v22  ;;  %v4716_v30 = vsel %vm14589_vm9, %v14588_v49, %v14587_v56  ;;  %vm14652_vm9 = vmmov %vm14426_vm0 }
 0xb1d   :  { %v11541_v27 = vpop.permute.xlu1 %4434  ;;  %v11548_v54 = vpop.permute.xlu0 %4450  ;;  %14585 = vst [vmem:[#allocation151_spill] sm:$0xff] %v11556_v6  ;;  %v4665_v32 = vsel %vm3408_vm5, %v14592_v18, %v14591_v8  ;;  %v14593_v6 = vld [vmem:[#allocation139_spill] sm:$0xff]  ;;  %v14600_v18 = vld [vmem:[#allocation22_spill] sm:$0xff]  ;;  %v4681_v60 = vsel %vm3429_vm2, %v14584_v22, %v14576_v43  ;;  %v4720_v22 = vmul.f32 %v4713_v50, %v10562_v3 }
 0xb1e   :  { %14580 = vst [vmem:[#allocation9_spill] sm:$0xff] %v11541_v27  ;;  %v4733_v61 = vmul.f32 %v4731_v48, %v14593_v6  ;;  %v4789_v37 = vrot.slane %v4685_v46, 4  ;;  %v14603_v8 = vld [vmem:[#allocation7_spill] sm:$0xff]  ;;  %v11605_v27 = vmul.f32 %v5273_v39, %v5269_v12  ;;  %v4736_v46 = vmul.f32 %v4732_v11, %v14543_v33 }
 0xb1f   :  { %14583 = vst [vmem:[#allocation127_spill] sm:$0xff] %v11548_v54  ;;  %v14601_v54 = vld [vmem:[#allocation143_spill] sm:$0xff]  ;;  %v4763_v7 = vsel %vm3532_vm13, %v14603_v8, %v14602_v62  ;;  %v11621_v12 = vmul.f32 %v4665_v32, %v10510_v45  ;;  %v11628_v50 = vmul.f32 %v4681_v60, %v10527_v2 }
 0xb20   :  { %5300 = vrot.lane.b32.xlu2 %v11521_v42, %s6792_s4  ;;  %v4717_v42 = vmul.f32 %v4716_v30, %v14601_v54  ;;  %14604 = vst [vmem:[#allocation148_spill] sm:$0xff] %v11605_v27  ;;  %v14608_v30 = vld [vmem:[#allocation130_spill] sm:$0xff] }
 0xb21   :  { %v4669_v39 = vmul.f32 %v4668_v44, %v14608_v30  ;;  %14609 = vst [vmem:[#allocation115_spill] sm:$0xff] %v11621_v12  ;;  %v14613_v44 = vld [vmem:[#allocation159_spill] sm:$0xff] }
 0xb22   :  { %v11569_v51 = vpop.permute.xlu2 %4988  ;;  %5086 = vrot.lane.b32.xlu1 %v11166_v1, %s6796_s0  ;;  %14611 = vst [vmem:[#allocation126_spill] sm:$0xff] %v11628_v50  ;;  %v4765_v1 = vmul.f32 %v4763_v7, %v14613_v44  ;;  %v14618_v7 = vld [vmem:[#allocation90_spill] sm:$0xff] }
 0xb23   :  { %14590 = vst [vmem:[#allocation152_spill] sm:$0xff] %v11569_v51  ;;  %v14598_v51 = vld [vmem:[#allocation69_spill] sm:$0xff]  ;;  %v11648_v12 = vsel %vm273_vm8, %v4669_v39, %v4789_v37  ;;  %v14621_v37 = vld [vmem:[#allocation86_spill] sm:$0xff] }
 0xb24   :  { %v4697_v48 = vsel %vm3450_vm7, %v14599_v24, %v14598_v51  ;;  %v4700_v49 = vsel %vm3450_vm7, %v14598_v51, %v14600_v18  ;;  %v14605_v24 = vld [vmem:[#allocation82_spill] sm:$0xff]  ;;  %5298 = vrot.lane.b32.xlu0 %v11605_v27, %s6792_s4  ;;  %14616 = vst [vmem:[#allocation167_spill] sm:$0xff] %v11648_v12  ;;  %v14624_v12 = vld [vmem:[#allocation68_spill] sm:$0xff] }
 0xb25   :  { %v4730_v51 = vsel %vm575_vm3, %v14578_v23, %v14605_v24  ;;  %v14606_v18 = vld [vmem:[#allocation6_spill] sm:$0xff]  ;;  %v4701_v26 = vmul.f32 %v4700_v49, %v14610_v19  ;;  %v4813_v23 = vrot.slane %v4733_v61, 4  ;;  %v11635_v32 = vpop.permute.xlu1 %4448  ;;  %v4801_v49 = vrot.slane %v4717_v42, 4  ;;  %v11645_v60 = vpop.permute.xlu0 %4464 }
 0xb26   :  { %v4715_v43 = vsel %vm14607_vm14, %v14587_v56, %v14606_v18  ;;  %v4704_v56 = vmul.f32 %v4697_v48, %v10515_v28  ;;  %v4714_v11 = vsel %vm14612_vm1, %v14606_v18, %v14594_v57  ;;  %v11640_v61 = vmul.f32 %v4730_v51, %v14434_v34  ;;  %v14617_v57 = vld [vmem:[#allocation43_spill] sm:$0xff]  ;;  %v14623_v39 = vld [vmem:[#allocation54_spill] sm:$0xff]  ;;  %vm14709_vm14 = vmmov %vm14426_vm0 }
 0xb27   :  { %v11643_v48 = vmul.f32 %v4715_v43, %v10543_v16  ;;  %v4804_v18 = vrot.slane %v4720_v22, 4  ;;  %v4748_v50 = vsel %vm3511_vm12, %v14618_v7, %v14617_v57  ;;  %v4729_v51 = vsel %vm575_vm3, %v14605_v24, %v14596_v4  ;;  %v14625_v4 = vld [vmem:[#allocation39_spill] sm:$0xff] }
 0xb28   :  { %5314 = vrot.lane.b32.xlu2 %v11605_v27, %s6791_s14  ;;  %14614 = vst [vmem:[#allocation175_spill] sm:$0xff] %v11640_v61  ;;  %v4816_v61 = vrot.slane %v4736_v46, 4  ;;  %v11661_v42 = vmul.f32 %v4714_v11, %v10546_v14  ;;  %v11667_v22 = vsel %vm3511_vm12, %v14621_v37, %v14618_v7  ;;  %v11675_v24 = vsel %vm273_vm8, %v14624_v12, %v4813_v23  ;;  %v14626_v46 = vld [vmem:[#allocation84_spill] sm:$0xff]  ;;  %v14632_v37 = vld [vmem:[#allocation63_spill] sm:$0xff] }
 0xb29   :  { %14615 = vst [vmem:[#allocation118_spill] sm:$0xff] %v11643_v48  ;;  %v4747_v48 = vsel %vm3511_vm12, %v14617_v57, %v14623_v39  ;;  %v4779_v11 = vsel %vm3553_vm10, %v14626_v46, %v14625_v4  ;;  %v4393_v57 = vsel %vm3429_vm2, %v11439_v38, %v11421_v17  ;;  %v11693_v12 = vmul.f32 %v4729_v51, %v14470_v13 }
 0xb2a   :  { %v11658_v43 = vpop.permute.xlu2 %5002  ;;  %14620 = vst [vmem:[#allocation81_spill] sm:$0xff] %v11661_v42  ;;  %v4825_v42 = vrot.slane %v4765_v1, 4  ;;  %v4440_v23 = vsel %vm575_vm3, %v11487_v21, %v11382_v20  ;;  %v11700_v39 = vsel %vm273_vm8, %v4701_v26, %v4801_v49  ;;  %v11707_v14 = vsel %vm3553_vm10, %v14625_v4, %v14632_v37  ;;  %5282 = vrot.lane.b32.xlu1 %v11605_v27, %s6800_s23  ;;  %v14637_v26 = vld [vmem:[#allocation156_spill] sm:$0xff] }
 0xb2b   :  { %14619 = vst [vmem:[#allocation173_spill] sm:$0xff] %v11658_v43  ;;  %v14627_v43 = vld [vmem:[#allocation18_spill] sm:$0xff]  ;;  %v11719_v49 = vmul.f32 %v4779_v11, %v14637_v26  ;;  %v4425_v4 = vsel %vm14426_vm0, %v11502_v41, %v11483_v31  ;;  %v4442_v11 = vmul.f32 %v4440_v23, %v14593_v6  ;;  %v4456_v23 = vsel %vm3511_vm12, %v11431_v53, %v11635_v32 }
 0xb2c   :  { %14622 = vst [vmem:[#allocation117_spill] sm:$0xff] %v11667_v22  ;;  %v4762_v7 = vsel %vm3532_vm13, %v14602_v62, %v14627_v43  ;;  %v11690_v22 = vmul.f32 %v4748_v50, %v10572_v9  ;;  %v14631_v62 = vld [vmem:[#allocation150_spill] sm:$0xff]  ;;  %v14634_v50 = vld [vmem:[#allocation65_spill] sm:$0xff]  ;;  %5312 = vrot.lane.b32.xlu0 %v11477_v35, %s6791_s14  ;;  %vm5579_vm1 = vcmp.lt.s32.totalorder %v7004_v15, 80  ;;  %v3917_v15 = vpop.f32.mrf.mxu1 }
 0xb2d   :  { %14629 = vst [vmem:[#allocation169_spill] sm:$0xff] %v11693_v12  ;;  %v4749_v1 = vmul.f32 %v4747_v48, %v14631_v62  ;;  %v11713_v51 = vsel %vm273_vm8, %v14634_v50, %v4816_v61  ;;  %v11716_v12 = vsel %vm273_vm8, %v4704_v56, %v4804_v18  ;;  %v11722_v48 = vmul.f32 %v4762_v7, %v10626_v58  ;;  %v14639_v61 = vld [vmem:[#allocation50_spill] sm:$0xff]  ;;  %v4463_v7 = vpop.permute.xlu1 %4462  ;;  %v14641_v50 = vld [vmem:[#allocation96_spill] sm:$0xff] }
 0xb2e   :  { %14628 = vst [vmem:[#allocation25_spill] sm:$0xff] %v11690_v22  ;;  %v4394_v22 = vmul.f32 %v4393_v57, %v14581_v55  ;;  %v11735_v56 = vsel %vm3532_vm13, %v14627_v43, %v14639_v61  ;;  %v4764_v18 = vsel %vm3532_vm13, %v14639_v61, %v14603_v8  ;;  %v11751_v43 = vsel %vm3553_vm10, %v14632_v37, %v14641_v50  ;;  %v14643_v55 = vld [vmem:[#allocation119_spill] sm:$0xff] }
 0xb2f   :  { %14630 = vst [vmem:[#allocation106_spill] sm:$0xff] %v11700_v39  ;;  %v11745_v57 = vsel %vm273_vm8, %v4749_v1, %v4825_v42  ;;  %v4472_v42 = vsel %vm3532_vm13, %v4463_v7, %v11645_v60  ;;  %v4479_v1 = vpop.permute.xlu0 %4478  ;;  %v4422_v37 = vsel %vm14645_vm11, %v11318_v52, %v11502_v41  ;;  %v4426_v61 = vmul.f32 %v4425_v4, %v14601_v54  ;;  %vm14724_vm11 = vmmov %vm14426_vm0 }
 0xb30   :  { %14633 = vst [vmem:[#allocation177_spill] sm:$0xff] %v11707_v14  ;;  %5328 = vrot.lane.b32.xlu2 %v11477_v35, %s6779_s21  ;;  %v4474_v6 = vmul.f32 %v4472_v42, %v14613_v44  ;;  %v4377_v41 = vsel %vm3408_vm5, %v11437_v59, %v11417_v0  ;;  %v4522_v42 = vrot.slane %v4442_v11, 4  ;;  %v4441_v44 = vsel %vm575_vm3, %v11507_v10, %v11487_v21  ;;  %v14647_v11 = vld [vmem:[#allocation114_spill] sm:$0xff] }
 0xb31   :  { %14635 = vst [vmem:[#allocation105_spill] sm:$0xff] %v11713_v51  ;;  %v4488_v51 = vsel %vm3553_vm10, %v4479_v1, %v11471_v36  ;;  %v4458_v54 = vmul.f32 %v4456_v23, %v14631_v62  ;;  %v4378_v21 = vmul.f32 %v4377_v41, %v14608_v30  ;;  %v4445_v23 = vmul.f32 %v4441_v44, %v14543_v33 }
 0xb32   :  { %14636 = vst [vmem:[#allocation108_spill] sm:$0xff] %v11716_v12  ;;  %v14644_v12 = vld [vmem:[#allocation46_spill] sm:$0xff]  ;;  %v4490_v4 = vmul.f32 %v4488_v51, %v14637_v26  ;;  %v4534_v39 = vrot.slane %v4474_v6, 4  ;;  %v4429_v51 = vmul.f32 %v4422_v37, %v10562_v3  ;;  %5296 = vrot.lane.b32.xlu1 %v11477_v35, %s6792_s4  ;;  %v4391_v37 = vsel %vm3429_vm2, %v14647_v11, %v11449_v5 }
 0xb33   :  { %14638 = vst [vmem:[#allocation102_spill] sm:$0xff] %v11722_v48  ;;  %v4409_v8 = vsel %vm3450_vm7, %v14644_v12, %v14643_v55  ;;  %v14646_v48 = vld [vmem:[#allocation125_spill] sm:$0xff]  ;;  %v11790_v55 = vmul.f32 %v4764_v18, %v14545_v29  ;;  %v4510_v18 = vrot.slane %v4426_v61, 4  ;;  %v4406_v61 = vsel %vm3450_vm7, %v11453_v25, %v14644_v12 }
 0xb34   :  { %14640 = vst [vmem:[#allocation176_spill] sm:$0xff] %v11735_v56  ;;  %v4374_v14 = vsel %vm3408_vm5, %v14646_v48, %v11437_v59  ;;  %v4498_v56 = vrot.slane %v4394_v22, 4  ;;  %v11796_v59 = vsel %vm3553_vm10, %v14641_v50, %v14626_v46  ;;  %v4457_v22 = vsel %vm3511_vm12, %v11445_v40, %v11431_v53  ;;  %6552 = vmatpush.msk.msra.mxu0 %vm273_vm8, %v4490_v4 }
 0xb35   :  { %14642 = vst [vmem:[#allocation170_spill] sm:$0xff] %v11751_v43  ;;  %v11773_v43 = vpop.permute.xlu2 %5016  ;;  %v4410_v6 = vmul.f32 %v4409_v8, %v14610_v19  ;;  %v4554_v46 = vsel %vm273_vm8, %v4458_v54, %v4534_v39  ;;  %v11813_v50 = vsel %vm3429_vm2, %v11421_v17, %v14647_v11  ;;  %v11816_v53 = vmul.f32 %v4374_v14, %v10510_v45  ;;  %v4469_v39 = vpop.permute.xlu1 %4468  ;;  %v14648_v17 = vld [vmem:[#allocation153_spill] sm:$0xff] }
 0xb36   :  { %5318 = vrot.lane.b32.xlu0 %v11496_v47, %s6791_s14  ;;  %4585 = vmatpush.msra.mxu0 %v4554_v46  ;;  %v4461_v8 = vmul.f32 %v4457_v22, %v10572_v9  ;;  %v4390_v54 = vsel %vm3429_vm2, %v11449_v5, %v11439_v38  ;;  %v4550_v14 = vsel %vm273_vm8, %v14648_v17, %v4522_v42  ;;  %v4513_v38 = vrot.slane %v4429_v51, 4  ;;  %v14651_v17 = vld [vmem:[#allocation122_spill] sm:$0xff] }
 0xb37   :  { %v4542_v44 = vsel %vm273_vm8, %v4378_v21, %v4498_v56  ;;  %v4473_v41 = vsel %vm3532_vm13, %v4469_v39, %v4463_v7  ;;  %v4485_v4 = vpop.permute.xlu0 %4484  ;;  %v4471_v56 = vsel %vm3532_vm13, %v11645_v60, %v11457_v63  ;;  %v4546_v12 = vsel %vm273_vm8, %v4410_v6, %v4510_v18  ;;  %v14649_v21 = vld [vmem:[#allocation174_spill] sm:$0xff] }
 0xb38   :  { %5334 = vrot.lane.b32.xlu2 %v11496_v47, %s6779_s21  ;;  %4586 = vmatpush.msra.mxu0 %v4550_v14  ;;  %v4477_v42 = vmul.f32 %v4473_v41, %v14545_v29  ;;  %v4489_v5 = vsel %vm3553_vm10, %v4485_v4, %v4479_v1  ;;  %v4525_v51 = vrot.slane %v4445_v23, 4  ;;  %v4470_v7 = vsel %vm3532_vm13, %v11457_v63, %v4469_v39  ;;  %v14653_v63 = vld [vmem:[#allocation9_spill] sm:$0xff]  ;;  %v14657_v41 = vld [vmem:[#allocation154_spill] sm:$0xff] }
 0xb39   :  { %v4493_v46 = vmul.f32 %v4489_v5, %v14649_v21  ;;  %v4397_v1 = vmul.f32 %v4390_v54, %v10527_v2  ;;  %v4413_v11 = vmul.f32 %v4406_v61, %v10515_v28  ;;  %v4424_v6 = vsel %vm14652_vm9, %v11483_v31, %v14651_v17  ;;  %v14655_v14 = vld [vmem:[#allocation161_spill] sm:$0xff]  ;;  %vm14735_vm9 = vmmov %vm14426_vm0 }
 0xb3a   :  { %4587 = vmatpush.msra.mxu0 %v4546_v12  ;;  %v4537_v18 = vrot.slane %v4477_v42, 4  ;;  %v4438_v23 = vsel %vm575_vm3, %v14653_v63, %v11507_v10  ;;  %v4439_v39 = vsel %vm575_vm3, %v11382_v20, %v14653_v63  ;;  %v4475_v54 = vmul.f32 %v4471_v56, %v10626_v58  ;;  %5302 = vrot.lane.b32.xlu1 %v11496_v47, %s6792_s4  ;;  %v14661_v63 = vld [vmem:[#allocation31_spill] sm:$0xff]  ;;  %v14688_v9 = vld [vmem:[#allocation105_spill] sm:$0xff] }
 0xb3b   :  { %6558 = vmatpush.msk.msra.mxu3 %vm273_vm8, %v4493_v46  ;;  %v4423_v31 = vsel %vm14654_vm6, %v14651_v17, %v11318_v52  ;;  %v4476_v61 = vmul.f32 %v4470_v7, %v14655_v14  ;;  %v11888_v10 = vmul.f32 %v4424_v6, %v10543_v16  ;;  %v4553_v52 = vsel %vm273_vm8, %v14657_v41, %v4525_v51  ;;  %v14659_v17 = vld [vmem:[#allocation158_spill] sm:$0xff] }
 0xb3c   :  { %4588 = vmatpush.msra.mxu0 %v4542_v44  ;;  %v4557_v20 = vsel %vm273_vm8, %v4461_v8, %v4537_v18  ;;  %v14656_v44 = vld [vmem:[#allocation41_spill] sm:$0xff]  ;;  %v4549_v56 = vsel %vm273_vm8, %v4413_v11, %v4513_v38  ;;  %v4501_v42 = vrot.slane %v4397_v1, 4  ;;  %v4443_v5 = vmul.f32 %v4439_v39, %v14434_v34  ;;  %v14660_v18 = vld [vmem:[#allocation163_spill] sm:$0xff] }
 0xb3d   :  { %v11848_v22 = vpop.permute.xlu2 %5022  ;;  %4645 = vmatpush.msra.mxu3 %v4557_v20  ;;  %v4444_v12 = vmul.f32 %v4438_v23, %v14470_v13  ;;  %v4483_v7 = vpop.permute.xlu1 %4482  ;;  %v4535_v51 = vrot.slane %v4475_v54, 4  ;;  %v4536_v11 = vrot.slane %v4476_v61, 4  ;;  %v14662_v39 = vld [vmem:[#allocation13_spill] sm:$0xff]  ;;  %v14663_v54 = vld [vmem:[#allocation142_spill] sm:$0xff]  ;;  %v14664_v20 = vld [vmem:[#allocation155_spill] sm:$0xff] }
 0xb3e   :  { %v11859_v60 = vsel %vm14650_vm4, %v11848_v22, %v11773_v43  ;;  %6560 = vmatpush.msk.msrb.mxu0 %vm273_vm8, %v11719_v49  ;;  %5332 = vrot.lane.b32.xlu0 %v14656_v44, %s6779_s21  ;;  %v14658_v49 = vld [vmem:[#allocation127_spill] sm:$0xff]  ;;  %v4486_v46 = vsel %vm3553_vm10, %v4483_v7, %v4485_v4  ;;  %v4487_v1 = vsel %vm3553_vm10, %v11471_v36, %v4483_v7  ;;  %v4828_v4 = vrot.slane %v11790_v55, 4  ;;  %vm14730_vm4 = vmmov %vm14426_vm0 }
 0xb3f   :  { %v4455_v8 = vsel %vm3511_vm12, %v11635_v32, %v14658_v49  ;;  %v4454_v38 = vsel %vm3511_vm12, %v14658_v49, %v11445_v40  ;;  %v4973_v32 = vpop.permute.xlu0 %4972  ;;  %4646 = vmatpush.msra.mxu3 %v4553_v52  ;;  %v4491_v6 = vmul.f32 %v4487_v1, %v14659_v17  ;;  %v4395_v36 = vmul.f32 %v11813_v50, %v14662_v39  ;;  %v14665_v52 = vld [vmem:[#allocation11_spill] sm:$0xff] }
 0xb40   :  { %5346 = vrot.lane.b32.xlu2 %v11605_v27, %s6781_s22  ;;  %4876 = vmatpush.msrb.mxu0 %v11745_v57  ;;  %v4492_v57 = vmul.f32 %v4486_v46, %v14660_v18  ;;  %v11918_v23 = vsel %vm3408_vm5, %v4973_v32, %v14661_v63  ;;  %v4428_v61 = vmul.f32 %v4423_v31, %v14663_v54  ;;  %v4523_v7 = vrot.slane %v4443_v5, 4  ;;  %v14666_v46 = vld [vmem:[#allocation146_spill] sm:$0xff]  ;;  %v14668_v31 = vld [vmem:[#allocation119_spill] sm:$0xff] }
 0xb41   :  { %v4459_v41 = vmul.f32 %v4455_v8, %v14664_v20  ;;  %4647 = vmatpush.msra.mxu3 %v4549_v56  ;;  %v4396_v49 = vmul.f32 %v4391_v37, %v14665_v52  ;;  %v4460_v1 = vmul.f32 %v4454_v38, %v14666_v46  ;;  %6554 = vmatpush.msk.msra.mxu2 %vm273_vm8, %v4491_v6  ;;  %v4524_v56 = vrot.slane %v4444_v12, 4  ;;  %v14669_v5 = vld [vmem:[#allocation106_spill] sm:$0xff]  ;;  %v14670_v38 = vld [vmem:[#allocation176_spill] sm:$0xff] }
 0xb42   :  { %4877 = vmatpush.msrb.mxu0 %v11675_v24  ;;  %6556 = vmatpush.msk.msra.mxu1 %vm273_vm8, %v4492_v57  ;;  %v4545_v55 = vsel %vm273_vm8, %v11816_v53, %v4501_v42  ;;  %v14667_v24 = vld [vmem:[#allocation123_spill] sm:$0xff]  ;;  %v11946_v6 = vmul.f32 %v14670_v38, %v14655_v14  ;;  %v4784_v53 = vmul.f32 %v11796_v59, %v14649_v21  ;;  %v14671_v12 = vld [vmem:[#allocation120_spill] sm:$0xff]  ;;  %v4512_v63 = vrot.slane %v4428_v61, 4  ;;  %v14677_v38 = vld [vmem:[#allocation109_spill] sm:$0xff] }
 0xb43   :  { %v4407_v50 = vsel %vm3450_vm7, %v14667_v24, %v11453_v25  ;;  %v4408_v37 = vsel %vm3450_vm7, %v14668_v31, %v14667_v24  ;;  %4648 = vmatpush.msra.mxu3 %v4545_v55  ;;  %v4555_v8 = vsel %vm273_vm8, %v4459_v41, %v4535_v51  ;;  %v4511_v25 = vrot.slane %v11888_v10, 4  ;;  %5316 = vrot.lane.b32.xlu1 %v14656_v44, %s6791_s14  ;;  %v14672_v59 = vld [vmem:[#allocation167_spill] sm:$0xff]  ;;  %v14673_v10 = vld [vmem:[#allocation25_spill] sm:$0xff] }
 0xb44   :  { %4878 = vmatpush.msrb.mxu0 %v14669_v5  ;;  %4605 = vmatpush.msra.mxu2 %v4555_v8  ;;  %v4556_v42 = vsel %vm273_vm8, %v4460_v1, %v4536_v11  ;;  %v4375_v51 = vsel %vm3408_vm5, %v14671_v12, %v14646_v48  ;;  %v4376_v57 = vsel %vm3408_vm5, %v11417_v0, %v14671_v12  ;;  %v4499_v55 = vrot.slane %v4395_v36, 4  ;;  %v14674_v24 = vld [vmem:[#allocation137_spill] sm:$0xff]  ;;  %v14675_v1 = vld [vmem:[#allocation138_spill] sm:$0xff]  ;;  %v14676_v5 = vld [vmem:[#allocation144_spill] sm:$0xff] }
 0xb45   :  { %v11921_v40 = vpop.permute.xlu2 %5036  ;;  %4625 = vmatpush.msra.mxu1 %v4556_v42  ;;  %v4848_v41 = vsel %vm273_vm8, %v14673_v10, %v4828_v4  ;;  %v4411_v11 = vmul.f32 %v4408_v37, %v14674_v24  ;;  %v4412_v31 = vmul.f32 %v4407_v50, %v14675_v1  ;;  %6566 = vmatpush.msk.msrb.mxu3 %vm273_vm8, %v4784_v53  ;;  %v4971_v48 = vpop.permute.xlu1 %4970  ;;  %v4500_v61 = vrot.slane %v4396_v49, 4  ;;  %v14678_v36 = vld [vmem:[#allocation12_spill] sm:$0xff]  ;;  %v14679_v53 = vld [vmem:[#allocation126_spill] sm:$0xff] }
 0xb46   :  { %4879 = vmatpush.msrb.mxu0 %v14672_v59  ;;  %5350 = vrot.lane.b32.xlu0 %v11496_v47, %s6781_s22  ;;  %v4551_v0 = vsel %vm273_vm8, %v14676_v5, %v4523_v7  ;;  %v4977_v8 = vsel %vm3408_vm5, %v4971_v48, %v4973_v32  ;;  %v11977_v4 = vsel %vm3408_vm5, %v14677_v38, %v4971_v48  ;;  %v4792_v42 = vrot.slane %v14679_v53, 4  ;;  %v14680_v7 = vld [vmem:[#allocation128_spill] sm:$0xff]  ;;  %v14682_v48 = vld [vmem:[#allocation86_spill] sm:$0xff] }
 0xb47   :  { %4606 = vmatpush.msra.mxu2 %v4551_v0  ;;  %v4552_v50 = vsel %vm273_vm8, %v14678_v36, %v4524_v56  ;;  %v4987_v37 = vpop.permute.xlu0 %4986  ;;  %v4379_v49 = vmul.f32 %v4376_v57, %v14680_v7  ;;  %4936 = vmatpush.msrb.mxu3 %v4848_v41  ;;  %v14681_v32 = vld [vmem:[#allocation152_spill] sm:$0xff]  ;;  %v4547_v59 = vsel %vm273_vm8, %v4411_v11, %v4511_v25  ;;  %v14683_v5 = vld [vmem:[#allocation54_spill] sm:$0xff]  ;;  %v14684_v0 = vld [vmem:[#allocation129_spill] sm:$0xff] }
 0xb48   :  { %5360 = vrot.lane.b32.xlu2 %v11477_v35, %s6794_s5  ;;  %4626 = vmatpush.msra.mxu1 %v4552_v50  ;;  %v4993_v12 = vsel %vm3429_vm2, %v4987_v37, %v14681_v32  ;;  %v4746_v56 = vsel %vm3511_vm12, %v14683_v5, %v14682_v48  ;;  %v4380_v38 = vmul.f32 %v4375_v51, %v14684_v0  ;;  %v14685_v41 = vld [vmem:[#allocation177_spill] sm:$0xff]  ;;  %v14686_v53 = vld [vmem:[#allocation102_spill] sm:$0xff]  ;;  %v4827_v51 = vrot.slane %v11946_v6, 4 }
 0xb49   :  { %v4998_v36 = vmul.f32 %v4993_v12, %v14665_v52  ;;  %4607 = vmatpush.msra.mxu2 %v4547_v59  ;;  %v4548_v57 = vsel %vm273_vm8, %v4412_v31, %v4512_v63  ;;  %v4782_v50 = vmul.f32 %v14685_v41, %v14659_v17  ;;  %v4826_v21 = vrot.slane %v14686_v53, 4  ;;  %v14687_v25 = vld [vmem:[#allocation170_spill] sm:$0xff]  ;;  %4937 = vmatpush.msrb.mxu3 %v14688_v9  ;;  %v14689_v31 = vld [vmem:[#allocation151_spill] sm:$0xff]  ;;  %v14693_v6 = vld [vmem:[#allocation53_spill] sm:$0xff] }
 0xb4a   :  { %v4783_v11 = vmul.f32 %v14687_v25, %v14660_v18  ;;  %4627 = vmatpush.msra.mxu1 %v4548_v57  ;;  %v4543_v48 = vsel %vm273_vm8, %v4379_v49, %v4499_v55  ;;  %v4982_v12 = vmul.f32 %v4977_v8, %v14684_v0  ;;  %v4544_v63 = vsel %vm273_vm8, %v4380_v38, %v4500_v61  ;;  %v14690_v41 = vld [vmem:[#allocation175_spill] sm:$0xff]  ;;  %v14691_v57 = vld [vmem:[#allocation108_spill] sm:$0xff]  ;;  %v14694_v49 = vld [vmem:[#allocation22_spill] sm:$0xff] }
 0xb4b   :  { %v5102_v59 = vrot.slane %v4998_v36, 4  ;;  %4608 = vmatpush.msra.mxu2 %v4543_v48  ;;  %v4687_v5 = vmul.f32 %v14689_v31, %v14665_v52  ;;  %v4814_v53 = vrot.slane %v14690_v41, 4  ;;  %v4750_v25 = vmul.f32 %v4746_v56, %v14664_v20  ;;  %4938 = vmatpush.msrb.mxu3 %v14691_v57  ;;  %v14692_v9 = vld [vmem:[#allocation115_spill] sm:$0xff]  ;;  %v14695_v61 = vld [vmem:[#allocation117_spill] sm:$0xff]  ;;  %v14698_v31 = vld [vmem:[#allocation56_spill] sm:$0xff] }
 0xb4c   :  { %4628 = vmatpush.msra.mxu1 %v4544_v63  ;;  %v4836_v55 = vsel %vm273_vm8, %v14692_v9, %v4792_v42  ;;  %v4699_v8 = vsel %vm3450_vm7, %v14694_v49, %v14693_v6  ;;  %v4751_v38 = vmul.f32 %v14695_v61, %v14666_v46  ;;  %v14696_v36 = vld [vmem:[#allocation169_spill] sm:$0xff]  ;;  %v14697_v63 = vld [vmem:[#allocation40_spill] sm:$0xff]  ;;  %v14700_v9 = vld [vmem:[#allocation118_spill] sm:$0xff]  ;;  %5330 = vrot.lane.b32.xlu1 %v11605_v27, %s6779_s21 }
 0xb4d   :  { %v11989_v10 = vpop.permute.xlu2 %5050  ;;  %v4815_v48 = vrot.slane %v14696_v36, 4  ;;  %6562 = vmatpush.msk.msrb.mxu2 %vm273_vm8, %v4782_v50  ;;  %v12025_v56 = vsel %vm273_vm8, %v4982_v12, %v5102_v59  ;;  %v4666_v42 = vsel %vm3408_vm5, %v14698_v31, %v14697_v63  ;;  %v14699_v41 = vld [vmem:[#allocation76_spill] sm:$0xff]  ;;  %v4802_v49 = vrot.slane %v14700_v9, 4  ;;  %4939 = vmatpush.msrb.mxu3 %v4836_v55  ;;  %v14702_v61 = vld [vmem:[#allocation81_spill] sm:$0xff] }
 0xb4e   :  { %6564 = vmatpush.msk.msrb.mxu1 %vm273_vm8, %v4783_v11  ;;  %v4698_v57 = vsel %vm3450_vm7, %v14693_v6, %v14699_v41  ;;  %v4846_v50 = vsel %vm273_vm8, %v4750_v25, %v4826_v21  ;;  %v4985_v11 = vpop.permute.xlu1 %4984  ;;  %v14701_v12 = vld [vmem:[#allocation48_spill] sm:$0xff]  ;;  %v4803_v36 = vrot.slane %v14702_v61, 4  ;;  %5364 = vrot.lane.b32.xlu0 %v14656_v44, %s6794_s5  ;;  %v4847_v6 = vsel %vm273_vm8, %v4751_v38, %v4827_v51  ;;  %v14703_v21 = vld [vmem:[#allocation93_spill] sm:$0xff]  ;;  %v14705_v38 = vld [vmem:[#allocation66_spill] sm:$0xff] }
 0xb4f   :  { %v4667_v59 = vsel %vm3408_vm5, %v14701_v12, %v14698_v31  ;;  %4896 = vmatpush.msrb.mxu2 %v4846_v50  ;;  %v4994_v63 = vsel %vm3429_vm2, %v4985_v11, %v4987_v37  ;;  %v12049_v55 = vpop.permute.xlu0 %5000  ;;  %v4790_v25 = vrot.slane %v14703_v21, 4  ;;  %v4702_v41 = vmul.f32 %v4699_v8, %v14674_v24  ;;  %v14704_v9 = vld [vmem:[#allocation4_spill] sm:$0xff] }
 0xb50   :  { %4916 = vmatpush.msrb.mxu1 %v4847_v6  ;;  %v4997_v31 = vmul.f32 %v4994_v63, %v14662_v39  ;;  %5366 = vrot.lane.b32.xlu2 %v11496_v47, %s6794_s5  ;;  %v4842_v50 = vsel %vm273_vm8, %v14704_v9, %v4814_v53  ;;  %v4791_v51 = vrot.slane %v4687_v5, 4  ;;  %v4703_v37 = vmul.f32 %v4698_v57, %v14675_v1 }
 0xb51   :  { %4897 = vmatpush.msrb.mxu2 %v4842_v50  ;;  %v4843_v61 = vsel %vm273_vm8, %v14705_v38, %v4815_v48  ;;  %v4670_v8 = vmul.f32 %v4667_v59, %v14680_v7  ;;  %v4981_v6 = vmul.f32 %v11977_v4, %v14680_v7  ;;  %v4838_v21 = vsel %vm273_vm8, %v4702_v41, %v4802_v49  ;;  %v14706_v48 = vld [vmem:[#allocation143_spill] sm:$0xff]  ;;  %v14708_v38 = vld [vmem:[#allocation37_spill] sm:$0xff] }
 0xb52   :  { %v5101_v63 = vrot.slane %v4997_v31, 4  ;;  %4917 = vmatpush.msrb.mxu1 %v4843_v61  ;;  %v4671_v53 = vmul.f32 %v4666_v42, %v14684_v0  ;;  %v4839_v5 = vsel %vm273_vm8, %v4703_v37, %v4803_v36  ;;  %v5028_v59 = vmul.f32 %v11859_v60, %v14706_v48  ;;  %v14707_v60 = vld [vmem:[#allocation135_spill] sm:$0xff] }
 0xb53   :  { %4898 = vmatpush.msrb.mxu2 %v4838_v21  ;;  %v4834_v57 = vsel %vm273_vm8, %v4670_v8, %v4790_v25  ;;  %v4983_v61 = vmul.f32 %v11918_v23, %v10510_v45 }
 0xb54   :  { %4918 = vmatpush.msrb.mxu1 %v4839_v5  ;;  %v12071_v9 = vsel %vm273_vm8, %v4981_v6, %v5101_v63  ;;  %v4835_v4 = vsel %vm273_vm8, %v4671_v53, %v4791_v51  ;;  %5344 = vrot.lane.b32.xlu1 %v11477_v35, %s6781_s22  ;;  %v5112_v37 = vrot.slane %v5028_v59, 4 }
 0xb55   :  { %v12058_v12 = vpop.permute.xlu2 %5064  ;;  %4899 = vmatpush.msrb.mxu2 %v4834_v57 }
 0xb56   :  { %4919 = vmatpush.msrb.mxu1 %v4835_v4  ;;  %v4991_v42 = vpop.permute.xlu1 %4990  ;;  %5378 = vrot.lane.b32.xlu0 %v11605_v27, %s6801_s25 }
 0xb57   :  { %v4992_v49 = vsel %vm3429_vm2, %v14681_v32, %v4991_v42  ;;  %v4995_v36 = vsel %vm3429_vm2, %v4991_v42, %v4985_v11  ;;  %v5007_v25 = vpop.permute.xlu0 %5006  ;;  %v4980_v11 = vmul.f32 %v14708_v38, %v14608_v30 }
 0xb58   :  { %v4996_v41 = vmul.f32 %v4995_v36, %v14707_v60  ;;  %v4999_v31 = vmul.f32 %v4992_v49, %v10527_v2  ;;  %5380 = vrot.lane.b32.xlu2 %v14656_v44, %s6801_s25  ;;  %v5011_v50 = vsel %vm3450_vm7, %v5007_v25, %v12049_v55  ;;  %v14710_v49 = vld [vmem:[#allocation14_spill] sm:$0xff] }
 0xb59   :  { %v5012_v32 = vmul.f32 %v5011_v50, %v14610_v19  ;;  %v5584_v36 = vperm.slane %v14710_v49, 7  ;;  %v14722_v19 = vld [vmem:[#allocation139_spill] sm:$0xff] }
 0xb5a   :  { %v5100_v8 = vrot.slane %v4996_v41, 4  ;;  %v5103_v6 = vrot.slane %v4999_v31, 4  ;;  %v14711_v41 = vld [vmem:[#allocation51_spill] sm:$0xff]  ;;  %v14712_v31 = vld [vmem:[#allocation80_spill] sm:$0xff] }
 0xb5b   :  { %v12100_v63 = vsel %vm273_vm8, %v5012_v32, %v5112_v37 }
 0xb5c   :  { %v12103_v21 = vsel %vm273_vm8, %v4980_v11, %v5100_v8  ;;  %v12106_v53 = vsel %vm273_vm8, %v4983_v61, %v5103_v6  ;;  %5348 = vrot.lane.b32.xlu1 %v14656_v44, %s6781_s22  ;;  %v14713_v11 = vld [vmem:[#allocation173_spill] sm:$0xff] }
 0xb5d   :  { %v12092_v51 = vpop.permute.xlu2 %5070  ;;  %v5010_v61 = vsel %vm3450_vm7, %v12049_v55, %v14713_v11 }
 0xb5e   :  { %v12110_v5 = vpop.permute.xlu1 %5004  ;;  %5392 = vrot.lane.b32.xlu0 %v11477_v35, %s6796_s0 }
 0xb5f   :  { %v12114_v23 = vpop.permute.xlu0 %5020  ;;  %v5008_v57 = vsel %vm3450_vm7, %v12110_v5, %v5007_v25  ;;  %v5582_v25 = vsel %vm5579_vm1, %v14712_v31, %v14711_v41 }
 0xb60   :  { %5394 = vrot.lane.b32.xlu2 %v11605_v27, %s6796_s0  ;;  %v5024_v59 = vsel %vm14709_vm14, %v12114_v23, %v11848_v22  ;;  %v5015_v50 = vmul.f32 %v5008_v57, %v10515_v28  ;;  %v12138_v22 = vmul.f32 %v5584_v36, %v5582_v25  ;;  %v14715_v36 = vld [vmem:[#allocation59_spill] sm:$0xff] }
 0xb61   :  { %v5031_v42 = vmul.f32 %v5024_v59, %v10562_v3  ;;  %v5587_v55 = vperm.slane %v14715_v36, 7  ;;  %v14716_v25 = vld [vmem:[#allocation95_spill] sm:$0xff] }
 0xb63   :  { %v5115_v37 = vrot.slane %v5031_v42, 4  ;;  %v14714_v42 = vld [vmem:[#allocation29_spill] sm:$0xff] }
 0xb64   :  { %5362 = vrot.lane.b32.xlu1 %v11605_v27, %s6794_s5  ;;  %v5586_v49 = vperm.slane %v14714_v42, 7  ;;  %v5013_v27 = vmul.f32 %v5010_v61, %v14674_v24  ;;  %v5583_v42 = vsel %vm5579_vm1, %v14716_v25, %v14712_v31 }
 0xb65   :  { %v12125_v4 = vpop.permute.xlu2 %5084  ;;  %v12136_v32 = vsel %vm273_vm8, %v5015_v50, %v5115_v37  ;;  %v14717_v50 = vld [vmem:[#allocation20_spill] sm:$0xff] }
 0xb66   :  { %v12142_v38 = vpop.permute.xlu1 %5018  ;;  %5398 = vrot.lane.b32.xlu0 %v11496_v47, %s6796_s0  ;;  %v5580_v37 = vsel %vm5579_vm1, %v14717_v50, %v14716_v25 }
 0xb67   :  { %v5026_v8 = vsel %vm14426_vm0, %v11773_v43, %v12142_v38  ;;  %v5035_v6 = vpop.permute.xlu0 %5034  ;;  %v12181_v61 = vmul.f32 %v5586_v49, %v5580_v37  ;;  %v14719_v49 = vld [vmem:[#allocation72_spill] sm:$0xff] }
 0xb68   :  { %v5029_v57 = vmul.f32 %v5026_v8, %v10543_v16  ;;  %5688 = vrot.lane.b32.xlu2 %v12138_v22, %s6801_s25  ;;  %v12169_v8 = vld [vmem:[%s13338_s15] sm:$0xff]  ;;  %v5585_v25 = vperm.slane %v14719_v49, 7 }
 0xb69   :  { %14718 = vst [vmem:[#allocation164_spill] sm:$0xff] %v12169_v8  ;;  %v4558_v30 = vrot.slane %v12169_v8, 3 }
 0xb6a   :  { %v5113_v43 = vrot.slane %v5029_v57, 4  ;;  %v12185_v57 = vmul.f32 %v5587_v55, %v5583_v42  ;;  %v5581_v55 = vsel %vm5579_vm1, %v14711_v41, %v14717_v50  ;;  %vm14745_vm1 = vmmov %vm14426_vm0 }
 0xb6b   :  { %6555 = vmatmul.msk.f32.vlgmr.msra.gmra.mxu2 %vm3845_vm15, %v4558_v30  ;;  %6553 = vmatmul.msk.f32.vlgmr.msra.gmra.mxu0 %vm3845_vm15, %v4558_v30  ;;  %v12207_v37 = vmul.f32 %v5585_v25, %v5581_v55  ;;  %v5041_v55 = vsel %vm575_vm3, %v5035_v6, %v11921_v40 }
 0xb6c   :  { %v12178_v36 = vsel %vm273_vm8, %v5013_v27, %v5113_v43  ;;  %6557 = vmatmul.msk.f32.vlgmr.msra.gmra.mxu1 %vm3845_vm15, %v4558_v30  ;;  %6559 = vmatmul.msk.f32.vlgmr.msra.gmra.mxu3 %vm3845_vm15, %v4558_v30 }
 0xb6d   :  { %v12157_v59 = vpop.permute.xlu2 %5280  ;;  %5376 = vrot.lane.b32.xlu1 %v11477_v35, %s6801_s25 }
 0xb6e   :  { %v12189_v60 = vpop.permute.xlu1 %5032  ;;  %5692 = vrot.lane.b32.xlu0 %v12181_v61, %s6801_s25 }
 0xb6f   :  { %v12193_v27 = vpop.permute.xlu0 %5048  ;;  %v5042_v45 = vsel %vm575_vm3, %v12189_v60, %v5035_v6  ;;  %v14723_v6 = vld [vmem:[#allocation116_spill] sm:$0xff] }
 0xb70   :  { %5694 = vrot.lane.b32.xlu2 %v12185_v57, %s6801_s25  ;;  %v5044_v39 = vmul.f32 %v5042_v45, %v14722_v19 }
 0xb75   :  { %v5287_v31 = vpop.permute.xlu2 %5286  ;;  %5382 = vrot.lane.b32.xlu1 %v11496_v47, %s6801_s25  ;;  %v5045_v47 = vmul.f32 %v5041_v55, %v14434_v34 }
 0xb76   :  { %v12201_v30 = vsel %vm3408_vm5, %v5287_v31, %v12157_v59  ;;  %v5039_v43 = vpop.permute.xlu1 %5038  ;;  %5706 = vrot.lane.b32.xlu0 %v12207_v37, %s6796_s0 }
 0xb77   :  { %14720 = vst [vmem:[#allocation168_spill] sm:$0xff] %v12201_v30  ;;  %v12213_v42 = vpop.permute.xlu0 %5054  ;;  %v5125_v3 = vrot.slane %v5045_v47, 4 }
 0xb78   :  { %5708 = vrot.lane.b32.xlu2 %v12181_v61, %s6796_s0 }
 0xb7d   :  { %v12217_v49 = vpop.permute.xlu2 %5300  ;;  %5396 = vrot.lane.b32.xlu1 %v14656_v44, %s6796_s0 }
 0xb7e   :  { %v5053_v41 = vpop.permute.xlu1 %5052  ;;  %5656 = vrot.lane.b32.xlu0 %v12138_v22, %s6781_s22 }
 0xb7f   :  { %v5069_v50 = vpop.permute.xlu0 %5068  ;;  %v5057_v30 = vsel %vm3511_vm12, %v11989_v10, %v5053_v41 }
 0xb80   :  { %5658 = vrot.lane.b32.xlu2 %v12207_v37, %s6781_s22 }
 0xb85   :  { %v12225_v25 = vpop.permute.xlu2 %5314  ;;  %5690 = vrot.lane.b32.xlu1 %v12207_v37, %s6801_s25 }
 0xb86   :  { %v5067_v44 = vpop.permute.xlu1 %5066  ;;  %5662 = vrot.lane.b32.xlu0 %v12185_v57, %s6781_s22 }
 0xb87   :  { %v5073_v35 = vsel %vm3532_vm13, %v5067_v44, %v5069_v50  ;;  %v5083_v24 = vpop.permute.xlu0 %5082  ;;  %v5074_v16 = vsel %vm3532_vm13, %v12058_v12, %v5067_v44  ;;  %v5061_v44 = vmul.f32 %v5057_v30, %v14664_v20  ;;  %v5153_v30 = vsel %vm273_vm8, %v14723_v6, %v5125_v3 }
 0xb88   :  { %v5077_v55 = vmul.f32 %v5073_v35, %v10626_v58  ;;  %5672 = vrot.lane.b32.xlu2 %v12138_v22, %s6794_s5  ;;  %v5089_v34 = vsel %vm3553_vm10, %v5083_v24, %v12125_v4  ;;  %v14721_v35 = vld [vmem:[#allocation159_spill] sm:$0xff] }
 0xb89   :  { %v5093_v8 = vmul.f32 %v5089_v34, %v14659_v17  ;;  %v5076_v58 = vmul.f32 %v5074_v16, %v14721_v35  ;;  %v5058_v34 = vsel %vm3511_vm12, %v12193_v27, %v11989_v10 }
 0xb8a   :  { %v5137_v2 = vrot.slane %v5077_v55, 4  ;;  %v5040_v55 = vsel %vm575_vm3, %v11921_v40, %v5039_v43  ;;  %v5059_v40 = vsel %vm3511_vm12, %v12213_v42, %v12193_v27 }
 0xb8b   :  { %6570 = vmatpush.msk.msra.mxu2 %vm273_vm8, %v5093_v8  ;;  %v5136_v16 = vrot.slane %v5076_v58, 4  ;;  %v5060_v8 = vmul.f32 %v5058_v34, %v14631_v62  ;;  %v14726_v34 = vld [vmem:[#allocation147_spill] sm:$0xff] }
 0xb8c   :  { %v5157_v7 = vsel %vm273_vm8, %v5061_v44, %v5137_v2  ;;  %v5063_v6 = vmul.f32 %v5059_v40, %v14726_v34 }
 0xb8d   :  { %v12249_v28 = vpop.permute.xlu2 %5328  ;;  %5207 = vmatpush.msra.mxu2 %v5157_v7  ;;  %5704 = vrot.lane.b32.xlu1 %v12138_v22, %s6796_s0  ;;  %v5072_v7 = vsel %vm3532_vm13, %v5069_v50, %v12092_v51  ;;  %v5075_v50 = vsel %vm3532_vm13, %v12092_v51, %v12058_v12  ;;  %v5156_v12 = vsel %vm273_vm8, %v5060_v8, %v5136_v16 }
 0xb8e   :  { %v5081_v47 = vpop.permute.xlu1 %5080  ;;  %5676 = vrot.lane.b32.xlu0 %v12181_v61, %s6794_s5  ;;  %v5079_v51 = vmul.f32 %v5075_v50, %v14545_v29 }
 0xb8f   :  { %v5090_v2 = vsel %vm3553_vm10, %v5081_v47, %v5083_v24  ;;  %v12272_v45 = vpop.permute.xlu0 %5284  ;;  %5208 = vmatpush.msra.mxu2 %v5153_v30  ;;  %v5124_v24 = vrot.slane %v5044_v39, 4  ;;  %v5025_v39 = vsel %vm14724_vm11, %v12142_v38, %v12114_v23  ;;  %v5046_v23 = vmul.f32 %v5040_v55, %v14470_v13  ;;  %v14725_v38 = vld [vmem:[#allocation111_spill] sm:$0xff]  ;;  %vm14760_vm11 = vmmov %vm14426_vm0 }
 0xb90   :  { %v5092_v10 = vmul.f32 %v5090_v2, %v14637_v26  ;;  %5678 = vrot.lane.b32.xlu2 %v12185_v57, %s6794_s5  ;;  %v12283_v3 = vsel %vm3408_vm5, %v12272_v45, %v5287_v31  ;;  %v5078_v31 = vmul.f32 %v5072_v7, %v14655_v14  ;;  %v5009_v55 = vsel %vm3450_vm7, %v14713_v11, %v12110_v5  ;;  %v14729_v11 = vld [vmem:[#allocation124_spill] sm:$0xff] }
 0xb91   :  { %5209 = vmatpush.msra.mxu2 %v12178_v36  ;;  %v5043_v36 = vsel %vm575_vm3, %v5039_v43, %v12189_v60  ;;  %v5152_v44 = vsel %vm273_vm8, %v14725_v38, %v5124_v24  ;;  %v5030_v60 = vmul.f32 %v5025_v39, %v14663_v54  ;;  %v5014_v40 = vmul.f32 %v5009_v55, %v14675_v1 }
 0xb92   :  { %6568 = vmatpush.msk.msra.mxu0 %vm273_vm8, %v5092_v10  ;;  %v5047_v43 = vmul.f32 %v5043_v36, %v14543_v33  ;;  %v5138_v30 = vrot.slane %v5078_v31, 4 }
 0xb93   :  { %5210 = vmatpush.msra.mxu2 %v12071_v9  ;;  %v5056_v9 = vsel %vm3511_vm12, %v5053_v41, %v12213_v42  ;;  %v14727_v41 = vld [vmem:[#allocation174_spill] sm:$0xff]  ;;  %v5114_v36 = vrot.slane %v5030_v60, 4 }
 0xb94   :  { %5187 = vmatpush.msra.mxu0 %v5156_v12  ;;  %v5062_v50 = vmul.f32 %v5056_v9, %v14666_v46  ;;  %v5127_v39 = vrot.slane %v5047_v43, 4 }
 0xb95   :  { %v12285_v58 = vpop.permute.xlu2 %5334  ;;  %5710 = vrot.lane.b32.xlu1 %v12185_v57, %s6796_s0  ;;  %v5150_v43 = vsel %vm273_vm8, %v5014_v40, %v5114_v36 }
 0xb96   :  { %v5087_v27 = vpop.permute.xlu1 %5086  ;;  %5188 = vmatpush.msra.mxu0 %v5152_v44  ;;  %5642 = vrot.lane.b32.xlu0 %v12207_v37, %s6779_s21 }
 0xb97   :  { %v5088_v16 = vsel %vm3553_vm10, %v12125_v4, %v5087_v27  ;;  %v5091_v2 = vsel %vm3553_vm10, %v5087_v27, %v5081_v47  ;;  %v5299_v7 = vpop.permute.xlu0 %5298  ;;  %v5126_v4 = vrot.slane %v5046_v23, 4  ;;  %v5139_v47 = vrot.slane %v5079_v51, 4  ;;  %v14728_v51 = vld [vmem:[#allocation134_spill] sm:$0xff] }
 0xb98   :  { %v5094_v42 = vmul.f32 %v5088_v16, %v14660_v18  ;;  %v5095_v10 = vmul.f32 %v5091_v2, %v14727_v41  ;;  %5644 = vrot.lane.b32.xlu2 %v12181_v61, %s6779_s21  ;;  %v5305_v24 = vsel %vm3429_vm2, %v5299_v7, %v12217_v49  ;;  %5189 = vmatpush.msra.mxu0 %v12100_v63 }
 0xb99   :  { %v5158_v63 = vsel %vm273_vm8, %v5062_v50, %v5138_v30  ;;  %v5310_v31 = vmul.f32 %v5305_v24, %v14665_v52  ;;  %v5159_v12 = vsel %vm273_vm8, %v5063_v6, %v5139_v47  ;;  %v5154_v5 = vsel %vm273_vm8, %v14728_v51, %v5126_v4  ;;  %v14732_v4 = vld [vmem:[#allocation132_spill] sm:$0xff] }
 0xb9a   :  { %5190 = vmatpush.msra.mxu0 %v12103_v21  ;;  %6572 = vmatpush.msk.msra.mxu1 %vm273_vm8, %v5094_v42  ;;  %v5155_v23 = vsel %vm273_vm8, %v14729_v11, %v5127_v39  ;;  %v14731_v42 = vld [vmem:[#allocation13_spill] sm:$0xff]  ;;  %v14733_v47 = vld [vmem:[#allocation128_spill] sm:$0xff]  ;;  %v14736_v11 = vld [vmem:[#allocation131_spill] sm:$0xff] }
 0xb9b   :  { %6574 = vmatpush.msk.msra.mxu3 %vm273_vm8, %v5095_v10  ;;  %v5414_v9 = vrot.slane %v5310_v31, 4  ;;  %v14734_v51 = vld [vmem:[#allocation136_spill] sm:$0xff] }
 0xb9c   :  { %5227 = vmatpush.msra.mxu1 %v5158_v63 }
 0xb9d   :  { %v12338_v8 = vpop.permute.xlu2 %5346  ;;  %5247 = vmatpush.msra.mxu3 %v5159_v12  ;;  %5660 = vrot.lane.b32.xlu1 %v12181_v61, %s6781_s22 }
 0xb9e   :  { %v5283_v21 = vpop.permute.xlu1 %5282  ;;  %5228 = vmatpush.msra.mxu1 %v5154_v5  ;;  %5608 = vrot.lane.b32.xlu0 %v12138_v22, %s6792_s4 }
 0xb9f   :  { %v5289_v38 = vsel %vm3408_vm5, %v5283_v21, %v12272_v45  ;;  %v5290_v44 = vsel %vm3408_vm5, %v12157_v59, %v5283_v21  ;;  %5248 = vmatpush.msra.mxu3 %v5155_v23  ;;  %v5313_v60 = vpop.permute.xlu0 %5312  ;;  %v5339_v59 = vsel %vm14730_vm4, %v12285_v58, %v12249_v28  ;;  %v5295_v23 = vmul.f32 %v12283_v3, %v14736_v11  ;;  %vm14761_vm4 = vmmov %vm14426_vm0 }
 0xba0   :  { %v5294_v27 = vmul.f32 %v5289_v38, %v14684_v0  ;;  %5610 = vrot.lane.b32.xlu2 %v12207_v37, %s6792_s4  ;;  %v12373_v6 = vsel %vm3450_vm7, %v5313_v60, %v12225_v25  ;;  %5229 = vmatpush.msra.mxu1 %v5150_v43  ;;  %v5340_v16 = vmul.f32 %v5339_v59, %v14706_v48  ;;  %v14738_v43 = vld [vmem:[#allocation145_spill] sm:$0xff] }
 0xba1   :  { %5249 = vmatpush.msra.mxu3 %v12136_v32  ;;  %v5293_v55 = vmul.f32 %v5290_v44, %v14733_v47 }
 0xba2   :  { %5230 = vmatpush.msra.mxu1 %v12025_v56  ;;  %v12384_v30 = vsel %vm273_vm8, %v5294_v27, %v5414_v9  ;;  %v5424_v24 = vrot.slane %v5340_v16, 4  ;;  %v14739_v9 = vld [vmem:[#allocation164_spill] sm:$0xff] }
 0xba3   :  { %5250 = vmatpush.msra.mxu3 %v12106_v53  ;;  %v4849_v27 = vrot.slane %v14739_v9, 4 }
 0xba5   :  { %v12376_v45 = vpop.permute.xlu2 %5360  ;;  %5674 = vrot.lane.b32.xlu1 %v12207_v37, %s6794_s5  ;;  %6561 = vmatmul.msk.f32.vlgmr.msrb.gmra.mxu0 %vm3845_vm15, %v4849_v27 }
 0xba6   :  { %v12390_v32 = vpop.permute.xlu1 %5296  ;;  %5614 = vrot.lane.b32.xlu0 %v12185_v57, %s6792_s4  ;;  %6567 = vmatmul.msk.f32.vlgmr.msrb.gmra.mxu3 %vm3845_vm15, %v4849_v27 }
 0xba7   :  { %v5306_v2 = vsel %vm3429_vm2, %v12390_v32, %v5299_v7  ;;  %6563 = vmatmul.msk.f32.vlgmr.msrb.gmra.mxu2 %vm3845_vm15, %v4849_v27  ;;  %6565 = vmatmul.msk.f32.vlgmr.msrb.gmra.mxu1 %vm3845_vm15, %v4849_v27 }
 0xba8   :  { %v5319_v56 = vpop.permute.xlu0 %5318  ;;  %v5309_v10 = vmul.f32 %v5306_v2, %v14731_v42  ;;  %5624 = vrot.lane.b32.xlu2 %v12138_v22, %s6791_s14 }
 0xba9   :  { %v5323_v53 = vsel %vm3450_vm7, %v5319_v56, %v5313_v60  ;;  %v14737_v60 = vld [vmem:[#allocation10_spill] sm:$0xff] }
 0xbaa   :  { %v5324_v50 = vmul.f32 %v5323_v53, %v14732_v4  ;;  %v5413_v39 = vrot.slane %v5309_v10, 4  ;;  %vm3162_vm6 = vcmp.lt.s32.totalorder %v14737_v60, 192  ;;  %v14741_v53 = vld [vmem:[#allocation133_spill] sm:$0xff]  ;;  %v14744_v60 = vld [vmem:[#allocation79_spill] sm:$0xff] }
 0xbac   :  { %v12407_v63 = vsel %vm273_vm8, %v5324_v50, %v5424_v24  ;;  %v12410_v7 = vsel %vm273_vm8, %v5293_v55, %v5413_v39  ;;  %v6802_v55 = vmov 1.0  }
 0xbad   :  { %v12404_v36 = vpop.permute.xlu2 %5366  ;;  %5640 = vrot.lane.b32.xlu1 %v12138_v22, %s6779_s21  ;;  %v5883_v39 = vperm.slane %v6802_v55, 0 }
 0xbae   :  { %v12414_v31 = vpop.permute.xlu1 %5302  ;;  %5628 = vrot.lane.b32.xlu0 %v12181_v61, %s6791_s14 }
 0xbaf   :  { %v5304_v12 = vsel %vm3429_vm2, %v12217_v49, %v12414_v31 }
 0xbb0   :  { %v5333_v40 = vpop.permute.xlu0 %5332  ;;  %v5311_v5 = vmul.f32 %v5304_v12, %v14734_v51  ;;  %5630 = vrot.lane.b32.xlu2 %v12185_v57, %s6791_s14 }
 0xbb1   :  { %v5336_v21 = vsel %vm14735_vm9, %v5333_v40, %v12285_v58  ;;  %v14740_v58 = vmov 0.0   ;;  %vm14766_vm9 = vmmov %vm14426_vm0 }
 0xbb2   :  { %v5415_v38 = vrot.slane %v5311_v5, 4  ;;  %v5343_v49 = vmul.f32 %v5336_v21, %v14738_v43  ;;  %v6494_v3 = vsel %vm3162_vm6, 1.0, %v14740_v58  ;;  %v14742_v21 = vld [vmem:[#allocation8_spill] sm:$0xff]  ;;  %vm14767_vm6 = vmmov %vm14426_vm0 }
 0xbb3   :  { %v5884_v12 = vperm.slane %v6494_v3, 0  ;;  %vm3164_vm14 = vcmp.lt.s32.totalorder %v14742_v21, 192 }
 0xbb4   :  { %v12436_v59 = vsel %vm273_vm8, %v5295_v23, %v5415_v38  ;;  %v5427_v10 = vrot.slane %v5343_v49, 4  ;;  %v14743_v23 = vld [vmem:[#allocation88_spill] sm:$0xff] }
 0xbb5   :  { %v12430_v44 = vpop.permute.xlu2 %5380  ;;  %5646 = vrot.lane.b32.xlu1 %v12185_v57, %s6779_s21  ;;  %v12461_v38 = vmul.f32 %v5883_v39, %v14743_v23  ;;  %v12464_v49 = vmul.f32 %v5884_v12, %v14744_v60  ;;  %v14746_v12 = vld [vmem:[#allocation141_spill] sm:$0xff] }
 0xbb6   :  { %v5317_v16 = vpop.permute.xlu1 %5316  ;;  %5594 = vrot.lane.b32.xlu0 %v12207_v37, %s6800_s23 }
 0xbb7   :  { %v5320_v2 = vsel %vm3450_vm7, %v5317_v16, %v5319_v56 }
 0xbb8   :  { %v5327_v24 = vmul.f32 %v5320_v2, %v14741_v53  ;;  %5596 = vrot.lane.b32.xlu2 %v12181_v61, %s6800_s23  ;;  %v12450_v50 = vpop.permute.xlu0 %5350  ;;  %v6495_v2 = vsel %vm3164_vm14, 1.0, %v14740_v58 }
 0xbb9   :  { %v5886_v3 = vperm.slane %v6495_v2, 0  ;;  %v14747_v2 = vld [vmem:[#allocation137_spill] sm:$0xff] }
 0xbba   :  { %v12457_v56 = vsel %vm273_vm8, %v5327_v24, %v5427_v10  ;;  %v5321_v10 = vsel %vm3450_vm7, %v12225_v25, %v5317_v16  ;;  %v5325_v11 = vmul.f32 %v12373_v6, %v14747_v2 }
 0xbbb   :  { %v5326_v25 = vmul.f32 %v5321_v10, %v14675_v1 }
 0xbbd   :  { %v12454_v5 = vpop.permute.xlu2 %5394  ;;  %5612 = vrot.lane.b32.xlu1 %v12181_v61, %s6792_s4 }
 0xbbe   :  { %5987 = vrot.lane.b32.xlu0 %v12461_v38, %s6801_s25  ;;  %v5331_v27 = vpop.permute.xlu1 %5330 }
 0xbbf   :  { %v5337_v24 = vsel %vm14745_vm1, %v5331_v27, %v5333_v40  ;;  %v5338_v58 = vsel %vm14426_vm0, %v12249_v28, %v5331_v27  ;;  %v14748_v40 = vld [vmem:[#allocation70_spill] sm:$0xff] }
 0xbc0   :  { %5989 = vrot.lane.b32.xlu2 %v12464_v49, %s6801_s25  ;;  %v12481_v55 = vpop.permute.xlu0 %5364  ;;  %v5341_v21 = vmul.f32 %v5338_v58, %v14746_v12  ;;  %v5342_v23 = vmul.f32 %v5337_v24, %v14663_v54  ;;  %v12491_v47 = vmul.f32 %v5886_v3, %v14748_v40  ;;  %v14749_v24 = vld [vmem:[#allocation64_spill] sm:$0xff] }
 0xbc1   :  { %v12510_v58 = vmul.f32 %v5883_v39, %v14749_v24 }
 0xbc2   :  { %v5425_v16 = vrot.slane %v5341_v21, 4  ;;  %v5426_v51 = vrot.slane %v5342_v23, 4 }
 0xbc4   :  { %v12496_v28 = vsel %vm273_vm8, %v5325_v11, %v5425_v16  ;;  %v12499_v27 = vsel %vm273_vm8, %v5326_v25, %v5426_v51 }
 0xbc5   :  { %v12485_v60 = vpop.permute.xlu2 %5688  ;;  %5626 = vrot.lane.b32.xlu1 %v12207_v37, %s6791_s14 }
 0xbc6   :  { %5993 = vrot.lane.b32.xlu0 %v12491_v47, %s6801_s25  ;;  %v5345_v6 = vpop.permute.xlu1 %5344 }
 0xbc7   :  { %v5354_v42 = vsel %vm575_vm3, %v5345_v6, %v12338_v8  ;;  %v5355_v4 = vsel %vm575_vm3, %v12450_v50, %v5345_v6  ;;  %v14751_v6 = vld [vmem:[#allocation112_spill] sm:$0xff] }
 0xbc8   :  { %6003 = vrot.lane.b32.xlu2 %v12461_v38, %s6796_s0  ;;  %v12505_v10 = vpop.permute.xlu0 %5378 }
 0xbcd   :  { %v12507_v3 = vpop.permute.xlu2 %5694  ;;  %5592 = vrot.lane.b32.xlu1 %v12138_v22, %s6800_s23 }
 0xbce   :  { %6007 = vrot.lane.b32.xlu0 %v12510_v58, %s6796_s0  ;;  %v12516_v51 = vpop.permute.xlu1 %5348 }
 0xbd0   :  { %6009 = vrot.lane.b32.xlu2 %v12491_v47, %s6796_s0  ;;  %v5393_v11 = vpop.permute.xlu0 %5392 }
 0xbd1   :  { %v5402_v21 = vsel %vm3553_vm10, %v5393_v11, %v12454_v5 }
 0xbd2   :  { %v5404_v39 = vmul.f32 %v5402_v21, %v14637_v26 }
 0xbd4   :  { %6576 = vmatpush.msk.msrb.mxu0 %vm273_vm8, %v5404_v39  ;;  %v5160_v39 = vrot.slane %v14739_v9, 5 }
 0xbd5   :  { %v12523_v23 = vpop.permute.xlu2 %5708  ;;  %5598 = vrot.lane.b32.xlu1 %v12185_v57, %s6800_s23 }
 0xbd6   :  { %5957 = vrot.lane.b32.xlu0 %v12464_v49, %s6781_s22  ;;  %v5363_v25 = vpop.permute.xlu1 %5362  ;;  %6571 = vmatmul.msk.f32.vlgmr.msra.gmra.mxu2 %vm3845_vm15, %v5160_v39 }
 0xbd7   :  { %6569 = vmatmul.msk.f32.vlgmr.msra.gmra.mxu0 %vm3845_vm15, %v5160_v39  ;;  %6573 = vmatmul.msk.f32.vlgmr.msra.gmra.mxu1 %vm3845_vm15, %v5160_v39 }
 0xbd8   :  { %5959 = vrot.lane.b32.xlu2 %v12510_v58, %s6781_s22  ;;  %v12533_v16 = vpop.permute.xlu0 %5398  ;;  %6575 = vmatmul.msk.f32.vlgmr.msra.gmra.mxu3 %vm3845_vm15, %v5160_v39 }
 0xbd9   :  { %v5403_v40 = vsel %vm3553_vm10, %v12533_v16, %v5393_v11  ;;  %v5307_v11 = vsel %vm3429_vm2, %v12414_v31, %v12390_v32  ;;  %v14750_v31 = vld [vmem:[#allocation135_spill] sm:$0xff] }
 0xbda   :  { %v5407_v21 = vmul.f32 %v5403_v40, %v14727_v41  ;;  %v5356_v40 = vmul.f32 %v5354_v42, %v14722_v19  ;;  %v5308_v52 = vmul.f32 %v5307_v11, %v14750_v31  ;;  %v5359_v11 = vmul.f32 %v5355_v4, %v14543_v33 }
 0xbdc   :  { %6582 = vmatpush.msk.msrb.mxu3 %vm273_vm8, %v5407_v21  ;;  %v5370_v21 = vsel %vm3511_vm12, %v12376_v45, %v5363_v25  ;;  %v5436_v12 = vrot.slane %v5356_v40, 4  ;;  %v5412_v39 = vrot.slane %v5308_v52, 4  ;;  %v14753_v52 = vld [vmem:[#allocation168_spill] sm:$0xff] }
 0xbdd   :  { %v12538_v24 = vpop.permute.xlu2 %5658  ;;  %5991 = vrot.lane.b32.xlu1 %v12510_v58, %s6801_s25  ;;  %v5372_v54 = vmul.f32 %v5370_v21, %v14631_v62 }
 0xbde   :  { %5971 = vrot.lane.b32.xlu0 %v12461_v38, %s6794_s5  ;;  %v5464_v21 = vsel %vm273_vm8, %v14751_v6, %v5436_v12  ;;  %v5439_v6 = vrot.slane %v5359_v11, 4  ;;  %v14755_v11 = vld [vmem:[#allocation140_spill] sm:$0xff] }
 0xbdf   :  { %v5377_v0 = vpop.permute.xlu1 %5376 }
 0xbe0   :  { %5973 = vrot.lane.b32.xlu2 %v12464_v49, %s6794_s5  ;;  %v5386_v1 = vsel %vm3532_vm13, %v5377_v0, %v12505_v10  ;;  %v12566_v2 = vpop.permute.xlu0 %5692 }
 0xbe1   :  { %v5388_v32 = vmul.f32 %v5386_v1, %v14721_v35  ;;  %v5371_v1 = vsel %vm3511_vm12, %v12404_v36, %v12376_v45 }
 0xbe2   :  { %v5375_v4 = vmul.f32 %v5371_v1, %v14726_v34 }
 0xbe3   :  { %v5448_v53 = vrot.slane %v5388_v32, 4 }
 0xbe5   :  { %v12570_v42 = vpop.permute.xlu2 %5672  ;;  %6005 = vrot.lane.b32.xlu1 %v12464_v49, %s6796_s0  ;;  %v5468_v43 = vsel %vm273_vm8, %v5372_v54, %v5448_v53  ;;  %v14752_v54 = vld [vmem:[#allocation130_spill] sm:$0xff] }
 0xbe6   :  { %5977 = vrot.lane.b32.xlu0 %v12491_v47, %s6794_s5  ;;  %5499 = vmatpush.msrb.mxu0 %v5468_v43  ;;  %v5292_v53 = vmul.f32 %v14753_v52, %v14752_v54 }
 0xbe7   :  { %v5383_v40 = vpop.permute.xlu1 %5382 }
 0xbe8   :  { %5939 = vrot.lane.b32.xlu2 %v12461_v38, %s6779_s21  ;;  %v5387_v43 = vsel %vm3532_vm13, %v5383_v40, %v5377_v0  ;;  %v12595_v32 = vpop.permute.xlu0 %5706  ;;  %5500 = vmatpush.msrb.mxu0 %v5464_v21  ;;  %v5384_v48 = vsel %vm3532_vm13, %v12430_v44, %v5383_v40  ;;  %v5456_v12 = vsel %vm273_vm8, %v5292_v53, %v5412_v39 }
 0xbe9   :  { %v5391_v45 = vmul.f32 %v5387_v43, %v14545_v29  ;;  %v5385_v0 = vsel %vm3532_vm13, %v12505_v10, %v12430_v44  ;;  %v5353_v21 = vsel %vm575_vm3, %v12338_v8, %v12516_v51  ;;  %v5352_v40 = vsel %vm575_vm3, %v12516_v51, %v12450_v50  ;;  %v14754_v10 = vld [vmem:[#allocation160_spill] sm:$0xff] }
 0xbea   :  { %5501 = vmatpush.msrb.mxu0 %v12407_v63  ;;  %v5369_v63 = vsel %vm3511_vm12, %v5363_v25, %v12481_v55  ;;  %v5390_v39 = vmul.f32 %v5384_v48, %v14655_v14  ;;  %v5389_v8 = vmul.f32 %v5385_v0, %v14754_v10  ;;  %v5357_v52 = vmul.f32 %v5353_v21, %v14755_v11  ;;  %v14756_v48 = vld [vmem:[#allocation30_spill] sm:$0xff] }
 0xbeb   :  { %v5451_v1 = vrot.slane %v5391_v45, 4  ;;  %v5358_v50 = vmul.f32 %v5352_v40, %v14470_v13  ;;  %v5467_v25 = vsel %vm273_vm8, %v14756_v48, %v5439_v6  ;;  %v5368_v53 = vsel %vm3511_vm12, %v12481_v55, %v12404_v36 }
 0xbec   :  { %5502 = vmatpush.msrb.mxu0 %v5456_v12  ;;  %v5373_v43 = vmul.f32 %v5369_v63, %v14664_v20  ;;  %v5450_v0 = vrot.slane %v5390_v39, 4  ;;  %v5449_v36 = vrot.slane %v5389_v8, 4  ;;  %v5437_v55 = vrot.slane %v5357_v52, 4  ;;  %v14758_v8 = vld [vmem:[#allocation41_spill] sm:$0xff] }
 0xbed   :  { %v12598_v31 = vpop.permute.xlu2 %5678  ;;  %5955 = vrot.lane.b32.xlu1 %v12461_v38, %s6781_s22  ;;  %v5471_v44 = vsel %vm273_vm8, %v5375_v4, %v5451_v1  ;;  %v5438_v40 = vrot.slane %v5358_v50, 4 }
 0xbee   :  { %5943 = vrot.lane.b32.xlu0 %v12510_v58, %s6779_s21  ;;  %5559 = vmatpush.msrb.mxu3 %v5471_v44 }
 0xbef   :  { %v5397_v51 = vpop.permute.xlu1 %5396  ;;  %v5466_v52 = vsel %vm273_vm8, %v14758_v8, %v5438_v40 }
 0xbf0   :  { %5945 = vrot.lane.b32.xlu2 %v12491_v47, %s6779_s21  ;;  %v5400_v45 = vsel %vm3553_vm10, %v5397_v51, %v12533_v16  ;;  %v5401_v4 = vsel %vm3553_vm10, %v12454_v5, %v5397_v51  ;;  %v12645_v12 = vpop.permute.xlu0 %5656  ;;  %5560 = vmatpush.msrb.mxu3 %v5467_v25  ;;  %v5374_v16 = vmul.f32 %v5368_v53, %v14666_v46 }
 0xbf1   :  { %v5405_v6 = vmul.f32 %v5401_v4, %v14659_v17  ;;  %v5406_v21 = vmul.f32 %v5400_v45, %v14660_v18  ;;  %v5469_v5 = vsel %vm273_vm8, %v5373_v43, %v5449_v36  ;;  %v5699_v43 = vsel %vm3532_vm13, %v12507_v3, %v12485_v60 }
 0xbf2   :  { %5561 = vmatpush.msrb.mxu3 %v12457_v56  ;;  %v5470_v63 = vsel %vm273_vm8, %v5374_v16, %v5450_v0  ;;  %v14757_v56 = vld [vmem:[#allocation148_spill] sm:$0xff]  ;;  %v5683_v0 = vsel %vm3511_vm12, %v12598_v31, %v12570_v42 }
 0xbf3   :  { %6578 = vmatpush.msk.msrb.mxu2 %vm273_vm8, %v5405_v6  ;;  %6580 = vmatpush.msk.msrb.mxu1 %vm273_vm8, %v5406_v21  ;;  %v5465_v39 = vsel %vm273_vm8, %v14757_v56, %v5437_v55  ;;  %v5687_v40 = vmul.f32 %v5683_v0, %v14726_v34 }
 0xbf4   :  { %5562 = vmatpush.msrb.mxu3 %v12436_v59  ;;  %v5713_v59 = vsel %vm3553_vm10, %v12595_v32, %v12523_v23 }
 0xbf5   :  { %v12649_v1 = vpop.permute.xlu2 %5644  ;;  %5961 = vrot.lane.b32.xlu1 %v12491_v47, %s6781_s22  ;;  %5519 = vmatpush.msrb.mxu2 %v5469_v5  ;;  %v5717_v48 = vmul.f32 %v5713_v59, %v14659_v17 }
 0xbf6   :  { %5539 = vmatpush.msrb.mxu1 %v5470_v63  ;;  %5909 = vrot.lane.b32.xlu0 %v12464_v49, %s6792_s4 }
 0xbf7   :  { %v12668_v44 = vpop.permute.xlu1 %5690  ;;  %5520 = vmatpush.msrb.mxu2 %v5465_v39 }
 0xbf8   :  { %5911 = vrot.lane.b32.xlu2 %v12510_v58, %s6792_s4  ;;  %5540 = vmatpush.msrb.mxu1 %v5466_v52  ;;  %v5663_v50 = vpop.permute.xlu0 %5662 }
 0xbf9   :  { %5521 = vmatpush.msrb.mxu2 %v12496_v28 }
 0xbfa   :  { %5541 = vmatpush.msrb.mxu1 %v12499_v27 }
 0xbfb   :  { %5522 = vmatpush.msrb.mxu2 %v12410_v7  ;;  %v5696_v7 = vsel %vm3532_vm13, %v12566_v2, %v12507_v3  ;;  %v5703_v3 = vmul.f32 %v5699_v43, %v14545_v29  ;;  %v5698_v43 = vsel %vm3532_vm13, %v12485_v60, %v12668_v44 }
 0xbfc   :  { %5542 = vmatpush.msrb.mxu1 %v12384_v30  ;;  %v5702_v4 = vmul.f32 %v5696_v7, %v14655_v14  ;;  %v5666_v7 = vsel %vm575_vm3, %v12645_v12, %v12538_v24  ;;  %v5700_v60 = vmul.f32 %v5698_v43, %v14721_v35 }
 0xbfd   :  { %v12675_v51 = vpop.permute.xlu2 %5610  ;;  %6586 = vmatpush.msk.msra.mxu2 %vm273_vm8, %v5717_v48  ;;  %5975 = vrot.lane.b32.xlu1 %v12510_v58, %s6794_s5  ;;  %v5763_v39 = vrot.slane %v5703_v3, 4 }
 0xbfe   :  { %5923 = vrot.lane.b32.xlu0 %v12461_v38, %s6791_s14  ;;  %v5762_v56 = vrot.slane %v5702_v4, 4  ;;  %v5668_v4 = vmul.f32 %v5666_v7, %v14722_v19 }
 0xbff   :  { %v5705_v25 = vpop.permute.xlu1 %5704  ;;  %v5783_v52 = vsel %vm273_vm8, %v5687_v40, %v5763_v39 }
 0xc00   :  { %5925 = vrot.lane.b32.xlu2 %v12464_v49, %s6791_s14  ;;  %v5714_v28 = vsel %vm3553_vm10, %v5705_v25, %v12595_v32  ;;  %v12691_v27 = vpop.permute.xlu0 %5676  ;;  %v5667_v32 = vsel %vm575_vm3, %v5663_v50, %v12645_v12  ;;  %v64_v12 = vld [vmem:[%s13335_s16] sm:$0x1] }
 0xc01   :  { %v5716_v30 = vmul.f32 %v5714_v28, %v14637_v26  ;;  %v5680_v45 = vsel %vm3511_vm12, %v12691_v27, %v12598_v31  ;;  %v5671_v6 = vmul.f32 %v5667_v32, %v14543_v33 }
 0xc02   :  { %v5686_v36 = vmul.f32 %v5680_v45, %v14666_v46 }
 0xc03   :  { %6584 = vmatpush.msk.msra.mxu0 %vm273_vm8, %v5716_v30  ;;  %v5751_v59 = vrot.slane %v5671_v6, 4  ;;  %v6763_v6 = vld [vmem:[%s13335_s16] ss:$0 sm:$0xff] }
 0xc05   :  { %v12698_v53 = vpop.permute.xlu2 %5624  ;;  %5941 = vrot.lane.b32.xlu1 %v12464_v49, %s6779_s21 }
 0xc06   :  { %5929 = vrot.lane.b32.xlu0 %v12491_v47, %s6791_s14 }
 0xc07   :  { %v5711_v21 = vpop.permute.xlu1 %5710 }
 0xc08   :  { %5891 = vrot.lane.b32.xlu2 %v12461_v38, %s6800_s23  ;;  %v5712_v55 = vsel %vm3553_vm10, %v12523_v23, %v5711_v21  ;;  %v5715_v31 = vsel %vm3553_vm10, %v5711_v21, %v5705_v25  ;;  %v12731_v16 = vpop.permute.xlu0 %5642  ;;  %v5782_v23 = vsel %vm273_vm8, %v5686_v36, %v5762_v56  ;;  %v5779_v25 = vsel %vm273_vm8, %v12185_v57, %v5751_v59 }
 0xc09   :  { %v5718_v5 = vmul.f32 %v5712_v55, %v14660_v18  ;;  %v5719_v63 = vmul.f32 %v5715_v31, %v14727_v41  ;;  %v5697_v57 = vsel %vm3532_vm13, %v12668_v44, %v12566_v2  ;;  %v5748_v21 = vrot.slane %v5668_v4, 4  ;;  %v14763_v4 = vld [vmem:[#allocation145_spill] sm:$0xff] }
 0xc0a   :  { %v5701_v0 = vmul.f32 %v5697_v57, %v14754_v10  ;;  %v5760_v36 = vrot.slane %v5700_v60, 4 }
 0xc0b   :  { %6588 = vmatpush.msk.msra.mxu1 %vm273_vm8, %v5718_v5  ;;  %6590 = vmatpush.msk.msra.mxu3 %vm273_vm8, %v5719_v63 }
 0xc0c   :  { %v5761_v40 = vrot.slane %v5701_v0, 4  ;;  %v14764_v0 = vld [vmem:[#allocation132_spill] sm:$0xff] }
 0xc0d   :  { %v12739_v8 = vpop.permute.xlu2 %5630  ;;  %5907 = vrot.lane.b32.xlu1 %v12461_v38, %s6792_s4  ;;  %5851 = vmatpush.msra.mxu1 %v5782_v23 }
 0xc0e   :  { %5871 = vmatpush.msra.mxu3 %v5783_v52  ;;  %5895 = vrot.lane.b32.xlu0 %v12510_v58, %s6800_s23  ;;  %v14759_v52 = vmov 2  }
 0xc0f   :  { %v5661_v48 = vpop.permute.xlu1 %5660 }
 0xc10   :  { %5897 = vrot.lane.b32.xlu2 %v12491_v47, %s6800_s23  ;;  %v5664_v28 = vsel %vm575_vm3, %v5661_v48, %v5663_v50  ;;  %5872 = vmatpush.msra.mxu3 %v5779_v25  ;;  %v12752_v30 = vpop.permute.xlu0 %5608  ;;  %v5665_v50 = vsel %vm575_vm3, %v12538_v24, %v5661_v48 }
 0xc11   :  { %v5670_v32 = vmul.f32 %v5664_v28, %v14470_v13  ;;  %v5669_v3 = vmul.f32 %v5665_v50, %v14755_v11  ;;  %v5472_v28 = vrot.slane %v14739_v9, 6  ;;  %v14762_v50 = vld [vmem:[#allocation143_spill] sm:$0xff] }
 0xc13   :  { %v5750_v45 = vrot.slane %v5670_v32, 4  ;;  %v5749_v5 = vrot.slane %v5669_v3, 4  ;;  %6581 = vmatmul.msk.f32.vlgmr.msrb.gmra.mxu1 %vm3845_vm15, %v5472_v28  ;;  %6583 = vmatmul.msk.f32.vlgmr.msrb.gmra.mxu3 %vm3845_vm15, %v5472_v28 }
 0xc14   :  { %6577 = vmatmul.msk.f32.vlgmr.msrb.gmra.mxu0 %vm3845_vm15, %v5472_v28  ;;  %6579 = vmatmul.msk.f32.vlgmr.msrb.gmra.mxu2 %vm3845_vm15, %v5472_v28  ;;  %v14770_v28 = vld [vmem:[#allocation11_spill] sm:$0xff] }
 0xc15   :  { %5913 = vrot.lane.b32.xlu1 %v12491_v47, %s6792_s4  ;;  %v5778_v2 = vsel %vm273_vm8, %v12181_v61, %v5750_v45  ;;  %v12781_v24 = vpop.permute.xlu2 %5596 }
 0xc16   :  { %6268 = vperm.xlu0 %6693, %v64_v12   ;;  %5852 = vmatpush.msra.mxu1 %v5778_v2  ;;  %v14765_v2 = vld [vmem:[#allocation133_spill] sm:$0xff] }
 0xc17   :  { %v5675_v44 = vpop.permute.xlu1 %5674 }
 0xc18   :  { %6289 = vperm.xlu2 %6695, %v6763_v6   ;;  %v5681_v55 = vsel %vm3511_vm12, %v5675_v44, %v12691_v27  ;;  %v5682_v61 = vsel %vm3511_vm12, %v12570_v42, %v5675_v44  ;;  %v12792_v31 = vpop.permute.xlu0 %5614  ;;  %v5776_v42 = vsel %vm273_vm8, %v12138_v22, %v5748_v21  ;;  %v5777_v27 = vsel %vm273_vm8, %v12207_v37, %v5749_v5 }
 0xc19   :  { %v5684_v63 = vmul.f32 %v5682_v61, %v14631_v62  ;;  %v5685_v56 = vmul.f32 %v5681_v55, %v14664_v20  ;;  %v5635_v37 = vsel %vm3450_vm7, %v12739_v8, %v12698_v53 }
 0xc1a   :  { %v5636_v3 = vmul.f32 %v5635_v37, %v14764_v0  ;;  %v14771_v37 = vmov 1  }
 0xc1b   :  { %v5780_v39 = vsel %vm273_vm8, %v5684_v63, %v5760_v36  ;;  %v5781_v59 = vsel %vm273_vm8, %v5685_v56, %v5761_v40  ;;  %v5649_v63 = vsel %vm14766_vm9, %v12731_v16, %v12649_v1 }
 0xc1c   :  { %5811 = vmatpush.msra.mxu0 %v5780_v39  ;;  %5831 = vmatpush.msra.mxu2 %v5781_v59  ;;  %v14768_v39 = vld [vmem:[#allocation142_spill] sm:$0xff] }
 0xc1d   :  { %5927 = vrot.lane.b32.xlu1 %v12510_v58, %s6791_s14  ;;  %v12806_v25 = vpop.permute.xlu2 %5989  ;;  %v5654_v59 = vmul.f32 %v5649_v63, %v14768_v39 }
 0xc1e   :  { %5812 = vmatpush.msra.mxu0 %v5776_v42  ;;  %5832 = vmatpush.msra.mxu2 %v5777_v27  ;;  %v14769_v42 = vld [vmem:[#allocation141_spill] sm:$0xff] }
 0xc1f   :  { %v5641_v23 = vpop.permute.xlu1 %5640  ;;  %6698 = vset.pattern.permute.xlu0 %v14759_v52 }
 0xc20   :  { %6697 = vset.pattern.permute.xlu2 %v14759_v52  ;;  %v5629_v48 = vpop.permute.xlu0 %5628  ;;  %v5650_v56 = vsel %vm14767_vm6, %v5641_v23, %v12731_v16 }
 0xc21   :  { %6333 = vperm.xlu2 %6697, %v6763_v6   ;;  %v5632_v7 = vsel %vm3450_vm7, %v5629_v48, %v12739_v8  ;;  %v5653_v27 = vmul.f32 %v5650_v56, %v14769_v42 }
 0xc22   :  { %v5639_v44 = vmul.f32 %v5632_v7, %v14765_v2 }
 0xc25   :  { %5893 = vrot.lane.b32.xlu1 %v12464_v49, %s6800_s23  ;;  %v12831_v21 = vpop.permute.xlu2 %6003 }
 0xc27   :  { %v5647_v22 = vpop.permute.xlu1 %5646 }
 0xc28   :  { %v5648_v43 = vsel %vm14760_vm11, %v12649_v1, %v5647_v22  ;;  %v5651_v32 = vsel %vm14761_vm4, %v5647_v22, %v5641_v23  ;;  %v5595_v57 = vpop.permute.xlu0 %5594  ;;  %v5738_v1 = vrot.slane %v5654_v59, 4 }
 0xc29   :  { %v5652_v45 = vmul.f32 %v5651_v32, %v14762_v50  ;;  %v5655_v60 = vmul.f32 %v5648_v43, %v14763_v4  ;;  %v5601_v16 = vsel %vm3408_vm5, %v5595_v57, %v12781_v24 }
 0xc2b   :  { %v5736_v36 = vrot.slane %v5652_v45, 4  ;;  %v5739_v8 = vrot.slane %v5655_v60, 4  ;;  %v5737_v45 = vrot.slane %v5653_v27, 4 }
 0xc2d   :  { %6183 = vperm.xlu1 %6694, %v64_v12   ;;  %v5772_v55 = vsel %vm273_vm8, %v5636_v3, %v5736_v36  ;;  %v5775_v61 = vsel %vm273_vm8, %v5639_v44, %v5739_v8  ;;  %v6010_v52 = vpop.permute.xlu2 %6009  ;;  %v14772_v3 = vld [vmem:[#allocation137_spill] sm:$0xff]  ;;  %v5618_v8 = vsel %vm3429_vm2, %v12752_v30, %v12675_v51 }
 0xc2e   :  { %5813 = vmatpush.msra.mxu0 %v5772_v55  ;;  %5873 = vmatpush.msra.mxu3 %v5775_v61  ;;  %v14774_v55 = vld [vmem:[#allocation129_spill] sm:$0xff] }
 0xc2f   :  { %v5613_v40 = vpop.permute.xlu1 %5612  ;;  %v5606_v61 = vmul.f32 %v5601_v16, %v14774_v55 }
 0xc30   :  { %v12835_v5 = vpop.permute.xlu0 %5987  ;;  %v5617_v12 = vsel %vm3429_vm2, %v12675_v51, %v5613_v40 }
 0xc31   :  { %v5622_v22 = vmul.f32 %v5617_v12, %v14770_v28 }
 0xc33   :  { %v5726_v60 = vrot.slane %v5622_v22, 4 }
 0xc35   :  { %6696 = vset.pattern.permute.xlu1 %v14771_v37  ;;  %v5770_v12 = vsel %vm273_vm8, %v5606_v61, %v5726_v60  ;;  %v12872_v59 = vpop.permute.xlu2 %5959  ;;  %v14777_v60 = vld [vmem:[#allocation135_spill] sm:$0xff] }
 0xc36   :  { %6301 = vperm.xlu1 %6696, %v6763_v6   ;;  %v14773_v6 = vld [vmem:[#allocation138_spill] sm:$0xff] }
 0xc37   :  { %v5627_v7 = vpop.permute.xlu1 %5626 }
 0xc38   :  { %v5633_v23 = vsel %vm3450_vm7, %v5627_v7, %v5629_v48  ;;  %v5634_v43 = vsel %vm3450_vm7, %v12698_v53, %v5627_v7  ;;  %v12859_v32 = vpop.permute.xlu0 %5993  ;;  %v14775_v53 = vld [vmem:[#allocation13_spill] sm:$0xff]  ;;  %v14776_v7 = vld [vmem:[#allocation128_spill] sm:$0xff] }
 0xc39   :  { %v5637_v44 = vmul.f32 %v5634_v43, %v14772_v3  ;;  %v5638_v36 = vmul.f32 %v5633_v23, %v14773_v6  ;;  %v5621_v56 = vmul.f32 %v5618_v8, %v14775_v53  ;;  %v5619_v23 = vsel %vm3429_vm2, %v12792_v31, %v12752_v30 }
 0xc3a   :  { %v5616_v43 = vsel %vm3429_vm2, %v5613_v40, %v12792_v31  ;;  %v6014_v30 = vsel %vm3553_vm10, %v6010_v52, %v12831_v21 }
 0xc3b   :  { %v5773_v48 = vsel %vm273_vm8, %v5637_v44, %v5737_v45  ;;  %v5774_v63 = vsel %vm273_vm8, %v5638_v36, %v5738_v1  ;;  %v5725_v37 = vrot.slane %v5621_v56, 4  ;;  %v5620_v44 = vmul.f32 %v5619_v23, %v14777_v60  ;;  %v14778_v36 = vld [vmem:[#allocation136_spill] sm:$0xff] }
 0xc3c   :  { %5833 = vmatpush.msra.mxu2 %v5773_v48  ;;  %5853 = vmatpush.msra.mxu1 %v5774_v63  ;;  %v5623_v8 = vmul.f32 %v5616_v43, %v14778_v36  ;;  %v5784_v48 = vrot.slane %v14739_v9, 7  ;;  %v5997_v23 = vsel %vm3532_vm13, %v12835_v5, %v12806_v25 }
 0xc3d   :  { %v5724_v63 = vrot.slane %v5620_v44, 4 }
 0xc3e   :  { %5854 = vmatpush.msra.mxu1 %v5770_v12  ;;  %v5727_v56 = vrot.slane %v5623_v8, 4  ;;  %v12900_v12 = vpop.permute.xlu2 %5973 }
 0xc3f   :  { %v5593_v27 = vpop.permute.xlu1 %5592  ;;  %6589 = vmatmul.msk.f32.vlgmr.msra.gmra.mxu1 %vm3845_vm15, %v5784_v48 }
 0xc40   :  { %v5602_v22 = vsel %vm3408_vm5, %v5593_v27, %v5595_v57  ;;  %v6008_v51 = vpop.permute.xlu0 %6007 }
 0xc41   :  { %v5605_v16 = vmul.f32 %v5602_v22, %v14776_v7  ;;  %v6011_v1 = vsel %vm3553_vm10, %v6008_v51, %v6010_v52 }
 0xc42   :  { %v6017_v45 = vmul.f32 %v6011_v1, %v14660_v18 }
 0xc43   :  { %v5769_v57 = vsel %vm273_vm8, %v5605_v16, %v5725_v37  ;;  %v14779_v37 = vld [vmem:[#allocation131_spill] sm:$0xff] }
 0xc44   :  { %5834 = vmatpush.msra.mxu2 %v5769_v57  ;;  %6596 = vmatpush.msk.msrb.mxu1 %vm273_vm8, %v6017_v45  ;;  %v5999_v57 = vmul.f32 %v5997_v23, %v14721_v35 }
 0xc45   :  { %6587 = vmatmul.msk.f32.vlgmr.msra.gmra.mxu2 %vm3845_vm15, %v5784_v48 }
 0xc46   :  { %v12920_v43 = vpop.permute.xlu2 %5939 }
 0xc47   :  { %v5599_v61 = vpop.permute.xlu1 %5598 }
 0xc48   :  { %v5600_v31 = vsel %vm3408_vm5, %v12781_v24, %v5599_v61  ;;  %v5603_v18 = vsel %vm3408_vm5, %v5599_v61, %v5593_v27  ;;  %v5958_v40 = vpop.permute.xlu0 %5957  ;;  %v6018_v24 = vmul.f32 %v6014_v30, %v14727_v41  ;;  %v5998_v41 = vsel %vm3532_vm13, %v12859_v32, %v12835_v5 }
 0xc49   :  { %v5604_v22 = vmul.f32 %v5603_v18, %v14752_v54  ;;  %v5607_v16 = vmul.f32 %v5600_v31, %v14779_v37  ;;  %v6002_v44 = vmul.f32 %v5998_v41, %v14545_v29  ;;  %v5964_v41 = vsel %vm575_vm3, %v5958_v40, %v12872_v59 }
 0xc4b   :  { %v5768_v52 = vsel %vm273_vm8, %v5604_v22, %v5724_v63  ;;  %v5771_v27 = vsel %vm273_vm8, %v5607_v16, %v5727_v56  ;;  %v6059_v63 = vrot.slane %v5999_v57, 4  ;;  %v6062_v29 = vrot.slane %v6002_v44, 4 }
 0xc4c   :  { %5814 = vmatpush.msra.mxu0 %v5768_v52  ;;  %5874 = vmatpush.msra.mxu3 %v5771_v27 }
 0xc4d   :  { %6585 = vmatmul.msk.f32.vlgmr.msra.gmra.mxu0 %vm3845_vm15, %v5784_v48  ;;  %6591 = vmatmul.msk.f32.vlgmr.msra.gmra.mxu3 %vm3845_vm15, %v5784_v48 }
 0xc4e   :  { %6598 = vmatpush.msk.msrb.mxu3 %vm273_vm8, %v6018_v24 }
 0xc4f   :  { %v5992_v9 = vpop.permute.xlu1 %5991 }
 0xc50   :  { %v5972_v1 = vpop.permute.xlu0 %5971 }
 0xc51   :  { %v5981_v45 = vsel %vm3511_vm12, %v5972_v1, %v12900_v12 }
 0xc52   :  { %v5983_v61 = vmul.f32 %v5981_v45, %v14631_v62 }
 0xc54   :  { %v6079_v62 = vsel %vm273_vm8, %v5983_v61, %v6059_v63 }
 0xc57   :  { %v6006_v8 = vpop.permute.xlu1 %6005 }
 0xc58   :  { %v6012_v30 = vsel %vm3553_vm10, %v6006_v8, %v6008_v51  ;;  %v6013_v5 = vsel %vm3553_vm10, %v12831_v21, %v6006_v8  ;;  %v5978_v31 = vpop.permute.xlu0 %5977  ;;  %v12942_v51 = vpop.permute.xlu2 %5945  ;;  %v5968_v8 = vmul.f32 %v5964_v41, %v14755_v11  ;;  %vm14783_vm10 = vmmov %vm14426_vm0 }
 0xc59   :  { %v6015_v18 = vmul.f32 %v6013_v5, %v14637_v26  ;;  %v6016_v48 = vmul.f32 %v6012_v30, %v14659_v17  ;;  %v5982_v35 = vsel %vm3511_vm12, %v5978_v31, %v5972_v1 }
 0xc5a   :  { %v5986_v56 = vmul.f32 %v5982_v35, %v14726_v34  ;;  %v6048_v5 = vrot.slane %v5968_v8, 4  ;;  %v3378_v8 = vld [vmem:[%s13338_s15 + $0x8] sm:$0x1] }
 0xc5b   :  { %6592 = vmatpush.msk.msrb.mxu0 %vm273_vm8, %v6015_v18  ;;  %6594 = vmatpush.msk.msrb.mxu2 %vm273_vm8, %v6016_v48 }
 0xc5c   :  { %v6082_v21 = vsel %vm273_vm8, %v5986_v56, %v6062_v29 }
 0xc5d   :  { %6110 = vmatpush.msrb.mxu0 %v6079_v62  ;;  %6170 = vmatpush.msrb.mxu3 %v6082_v21 }
 0xc5f   :  { %v5956_v26 = vpop.permute.xlu1 %5955 }
 0xc60   :  { %v5965_v17 = vsel %vm575_vm3, %v5956_v26, %v5958_v40  ;;  %v12946_v22 = vpop.permute.xlu0 %5943  ;;  %v12951_v52 = vpop.permute.xlu2 %5911 }
 0xc61   :  { %v5967_v34 = vmul.f32 %v5965_v17, %v14722_v19  ;;  %v5996_v19 = vsel %vm3532_vm13, %v12806_v25, %v5992_v9 }
 0xc62   :  { %v6000_v61 = vmul.f32 %v5996_v19, %v14754_v10 }
 0xc63   :  { %v6047_v16 = vrot.slane %v5967_v34, 4 }
 0xc65   :  { %v6075_v24 = vsel %vm273_vm8, %v12461_v38, %v6047_v16  ;;  %v5995_v38 = vsel %vm3532_vm13, %v5992_v9, %v12859_v32  ;;  %v6060_v32 = vrot.slane %v6000_v61, 4  ;;  %vm14782_vm13 = vmmov %vm14426_vm0 }
 0xc66   :  { %6111 = vmatpush.msrb.mxu0 %v6075_v24  ;;  %v6001_v40 = vmul.f32 %v5995_v38, %v14655_v14 }
 0xc67   :  { %v5962_v27 = vpop.permute.xlu1 %5961 }
 0xc68   :  { %v5966_v1 = vsel %vm575_vm3, %v5962_v27, %v5956_v26  ;;  %v12955_v23 = vpop.permute.xlu0 %5909  ;;  %v5963_v57 = vsel %vm575_vm3, %v12872_v59, %v5962_v27  ;;  %v6061_v10 = vrot.slane %v6001_v40, 4  ;;  %v5926_v18 = vpop.permute.xlu2 %5925  ;;  %vm14780_vm3 = vmmov %vm14426_vm0 }
 0xc69   :  { %v5970_v45 = vmul.f32 %v5966_v1, %v14543_v33  ;;  %v5969_v30 = vmul.f32 %v5963_v57, %v14470_v13 }
 0xc6b   :  { %v6050_v44 = vrot.slane %v5970_v45, 4  ;;  %v6049_v14 = vrot.slane %v5969_v30, 4 }
 0xc6d   :  { %v6078_v33 = vsel %vm273_vm8, %v12491_v47, %v6050_v44  ;;  %v5950_v47 = vsel %vm14780_vm3, %v12942_v51, %v12920_v43  ;;  %v6077_v63 = vsel %vm273_vm8, %v12510_v58, %v6049_v14 }
 0xc6e   :  { %6171 = vmatpush.msrb.mxu3 %v6078_v33 }
 0xc6f   :  { %v5976_v25 = vpop.permute.xlu1 %5975 }
 0xc70   :  { %v5979_v9 = vsel %vm3511_vm12, %v5976_v25, %v5978_v31  ;;  %v5980_v11 = vsel %vm3511_vm12, %v12900_v12, %v5976_v25  ;;  %v5924_v59 = vpop.permute.xlu0 %5923  ;;  %v6076_v12 = vsel %vm273_vm8, %v12464_v49, %v6048_v5  ;;  %vm14781_vm12 = vmmov %vm14426_vm0 }
 0xc71   :  { %v5984_v13 = vmul.f32 %v5980_v11, %v14664_v20  ;;  %v5985_v48 = vmul.f32 %v5979_v9, %v14666_v46  ;;  %v5951_v20 = vmul.f32 %v5950_v47, %v14762_v50  ;;  %v5933_v29 = vsel %vm3450_vm7, %v5924_v59, %v5926_v18  ;;  %v5892_v50 = vpop.permute.xlu2 %5891 }
 0xc72   :  { %v5936_v17 = vmul.f32 %v5933_v29, %v14772_v3 }
 0xc73   :  { %v6080_v35 = vsel %vm273_vm8, %v5984_v13, %v6060_v32  ;;  %v6081_v31 = vsel %vm273_vm8, %v5985_v48, %v6061_v10  ;;  %v6035_v26 = vrot.slane %v5951_v20, 4  ;;  %v5916_v32 = vsel %vm3429_vm2, %v12955_v23, %v12951_v52 }
 0xc74   :  { %6130 = vmatpush.msrb.mxu2 %v6080_v35  ;;  %6150 = vmatpush.msrb.mxu1 %v6081_v31  ;;  %v3877_v35 = vpop.f32.mrf.mxu0 }
 0xc76   :  { %6131 = vmatpush.msrb.mxu2 %v6076_v12  ;;  %6151 = vmatpush.msrb.mxu1 %v6077_v63  ;;  %v3937_v12 = vpop.f32.mrf.mxu3  ;;  %v3897_v63 = vpop.f32.mrf.mxu2 }
 0xc77   :  { %v5942_v46 = vpop.permute.xlu1 %5941 }
 0xc78   :  { %v5949_v56 = vsel %vm14781_vm12, %v12920_v43, %v5942_v46  ;;  %v5930_v62 = vpop.permute.xlu0 %5929  ;;  %v5948_v19 = vsel %vm14783_vm10, %v5942_v46, %v12946_v22  ;;  %v4011_v46 = vpop.f32.mrf.mxu1 }
 0xc79   :  { %v5952_v21 = vmul.f32 %v5949_v56, %v14769_v42  ;;  %v5934_v49 = vsel %vm3450_vm7, %v5930_v62, %v5924_v59  ;;  %v5898_v27 = vpop.permute.xlu2 %5897 }
 0xc7a   :  { %v5935_v58 = vmul.f32 %v5934_v49, %v14764_v0  ;;  %v5902_v42 = vsel %vm3408_vm5, %v5898_v27, %v5892_v50  ;;  %v5947_v0 = vsel %vm14782_vm13, %v12946_v22, %v12942_v51  ;;  %v5953_v51 = vmul.f32 %v5948_v19, %v14768_v39 }
 0xc7b   :  { %v6036_v34 = vrot.slane %v5952_v21, 4  ;;  %v5903_v38 = vmul.f32 %v5902_v42, %v14752_v54  ;;  %v5954_v44 = vmul.f32 %v5947_v0, %v14763_v4 }
 0xc7c   :  { %v6071_v16 = vsel %vm273_vm8, %v5935_v58, %v6035_v26  ;;  %v6037_v39 = vrot.slane %v5953_v51, 4  ;;  %v3971_v31 = vpop.f32.mrf.mxu0  ;;  %v14787_v51 = vld [vmem:[#allocation44_spill] sm:$0xff] }
 0xc7d   :  { %6112 = vmatpush.msrb.mxu0 %v6071_v16  ;;  %v6072_v24 = vsel %vm273_vm8, %v5936_v17, %v6036_v34  ;;  %v6038_v30 = vrot.slane %v5954_v44, 4  ;;  %v3972_v34 = vadd.f32 %v3971_v31, %v3877_v35  ;;  %v14786_v44 = vld [vmem:[#allocation21_spill] sm:$0xff] }
 0xc7e   :  { %6132 = vmatpush.msrb.mxu2 %v6072_v24  ;;  %v3991_v29 = vpop.f32.mrf.mxu2 }
 0xc7f   :  { %v5908_v43 = vpop.permute.xlu1 %5907 }
 0xc80   :  { %v5917_v9 = vsel %vm3429_vm2, %v5908_v43, %v12955_v23  ;;  %v4319_v56 = vpop.f32.mrf.mxu1 }
 0xc84   :  { %v4279_v20 = vpop.f32.mrf.mxu0 }
 0xc86   :  { %v4299_v21 = vpop.f32.mrf.mxu2 }
 0xc87   :  { %v5914_v1 = vpop.permute.xlu1 %5913 }
 0xc88   :  { %v5918_v41 = vsel %vm3429_vm2, %v5914_v1, %v5908_v43  ;;  %v5915_v45 = vsel %vm3429_vm2, %v12951_v52, %v5914_v1  ;;  %v4630_v26 = vpop.f32.mrf.mxu1  ;;  %v4342_v43 = vadd.f32 %v4279_v20, %v3972_v34 }
 0xc89   :  { %v5919_v3 = vmul.f32 %v5918_v41, %v14777_v60  ;;  %v5896_v60 = vpop.permute.xlu0 %5895  ;;  %v5922_v61 = vmul.f32 %v5915_v45, %v14778_v36  ;;  %v14785_v45 = vld [vmem:[#allocation67_spill] sm:$0xff] }
 0xc8a   :  { %v5899_v54 = vsel %vm3408_vm5, %v5896_v60, %v5898_v27  ;;  %v14784_v27 = vld [vmem:[#allocation5_spill] sm:$0xff] }
 0xc8b   :  { %v6023_v57 = vrot.slane %v5919_v3, 4  ;;  %v6026_v25 = vrot.slane %v5922_v61, 4  ;;  %v5906_v11 = vmul.f32 %v5899_v54, %v14779_v37  ;;  %v6478_v1 = vmul.f32 -1.442695, %v14784_v27 }
 0xc8c   :  { %v4012_v61 = vadd.f32 %v4011_v46, %v3917_v15 }
 0xc8d   :  { %v6067_v22 = vsel %vm273_vm8, %v5903_v38, %v6023_v57  ;;  %6718 = vpow2.f32 %v6478_v1  ;;  %v6476_v38 = vmul.f32 -1.442695, %v14785_v45 }
 0xc8e   :  { %6113 = vmatpush.msrb.mxu0 %v6067_v22 }
 0xc8f   :  { %v5928_v40 = vpop.permute.xlu1 %5927  ;;  %6593 = vmatmul.msk.f32.vlgmr.msrb.gmra.mxu0 %vm3845_vm15, %v3378_v8  ;;  %6720 = vpow2.f32 %v6476_v38 }
 0xc90   :  { %v5931_v4 = vsel %vm3450_vm7, %v5928_v40, %v5930_v62  ;;  %v5932_v33 = vsel %vm3450_vm7, %v5926_v18, %v5928_v40  ;;  %v6070_v18 = vsel %vm273_vm8, %v5906_v11, %v6026_v25  ;;  %v4921_v16 = vpop.f32.mrf.mxu1 }
 0xc91   :  { %v5937_v36 = vmul.f32 %v5932_v33, %v14773_v6  ;;  %v5938_v5 = vmul.f32 %v5931_v4, %v14765_v2  ;;  %v5921_v6 = vmul.f32 %v5916_v32, %v14770_v28  ;;  %v5920_v2 = vmul.f32 %v5917_v9, %v14775_v53 }
 0xc93   :  { %v6073_v59 = vsel %vm273_vm8, %v5937_v36, %v6037_v39  ;;  %v6074_v10 = vsel %vm273_vm8, %v5938_v5, %v6038_v30  ;;  %v6025_v14 = vrot.slane %v5921_v6, 4  ;;  %v6024_v13 = vrot.slane %v5920_v2, 4  ;;  %v6719_v40 = vpop.eup %6718 }
 0xc94   :  { %6152 = vmatpush.msrb.mxu1 %v6073_v59  ;;  %6172 = vmatpush.msrb.mxu3 %v6074_v10  ;;  %v13066_v33 = vadd.f32 1.0, %v6719_v40  ;;  %v4344_v39 = vadd.f32 %v4319_v56, %v4012_v61  ;;  %v3992_v36 = vadd.f32 %v3991_v29, %v3897_v63 }
 0xc95   :  { %v6721_v11 = vpop.eup %6720 }
 0xc96   :  { %6173 = vmatpush.msrb.mxu3 %v6070_v18  ;;  %v4655_v59 = vadd.f32 %v4630_v26, %v4344_v39  ;;  %vm2917_vm2 = vweird.f32 %v13066_v33 }
 0xc97   :  { %v5894_v52 = vpop.permute.xlu1 %5893  ;;  %6599 = vmatmul.msk.f32.vlgmr.msrb.gmra.mxu3 %vm3845_vm15, %v3378_v8 }
 0xc98   :  { %v5900_v23 = vsel %vm3408_vm5, %v5894_v52, %v5896_v60  ;;  %v5901_v37 = vsel %vm3408_vm5, %v5892_v50, %v5894_v52  ;;  %v4610_v50 = vpop.f32.mrf.mxu2  ;;  %v5232_v3 = vpop.f32.mrf.mxu1  ;;  %v6477_v60 = vmul.f32 -1.442695, %v14787_v51 }
 0xc99   :  { %v5904_v48 = vmul.f32 %v5901_v37, %v14776_v7  ;;  %v5905_v28 = vmul.f32 %v5900_v23, %v14774_v55  ;;  %v4031_v7 = vpop.f32.mrf.mxu3  ;;  %v4590_v55 = vpop.f32.mrf.mxu0  ;;  %v4343_v23 = vadd.f32 %v4299_v21, %v3992_v36 }
 0xc9a   :  { %v4653_v0 = vadd.f32 %v4590_v55, %v4342_v43  ;;  %v4032_v22 = vadd.f32 %v4031_v7, %v3937_v12 }
 0xc9b   :  { %v6068_v53 = vsel %vm273_vm8, %v5904_v48, %v6024_v13  ;;  %v6069_v47 = vsel %vm273_vm8, %v5905_v28, %v6025_v14  ;;  %v13071_v14 = vadd.f32 1.0, %v6721_v11  ;;  %v4946_v28 = vadd.f32 %v4921_v16, %v4655_v59 }
 0xc9c   :  { %6133 = vmatpush.msrb.mxu2 %v6068_v53  ;;  %6153 = vmatpush.msrb.mxu1 %v6069_v47  ;;  %v4654_v12 = vadd.f32 %v4610_v50, %v4343_v23 }
 0xc9d   :  { %6595 = vmatmul.msk.f32.vlgmr.msrb.gmra.mxu2 %vm3845_vm15, %v3378_v8  ;;  %6597 = vmatmul.msk.f32.vlgmr.msrb.gmra.mxu1 %vm3845_vm15, %v3378_v8  ;;  %v6479_v8 = vmul.f32 -1.442695, %v14786_v44  ;;  %v5257_v20 = vadd.f32 %v5232_v3, %v4946_v28  ;;  %v2891_v40 = vand.u32 2147483647, %v13071_v14  ;;  %vm2887_vm5 = vweird.f32 %v13071_v14 }
 0xc9f   :  { %6722 = vpow2.f32 %v6479_v8  ;;  %v6184_v2 = vpop.permute.xlu1 %6183  ;;  %vm13122_vm15 = vcmp.eq.f32.partialorder %v2891_v40, 8.507059e+37 }
 0xca0   :  { %v4901_v42 = vpop.f32.mrf.mxu2  ;;  %6724 = vpow2.f32 %v6477_v60  ;;  %v5544_v32 = vpop.f32.mrf.mxu1  ;;  %v13069_v52 = vperm.slane %v6184_v2, 0 }
 0xca1   :  { %v4339_v62 = vpop.f32.mrf.mxu3  ;;  %v4881_v49 = vpop.f32.mrf.mxu0  ;;  %6726 = vrcp.f32 %v13066_v33  ;;  %v5569_v21 = vadd.f32 %v5544_v32, %v5257_v20  ;;  %v14801_v32 = vld [vmem:[#allocation61_spill] sm:$0xff] }
 0xca2   :  { %v4944_v57 = vadd.f32 %v4881_v49, %v4653_v0  ;;  %v4345_v25 = vadd.f32 %v4339_v62, %v4032_v22  ;;  %6728 = vrcp.f32 %v13071_v14  ;;  %v4945_v62 = vadd.f32 %v4901_v42, %v4654_v12 }
 0xca3   :  { %v2923_v22 = vand.u32 2147483648, %v13066_v33 }
 0xca5   :  { %v6723_v6 = vpop.eup %6722  ;;  %v2924_v2 = vor.u32 1.1754944e-38, %v2923_v22  ;;  %v14798_v22 = vld [vmem:[#allocation3_spill] sm:$0xff] }
 0xca6   :  { %v6725_v18 = vpop.eup %6724  ;;  %v13073_v48 = vadd.f32 1.0, %v6723_v6 }
 0xca7   :  { %v13075_v35 = vadd.f32 1.0, %v6725_v18  ;;  %v13077_v15 = vpop.eup %6726 }
 0xca8   :  { %v5212_v54 = vpop.f32.mrf.mxu2  ;;  %6730 = vrcp.f32 %v13073_v48  ;;  %v2913_v29 = vmul.f32 %v13077_v15, %v13066_v33  ;;  %v13085_v26 = vpop.eup %6728  ;;  %vm2918_vm8 = vweird.f32 %v13077_v15  ;;  %vm2932_vm14 = vweird.f32 %v13073_v48 }
 0xca9   :  { %v4650_v58 = vpop.f32.mrf.mxu3  ;;  %v5192_v17 = vpop.f32.mrf.mxu0  ;;  %6732 = vrcp.f32 %v13075_v35  ;;  %v2883_v43 = vmul.f32 %v13085_v26, %v13071_v14  ;;  %vm13111_vm7 = vmor %vm2917_vm2, %vm2918_vm8  ;;  %v2936_v28 = vand.u32 2147483647, %v13073_v48  ;;  %vm2888_vm1 = vweird.f32 %v13085_v26 }
 0xcaa   :  { %v5255_v30 = vadd.f32 %v5192_v17, %v4944_v57  ;;  %v4656_v10 = vadd.f32 %v4650_v58, %v4345_v25  ;;  %v2914_v58 = vsub.f32 1.0, %v2913_v29  ;;  %v5256_v17 = vadd.f32 %v5212_v54, %v4945_v62  ;;  %vm13141_vm4 = vmor %vm2887_vm5, %vm2888_vm1 }
 0xcab   :  { %v2884_v8 = vsub.f32 1.0, %v2883_v43  ;;  %v2938_v12 = vand.u32 2147483648, %v13073_v48  ;;  %vm2902_vm12 = vweird.f32 %v13075_v35  ;;  %v2906_v43 = vand.u32 2147483647, %v13075_v35 }
 0xcac   :  { %v2915_v42 = vmul.f32 %v13077_v15, %v2914_v58  ;;  %v13150_v58 = vpop.permute.xlu2 %6289 }
 0xcad   :  { %v2885_v11 = vmul.f32 %v13085_v26, %v2884_v8  ;;  %vm2907_vm5 = vcmp.eq.f32.partialorder %v2906_v43, 8.507059e+37 }
 0xcae   :  { %v13087_v50 = vpop.eup %6730  ;;  %v13104_v61 = vadd.f32 %v13077_v15, %v2915_v42 }
 0xcaf   :  { %v13089_v34 = vpop.eup %6732  ;;  %v2928_v57 = vmul.f32 %v13087_v50, %v13073_v48  ;;  %vm2933_vm0 = vweird.f32 %v13087_v50 }
 0xcb0   :  { %v5524_v31 = vpop.f32.mrf.mxu2  ;;  %v2898_v44 = vmul.f32 %v13089_v34, %v13075_v35  ;;  %v2920_v6 = vsel %vm13111_vm7, %v13077_v15, %v13104_v61  ;;  %vm2903_vm9 = vweird.f32 %v13089_v34  ;;  %vm13159_vm6 = vmor %vm2932_vm14, %vm2933_vm0  ;;  %vm2937_vm7 = vcmp.eq.f32.partialorder %v2936_v28, 8.507059e+37 }
 0xcb1   :  { %v4941_v24 = vpop.f32.mrf.mxu3  ;;  %v5504_v41 = vpop.f32.mrf.mxu0  ;;  %v2929_v25 = vsub.f32 1.0, %v2928_v57  ;;  %vm13170_vm10 = vmor %vm2902_vm12, %vm2903_vm9 }
 0xcb2   :  { %v5567_v5 = vadd.f32 %v5504_v41, %v5255_v30  ;;  %v4947_v53 = vadd.f32 %v4941_v24, %v4656_v10  ;;  %v2893_v30 = vand.u32 2147483648, %v13071_v14  ;;  %v2899_v36 = vsub.f32 1.0, %v2898_v44 }
 0xcb4   :  { %v2894_v23 = vor.u32 1.1754944e-38, %v2893_v30  ;;  %v14799_v30 = vld [vmem:[#allocation75_spill] sm:$0xff] }
 0xcb9   :  { %v5252_v19 = vpop.f32.mrf.mxu3 }
 0xcba   :  { %v5258_v46 = vadd.f32 %v5252_v19, %v4947_v53  ;;  %v5568_v19 = vadd.f32 %v5524_v31, %v5256_v17  ;;  %v2900_v53 = vmul.f32 %v13089_v34, %v2899_v36  ;;  %v14800_v36 = vld [vmem:[#allocation2_spill] sm:$0xff] }
 0xcbc   :  { %v5856_v55 = vpop.f32.mrf.mxu1  ;;  %v2901_v62 = vadd.f32 %v13089_v34, %v2900_v53 }
 0xcbd   :  { %v5881_v27 = vadd.f32 %v5856_v55, %v5569_v21  ;;  %v6269_v21 = vpop.permute.xlu0 %6268 }
 0xcc1   :  { %v5564_v9 = vpop.f32.mrf.mxu3 }
 0xcc2   :  { %v5570_v49 = vadd.f32 %v5564_v9, %v5258_v46  ;;  %v2921_v9 = vand.u32 2147483647, %v13066_v33 }
 0xcc4   :  { %vm2922_vm2 = vcmp.eq.f32.partialorder %v2921_v9, 8.507059e+37 }
 0xcc8   :  { %v5836_v16 = vpop.f32.mrf.mxu2 }
 0xcc9   :  { %v5880_v54 = vadd.f32 %v5836_v16, %v5568_v19  ;;  %v2939_v19 = vor.u32 1.1754944e-38, %v2938_v12 }
 0xcca   :  { %v5816_v4 = vpop.f32.mrf.mxu0 }
 0xccb   :  { %v5879_v37 = vadd.f32 %v5816_v4, %v5567_v5 }
 0xcd0   :  { %v5876_v56 = vpop.f32.mrf.mxu3 }
 0xcd1   :  { %v5882_v1 = vadd.f32 %v5876_v56, %v5570_v49 }
 0xd0c   :  { %v6115_v13 = vpop.f32.mrf.mxu0 }
 0xd0d   :  { %v6178_v47 = vadd.f32 %v6115_v13, %v5879_v37  ;;  %v2930_v13 = vmul.f32 %v13087_v50, %v2929_v25 }
 0xd0f   :  { %v6187_v63 = vadd.f32 %v13069_v52, %v6178_v47  ;;  %v2886_v47 = vadd.f32 %v13085_v26, %v2885_v11  ;;  %v2931_v56 = vadd.f32 %v13087_v50, %v2930_v13 }
 0xd11   :  { %v6600_v7 = vmul.f32 -1.442695, %v6187_v63  ;;  %v2890_v17 = vsel %vm13141_vm4, %v13085_v26, %v2886_v47  ;;  %v2935_v42 = vsel %vm13159_vm6, %v13087_v50, %v2931_v56  ;;  %v13190_v50 = vsel %vm2922_vm2, %v2924_v2, %v2920_v6  ;;  %v13210_v6 = vpop.permute.xlu2 %6333 }
 0xd13   :  { %6734 = vpow2.f32 %v6600_v7 }
 0xd19   :  { %v6735_v24 = vpop.eup %6734 }
 0xd1a   :  { %v13094_v41 = vadd.f32 1.0, %v6735_v24  ;;  %v6155_v0 = vpop.f32.mrf.mxu1  ;;  %v6175_v3 = vpop.f32.mrf.mxu3 }
 0xd1b   :  { %v6180_v45 = vadd.f32 %v6155_v0, %v5881_v27  ;;  %v6181_v38 = vadd.f32 %v6175_v3, %v5882_v1  ;;  %v13174_v27 = vperm.slane %v6269_v21, 0  ;;  %v2895_v0 = vsel %vm13122_vm15, %v2894_v23, %v2890_v17 }
 0xd1c   :  { %6736 = vrcp.f32 %v13094_v41  ;;  %v6218_v63 = vand.u32 2147483648, %v13094_v41  ;;  %v6216_v7 = vand.u32 2147483647, %v13094_v41  ;;  %vm6212_vm3 = vweird.f32 %v13094_v41 }
 0xd1d   :  { %v6189_v51 = vadd.f32 %v13069_v52, %v6180_v45  ;;  %v6190_v60 = vadd.f32 %v13069_v52, %v6181_v38  ;;  %v13185_v38 = vpop.permute.xlu1 %6301 }
 0xd1e   :  { %v6219_v26 = vor.u32 1.1754944e-38, %v6218_v63  ;;  %vm6217_vm8 = vcmp.eq.f32.partialorder %v6216_v7, 8.507059e+37  ;;  %v6304_v40 = vmul.f32 %v13185_v38, %v14798_v22 }
 0xd1f   :  { %v6602_v4 = vmul.f32 -1.442695, %v6189_v51  ;;  %v6603_v39 = vmul.f32 -1.442695, %v6190_v60  ;;  %v6320_v60 = vperm.slane %v2895_v0, 1 }
 0xd20   :  { %v6135_v5 = vpop.f32.mrf.mxu2 }
 0xd21   :  { %6738 = vpow2.f32 %v6602_v4  ;;  %v6179_v59 = vadd.f32 %v6135_v5, %v5880_v54  ;;  %v6308_v54 = vmul.f32 %v13185_v38, %v14799_v30  ;;  %v14807_v30 = vld [vmem:[#allocation16_spill] sm:$0xff] }
 0xd22   :  { %v6737_v10 = vpop.eup %6736  ;;  %6740 = vpow2.f32 %v6603_v39 }
 0xd23   :  { %v6208_v33 = vmul.f32 %v6737_v10, %v13094_v41  ;;  %v6188_v37 = vadd.f32 %v13069_v52, %v6179_v59  ;;  %v2908_v52 = vand.u32 2147483648, %v13075_v35  ;;  %vm6213_vm11 = vweird.f32 %v6737_v10 }
 0xd24   :  { %vm6214_vm13 = vmor %vm6212_vm3, %vm6213_vm11  ;;  %v2905_v35 = vsel %vm13170_vm10, %v13089_v34, %v2901_v62  ;;  %v13194_v34 = vsel %vm2937_vm7, %v2939_v19, %v2935_v42 }
 0xd25   :  { %v6209_v31 = vsub.f32 1.0, %v6208_v33  ;;  %v6601_v15 = vmul.f32 -1.442695, %v6188_v37  ;;  %v2909_v45 = vor.u32 1.1754944e-38, %v2908_v52 }
 0xd27   :  { %v6739_v20 = vpop.eup %6738  ;;  %v6210_v46 = vmul.f32 %v6737_v10, %v6209_v31  ;;  %6742 = vpow2.f32 %v6601_v15  ;;  %v13192_v8 = vsel %vm2907_vm5, %v2909_v45, %v2905_v35  ;;  %v6765_v35 = vld [vmem:[%s13836_s26 + $0x20] sm:$0xff] }
 0xd28   :  { %v6741_v29 = vpop.eup %6740  ;;  %v13148_v49 = vadd.f32 1.0, %v6739_v20  ;;  %v6321_v45 = vperm.slane %v13192_v8, 1 }
 0xd29   :  { %v6211_v16 = vadd.f32 %v6737_v10, %v6210_v46  ;;  %v13164_v24 = vadd.f32 1.0, %v6741_v29 }
 0xd2a   :  { %6744 = vrcp.f32 %v13148_v49  ;;  %vm6242_vm15 = vweird.f32 %v13148_v49  ;;  %v6246_v25 = vand.u32 2147483647, %v13148_v49  ;;  %v6248_v11 = vand.u32 2147483648, %v13148_v49 }
 0xd2b   :  { %v6215_v1 = vsel %vm6214_vm13, %v6737_v10, %v6211_v16  ;;  %6746 = vrcp.f32 %v13164_v24  ;;  %vm6257_vm14 = vweird.f32 %v13164_v24  ;;  %v6261_v10 = vand.u32 2147483647, %v13164_v24 }
 0xd2c   :  { %v6220_v41 = vsel %vm6217_vm8, %v6219_v26, %v6215_v1  ;;  %v6263_v13 = vand.u32 2147483648, %v13164_v24  ;;  %vm13216_vm0 = vcmp.eq.f32.partialorder %v6246_v25, 8.507059e+37  ;;  %v6249_v7 = vor.u32 1.1754944e-38, %v6248_v11  ;;  %v6764_v26 = vld [vmem:[%s13836_s26] sm:$0xff]  ;;  %v14809_v25 = vld [vmem:[#allocation27_spill] sm:$0xff] }
 0xd2d   :  { %v6743_v3 = vpop.eup %6742  ;;  %v6272_v57 = vmul.f32 %v13174_v27, %v6220_v41  ;;  %vm13225_vm9 = vcmp.eq.f32.partialorder %v6261_v10, 8.507059e+37 }
 0xd2e   :  { %v13188_v44 = vadd.f32 1.0, %v6743_v3  ;;  %v6264_v21 = vor.u32 1.1754944e-38, %v6263_v13 }
 0xd2f   :  { %v6276_v51 = vperm.slane %v6272_v57, 0  ;;  %v6322_v57 = vperm.slane %v13190_v50, 1 }
 0xd30   :  { %v6745_v61 = vpop.eup %6744  ;;  %6748 = vrcp.f32 %v13188_v44  ;;  %v6231_v43 = vand.u32 2147483647, %v13188_v44  ;;  %v6233_v42 = vand.u32 2147483648, %v13188_v44  ;;  %vm6227_vm12 = vweird.f32 %v13188_v44 }
 0xd31   :  { %v6747_v4 = vpop.eup %6746  ;;  %v6238_v39 = vmul.f32 %v6745_v61, %v13148_v49  ;;  %v6280_v5 = vmul.f32 %v6276_v51, %v14800_v36  ;;  %v6284_v9 = vmul.f32 %v6276_v51, %v14801_v32  ;;  %vm6243_vm1 = vweird.f32 %v6745_v61 }
 0xd32   :  { %v6253_v59 = vmul.f32 %v6747_v4, %v13164_v24  ;;  %vm6258_vm11 = vweird.f32 %v6747_v4  ;;  %vm6244_vm4 = vmor %vm6242_vm15, %vm6243_vm1  ;;  %v6323_v51 = vperm.slane %v13194_v34, 1  ;;  %v6234_v50 = vor.u32 1.1754944e-38, %v6233_v42 }
 0xd33   :  { %v6239_v2 = vsub.f32 1.0, %v6238_v39  ;;  %v6292_v18 = vmul.f32 %v13150_v58, %v6280_v5  ;;  %v6296_v23 = vmul.f32 %v13150_v58, %v6284_v9  ;;  %v6324_v33 = vmul.f32 %v6320_v60, %v6280_v5  ;;  %vm6259_vm6 = vmor %vm6257_vm14, %vm6258_vm11  ;;  %v14810_v5 = vld [vmem:[#allocation91_spill] sm:$0xff] }
 0xd34   :  { %v6254_v37 = vsub.f32 1.0, %v6253_v59  ;;  %v6328_v28 = vmul.f32 %v6320_v60, %v6284_v9  ;;  %v14806_v60 = vld [vmem:[#allocation32_spill] sm:$0xff]  ;;  %vm6232_vm10 = vcmp.eq.f32.partialorder %v6231_v43, 8.507059e+37  ;;  %v14811_v9 = vld [vmem:[#allocation33_spill] sm:$0xff]  ;;  %v14817_v43 = vld [vmem:[#allocation34_spill] sm:$0xff] }
 0xd35   :  { %v6240_v53 = vmul.f32 %v6745_v61, %v6239_v2  ;;  %v6312_v47 = vadd.f32 %v6304_v40, %v6292_v18  ;;  %v6316_v31 = vadd.f32 %v6308_v54, %v6296_v23  ;;  %v6336_v15 = vmul.f32 %v13210_v6, %v6324_v33  ;;  %v14812_v59 = vld [vmem:[#allocation24_spill] sm:$0xff]  ;;  %v14813_v2 = vld [vmem:[#allocation85_spill] sm:$0xff] }
 0xd36   :  { %v6749_v12 = vpop.eup %6748  ;;  %v6255_v63 = vmul.f32 %v6747_v4, %v6254_v37  ;;  %v6340_v20 = vmul.f32 %v13210_v6, %v6328_v28  ;;  %v6307_v54 = vmul.f32 %v13185_v38, %v14807_v30  ;;  %v6311_v11 = vmul.f32 %v13185_v38, %v14811_v9 }
 0xd37   :  { %v6241_v46 = vadd.f32 %v6745_v61, %v6240_v53  ;;  %v6223_v29 = vmul.f32 %v6749_v12, %v13188_v44  ;;  %v6344_v55 = vadd.f32 %v6336_v15, %v6312_v47  ;;  %vm6228_vm3 = vweird.f32 %v6749_v12 }
 0xd38   :  { %v6256_v56 = vadd.f32 %v6747_v4, %v6255_v63  ;;  %v6348_v17 = vadd.f32 %v6340_v20, %v6316_v31  ;;  %vm6229_vm13 = vmor %vm6227_vm12, %vm6228_vm3 }
 0xd39   :  { %v6245_v14 = vsel %vm6244_vm4, %v6745_v61, %v6241_v46  ;;  %v6224_v16 = vsub.f32 1.0, %v6223_v29  ;;  %v6352_v49 = vadd.f32 %v6764_v26, %v6344_v55  ;;  %v6306_v61 = vmul.f32 %v13185_v38, %v14806_v60  ;;  %v14814_v29 = vld [vmem:[#allocation78_spill] sm:$0xff] }
 0xd3a   :  { %v6250_v48 = vsel %vm13216_vm0, %v6249_v7, %v6245_v14  ;;  %v6260_v1 = vsel %vm6259_vm6, %v6747_v4, %v6256_v56  ;;  %v6356_v24 = vadd.f32 %v6765_v35, %v6348_v17  ;;  %v14808_v4 = vld [vmem:[#allocation49_spill] sm:$0xff]  ;;  %v6309_v26 = vmul.f32 %v13185_v38, %v14817_v43 }
 0xd3b   :  { %v6274_v41 = vmul.f32 %v13174_v27, %v6250_v48  ;;  %v6265_v0 = vsel %vm13225_vm9, %v6264_v21, %v6260_v1  ;;  %v6225_v3 = vmul.f32 %v6749_v12, %v6224_v16  ;;  %6360 = vst [vmem:[%s13339_s17] sm:$0xff] %v6352_v49  ;;  %v6310_v8 = vmul.f32 %v13185_v38, %v14808_v4  ;;  %v14815_v56 = vld [vmem:[#allocation57_spill] sm:$0xff] }
 0xd3c   :  { %v6275_v19 = vmul.f32 %v13174_v27, %v6265_v0  ;;  %6364 = vst [vmem:[%s13339_s17 + $0x20] sm:$0xff] %v6356_v24  ;;  %v14816_v14 = vld [vmem:[#allocation89_spill] sm:$0xff] }
 0xd3d   :  { %v6226_v22 = vadd.f32 %v6749_v12, %v6225_v3  ;;  %v6278_v40 = vperm.slane %v6274_v41, 0  ;;  %v6305_v16 = vmul.f32 %v13185_v38, %v14816_v14  ;;  %v6766_v3 = vld [vmem:[%s13836_s26 + $0x10] sm:$0xff] }
 0xd3e   :  { %v6279_v34 = vperm.slane %v6275_v19, 0 }
 0xd3f   :  { %v6230_v39 = vsel %vm6229_vm13, %v6749_v12, %v6226_v22  ;;  %v6282_v36 = vmul.f32 %v6278_v40, %v14809_v25  ;;  %v6286_v32 = vmul.f32 %v6278_v40, %v14810_v5  ;;  %v6769_v40 = vld [vmem:[%s13836_s26 + $0x38] sm:$0xff] }
 0xd40   :  { %v6235_v44 = vsel %vm6232_vm10, %v6234_v50, %v6230_v39  ;;  %v6283_v10 = vmul.f32 %v6279_v34, %v14812_v59  ;;  %v6287_v18 = vmul.f32 %v6279_v34, %v14813_v2  ;;  %v6771_v50 = vld [vmem:[%s13836_s26 + $0x28] sm:$0xff] }
 0xd41   :  { %v6273_v23 = vmul.f32 %v13174_v27, %v6235_v44  ;;  %v6294_v33 = vmul.f32 %v13150_v58, %v6282_v36  ;;  %v6298_v37 = vmul.f32 %v13150_v58, %v6286_v32  ;;  %v6326_v13 = vmul.f32 %v6322_v57, %v6282_v36 }
 0xd42   :  { %v6295_v28 = vmul.f32 %v13150_v58, %v6283_v10  ;;  %v6299_v53 = vmul.f32 %v13150_v58, %v6287_v18  ;;  %v6327_v47 = vmul.f32 %v6323_v51, %v6283_v10  ;;  %v6330_v31 = vmul.f32 %v6322_v57, %v6286_v32  ;;  %v6767_v57 = vld [vmem:[%s13836_s26 + $0x18] sm:$0xff] }
 0xd43   :  { %v6277_v15 = vperm.slane %v6273_v23, 0  ;;  %v6314_v12 = vadd.f32 %v6306_v61, %v6294_v33  ;;  %v6318_v52 = vadd.f32 %v6310_v8, %v6298_v37  ;;  %v6331_v63 = vmul.f32 %v6323_v51, %v6287_v18 }
 0xd44   :  { %v6315_v20 = vadd.f32 %v6307_v54, %v6295_v28  ;;  %v6319_v46 = vadd.f32 %v6311_v11, %v6299_v53  ;;  %v6338_v7 = vmul.f32 %v13210_v6, %v6326_v13  ;;  %v6339_v27 = vmul.f32 %v13210_v6, %v6327_v47 }
 0xd45   :  { %v6281_v55 = vmul.f32 %v6277_v15, %v14814_v29  ;;  %v6285_v62 = vmul.f32 %v6277_v15, %v14815_v56  ;;  %v6342_v21 = vmul.f32 %v13210_v6, %v6330_v31  ;;  %v6343_v17 = vmul.f32 %v13210_v6, %v6331_v63 }
 0xd46   :  { %v6346_v49 = vadd.f32 %v6338_v7, %v6314_v12  ;;  %v6347_v48 = vadd.f32 %v6339_v27, %v6315_v20 }
 0xd47   :  { %v6293_v1 = vmul.f32 %v13150_v58, %v6281_v55  ;;  %v6297_v42 = vmul.f32 %v13150_v58, %v6285_v62  ;;  %v6325_v35 = vmul.f32 %v6321_v45, %v6281_v55  ;;  %v6329_v24 = vmul.f32 %v6321_v45, %v6285_v62  ;;  %v6768_v45 = vld [vmem:[%s13836_s26 + $0x30] sm:$0xff] }
 0xd48   :  { %v6350_v41 = vadd.f32 %v6342_v21, %v6318_v52  ;;  %v6351_v0 = vadd.f32 %v6343_v17, %v6319_v46  ;;  %v6354_v19 = vadd.f32 %v6766_v3, %v6346_v49  ;;  %v6355_v38 = vadd.f32 %v6767_v57, %v6347_v48 }
 0xd49   :  { %v6313_v51 = vadd.f32 %v6305_v16, %v6293_v1  ;;  %v6317_v60 = vadd.f32 %v6309_v26, %v6297_v42  ;;  %v6337_v61 = vmul.f32 %v13210_v6, %v6325_v35  ;;  %v6341_v58 = vmul.f32 %v13210_v6, %v6329_v24  ;;  %v6770_v6 = vld [vmem:[%s13836_s26 + $0x8] sm:$0xff] }
 0xd4a   :  { %v6358_v22 = vadd.f32 %v6768_v45, %v6350_v41  ;;  %v6359_v30 = vadd.f32 %v6769_v40, %v6351_v0  ;;  %6362 = vst [vmem:[%s13339_s17 + $0x10] sm:$0xff] %v6354_v19 }
 0xd4b   :  { %v6345_v54 = vadd.f32 %v6337_v61, %v6313_v51  ;;  %v6349_v4 = vadd.f32 %v6341_v58, %v6317_v60  ;;  %6363 = vst [vmem:[%s13339_s17 + $0x18] sm:$0xff] %v6355_v38 }
 0xd4c   :  { %6366 = vst [vmem:[%s13339_s17 + $0x30] sm:$0xff] %v6358_v22 }
 0xd4d   :  { %v6353_v8 = vadd.f32 %v6770_v6, %v6345_v54  ;;  %v6357_v34 = vadd.f32 %v6771_v50, %v6349_v4  ;;  %6367 = vst [vmem:[%s13339_s17 + $0x38] sm:$0xff] %v6359_v30 }
 0xd4f   :  { %6361 = vst [vmem:[%s13339_s17 + $0x8] sm:$0xff] %v6353_v8 }
 0xd50   :  { %6365 = vst [vmem:[%s13339_s17 + $0x28] sm:$0xff] %v6357_v34 }

</bundles_post_ra>
